<compile_context>
chip_gen: v6e
topology: v6e:2x2x1
jax: 0.10.0
libtpu: 0.0.40
codegen_flags: <defaults>
</compile_context>

<pallas_src>
import jax
import jax.numpy as jnp
import numpy as np
from jax.experimental import pallas as pl
from jax.experimental.pallas import tpu as pltpu

# ----------------------------- module "init" ---------------------------------
NUM_CLASSES = 8
# anchors arg of YOLOv3Loss.__init__, shaped so that num_anchors = len(anchors[0]) = 3
# and self.anchors[idx // 3, idx % 3] == anchors.reshape(-1, 2)[idx].
ANCHORS = jnp.array([[[10.0, 13.0], [16.0, 30.0], [33.0, 23.0]]], dtype=jnp.float32)
NUM_ANCHORS = ANCHORS.shape[1]
GRID = 13                                   # hard-coded "13" in the reference forward
NUM_PRIORS = GRID * GRID * NUM_ANCHORS      # 507
P_PAD = 512                                 # priors padded to a lane-friendly 512
OBJ_SCALE, NOOBJ_SCALE, CLS_SCALE, BOX_SCALE = 1.0, 100.0, 1.0, 5.0
# TODO(synk): `strides` and `anchor_softmax` are stored in __init__ but never used in
# forward(), so they are omitted here.

F_DIM = 5 + NUM_CLASSES                     # pred features per prior (13)
F_PAD = 16                                  # feature rows padded to a sublane-aligned 16
OBJ_COLS = 8                                # prior, tx, ty, tw, th, cls, write, valid
OUT_LANES = 128                             # lane-dense output block (losses in lanes 0..3)


def _round_up(x, m):
    return ((x + m - 1) // m) * m


def _softplus(x):
    # log(1 + e^x) = max(x, 0) + log(1 + e^{-|x|}); one exp + one log per element.
    return jnp.maximum(x, 0.0) + jnp.log(1.0 + jnp.exp(-jnp.abs(x)))


# ----------------------------- Pallas kernel ---------------------------------
def yolo_loss_kernel(pred_ref, od_ref, bi_ref, out_ref):
    """One grid step = TB batch elements.

    pred_ref: (TB, F_PAD, P_PAD)  VMEM -- priors on lanes, rows 0-3 box, 4 conf, 8-15 classes
    od_ref  : (TB, MAX_OBJ, 8)    VMEM -- compact per-object records
    bi_ref  : (TB, 8)             VMEM -- [noobj_target, batch_valid, 0...]
    out_ref : (TB, 128)           VMEM -- lanes 0..3 = (box, obj, noobj, cls)
    """
    f32 = jnp.float32
    pred = pred_ref[...]                               # (TB, 16, P)
    od = od_ref[...]                                   # (TB, M, 8)
    bi = bi_ref[...]                                   # (TB, 8)
    tb = pred.shape[0]

    lane_i = jax.lax.broadcasted_iota(jnp.int32, (1, 1, P_PAD), 2)
    lane_valid = (lane_i < NUM_PRIORS).astype(f32)     # (1, 1, P)
    lane = lane_i.astype(f32)

    prior = od[:, :, 0:1]                              # (TB, M, 1)
    write = od[:, :, 6:7]                              # last-writer flag
    hit = (lane == prior).astype(f32)                  # (TB, M, P)
    eq_w = hit * write                                 # unique writer per prior

    obj = jnp.sum(eq_w, axis=1, keepdims=True)         # (TB, 1, P) in {0, 1}

    # tbox on the VPU: tx/ty/tw/th are real-valued; keep full f32 (an MXU pass
    # would bf16-round them).  Only 4 small broadcast-multiply + reduce passes.
    tbox = jnp.concatenate(
        [jnp.sum(eq_w * od[:, :, c:c + 1], axis=1, keepdims=True) for c in (1, 2, 3, 4)],
        axis=1)                                        # (TB, 4, P)

    # tcls on the MXU: one batched K=MAX_OBJ contraction of exact {0,1}
    # coefficients (f32 accumulate -> exact), clipped to 1 to match the
    # reference's repeated tcls[prior, cls] = 1 assignments.
    cls_row = od[:, :, 5][:, None, :]                  # (TB, 1, M)
    valid_row = od[:, :, 7][:, None, :]                # (TB, 1, M)
    cls_iota = jax.lax.broadcasted_iota(jnp.int32, (1, NUM_CLASSES, 1), 1).astype(f32)
    coef = valid_row * (cls_row == cls_iota).astype(f32)          # (TB, C, M), exact {0,1}
    tcls_raw = jnp.einsum('bcm,bmp->bcp', coef, hit,
                          preferred_element_type=jnp.float32)     # (TB, C, P)
    tcls = jnp.minimum(tcls_raw, 1.0)

    noobj_tgt = bi[:, 0:1, None]                       # (TB,1,1): 0 normally, 1 if no valid targets
    batch_valid = bi[:, 1:2, None]                     # (TB,1,1): 0 for padded batch rows
    noobj = lane_valid * (1.0 - obj) * batch_valid     # (TB, 1, P)

    pbox = pred[:, 0:4, :]                             # raw box preds (no sigmoid, as in reference)
    zconf = pred[:, 4:5, :]                            # confidence logits
    zcls = pred[:, 8:8 + NUM_CLASSES, :]               # class logits (sublane-aligned slice)

    # Logit-space BCE (exact; PyTorch's clamp(log, -100) only differs for |z| >~ 100).
    sp_neg = _softplus(-zconf)                         # -log(sigmoid(z))
    sp_pos = sp_neg + zconf                            # -log(1 - sigmoid(z))

    box_v = BOX_SCALE * jnp.sum(obj * (pbox - tbox) ** 2, axis=1, keepdims=True)     # (TB,1,P)
    obj_v = OBJ_SCALE * (obj * sp_neg)                                               # (TB,1,P)
    noobj_v = NOOBJ_SCALE * noobj * (noobj_tgt * sp_neg + (1.0 - noobj_tgt) * sp_pos)
    cls_v = CLS_SCALE * jnp.sum(obj * (_softplus(zcls) - zcls * tcls),
                                axis=1, keepdims=True)                               # (TB,1,P)

    stacked = jnp.concatenate([box_v, obj_v, noobj_v, cls_v], axis=1)                # (TB,4,P)
    sums = jnp.sum(stacked, axis=2)                                                  # (TB,4)
    # Lane-dense store: pad to 128 lanes so the epilogue uses unmasked vst.
    out_ref[...] = jnp.concatenate([sums, jnp.zeros((tb, OUT_LANES - 4), f32)], axis=1)


def _pallas_per_batch_losses(pred16, objdata, binfo, tb):
    bp = pred16.shape[0]
    max_obj = objdata.shape[1]
    return pl.pallas_call(
        yolo_loss_kernel,
        out_shape=jax.ShapeDtypeStruct((bp, OUT_LANES), jnp.float32),
        grid=(bp // tb,),
        in_specs=[
            pl.BlockSpec((tb, F_PAD, P_PAD), lambda i: (i, 0, 0)),
            pl.BlockSpec((tb, max_obj, OBJ_COLS), lambda i: (i, 0, 0)),
            pl.BlockSpec((tb, OBJ_COLS), lambda i: (i, 0)),
        ],
        out_specs=pl.BlockSpec((tb, OUT_LANES), lambda i: (i, 0)),
        compiler_params=pltpu.CompilerParams(dimension_semantics=("parallel",)),
    )(pred16, objdata, binfo)


# ------------------------- target construction (glue) ------------------------
def _build_objdata_single(target):
    """target: (MAX_OBJ, 6) -> (objdata (MAX_OBJ, 8), binfo (8,)).

    Tiny O(MAX_OBJ) prep: anchor IoU / best anchor, prior index, box targets,
    last-writer flag for duplicate priors.  Dense per-prior tensors are built
    inside the kernel from this compact record.
    """
    anchors_flat = ANCHORS.reshape(-1, 2)                    # (A, 2)
    valid = target[:, 4] > 0
    has_valid = jnp.any(valid)

    # anchor/target IoU with 0-centered wh boxes; target wh scaled by 1000 (as in reference)
    aw, ah = anchors_flat[:, 0], anchors_flat[:, 1]
    tw_s, th_s = target[:, 2] * 1000.0, target[:, 3] * 1000.0
    inter = jnp.minimum(aw[:, None], tw_s[None, :]) * jnp.minimum(ah[:, None], th_s[None, :])
    union = (aw * ah)[:, None] + (tw_s * th_s)[None, :] - inter
    iou = inter / (union + 1e-16)                            # (A, T)
    best_a = jnp.argmax(iou, axis=0)                         # (T,)

    gx = (target[:, 0] * GRID).astype(jnp.int32)             # int() truncation (positive coords)
    gy = (target[:, 1] * GRID).astype(jnp.int32)
    prior = gy * GRID * NUM_ANCHORS + gx * NUM_ANCHORS + best_a   # (T,)

    tx = target[:, 0] * GRID - gx.astype(jnp.float32)
    ty = target[:, 1] * GRID - gy.astype(jnp.float32)
    tw = jnp.log(target[:, 2] * GRID / anchors_flat[best_a, 0] + 1e-16)
    th = jnp.log(target[:, 3] * GRID / anchors_flat[best_a, 1] + 1e-16)
    cls = target[:, 5]

    # last-write-wins for duplicate prior indices (matches the reference loop order)
    m = target.shape[0]
    order = jnp.arange(m)
    later_same = ((prior[None, :] == prior[:, None])
                  & valid[None, :] & (order[None, :] > order[:, None]))
    write = valid & jnp.logical_not(jnp.any(later_same, axis=1))

    vf = valid.astype(jnp.float32)
    wf = write.astype(jnp.float32)
    prior_f = jnp.where(valid, prior.astype(jnp.float32), -1.0)
    tx = jnp.where(valid, tx, 0.0)
    ty = jnp.where(valid, ty, 0.0)
    tw = jnp.where(valid, tw, 0.0)
    th = jnp.where(valid, th, 0.0)
    cls = jnp.where(valid, cls, -1.0)

    objdata = jnp.stack([prior_f, tx, ty, tw, th, cls, wf, vf], axis=1)   # (M, 8)
    # reference quirk: with zero valid targets the noobj BCE target is 1 (not 0)
    noobj_tgt = jnp.where(has_valid, 0.0, 1.0)
    binfo = jnp.concatenate([noobj_tgt[None].astype(jnp.float32),
                             jnp.ones((1,), jnp.float32),
                             jnp.zeros((OBJ_COLS - 2,), jnp.float32)], axis=0)
    return objdata, binfo


def yolov3_loss(predictions, targets):
    """predictions: (B, NUM_PRIORS, 5+C) f32; targets: (B, MAX_OBJ, 6) f32."""
    predictions = predictions.astype(jnp.float32)
    targets = targets.astype(jnp.float32)
    B, num_priors, f_dim = predictions.shape
    assert num_priors == NUM_PRIORS and f_dim == F_DIM

    objdata, binfo = jax.vmap(_build_objdata_single)(targets)    # (B,M,8), (B,8)

    # priors -> lanes; feature rows reordered/padded to a sublane-aligned 16:
    #   rows 0-3 = box, 4 = conf, 5-7 = zero pad, 8-15 = classes
    # so the class slice sits on an 8-sublane tile boundary inside the kernel.
    pred_t = jnp.transpose(predictions, (0, 2, 1))               # (B, 13, 507)
    pred_t = jnp.pad(pred_t, ((0, 0), (0, 0), (0, P_PAD - NUM_PRIORS)))
    pred16 = jnp.concatenate(
        [pred_t[:, :5, :], jnp.zeros((B, 3, P_PAD), jnp.float32), pred_t[:, 5:, :]],
        axis=1)                                                  # (B, 16, 512)
    # TODO(synk): if the detection head can emit the (B, 16, P) layout directly,
    # this transpose+pad HBM round trip disappears entirely.

    # Batch tile: multiple of 8 (sublane rule on the small 2-D blocks), aiming for
    # >= 2 grid steps so the "parallel" axis can feed both v7x TensorCores, and
    # capped at 32 so the per-step footprint (~6 MiB incl. double-buffered inputs)
    # stays under v5e's 16 MiB scoped-VMEM default.
    # TODO(synk): on v6e with large B, tb=64 + vmem_limit_bytes amortizes the
    # ~0.35 us per-step overhead a bit more.
    tb = min(32, max(8, _round_up(-(-B // 2), 8)))
    bp = _round_up(B, tb)
    if bp > B:
        pad = bp - B
        pred16 = jnp.pad(pred16, ((0, pad), (0, 0), (0, 0)))
        objdata = jnp.pad(objdata, ((0, pad), (0, 0), (0, 0)))
        binfo = jnp.pad(binfo, ((0, pad), (0, 0)))   # batch_valid=0 -> zero contribution

    per = _pallas_per_batch_losses(pred16, objdata, binfo, tb)   # (bp, 128)
    denom = float(max(1, B))
    box_l = per[:, 0].sum() / denom
    obj_l = per[:, 1].sum() / denom
    noobj_l = per[:, 2].sum() / denom
    cls_l = per[:, 3].sum() / denom
    total = box_l + obj_l + noobj_l + cls_l
    return total, box_l, obj_l, noobj_l, cls_l


# ------------------- NumPy reference (mirrors the PyTorch loop) ---------------
def _numpy_reference(predictions, targets):
    pred_all = np.asarray(predictions, dtype=np.float64)
    tgt_all = np.asarray(targets, dtype=np.float64)
    anchors_flat = np.asarray(ANCHORS, dtype=np.float64).reshape(-1, 2)
    B = pred_all.shape[0]

    def sigmoid(x):
        return 1.0 / (1.0 + np.exp(-x))

    def bce(p, t):
        return -(t * np.maximum(np.log(p), -100.0)
                 + (1.0 - t) * np.maximum(np.log(1.0 - p), -100.0))

    box_loss = obj_loss = noobj_loss = cls_loss = 0.0
    for b in range(B):
        pred = pred_all[b]
        target = tgt_all[b]
        valid_targets = target[target[:, 4] > 0]
        if len(valid_targets) == 0:
            noobj_mask = np.ones(pred.shape[0])
            noobj_loss += NOOBJ_SCALE * bce(sigmoid(pred[:, 4]), noobj_mask).sum()
            continue
        target_boxes = valid_targets[:, :4].copy()
        target_boxes[:, 2:] *= 1000.0
        A = anchors_flat.shape[0]
        iou = np.zeros((A, len(valid_targets)))
        for a in range(A):
            a_area = anchors_flat[a, 0] * anchors_flat[a, 1]
            for t in range(len(valid_targets)):
                t_area = target_boxes[t, 2] * target_boxes[t, 3]
                w_i = min(anchors_flat[a, 0], target_boxes[t, 2])
                h_i = min(anchors_flat[a, 1], target_boxes[t, 3])
                inter = w_i * h_i
                union = a_area + t_area - inter
                iou[a, t] = inter / (union + 1e-16)
        best_anchor = iou.argmax(axis=0)
        P = pred.shape[0]
        obj_mask = np.zeros(P)
        noobj_mask = np.ones(P)
        tx = np.zeros(P); ty = np.zeros(P); tw = np.zeros(P); th = np.zeros(P)
        tcls = np.zeros((P, NUM_CLASSES))
        for t in range(len(valid_targets)):
            tb_ = valid_targets[t, :4]
            tc = int(valid_targets[t, 5])
            gx = int(tb_[0] * 13); gy = int(tb_[1] * 13)
            ai = int(best_anchor[t])
            pi = gy * 13 * NUM_ANCHORS + gx * NUM_ANCHORS + ai
            obj_mask[pi] = 1; noobj_mask[pi] = 0
            tx[pi] = tb_[0] * 13 - gx
            ty[pi] = tb_[1] * 13 - gy
            tw[pi] = np.log(tb_[2] * 13 / anchors_flat[ai, 0] + 1e-16)
            th[pi] = np.log(tb_[3] * 13 / anchors_flat[ai, 1] + 1e-16)
            tcls[pi, tc] = 1
        sel = obj_mask > 0
        pred_boxes = pred[:, :4]
        if sel.sum() > 0:
            box_loss += BOX_SCALE * (
                (pred_boxes[sel, 0] - tx[sel]) ** 2 + (pred_boxes[sel, 1] - ty[sel]) ** 2
                + (pred_boxes[sel, 2] - tw[sel]) ** 2 + (pred_boxes[sel, 3] - th[sel]) ** 2).sum()
        pred_conf = sigmoid(pred[:, 4])
        obj_loss += OBJ_SCALE * bce(pred_conf[sel], obj_mask[sel]).sum()
        nsel = noobj_mask > 0
        noobj_loss += NOOBJ_SCALE * bce(pred_conf[nsel], obj_mask[nsel]).sum()
        pred_cls = sigmoid(pred[:, 5:])[sel]
        if pred_cls.shape[0] > 0:
            cls_loss += CLS_SCALE * bce(pred_cls, tcls[sel]).sum()
    bs = max(1, B)
    box_loss /= bs; obj_loss /= bs; noobj_loss /= bs; cls_loss /= bs
    total = box_loss + obj_loss + noobj_loss + cls_loss
    return np.array([total, box_loss, obj_loss, noobj_loss, cls_loss])


# ----------------------------------- main -------------------------------------
if __name__ == "__main__":
    B, MAX_OBJ = 2, 8
    key = jax.random.PRNGKey(0)
    kp, kxy, kwh, kcls = jax.random.split(key, 4)

    predictions = 0.5 * jax.random.normal(kp, (B, NUM_PRIORS, F_DIM), dtype=jnp.float32)

    xy = jax.random.uniform(kxy, (B, MAX_OBJ, 2), minval=0.03, maxval=0.96)
    wh = jax.random.uniform(kwh, (B, MAX_OBJ, 2), minval=0.05, maxval=0.5)
    cls = jax.random.randint(kcls, (B, MAX_OBJ, 1), 0, NUM_CLASSES).astype(jnp.float32)
    # batch 0: 3 valid objects; batch 1: zero valid objects (exercises the "continue" path)
    conf = jnp.zeros((B, MAX_OBJ, 1), jnp.float32).at[0, :3, 0].set(1.0)
    targets = jnp.concatenate([xy, wh, conf, cls], axis=-1)

    loss_fn = jax.jit(yolov3_loss)
    out = jax.block_until_ready(loss_fn(predictions, targets))

    ref = _numpy_reference(predictions, targets)
    np.testing.assert_allclose(np.array(out), ref, rtol=2e-3, atol=2e-3)

    print("KERNEL_OK")
</pallas_src>

<mosaic_0001>
module attributes {stable_mosaic.version = 11 : i64} {
  func.func @yolo_loss_kernel(%arg0: i32, %arg1: memref<8x16x512xf32, #tpu.memory_space<vmem>>, %arg2: memref<8x8x8xf32, #tpu.memory_space<vmem>>, %arg3: memref<8x8xf32, #tpu.memory_space<vmem>>, %arg4: memref<8x128xf32, #tpu.memory_space<vmem>>) attributes {dimension_semantics = [#tpu.dimension_semantics<parallel>], iteration_bounds = array<i64: 1>, scalar_prefetch = 0 : i64, scratch_operands = 0 : i64, tpu.core_type = #tpu.core_type<tc>, window_params = [{transform_indices = @transform_0, window_bounds = array<i64: 8, 16, 512>}, {transform_indices = @transform_1, window_bounds = array<i64: 8, 8, 8>}, {transform_indices = @transform_2, window_bounds = array<i64: 8, 8>}, {transform_indices = @transform_3, window_bounds = array<i64: 8, 128>}]} {
    %c0 = arith.constant 0 : index
    %c0_0 = arith.constant 0 : index
    %c0_1 = arith.constant 0 : index
    %0 = vector.load %arg1[%c0, %c0_0, %c0_1] : memref<8x16x512xf32, #tpu.memory_space<vmem>>, vector<8x16x512xf32>
    %c0_2 = arith.constant 0 : index
    %c0_3 = arith.constant 0 : index
    %c0_4 = arith.constant 0 : index
    %1 = vector.load %arg2[%c0_2, %c0_3, %c0_4] : memref<8x8x8xf32, #tpu.memory_space<vmem>>, vector<8x8x8xf32>
    %c0_5 = arith.constant 0 : index
    %c0_6 = arith.constant 0 : index
    %2 = vector.load %arg3[%c0_5, %c0_6] : memref<8x8xf32, #tpu.memory_space<vmem>>, vector<8x8xf32>
    %3 = tpu.iota {dimensions = array<i32: 2>} : vector<1x1x512xi32>
    %c507_i32 = arith.constant 507 : i32
    %4 = vector.broadcast %c507_i32 : i32 to vector<1x1x512xi32>
    %5 = arith.cmpi slt, %3, %4 : vector<1x1x512xi32>
    %6 = arith.extui %5 : vector<1x1x512xi1> to vector<1x1x512xi32>
    %7 = arith.sitofp %6 : vector<1x1x512xi32> to vector<1x1x512xf32>
    %8 = arith.sitofp %3 : vector<1x1x512xi32> to vector<1x1x512xf32>
    %9 = vector.extract_strided_slice %1 {offsets = [0, 0, 0], sizes = [8, 8, 1], strides = [1, 1, 1]} : vector<8x8x8xf32> to vector<8x8x1xf32>
    %10 = vector.extract_strided_slice %1 {offsets = [0, 0, 6], sizes = [8, 8, 1], strides = [1, 1, 1]} : vector<8x8x8xf32> to vector<8x8x1xf32>
    %11 = vector.broadcast %8 : vector<1x1x512xf32> to vector<8x8x512xf32>
    %12 = vector.broadcast %9 : vector<8x8x1xf32> to vector<8x8x512xf32>
    %13 = arith.cmpf oeq, %11, %12 : vector<8x8x512xf32>
    %14 = arith.extui %13 : vector<8x8x512xi1> to vector<8x8x512xi32>
    %15 = arith.sitofp %14 : vector<8x8x512xi32> to vector<8x8x512xf32>
    %16 = vector.broadcast %10 : vector<8x8x1xf32> to vector<8x8x512xf32>
    %17 = arith.mulf %15, %16 : vector<8x8x512xf32>
    %cst = arith.constant dense<0.000000e+00> : vector<8x512xf32>
    %18 = vector.multi_reduction <add>, %17, %cst [1] : vector<8x8x512xf32> to vector<8x512xf32>
    %19 = vector.shape_cast %18 : vector<8x512xf32> to vector<8x1x512xf32>
    %20 = vector.extract_strided_slice %1 {offsets = [0, 0, 1], sizes = [8, 8, 1], strides = [1, 1, 1]} : vector<8x8x8xf32> to vector<8x8x1xf32>
    %21 = vector.broadcast %20 : vector<8x8x1xf32> to vector<8x8x512xf32>
    %22 = arith.mulf %17, %21 : vector<8x8x512xf32>
    %cst_7 = arith.constant dense<0.000000e+00> : vector<8x512xf32>
    %23 = vector.multi_reduction <add>, %22, %cst_7 [1] : vector<8x8x512xf32> to vector<8x512xf32>
    %24 = vector.shape_cast %23 : vector<8x512xf32> to vector<8x1x512xf32>
    %25 = vector.extract_strided_slice %1 {offsets = [0, 0, 2], sizes = [8, 8, 1], strides = [1, 1, 1]} : vector<8x8x8xf32> to vector<8x8x1xf32>
    %26 = vector.broadcast %25 : vector<8x8x1xf32> to vector<8x8x512xf32>
    %27 = arith.mulf %17, %26 : vector<8x8x512xf32>
    %cst_8 = arith.constant dense<0.000000e+00> : vector<8x512xf32>
    %28 = vector.multi_reduction <add>, %27, %cst_8 [1] : vector<8x8x512xf32> to vector<8x512xf32>
    %29 = vector.shape_cast %28 : vector<8x512xf32> to vector<8x1x512xf32>
    %30 = vector.extract_strided_slice %1 {offsets = [0, 0, 3], sizes = [8, 8, 1], strides = [1, 1, 1]} : vector<8x8x8xf32> to vector<8x8x1xf32>
    %31 = vector.broadcast %30 : vector<8x8x1xf32> to vector<8x8x512xf32>
    %32 = arith.mulf %17, %31 : vector<8x8x512xf32>
    %cst_9 = arith.constant dense<0.000000e+00> : vector<8x512xf32>
    %33 = vector.multi_reduction <add>, %32, %cst_9 [1] : vector<8x8x512xf32> to vector<8x512xf32>
    %34 = vector.shape_cast %33 : vector<8x512xf32> to vector<8x1x512xf32>
    %35 = vector.extract_strided_slice %1 {offsets = [0, 0, 4], sizes = [8, 8, 1], strides = [1, 1, 1]} : vector<8x8x8xf32> to vector<8x8x1xf32>
    %36 = vector.broadcast %35 : vector<8x8x1xf32> to vector<8x8x512xf32>
    %37 = arith.mulf %17, %36 : vector<8x8x512xf32>
    %cst_10 = arith.constant dense<0.000000e+00> : vector<8x512xf32>
    %38 = vector.multi_reduction <add>, %37, %cst_10 [1] : vector<8x8x512xf32> to vector<8x512xf32>
    %39 = vector.shape_cast %38 : vector<8x512xf32> to vector<8x1x512xf32>
    %40 = tpu.concatenate %24, %29, %34, %39 in 1 : vector<8x1x512xf32>, vector<8x1x512xf32>, vector<8x1x512xf32>, vector<8x1x512xf32> -> vector<8x4x512xf32>
    %41 = vector.extract_strided_slice %1 {offsets = [0, 0, 5], sizes = [8, 8, 1], strides = [1, 1, 1]} : vector<8x8x8xf32> to vector<8x8x1xf32>
    %42 = vector.shape_cast %41 : vector<8x8x1xf32> to vector<8x8xf32>
    %43 = vector.shape_cast %42 : vector<8x8xf32> to vector<8x1x8xf32>
    %44 = vector.extract_strided_slice %1 {offsets = [0, 0, 7], sizes = [8, 8, 1], strides = [1, 1, 1]} : vector<8x8x8xf32> to vector<8x8x1xf32>
    %45 = vector.shape_cast %44 : vector<8x8x1xf32> to vector<8x8xf32>
    %46 = vector.shape_cast %45 : vector<8x8xf32> to vector<8x1x8xf32>
    %47 = tpu.iota {dimensions = array<i32: 1>} : vector<1x8x1xi32>
    %48 = arith.sitofp %47 : vector<1x8x1xi32> to vector<1x8x1xf32>
    %49 = vector.broadcast %43 : vector<8x1x8xf32> to vector<8x8x8xf32>
    %50 = vector.broadcast %48 : vector<1x8x1xf32> to vector<8x8x8xf32>
    %51 = arith.cmpf oeq, %49, %50 : vector<8x8x8xf32>
    %52 = arith.extui %51 : vector<8x8x8xi1> to vector<8x8x8xi32>
    %53 = arith.sitofp %52 : vector<8x8x8xi32> to vector<8x8x8xf32>
    %54 = vector.broadcast %46 : vector<8x1x8xf32> to vector<8x8x8xf32>
    %55 = arith.mulf %54, %53 : vector<8x8x8xf32>
    "tpu.trace_start"() <{level = 10 : i32, message = "bcm,bmp->bcp"}> : () -> ()
    %cst_11 = arith.constant dense<0.000000e+00> : vector<8x8x512xf32>
    %56 = tpu.matmul %55, %15, %cst_11 {dimension_numbers = #tpu.dot_dimension_numbers<[2], [1], [1], [2], [0, 0, 0, 1, 1, 2], [0], [0]>} : vector<8x8x8xf32>, vector<8x8x512xf32>, vector<8x8x512xf32> -> vector<8x8x512xf32>
    "tpu.trace_stop"() : () -> ()
    %cst_12 = arith.constant 1.000000e+00 : f32
    %57 = vector.broadcast %cst_12 : f32 to vector<8x8x512xf32>
    %58 = arith.minimumf %56, %57 : vector<8x8x512xf32>
    %59 = vector.extract_strided_slice %2 {offsets = [0, 0], sizes = [8, 1], strides = [1, 1]} : vector<8x8xf32> to vector<8x1xf32>
    %60 = vector.shape_cast %59 : vector<8x1xf32> to vector<8x1x1xf32>
    %61 = vector.extract_strided_slice %2 {offsets = [0, 1], sizes = [8, 1], strides = [1, 1]} : vector<8x8xf32> to vector<8x1xf32>
    %62 = vector.shape_cast %61 : vector<8x1xf32> to vector<8x1x1xf32>
    %cst_13 = arith.constant 1.000000e+00 : f32
    %63 = vector.broadcast %cst_13 : f32 to vector<8x1x512xf32>
    %64 = arith.subf %63, %19 : vector<8x1x512xf32>
    %65 = vector.broadcast %7 : vector<1x1x512xf32> to vector<8x1x512xf32>
    %66 = arith.mulf %65, %64 : vector<8x1x512xf32>
    %67 = vector.broadcast %62 : vector<8x1x1xf32> to vector<8x1x512xf32>
    %68 = arith.mulf %66, %67 : vector<8x1x512xf32>
    %69 = vector.extract_strided_slice %0 {offsets = [0, 0, 0], sizes = [8, 4, 512], strides = [1, 1, 1]} : vector<8x16x512xf32> to vector<8x4x512xf32>
    %70 = vector.extract_strided_slice %0 {offsets = [0, 4, 0], sizes = [8, 1, 512], strides = [1, 1, 1]} : vector<8x16x512xf32> to vector<8x1x512xf32>
    %71 = vector.extract_strided_slice %0 {offsets = [0, 8, 0], sizes = [8, 8, 512], strides = [1, 1, 1]} : vector<8x16x512xf32> to vector<8x8x512xf32>
    %cst_14 = arith.constant 0.000000e+00 : f32
    %72 = vector.broadcast %cst_14 : f32 to vector<8x1x512xf32>
    %73 = arith.subf %72, %70 : vector<8x1x512xf32>
    %cst_15 = arith.constant 0.000000e+00 : f32
    %74 = vector.broadcast %cst_15 : f32 to vector<8x1x512xf32>
    %75 = arith.maximumf %73, %74 : vector<8x1x512xf32>
    %76 = math.absf %73 : vector<8x1x512xf32>
    %cst_16 = arith.constant 0.000000e+00 : f32
    %77 = vector.broadcast %cst_16 : f32 to vector<8x1x512xf32>
    %78 = arith.subf %77, %76 : vector<8x1x512xf32>
    %79 = math.exp %78 : vector<8x1x512xf32>
    %cst_17 = arith.constant 1.000000e+00 : f32
    %80 = vector.broadcast %cst_17 : f32 to vector<8x1x512xf32>
    %81 = arith.addf %80, %79 : vector<8x1x512xf32>
    %82 = math.log %81 : vector<8x1x512xf32>
    %83 = arith.addf %75, %82 : vector<8x1x512xf32>
    %84 = arith.addf %83, %70 : vector<8x1x512xf32>
    %85 = arith.subf %69, %40 : vector<8x4x512xf32>
    %86 = arith.mulf %85, %85 : vector<8x4x512xf32>
    %87 = vector.broadcast %19 : vector<8x1x512xf32> to vector<8x4x512xf32>
    %88 = arith.mulf %87, %86 : vector<8x4x512xf32>
    %cst_18 = arith.constant dense<0.000000e+00> : vector<8x512xf32>
    %89 = vector.multi_reduction <add>, %88, %cst_18 [1] : vector<8x4x512xf32> to vector<8x512xf32>
    %90 = vector.shape_cast %89 : vector<8x512xf32> to vector<8x1x512xf32>
    %cst_19 = arith.constant 5.000000e+00 : f32
    %91 = vector.broadcast %cst_19 : f32 to vector<8x1x512xf32>
    %92 = arith.mulf %91, %90 : vector<8x1x512xf32>
    %93 = arith.mulf %19, %83 : vector<8x1x512xf32>
    %cst_20 = arith.constant 1.000000e+00 : f32
    %94 = vector.broadcast %cst_20 : f32 to vector<8x1x512xf32>
    %95 = arith.mulf %94, %93 : vector<8x1x512xf32>
    %cst_21 = arith.constant 1.000000e+02 : f32
    %96 = vector.broadcast %cst_21 : f32 to vector<8x1x512xf32>
    %97 = arith.mulf %96, %68 : vector<8x1x512xf32>
    %98 = vector.broadcast %60 : vector<8x1x1xf32> to vector<8x1x512xf32>
    %99 = arith.mulf %98, %83 : vector<8x1x512xf32>
    %cst_22 = arith.constant 1.000000e+00 : f32
    %100 = vector.broadcast %cst_22 : f32 to vector<8x1x1xf32>
    %101 = arith.subf %100, %60 : vector<8x1x1xf32>
    %102 = vector.broadcast %101 : vector<8x1x1xf32> to vector<8x1x512xf32>
    %103 = arith.mulf %102, %84 : vector<8x1x512xf32>
    %104 = arith.addf %99, %103 : vector<8x1x512xf32>
    %105 = arith.mulf %97, %104 : vector<8x1x512xf32>
    %cst_23 = arith.constant 0.000000e+00 : f32
    %106 = vector.broadcast %cst_23 : f32 to vector<8x8x512xf32>
    %107 = arith.maximumf %71, %106 : vector<8x8x512xf32>
    %108 = math.absf %71 : vector<8x8x512xf32>
    %cst_24 = arith.constant 0.000000e+00 : f32
    %109 = vector.broadcast %cst_24 : f32 to vector<8x8x512xf32>
    %110 = arith.subf %109, %108 : vector<8x8x512xf32>
    %111 = math.exp %110 : vector<8x8x512xf32>
    %cst_25 = arith.constant 1.000000e+00 : f32
    %112 = vector.broadcast %cst_25 : f32 to vector<8x8x512xf32>
    %113 = arith.addf %112, %111 : vector<8x8x512xf32>
    %114 = math.log %113 : vector<8x8x512xf32>
    %115 = arith.addf %107, %114 : vector<8x8x512xf32>
    %116 = arith.mulf %71, %58 : vector<8x8x512xf32>
    %117 = arith.subf %115, %116 : vector<8x8x512xf32>
    %118 = vector.broadcast %19 : vector<8x1x512xf32> to vector<8x8x512xf32>
    %119 = arith.mulf %118, %117 : vector<8x8x512xf32>
    %cst_26 = arith.constant dense<0.000000e+00> : vector<8x512xf32>
    %120 = vector.multi_reduction <add>, %119, %cst_26 [1] : vector<8x8x512xf32> to vector<8x512xf32>
    %121 = vector.shape_cast %120 : vector<8x512xf32> to vector<8x1x512xf32>
    %cst_27 = arith.constant 1.000000e+00 : f32
    %122 = vector.broadcast %cst_27 : f32 to vector<8x1x512xf32>
    %123 = arith.mulf %122, %121 : vector<8x1x512xf32>
    %124 = tpu.concatenate %92, %95, %105, %123 in 1 : vector<8x1x512xf32>, vector<8x1x512xf32>, vector<8x1x512xf32>, vector<8x1x512xf32> -> vector<8x4x512xf32>
    %cst_28 = arith.constant dense<0.000000e+00> : vector<8x4xf32>
    %125 = vector.multi_reduction <add>, %124, %cst_28 [2] : vector<8x4x512xf32> to vector<8x4xf32>
    %cst_29 = arith.constant 0.000000e+00 : f32
    %126 = vector.broadcast %cst_29 : f32 to vector<8x124xf32>
    %127 = tpu.concatenate %125, %126 in 1 : vector<8x4xf32>, vector<8x124xf32> -> vector<8x128xf32>
    %c0_30 = arith.constant 0 : index
    %c0_31 = arith.constant 0 : index
    %128 = vector.load %arg4[%c0_30, %c0_31] : memref<8x128xf32, #tpu.memory_space<vmem>>, vector<8x128xf32>
    tpu.vector_store %arg4[%c0_30, %c0_31], %127 {strides = array<i32>} : memref<8x128xf32, #tpu.memory_space<vmem>>, vector<8x128xf32>,
    return
  }
  func.func @transform_0(%arg0: i32) -> (i32, i32, i32) {
    %c0_i32 = arith.constant 0 : i32
    %c0_i32_0 = arith.constant 0 : i32
    %c0_i32_1 = arith.constant 0 : i32
    return %arg0, %c0_i32, %c0_i32_0 : i32, i32, i32
  }
  func.func @transform_1(%arg0: i32) -> (i32, i32, i32) {
    %c0_i32 = arith.constant 0 : i32
    %c0_i32_0 = arith.constant 0 : i32
    %c0_i32_1 = arith.constant 0 : i32
    return %arg0, %c0_i32, %c0_i32_0 : i32, i32, i32
  }
  func.func @transform_2(%arg0: i32) -> (i32, i32) {
    %c0_i32 = arith.constant 0 : i32
    %c0_i32_0 = arith.constant 0 : i32
    return %arg0, %c0_i32 : i32, i32
  }
  func.func @transform_3(%arg0: i32) -> (i32, i32) {
    %c0_i32 = arith.constant 0 : i32
    %c0_i32_0 = arith.constant 0 : i32
    return %arg0, %c0_i32 : i32, i32
  }
}

</mosaic_0001>

<bundles_post_ra>
// kernel: mul.34
= control target key start
LH: loop header
LB: loop body
LE: loop exit
PB: predicated region body
PF: predicated region fallthrough
CT: control target
= control target key end

     0   :  { %s34_s0 = inlined_call_operand.vmem [shape: f32[2,8], index: 0, kind: input, shape index: {}]   ;;  %s35_s1 = inlined_call_operand.vmem [shape: f32[2,8], index: 1, kind: input, shape index: {}]   ;;  %s36_s2 = inlined_call_operand.vmem [shape: f32[2,8], index: 2, kind: output, shape index: {}]  }
   0x1   :  { %v3_v0 = vld [vmem:[%s34_s0] sm:$0x3] }
   0x2   :  { %v4_v1 = vld [vmem:[%s35_s1] sm:$0x3] }
   0x3   :  { %v7_v2 = vmul.f32 %v4_v1, %v3_v0 }
   0x5   :  { %9 = vst [vmem:[%s36_s2] sm:$0x3] %v7_v2 }

// kernel: yolov3_loss.1
= control target key start
LH: loop header
LB: loop body
LE: loop exit
PB: predicated region body
PF: predicated region fallthrough
CT: control target
= control target key end

     0   :  { %v11187_v0 = vmov 0   ;;  %v11191_v5 = vmov 0.0   ;;  %v6811_v10 = vmov 6   ;;  %v11189_v11 = vmov 1   ;;  %s6816_s28 = smov 2   ;;  %s11181_s1 = inlined_call_operand.vmem [shape: f32[8,8,8], index: 1, kind: input, shape index: {}]   ;;  %s11182_s2 = inlined_call_operand.vmem [shape: f32[8,8], index: 2, kind: input, shape index: {}]   ;;  %s11183_s0 = inlined_call_operand.vmem [shape: f32[8,16,512], index: 0, kind: input, shape index: {}]   ;;  %s11184_s3 = inlined_call_operand.vmem [shape: f32[8,128], index: 3, kind: output, shape index: {}]  }
   0x1   :  { %6346 = vset.pattern.permute.xlu1 %v11187_v0  ;;  %6345 = vset.pattern.permute.xlu0 %v11187_v0  ;;  %v6845_v1 = vld [vmem:[%s11181_s1 + $0x10] sm:$0xff]  ;;  %v6850_v2 = vld [vmem:[%s11181_s1] sm:$0xff]  ;;  %v6857_v3 = vld [vmem:[%s11181_s1 + $0x18] sm:$0xff]  ;;  %v6813_v12 = vmov 2   ;;  %v6814_v13 = vmov 3   ;;  %v87_v14 = vlaneseq  ;;  %v6815_v18 = vmov 4  }
   0x2   :  { %120 = vperm.xlu1 %6346, %v6845_v1   ;;  %110 = vperm.xlu0 %6345, %v6850_v2   ;;  %v6862_v4 = vld [vmem:[%s11181_s1 + $0x8] sm:$0xff]  ;;  %v6876_v7 = vld [vmem:[%s11181_s1 + $0x20] sm:$0xff]  ;;  %v6883_v8 = vld [vmem:[%s11181_s1 + $0x38] sm:$0xff] }
   0x3   :  { %2324 = vmatprep.mubr.f32.mxu0 %v11191_v5  ;;  %2395 = vmatprep.mubr.f32.mxu1 %v11191_v5  ;;  %v6871_v6 = vld [vmem:[%s11181_s1 + $0x28] sm:$0xff]  ;;  %v6888_v9 = vld [vmem:[%s11181_s1 + $0x30] sm:$0xff]  ;;  %v6916_v15 = vshrl.u32 %v87_v14, 7 }
   0x5   :  { %v1637_v16 = vsub.s32 2, %v6916_v15  ;;  %v1641_v17 = vsub.s32 3, %v6916_v15  ;;  %v6923_v19 = vcvt.s32.f32 %v6916_v15  ;;  %v1653_v22 = vsub.s32 6, %v6916_v15 }
   0x6   :  { %125 = vperm.xlu1 %6346, %v6857_v3   ;;  %115 = vperm.xlu0 %6345, %v6862_v4   ;;  %v1657_v23 = vsub.s32 7, %v6916_v15  ;;  %v6980_v38 = vsub.s32 0, %v6916_v15  ;;  %v1633_v41 = vsub.s32 1, %v6916_v15  ;;  %v1645_v44 = vsub.s32 4, %v6916_v15 }
   0x7   :  { %v6926_v20 = vrot.slane %v6923_v19, %v1637_v16  ;;  %v6929_v21 = vrot.slane %v6923_v19, %v1641_v17  ;;  %v6940_v24 = vrot.slane %v6923_v19, %v1653_v22  ;;  %v1649_v48 = vsub.s32 5, %v6916_v15 }
   0x8   :  { %v6943_v25 = vrot.slane %v6923_v19, %v1657_v23  ;;  %11466 = vst [vmem:[#allocation2_spill] sm:$0xff] %v6980_v38  ;;  %v6993_v43 = vrot.slane %v6923_v19, %v6980_v38  ;;  %v6999_v47 = vrot.slane %v6923_v19, %v1633_v41  ;;  %v7011_v50 = vrot.slane %v6923_v19, %v1645_v44 }
   0x9   :  { %vm1669_vm0 = vcmp.eq.f32.partialorder %v6850_v2, %v6926_v20  ;;  %vm1670_vm1 = vcmp.eq.f32.partialorder %v6850_v2, %v6929_v21  ;;  %vm1673_vm2 = vcmp.eq.f32.partialorder %v6850_v2, %v6940_v24  ;;  %vm1677_vm4 = vcmp.eq.f32.partialorder %v6862_v4, %v6926_v20 }
   0xa   :  { %135 = vperm.xlu1 %6346, %v6871_v6   ;;  %130 = vperm.xlu0 %6345, %v6876_v7   ;;  %v6224_v26 = vsel %vm1669_vm0, 1.0, %v11191_v5  ;;  %v6225_v27 = vsel %vm1670_vm1, 1.0, %v11191_v5  ;;  %vm1674_vm3 = vcmp.eq.f32.partialorder %v6850_v2, %v6943_v25  ;;  %v6228_v29 = vsel %vm1673_vm2, 1.0, %v11191_v5 }
   0xb   :  { %v6361_v28 = vpack.i.bf16 %v6225_v27, %v6224_v26  ;;  %v6229_v30 = vsel %vm1674_vm3, 1.0, %v11191_v5  ;;  %vm1678_vm5 = vcmp.eq.f32.partialorder %v6862_v4, %v6929_v21  ;;  %v6232_v32 = vsel %vm1677_vm4, 1.0, %v11191_v5 }
   0xc   :  { %v6371_v31 = vpack.i.bf16 %v6229_v30, %v6228_v29  ;;  %v6233_v33 = vsel %vm1678_vm5, 1.0, %v11191_v5  ;;  %vm1681_vm6 = vcmp.eq.f32.partialorder %v6862_v4, %v6940_v24  ;;  %vm1682_vm7 = vcmp.eq.f32.partialorder %v6862_v4, %v6943_v25 }
   0xd   :  { %v6381_v34 = vpack.i.bf16 %v6233_v33, %v6232_v32  ;;  %v6236_v35 = vsel %vm1681_vm6, 1.0, %v11191_v5  ;;  %v6237_v36 = vsel %vm1682_vm7, 1.0, %v11191_v5  ;;  %vm1685_vm8 = vcmp.eq.f32.partialorder %v6845_v1, %v6926_v20 }
   0xe   :  { %145 = vperm.xlu1 %6346, %v6883_v8   ;;  %140 = vperm.xlu0 %6345, %v6888_v9   ;;  %vm1686_vm9 = vcmp.eq.f32.partialorder %v6845_v1, %v6929_v21  ;;  %v6391_v37 = vpack.i.bf16 %v6237_v36, %v6236_v35  ;;  %v6240_v39 = vsel %vm1685_vm8, 1.0, %v11191_v5  ;;  %vm1689_vm10 = vcmp.eq.f32.partialorder %v6845_v1, %v6940_v24 }
   0xf   :  { %v6241_v40 = vsel %vm1686_vm9, 1.0, %v11191_v5  ;;  %vm1690_vm11 = vcmp.eq.f32.partialorder %v6845_v1, %v6943_v25  ;;  %v6244_v45 = vsel %vm1689_vm10, 1.0, %v11191_v5  ;;  %vm1693_vm12 = vcmp.eq.f32.partialorder %v6857_v3, %v6926_v20 }
  0x10   :  { %v6401_v42 = vpack.i.bf16 %v6241_v40, %v6240_v39  ;;  %v6245_v46 = vsel %vm1690_vm11, 1.0, %v11191_v5  ;;  %vm1694_vm13 = vcmp.eq.f32.partialorder %v6857_v3, %v6929_v21  ;;  %vm1667_vm14 = vcmp.eq.f32.partialorder %v6850_v2, %v6993_v43 }
  0x11   :  { %v6411_v49 = vpack.i.bf16 %v6245_v46, %v6244_v45  ;;  %v6248_v51 = vsel %vm1693_vm12, 1.0, %v11191_v5  ;;  %v6249_v52 = vsel %vm1694_vm13, 1.0, %v11191_v5  ;;  %vm1668_vm15 = vcmp.eq.f32.partialorder %v6850_v2, %v6999_v47 }
  0x12   :  { %6348 = vset.pattern.permute.xlu1 %v6811_v10  ;;  %6347 = vset.pattern.permute.xlu0 %v6811_v10  ;;  %v7018_v53 = vrot.slane %v6923_v19, %v1649_v48  ;;  %vm1697_vm0 = vcmp.eq.f32.partialorder %v6857_v3, %v6940_v24  ;;  %vm1698_vm1 = vcmp.eq.f32.partialorder %v6857_v3, %v6943_v25  ;;  %v6222_v54 = vsel %vm1667_vm14, 1.0, %v11191_v5 }
  0x13   :  { %249 = vperm.xlu1 %6348, %v6862_v4   ;;  %245 = vperm.xlu0 %6347, %v6850_v2   ;;  %v6421_v55 = vpack.i.bf16 %v6249_v52, %v6248_v51  ;;  %v6223_v56 = vsel %vm1668_vm15, 1.0, %v11191_v5  ;;  %vm1671_vm2 = vcmp.eq.f32.partialorder %v6850_v2, %v7011_v50  ;;  %v6252_v57 = vsel %vm1697_vm0, 1.0, %v11191_v5 }
  0x14   :  { %v6253_v58 = vsel %vm1698_vm1, 1.0, %v11191_v5  ;;  %vm1672_vm3 = vcmp.eq.f32.partialorder %v6850_v2, %v7018_v53  ;;  %vm1701_vm4 = vcmp.eq.f32.partialorder %v6876_v7, %v6926_v20  ;;  %vm1702_vm5 = vcmp.eq.f32.partialorder %v6876_v7, %v6929_v21 }
  0x15   :  { %v6356_v59 = vpack.i.bf16 %v6223_v56, %v6222_v54  ;;  %v6226_v60 = vsel %vm1671_vm2, 1.0, %v11191_v5  ;;  %vm1675_vm6 = vcmp.eq.f32.partialorder %v6862_v4, %v6993_v43  ;;  %v6431_v61 = vpack.i.bf16 %v6253_v58, %v6252_v57 }
  0x16   :  { %v6227_v62 = vsel %vm1672_vm3, 1.0, %v11191_v5  ;;  %v6256_v63 = vsel %vm1701_vm4, 1.0, %v11191_v5  ;;  %vm1676_vm7 = vcmp.eq.f32.partialorder %v6862_v4, %v6999_v47  ;;  %vm1707_vm8 = vcmp.eq.f32.partialorder %v6871_v6, %v6993_v43 }
  0x17   :  { %253 = vperm.xlu1 %6348, %v6845_v1   ;;  %257 = vperm.xlu0 %6347, %v6857_v3   ;;  %vm1708_vm9 = vcmp.eq.f32.partialorder %v6871_v6, %v6999_v47  ;;  %v6817_v10 = vmov 7   ;;  %v6231_v17 = vsel %vm1676_vm7, 1.0, %v11191_v5  ;;  %vm1679_vm10 = vcmp.eq.f32.partialorder %v6862_v4, %v7011_v50 }
  0x18   :  { %v6263_v19 = vsel %vm1708_vm9, 1.0, %v11191_v5  ;;  %vm1680_vm11 = vcmp.eq.f32.partialorder %v6862_v4, %v7018_v53  ;;  %vm1706_vm12 = vcmp.eq.f32.partialorder %v6876_v7, %v6943_v25  ;;  %vm1710_vm13 = vcmp.eq.f32.partialorder %v6871_v6, %v6929_v21 }
  0x19   :  { %v6234_v23 = vsel %vm1679_vm10, 1.0, %v11191_v5  ;;  %v6235_v27 = vsel %vm1680_vm11, 1.0, %v11191_v5  ;;  %vm1683_vm14 = vcmp.eq.f32.partialorder %v6845_v1, %v6993_v43  ;;  %vm1684_vm15 = vcmp.eq.f32.partialorder %v6845_v1, %v6999_v47 }
  0x1a   :  { %v7077_v29 = vand.u32 127, %v87_v14  ;;  %vm1715_vm0 = vcmp.eq.f32.partialorder %v6888_v9, %v6993_v43  ;;  %vm1716_vm1 = vcmp.eq.f32.partialorder %v6888_v9, %v6999_v47  ;;  %v6386_v30 = vpack.i.bf16 %v6235_v27, %v6234_v23 }
  0x1b   :  { %261 = vperm.xlu1 %6348, %v6876_v7   ;;  %265 = vperm.xlu0 %6347, %v6871_v6   ;;  %v6239_v33 = vsel %vm1684_vm15, 1.0, %v11191_v5  ;;  %vm1687_vm2 = vcmp.eq.f32.partialorder %v6845_v1, %v7011_v50  ;;  %v6270_v14 = vsel %vm1715_vm0, 1.0, %v11191_v5  ;;  %vm1688_vm3 = vcmp.eq.f32.partialorder %v6845_v1, %v7018_v53 }
  0x1c   :  { %v89_v35 = vadd.s32 128, %v7077_v29  ;;  %vm1714_vm4 = vcmp.eq.f32.partialorder %v6871_v6, %v6943_v25  ;;  %v7099_v36 = vadd.s32 384, %v7077_v29  ;;  %v6242_v40 = vsel %vm1687_vm2, 1.0, %v11191_v5 }
  0x1d   :  { %vm1723_vm7 = vcmp.eq.f32.partialorder %v6883_v8, %v6993_v43  ;;  %v7124_v51 = vcvt.s32.f32 %v7077_v29  ;;  %vm1692_vm9 = vcmp.eq.f32.partialorder %v6857_v3, %v6999_v47  ;;  %v11185_v57 = vmov 1.0  }
  0x1e   :  { %11467 = vst [vmem:[#allocation3_spill] sm:$0xff] %v7099_v36  ;;  %v7110_v45 = vcvt.s32.f32 %v89_v35  ;;  %v6278_v58 = vsel %vm1723_vm7, 1.0, %v11191_v5  ;;  %vm1726_vm15 = vcmp.eq.f32.partialorder %v6883_v8, %v6929_v21  ;;  %vm1695_vm0 = vcmp.eq.f32.partialorder %v6857_v3, %v7011_v50 }
  0x1f   :  { %269 = vperm.xlu1 %6348, %v6888_v9   ;;  %273 = vperm.xlu0 %6347, %v6883_v8   ;;  %11471 = vst [vmem:[#allocation7_spill] sm:$0xff] %v7124_v51  ;;  %vm1700_vm7 = vcmp.eq.f32.partialorder %v6876_v7, %v6999_v47 }
  0x20   :  { %11468 = vst [vmem:[#allocation4_spill] sm:$0xff] %v7110_v45  ;;  %v6255_v23 = vsel %vm1700_vm7, 1.0, %v11191_v5  ;;  %vm1720_vm7 = vcmp.eq.f32.partialorder %v6888_v9, %v7018_v53 }
  0x23   :  { %6349 = vset.pattern.permute.xlu1 %v11189_v11  ;;  %6350 = vset.pattern.permute.xlu0 %v6813_v12 }
  0x24   :  { %501 = vperm.xlu1 %6349, %v6850_v2   ;;  %757 = vperm.xlu0 %6350, %v6850_v2  }
  0x28   :  { %509 = vperm.xlu1 %6349, %v6845_v1   ;;  %769 = vperm.xlu0 %6350, %v6857_v3  }
  0x2c   :  { %513 = vperm.xlu1 %6349, %v6857_v3   ;;  %777 = vperm.xlu0 %6350, %v6871_v6  }
  0x30   :  { %521 = vperm.xlu1 %6349, %v6871_v6   ;;  %785 = vperm.xlu0 %6350, %v6883_v8  }
  0x34   :  { %529 = vperm.xlu1 %6349, %v6883_v8   ;;  %6353 = vset.pattern.permute.xlu0 %v6814_v13 }
  0x35   :  { %1017 = vperm.xlu0 %6353, %v6862_v4  }
  0x38   :  { %6351 = vset.pattern.permute.xlu1 %v6813_v12  ;;  %v6366_v12 = vpack.i.bf16 %v6227_v62, %v6226_v60  ;;  %v6247_v60 = vsel %vm1692_vm9, 1.0, %v11191_v5  ;;  %vm1704_vm9 = vcmp.eq.f32.partialorder %v6876_v7, %v7018_v53 }
  0x39   :  { %761 = vperm.xlu1 %6351, %v6862_v4   ;;  %1029 = vperm.xlu0 %6353, %v6876_v7  }
  0x3d   :  { %765 = vperm.xlu1 %6351, %v6845_v1   ;;  %1037 = vperm.xlu0 %6353, %v6888_v9  }
  0x41   :  { %773 = vperm.xlu1 %6351, %v6876_v7   ;;  %6354 = vset.pattern.permute.xlu0 %v6815_v18 }
  0x42   :  { %1269 = vperm.xlu0 %6354, %v6850_v2  }
  0x45   :  { %781 = vperm.xlu1 %6351, %v6888_v9  }
  0x46   :  { %1281 = vperm.xlu0 %6354, %v6857_v3  }
  0x49   :  { %6352 = vset.pattern.permute.xlu1 %v6814_v13  ;;  %v6230_v13 = vsel %vm1675_vm6, 1.0, %v11191_v5  ;;  %vm1691_vm6 = vcmp.eq.f32.partialorder %v6857_v3, %v6993_v43 }
  0x4a   :  { %1013 = vperm.xlu1 %6352, %v6850_v2   ;;  %1289 = vperm.xlu0 %6354, %v6871_v6   ;;  %v6257_v2 = vsel %vm1702_vm5, 1.0, %v11191_v5  ;;  %v6376_v22 = vpack.i.bf16 %v6231_v17, %v6230_v13  ;;  %vm1718_vm5 = vcmp.eq.f32.partialorder %v6888_v9, %v6929_v21 }
  0x4b   :  { %v6441_v16 = vpack.i.bf16 %v6257_v2, %v6256_v63  ;;  %v6273_v44 = vsel %vm1718_vm5, 1.0, %v11191_v5  ;;  %vm1730_vm5 = vcmp.eq.f32.partialorder %v6883_v8, %v6943_v25 }
  0x4e   :  { %1021 = vperm.xlu1 %6352, %v6845_v1   ;;  %1297 = vperm.xlu0 %6354, %v6883_v8  }
  0x52   :  { %1025 = vperm.xlu1 %6352, %v6857_v3   ;;  %6362 = vrot.lane.b32.xlu0 %v6361_v28, %s6816_s28  ;;  %v6265_v28 = vsel %vm1710_vm13, 1.0, %v11191_v5 }
  0x53   :  { %6517 = vset.pattern.permute.xlu0 %v6817_v10 }
  0x56   :  { %1033 = vperm.xlu1 %6352, %v6871_v6   ;;  %6372 = vrot.lane.b32.xlu0 %v6371_v31, %s6816_s28  ;;  %v6238_v31 = vsel %vm1683_vm14, 1.0, %v11191_v5  ;;  %vm1722_vm14 = vcmp.eq.f32.partialorder %v6888_v9, %v6943_v25  ;;  %v6285_v25 = vsel %vm1730_vm5, 1.0, %v11191_v5  ;;  %vm1717_vm5 = vcmp.eq.f32.partialorder %v6888_v9, %v6926_v20 }
  0x57   :  { %v6396_v39 = vpack.i.bf16 %v6239_v33, %v6238_v31  ;;  %v6277_v2 = vsel %vm1722_vm14, 1.0, %v11191_v5  ;;  %vm1705_vm14 = vcmp.eq.f32.partialorder %v6876_v7, %v6940_v24 }
  0x58   :  { %v6260_v33 = vsel %vm1705_vm14, 1.0, %v11191_v5  ;;  %vm1727_vm14 = vcmp.eq.f32.partialorder %v6883_v8, %v7011_v50 }
  0x5a   :  { %1041 = vperm.xlu1 %6352, %v6883_v8   ;;  %6382 = vrot.lane.b32.xlu0 %v6381_v34, %s6816_s28  ;;  %v6271_v34 = vsel %vm1716_vm1, 1.0, %v11191_v5  ;;  %vm1696_vm1 = vcmp.eq.f32.partialorder %v6857_v3, %v7018_v53  ;;  %v6281_v3 = vsel %vm1726_vm15, 1.0, %v11191_v5  ;;  %vm1709_vm15 = vcmp.eq.f32.partialorder %v6871_v6, %v6926_v20 }
  0x5b   :  { %v6471_v41 = vpack.i.bf16 %v6271_v34, %v6270_v14  ;;  %v6501_v17 = vpack.i.bf16 %v6281_v3, %v6277_v2  ;;  %v6264_v14 = vsel %vm1709_vm15, 1.0, %v11191_v5  ;;  %vm1728_vm15 = vcmp.eq.f32.partialorder %v6883_v8, %v7018_v53 }
  0x5c   :  { %v6456_v35 = vpack.i.bf16 %v6264_v14, %v6260_v33 }
  0x5e   :  { %6355 = vset.pattern.permute.xlu1 %v6815_v18  ;;  %6392 = vrot.lane.b32.xlu0 %v6391_v37, %s6816_s28  ;;  %v6262_v18 = vsel %vm1707_vm8, 1.0, %v11191_v5  ;;  %v90_v37 = vadd.s32 256, %v7077_v29  ;;  %vm1724_vm8 = vcmp.eq.f32.partialorder %v6883_v8, %v6999_v47 }
  0x5f   :  { %1273 = vperm.xlu1 %6355, %v6862_v4   ;;  %v6451_v26 = vpack.i.bf16 %v6263_v19, %v6262_v18  ;;  %v6261_v4 = vsel %vm1706_vm12, 1.0, %v11191_v5 }
  0x60   :  { %v6461_v32 = vpack.i.bf16 %v6265_v28, %v6261_v4  ;;  %v7126_v52 = vcvt.s32.f32 %v90_v37  ;;  %v6259_v28 = vsel %vm1704_vm9, 1.0, %v11191_v5  ;;  %vm1725_vm9 = vcmp.eq.f32.partialorder %v6883_v8, %v6926_v20 }
  0x62   :  { %6402 = vrot.lane.b32.xlu0 %v6401_v42, %s6816_s28  ;;  %v6269_v42 = vsel %vm1714_vm4, 1.0, %v11191_v5  ;;  %11472 = vst [vmem:[#allocation8_spill] sm:$0xff] %v7126_v52  ;;  %vm1729_vm4 = vcmp.eq.f32.partialorder %v6883_v8, %v6940_v24  ;;  %v7288_v8 = vsel %vm1728_vm15, 1.0, %v11191_v5 }
  0x63   :  { %1277 = vperm.xlu1 %6355, %v6845_v1   ;;  %v6243_v1 = vsel %vm1688_vm3, 1.0, %v11191_v5  ;;  %v6481_v56 = vpack.i.bf16 %v6273_v44, %v6269_v42  ;;  %v6284_v19 = vsel %vm1729_vm4, 1.0, %v11191_v5  ;;  %vm1713_vm4 = vcmp.eq.f32.partialorder %v6871_v6, %v6940_v24 }
  0x64   :  { %v6406_v54 = vpack.i.bf16 %v6243_v1, %v6242_v40  ;;  %v6511_v47 = vpack.i.bf16 %v6285_v25, %v6284_v19  ;;  %v6272_v42 = vsel %vm1717_vm5, 1.0, %v11191_v5 }
  0x66   :  { %6412 = vrot.lane.b32.xlu0 %v6411_v49, %s6816_s28  ;;  %v7121_v49 = vcvt.s32.f32 %v7099_v36 }
  0x67   :  { %1285 = vperm.xlu1 %6355, %v6876_v7  }
  0x68   :  { %11470 = vst [vmem:[#allocation6_spill] sm:$0xff] %v7121_v49 }
  0x6a   :  { %6422 = vrot.lane.b32.xlu0 %v6421_v55, %s6816_s28  ;;  %v6246_v55 = vsel %vm1691_vm6, 1.0, %v11191_v5  ;;  %vm1699_vm6 = vcmp.eq.f32.partialorder %v6876_v7, %v6993_v43 }
  0x6b   :  { %1293 = vperm.xlu1 %6355, %v6888_v9   ;;  %v6416_v63 = vpack.i.bf16 %v6247_v60, %v6246_v55 }
  0x6e   :  { %6432 = vrot.lane.b32.xlu0 %v6431_v61, %s6816_s28 }
  0x6f   :  { %6357 = vrot.lane.b32.xlu1 %v6356_v59, %s6816_s28  ;;  %v6279_v59 = vsel %vm1724_vm8, 1.0, %v11191_v5  ;;  %vm1703_vm8 = vcmp.eq.f32.partialorder %v6876_v7, %v7011_v50 }
  0x70   :  { %6516 = vset.pattern.permute.xlu1 %v6817_v10  ;;  %v6491_v21 = vpack.i.bf16 %v6279_v59, %v6278_v58  ;;  %v6250_v10 = vsel %vm1695_vm0, 1.0, %v11191_v5  ;;  %v6258_v4 = vsel %vm1703_vm8, 1.0, %v11191_v5  ;;  %vm1711_vm0 = vcmp.eq.f32.partialorder %v6871_v6, %v7011_v50 }
  0x71   :  { %v6266_v37 = vsel %vm1711_vm0, 1.0, %v11191_v5  ;;  %vm1721_vm8 = vcmp.eq.f32.partialorder %v6888_v9, %v6940_v24  ;;  %v6280_v24 = vsel %vm1725_vm9, 1.0, %v11191_v5  ;;  %vm11274_vm9 = vcmask 1042432  }
  0x72   :  { %6442 = vrot.lane.b32.xlu0 %v6441_v16, %s6816_s28  ;;  %v6276_v20 = vsel %vm1721_vm8, 1.0, %v11191_v5  ;;  %vm11275_vm8 = vcmask 1041408  }
  0x73   :  { %6367 = vrot.lane.b32.xlu1 %v6366_v12, %s6816_s28  ;;  %v6251_v12 = vsel %vm1696_vm1, 1.0, %v11191_v5  ;;  %vm1712_vm1 = vcmp.eq.f32.partialorder %v6871_v6, %v7018_v53  ;;  %v6268_v6 = vsel %vm1713_vm4, 1.0, %v11191_v5  ;;  %v7292_v53 = vsub.s32 %v7077_v29, %v6916_v15 }
  0x74   :  { %v6426_v18 = vpack.i.bf16 %v6251_v12, %v6250_v10  ;;  %v6496_v59 = vpack.i.bf16 %v6280_v24, %v6276_v20 }
  0x75   :  { %11483 = vst [vmem:[#allocation19_spill] sm:$0xff] %v7292_v53 }
  0x76   :  { %6452 = vrot.lane.b32.xlu0 %v6451_v26, %s6816_s28 }
  0x77   :  { %6377 = vrot.lane.b32.xlu1 %v6376_v22, %s6816_s28  ;;  %v6254_v22 = vsel %vm1699_vm6, 1.0, %v11191_v5  ;;  %vm1719_vm6 = vcmp.eq.f32.partialorder %v6888_v9, %v7011_v50  ;;  %v7285_v50 = vsel %vm1727_vm14, 1.0, %v11191_v5 }
  0x78   :  { %v6436_v27 = vpack.i.bf16 %v6255_v23, %v6254_v22  ;;  %v6274_v44 = vsel %vm1719_vm6, 1.0, %v11191_v5 }
  0x7a   :  { %6462 = vrot.lane.b32.xlu0 %v6461_v32, %s6816_s28  ;;  %v6446_v32 = vpack.i.bf16 %v6259_v28, %v6258_v4 }
  0x7b   :  { %6387 = vrot.lane.b32.xlu1 %v6386_v30, %s6816_s28 }
  0x7d   :  { %v7116_v46 = vpop.permute.xlu1 %120  ;;  %v7118_v48 = vpop.permute.xlu0 %110 }
  0x7e   :  { %11469 = vst [vmem:[#allocation5_spill] sm:$0xff] %v7116_v46  ;;  %vm149_vm10 = vcmp.eq.f32.partialorder %v7110_v45, %v7118_v48  ;;  %6472 = vrot.lane.b32.xlu0 %v6471_v41, %s6816_s28  ;;  %vm151_vm11 = vcmp.eq.f32.partialorder %v7121_v49, %v7118_v48  ;;  %vm148_vm12 = vcmp.eq.f32.partialorder %v7124_v51, %v7118_v48 }
  0x7f   :  { %6397 = vrot.lane.b32.xlu1 %v6396_v39, %s6816_s28  ;;  %6286 = vmatprep.subr.msk.mxu0 %vm149_vm10, %v11185_v57  ;;  %vm150_vm13 = vcmp.eq.f32.partialorder %v7126_v52, %v7118_v48  ;;  %v6267_v39 = vsel %vm1712_vm1, 1.0, %v11191_v5  ;;  %vm157_vm0 = vcmp.eq.f32.partialorder %v7110_v45, %v7116_v46  ;;  %vm159_vm1 = vcmp.eq.f32.partialorder %v7121_v49, %v7116_v46 }
  0x80   :  { %6289 = vmatprep.subr.msk.mxu1 %vm151_vm11, %v11185_v57  ;;  %6287 = vmatpush1.msk.msra.mxu0 %vm148_vm12, %v11185_v57  ;;  %v6466_v1 = vpack.i.bf16 %v6267_v39, %v6266_v37  ;;  %vm156_vm4 = vcmp.eq.f32.partialorder %v7124_v51, %v7116_v46  ;;  %v6191_v60 = vsel %vm149_vm10, 1.0, %v11191_v5  ;;  %v6193_v29 = vsel %vm151_vm11, 1.0, %v11191_v5 }
  0x81   :  { %v7169_v61 = vpop.permute.xlu1 %125  ;;  %v7171_v62 = vpop.permute.xlu0 %115  ;;  %6290 = vmatpush1.msk.msra.mxu1 %vm150_vm13, %v11185_v57  ;;  %v6190_v2 = vsel %vm148_vm12, 1.0, %v11191_v5  ;;  %v6192_v3 = vsel %vm150_vm13, 1.0, %v11191_v5  ;;  %vm158_vm11 = vcmp.eq.f32.partialorder %v7126_v52, %v7116_v46  ;;  %v7329_v12 = vsel %vm157_vm0, 1.0, %v11191_v5 }
  0x82   :  { %11473 = vst [vmem:[#allocation9_spill] sm:$0xff] %v7169_v61  ;;  %11474 = vst [vmem:[#allocation10_spill] sm:$0xff] %v7171_v62  ;;  %vm153_vm2 = vcmp.eq.f32.partialorder %v7110_v45, %v7171_v62  ;;  %6482 = vrot.lane.b32.xlu0 %v6481_v56, %s6816_s28  ;;  %vm155_vm3 = vcmp.eq.f32.partialorder %v7121_v49, %v7171_v62  ;;  %v6476_v56 = vpack.i.bf16 %v6272_v42, %v6268_v6 }
  0x83   :  { %6407 = vrot.lane.b32.xlu1 %v6406_v54, %s6816_s28  ;;  %6292 = vmatprep.subr.msk.mxu0 %vm153_vm2, %v11185_v57  ;;  %v6275_v54 = vsel %vm1720_vm7, 1.0, %v11191_v5  ;;  %vm152_vm5 = vcmp.eq.f32.partialorder %v7124_v51, %v7171_v62  ;;  %vm154_vm10 = vcmp.eq.f32.partialorder %v7126_v52, %v7171_v62  ;;  %v7335_v48 = vsel %vm159_vm1, 1.0, %v11191_v5 }
  0x84   :  { %6295 = vmatprep.subr.msk.mxu1 %vm155_vm3, %v11185_v57  ;;  %v6486_v58 = vpack.i.bf16 %v6275_v54, %v6274_v44  ;;  %vm161_vm12 = vcmp.eq.f32.partialorder %v7110_v45, %v7169_v61  ;;  %v6197_v19 = vsel %vm155_vm3, 1.0, %v11191_v5  ;;  %v6194_v25 = vsel %vm152_vm5, 1.0, %v11191_v5 }
  0x85   :  { %v7203_v13 = vpop.permute.xlu1 %135  ;;  %v7205_v16 = vpop.permute.xlu0 %130  ;;  %vm11296_vm13 = vcmp.eq.f32.partialorder %v7121_v49, %v7169_v61  ;;  %v6196_v23 = vsel %vm154_vm10, 1.0, %v11191_v5  ;;  %v6203_v33 = vsel %vm161_vm12, 1.0, %v11191_v5  ;;  %vm11294_vm3 = vcmp.eq.f32.partialorder %v7126_v52, %v7169_v61 }
  0x86   :  { %11475 = vst [vmem:[#allocation11_spill] sm:$0xff] %v7203_v13  ;;  %11476 = vst [vmem:[#allocation12_spill] sm:$0xff] %v7205_v16  ;;  %6492 = vrot.lane.b32.xlu0 %v6491_v21, %s6816_s28  ;;  %v6205_v39 = vsel %vm11296_vm13, 1.0, %v11191_v5  ;;  %v7418_v24 = vsel %vm11294_vm3, 1.0, %v11191_v5  ;;  %vm11291_vm6 = vcmp.eq.f32.partialorder %v7110_v45, %v7205_v16  ;;  %vm11292_vm7 = vcmask 1040384  }
  0x87   :  { %6417 = vrot.lane.b32.xlu1 %v6416_v63, %s6816_s28  ;;  %vm2255_vm3 = vcmask 1047559   ;;  %vm2257_vm13 = vcmask 64512  }
  0x89   :  { %v7217_v26 = vpop.permute.xlu1 %145  ;;  %v7219_v43 = vpop.permute.xlu0 %140 }
  0x8a   :  { %11477 = vst [vmem:[#allocation13_spill] sm:$0xff] %v7217_v26  ;;  %11478 = vst [vmem:[#allocation14_spill] sm:$0xff] %v7219_v43  ;;  %6502 = vrot.lane.b32.xlu0 %v6501_v17, %s6816_s28  ;;  %v7341_v17 = vsel %vm156_vm4, 1.0, %v11191_v5 }
  0x8b   :  { %6427 = vrot.lane.b32.xlu1 %v6426_v18, %s6816_s28  ;;  %v6195_v18 = vsel %vm153_vm2, 1.0, %v11191_v5  ;;  %vm11295_vm2 = vcmp.eq.f32.partialorder %v7124_v51, %v7169_v61 }
  0x8c   :  { %v7407_v44 = vsel %vm11295_vm2, 1.0, %v11191_v5 }
  0x8e   :  { %v7233_v30 = vpop.permute.xlu1 %249  ;;  %v7235_v31 = vpop.permute.xlu0 %245  ;;  %6512 = vrot.lane.b32.xlu0 %v6511_v47, %s6816_s28  ;;  %v7370_v47 = vsel %vm158_vm11, 1.0, %v11191_v5 }
  0x8f   :  { %6437 = vrot.lane.b32.xlu1 %v6436_v27, %s6816_s28  ;;  %v7360_v22 = vmul.f32 %v6190_v2, %v7235_v31  ;;  %v7375_v27 = vmul.f32 %v6191_v60, %v7235_v31  ;;  %v7378_v4 = vmul.f32 %v6193_v29, %v7235_v31  ;;  %v7412_v20 = vmul.f32 %v6197_v19, %v7233_v30 }
  0x90   :  { %v7424_v29 = vmul.f32 %v6195_v18, %v7233_v30  ;;  %v7438_v61 = vmul.f32 %v6196_v23, %v7233_v30 }
  0x91   :  { %11485 = vst [vmem:[#allocation21_spill] sm:$0xff] %v7412_v20  ;;  %v350_v36 = vrot.slane %v7412_v20, 4 }
  0x92   :  { %v7245_v7 = vpop.permute.xlu1 %253  ;;  %v7247_v34 = vpop.permute.xlu0 %257  ;;  %11486 = vst [vmem:[#allocation22_spill] sm:$0xff] %v7424_v29  ;;  %11490 = vst [vmem:[#allocation26_spill] sm:$0xff] %v7438_v61 }
  0x93   :  { %6447 = vrot.lane.b32.xlu1 %v6446_v32, %s6816_s28  ;;  %v7463_v43 = vmul.f32 %v7335_v48, %v7245_v7 }
  0x96   :  { %v7256_v40 = vpop.permute.xlu1 %261  ;;  %v7258_v41 = vpop.permute.xlu0 %265 }
  0x97   :  { %11479 = vst [vmem:[#allocation15_spill] sm:$0xff] %v7256_v40  ;;  %11480 = vst [vmem:[#allocation16_spill] sm:$0xff] %v7258_v41  ;;  %6457 = vrot.lane.b32.xlu1 %v6456_v35, %s6816_s28  ;;  %v7393_v35 = vmul.f32 %v6192_v3, %v7235_v31  ;;  %v308_v3 = vrot.slane %v7360_v22, 4 }
  0x99   :  { %v320_v57 = vrot.slane %v7393_v35, 4 }
  0x9a   :  { %v7277_v55 = vpop.permute.xlu1 %269  ;;  %v7279_v9 = vpop.permute.xlu0 %273 }
  0x9b   :  { %11481 = vst [vmem:[#allocation17_spill] sm:$0xff] %v7277_v55  ;;  %11482 = vst [vmem:[#allocation18_spill] sm:$0xff] %v7279_v9  ;;  %6467 = vrot.lane.b32.xlu1 %v6466_v1, %s6816_s28  ;;  %v11495_v55 = vpack.i.bf16 %v7288_v8, %v7285_v50  ;;  %v7466_v50 = vadd.f32 %v350_v36, %v7412_v20 }
  0x9d   :  { %11498 = vst [vmem:[#allocation33_spill] sm:$0xff] %v7466_v50 }
  0x9f   :  { %v502_v63 = vpop.permute.xlu1 %501  ;;  %v758_v10 = vpop.permute.xlu0 %757  ;;  %6477 = vrot.lane.b32.xlu1 %v6476_v56, %s6816_s28  ;;  %v314_v56 = vrot.slane %v7375_v27, 4 }
  0xa0   :  { %v532_v14 = vmul.f32 %v502_v63, %v7360_v22  ;;  %v788_v37 = vmul.f32 %v758_v10, %v7360_v22  ;;  %v533_v1 = vmul.f32 %v502_v63, %v7375_v27  ;;  %v535_v6 = vmul.f32 %v502_v63, %v7378_v4 }
  0xa1   :  { %v789_v42 = vmul.f32 %v758_v10, %v7375_v27  ;;  %v534_v31 = vmul.f32 %v502_v63, %v7393_v35  ;;  %v790_v54 = vmul.f32 %v758_v10, %v7393_v35  ;;  %v791_v60 = vmul.f32 %v758_v10, %v7378_v4 }
  0xa2   :  { %v564_v19 = vrot.slane %v532_v14, 4  ;;  %v820_v0 = vrot.slane %v788_v37, 4  ;;  %v570_v11 = vrot.slane %v533_v1, 4  ;;  %v582_v5 = vrot.slane %v535_v6, 4 }
  0xa3   :  { %v7380_v28 = vpop.permute.xlu1 %509  ;;  %v7382_v32 = vpop.permute.xlu0 %769  ;;  %6487 = vrot.lane.b32.xlu1 %v6486_v58, %s6816_s28  ;;  %v326_v58 = vrot.slane %v7378_v4, 4  ;;  %v826_v21 = vrot.slane %v789_v42, 4  ;;  %v7434_v10 = vmul.f32 %v6194_v25, %v7233_v30  ;;  %v576_v18 = vrot.slane %v534_v31, 4 }
  0xa4   :  { %11484 = vst [vmem:[#allocation20_spill] sm:$0xff] %v7382_v32  ;;  %v832_v38 = vrot.slane %v790_v54, 4  ;;  %v838_v26 = vrot.slane %v791_v60, 4  ;;  %v7456_v30 = vadd.f32 %v308_v3, %v7360_v22  ;;  %v565_v23 = vadd.f32 %v564_v19, %v532_v14 }
  0xa5   :  { %11489 = vst [vmem:[#allocation25_spill] sm:$0xff] %v7434_v10  ;;  %v7444_v9 = vadd.f32 %v326_v58, %v7378_v4  ;;  %v821_v58 = vadd.f32 %v820_v0, %v788_v37  ;;  %v583_v53 = vadd.f32 %v582_v5, %v535_v6  ;;  %v827_v46 = vadd.f32 %v826_v21, %v789_v42 }
  0xa6   :  { %11496 = vst [vmem:[#allocation31_spill] sm:$0xff] %v7456_v30  ;;  %v7476_v0 = vmul.f32 %v7329_v12, %v7245_v7  ;;  %v7480_v5 = vmul.f32 %v7341_v17, %v7245_v7  ;;  %v7483_v21 = vmul.f32 %v6203_v33, %v7247_v34  ;;  %v7490_v17 = vmul.f32 %v7370_v47, %v7245_v7 }
  0xa7   :  { %v7426_v63 = vpop.permute.xlu1 %513  ;;  %v7428_v2 = vpop.permute.xlu0 %777  ;;  %6497 = vrot.lane.b32.xlu1 %v6496_v59, %s6816_s28  ;;  %v7441_v59 = vadd.f32 %v314_v56, %v7375_v27  ;;  %11492 = vst [vmem:[#allocation28_spill] sm:$0xff] %v7444_v9  ;;  %v7459_v56 = vadd.f32 %v320_v57, %v7393_v35  ;;  %v839_v57 = vadd.f32 %v838_v26, %v791_v60  ;;  %v584_v48 = vrot.slane %v583_v53, 2 }
  0xa8   :  { %11487 = vst [vmem:[#allocation23_spill] sm:$0xff] %v7426_v63  ;;  %11488 = vst [vmem:[#allocation24_spill] sm:$0xff] %v7428_v2  ;;  %v833_v2 = vadd.f32 %v832_v38, %v790_v54  ;;  %v822_v38 = vrot.slane %v821_v58, 2  ;;  %v828_v37 = vrot.slane %v827_v46, 2  ;;  %v11506_v54 = vmov 0.0  }
  0xa9   :  { %11491 = vst [vmem:[#allocation27_spill] sm:$0xff] %v7441_v59  ;;  %11497 = vst [vmem:[#allocation32_spill] sm:$0xff] %v7459_v56  ;;  %v571_v59 = vadd.f32 %v570_v11, %v533_v1  ;;  %v566_v11 = vrot.slane %v565_v23, 2  ;;  %v840_v42 = vrot.slane %v839_v57, 2  ;;  %v6207_v60 = vsel %vm11291_vm6, 1.0, %v11506_v54 }
  0xaa   :  { %11501 = vst [vmem:[#allocation36_spill] sm:$0xff] %v7476_v0  ;;  %11502 = vst [vmem:[#allocation37_spill] sm:$0xff] %v7480_v5  ;;  %v834_v1 = vrot.slane %v833_v2, 2  ;;  %v823_v19 = vadd.f32 %v822_v38, %v821_v58  ;;  %v7509_v33 = vmul.f32 %v7418_v24, %v7247_v34  ;;  %v829_v9 = vadd.f32 %v828_v37, %v827_v46 }
  0xab   :  { %v7447_v62 = vpop.permute.xlu1 %521  ;;  %v7449_v25 = vpop.permute.xlu0 %785  ;;  %6507 = vrot.lane.b32.xlu1 %v11495_v55, %s6816_s28  ;;  %v7469_v55 = vmul.f32 %v6205_v39, %v7247_v34  ;;  %11503 = vst [vmem:[#allocation38_spill] sm:$0xff] %v7483_v21  ;;  %v572_v26 = vrot.slane %v571_v59, 2  ;;  %v374_v39 = vrot.slane %v7463_v43, 4  ;;  %11504 = vst [vmem:[#allocation39_spill] sm:$0xff] %v7490_v17  ;;  %v567_v3 = vadd.f32 %v566_v11, %v565_v23 }
  0xac   :  { %11493 = vst [vmem:[#allocation29_spill] sm:$0xff] %v7447_v62  ;;  %11494 = vst [vmem:[#allocation30_spill] sm:$0xff] %v7449_v25  ;;  %v577_v25 = vadd.f32 %v576_v18, %v534_v31  ;;  %v7496_v31 = vmul.f32 %v7407_v44, %v7247_v34  ;;  %v585_v44 = vadd.f32 %v584_v48, %v583_v53  ;;  %vm2249_vm6 = vcmask 1044484  }
  0xad   :  { %11499 = vst [vmem:[#allocation34_spill] sm:$0xff] %v7469_v55  ;;  %v398_v6 = vrot.slane %v7469_v55, 4  ;;  %11508 = vst [vmem:[#allocation42_spill] sm:$0xff] %v7509_v33  ;;  %v573_v8 = vadd.f32 %v572_v26, %v571_v59  ;;  %v7512_v56 = vadd.f32 %v374_v39, %v7463_v43  ;;  %v835_v23 = vadd.f32 %v834_v1, %v833_v2 }
  0xae   :  { %v578_v12 = vrot.slane %v577_v25, 2  ;;  %11505 = vst [vmem:[#allocation40_spill] sm:$0xff] %v7496_v31  ;;  %v7518_v11 = vmul.f32 %v6207_v60, %v7256_v40  ;;  %v841_v38 = vadd.f32 %v840_v42, %v839_v57  ;;  %v541_v34 = vmul.f32 %v7380_v28, %v7476_v0 }
  0xaf   :  { %v7472_v14 = vpop.permute.xlu1 %529  ;;  %11509 = vst [vmem:[#allocation43_spill] sm:$0xff] %v7512_v56  ;;  %v7515_v58 = vadd.f32 %v398_v6, %v7469_v55  ;;  %v543_v53 = vmul.f32 %v7380_v28, %v7463_v43  ;;  %v540_v46 = vmul.f32 %v7380_v28, %v7480_v5  ;;  %v568_v24 = vrot.slane %v567_v3, 1 }
  0xb0   :  { %11500 = vst [vmem:[#allocation35_spill] sm:$0xff] %v7472_v14  ;;  %v1018_v36 = vpop.permute.xlu0 %1017  ;;  %v579_v30 = vadd.f32 %v578_v12, %v577_v25  ;;  %11511 = vst [vmem:[#allocation45_spill] sm:$0xff] %v7518_v11  ;;  %v824_v59 = vrot.slane %v823_v19, 1  ;;  %v542_v57 = vmul.f32 %v7380_v28, %v7490_v17  ;;  %v574_v48 = vrot.slane %v573_v8, 1 }
  0xb1   :  { %11510 = vst [vmem:[#allocation44_spill] sm:$0xff] %v7515_v58  ;;  %v1049_v2 = vmul.f32 %v1018_v36, %v7424_v29  ;;  %v586_v37 = vrot.slane %v585_v44, 1  ;;  %v830_v39 = vrot.slane %v829_v9, 1  ;;  %v1051_v12 = vmul.f32 %v1018_v36, %v7412_v20 }
  0xb2   :  { %v580_v1 = vrot.slane %v579_v30, 1  ;;  %v836_v6 = vrot.slane %v835_v23, 1  ;;  %v1048_v42 = vmul.f32 %v1018_v36, %v7434_v10  ;;  %v1050_v60 = vmul.f32 %v1018_v36, %v7438_v61 }
  0xb3   :  { %v842_v47 = vrot.slane %v841_v38, 1  ;;  %v618_v58 = vrot.slane %v541_v34, 4  ;;  %v630_v56 = vrot.slane %v543_v53, 4  ;;  %v612_v50 = vrot.slane %v540_v46, 4 }
  0xb4   :  { %v7502_v18 = vpop.permute.xlu1 %761  ;;  %v7504_v7 = vpop.permute.xlu0 %1029  ;;  %v569_v14 = vadd.f32 %v568_v24, %v567_v3  ;;  %v1106_v62 = vrot.slane %v1049_v2, 4  ;;  %v624_v28 = vrot.slane %v542_v57, 4  ;;  %v575_v45 = vadd.f32 %v574_v48, %v573_v8 }
  0xb5   :  { %11507 = vst [vmem:[#allocation41_spill] sm:$0xff] %v7504_v7  ;;  %v587_v13 = vadd.f32 %v586_v37, %v585_v44  ;;  %v831_v52 = vadd.f32 %v830_v39, %v829_v9  ;;  %v1118_v51 = vrot.slane %v1051_v12, 4  ;;  %v581_v54 = vadd.f32 %v580_v1, %v579_v30 }
  0xb6   :  { %v837_v7 = vadd.f32 %v836_v6, %v835_v23  ;;  %v1100_v49 = vrot.slane %v1048_v42, 4  ;;  %v1112_v16 = vrot.slane %v1050_v60, 4  ;;  %v843_v36 = vadd.f32 %v842_v47, %v841_v38 }
  0xb7   :  { %v7538_v11 = vadd.f32 %v618_v58, %v541_v34  ;;  %v7540_v33 = vadd.f32 %v630_v56, %v543_v53  ;;  %v7542_v3 = vadd.f32 %v612_v50, %v540_v46  ;;  %v1107_v24 = vadd.f32 %v1106_v62, %v1049_v2 }
  0xb8   :  { %v7527_v25 = vpop.permute.xlu1 %765  ;;  %v7529_v26 = vpop.permute.xlu0 %1037  ;;  %v793_v9 = vmul.f32 %v7502_v18, %v7424_v29  ;;  %v7551_v30 = vadd.f32 %v624_v28, %v542_v57  ;;  %v7554_v44 = vsel %vm11292_vm7, %v575_v45, %v831_v52  ;;  %v1119_v47 = vadd.f32 %v1118_v51, %v1051_v12 }
  0xb9   :  { %11512 = vst [vmem:[#allocation46_spill] sm:$0xff] %v7529_v26  ;;  %v825_v26 = vadd.f32 %v824_v59, %v823_v19  ;;  %v795_v56 = vmul.f32 %v7502_v18, %v7412_v20  ;;  %v792_v50 = vmul.f32 %v7502_v18, %v7434_v10  ;;  %v1101_v62 = vadd.f32 %v1100_v49, %v1048_v42 }
  0xba   :  { %v794_v23 = vmul.f32 %v7502_v18, %v7438_v61  ;;  %v1113_v58 = vadd.f32 %v1112_v16, %v1050_v60  ;;  %v7566_v38 = vsel %vm11292_vm7, %v587_v13, %v843_v36  ;;  %v1108_v53 = vrot.slane %v1107_v24, 2 }
  0xbb   :  { %v7545_v19 = vsel %vm11292_vm7, %v569_v14, %v825_v26  ;;  %v7561_v14 = vsel %vm11292_vm7, %v581_v54, %v837_v7  ;;  %v850_v46 = vrot.slane %v793_v9, 4  ;;  %v1120_v7 = vrot.slane %v1119_v47, 2 }
  0xbc   :  { %v7536_v41 = vpop.permute.xlu1 %773  ;;  %v862_v18 = vrot.slane %v795_v56, 4  ;;  %v844_v59 = vrot.slane %v792_v50, 4  ;;  %v1102_v26 = vrot.slane %v1101_v62, 2  ;;  %v856_v57 = vrot.slane %v794_v23, 4 }
  0xbd   :  { %11513 = vst [vmem:[#allocation47_spill] sm:$0xff] %v7536_v41  ;;  %v1270_v40 = vpop.permute.xlu0 %1269  ;;  %v1114_v48 = vrot.slane %v1113_v58, 2  ;;  %v1109_v6 = vadd.f32 %v1108_v53, %v1107_v24  ;;  %v851_v42 = vadd.f32 %v850_v46, %v793_v9  ;;  %v1121_v36 = vadd.f32 %v1120_v7, %v1119_v47 }
  0xbe   :  { %v1300_v54 = vmul.f32 %v1270_v40, %v7360_v22  ;;  %v1301_v16 = vmul.f32 %v1270_v40, %v7375_v27  ;;  %v1302_v2 = vmul.f32 %v1270_v40, %v7393_v35  ;;  %v1303_v37 = vmul.f32 %v1270_v40, %v7378_v4 }
  0xbf   :  { %v863_v49 = vadd.f32 %v862_v18, %v795_v56  ;;  %v857_v31 = vadd.f32 %v856_v57, %v794_v23  ;;  %v7586_v24 = vadd.f32 %v1114_v48, %v1113_v58  ;;  %v1110_v9 = vrot.slane %v1109_v6, 1 }
  0xc0   :  { %v7549_v8 = vpop.permute.xlu1 %781  ;;  %v1332_v60 = vrot.slane %v1300_v54, 4  ;;  %v1338_v34 = vrot.slane %v1301_v16, 4  ;;  %v1344_v40 = vrot.slane %v1302_v2, 4  ;;  %v852_v53 = vrot.slane %v851_v42, 2 }
  0xc1   :  { %11514 = vst [vmem:[#allocation48_spill] sm:$0xff] %v7549_v8  ;;  %v7568_v45 = vpop.permute.xlu0 %1281  ;;  %v845_v8 = vadd.f32 %v844_v59, %v792_v50  ;;  %v1122_v56 = vrot.slane %v1121_v36, 1  ;;  %v864_v46 = vrot.slane %v863_v49, 2 }
  0xc2   :  { %11515 = vst [vmem:[#allocation49_spill] sm:$0xff] %v7568_v45  ;;  %v1339_v7 = vadd.f32 %v1338_v34, %v1301_v16  ;;  %v1345_v50 = vadd.f32 %v1344_v40, %v1302_v2  ;;  %v1116_v34 = vrot.slane %v7586_v24, 1  ;;  %v7595_v16 = vadd.f32 %v1110_v9, %v1109_v6 }
  0xc4   :  { %11519 = vst [vmem:[#allocation53_spill] sm:$0xff] %v7595_v16  ;;  %v1340_v2 = vrot.slane %v1339_v7, 2  ;;  %v1346_v40 = vrot.slane %v1345_v50, 2 }
  0xc5   :  { %v1014_v13 = vpop.permute.xlu1 %1013  ;;  %v7582_v52 = vpop.permute.xlu0 %1289 }
  0xc6   :  { %v1044_v39 = vmul.f32 %v1014_v13, %v7360_v22  ;;  %v1045_v12 = vmul.f32 %v1014_v13, %v7375_v27  ;;  %v1046_v1 = vmul.f32 %v1014_v13, %v7393_v35  ;;  %v1047_v28 = vmul.f32 %v1014_v13, %v7378_v4  ;;  %11516 = vst [vmem:[#allocation50_spill] sm:$0xff] %v7582_v52 }
  0xc7   :  { %v1103_v22 = vadd.f32 %v1102_v26, %v1101_v62  ;;  %v1350_v27 = vrot.slane %v1303_v37, 4  ;;  %v1333_v4 = vadd.f32 %v1332_v60, %v1300_v54  ;;  %v846_v13 = vrot.slane %v845_v8, 2 }
  0xc8   :  { %v1076_v41 = vrot.slane %v1044_v39, 4  ;;  %v1082_v55 = vrot.slane %v1045_v12, 4  ;;  %v1088_v35 = vrot.slane %v1046_v1, 4  ;;  %v1094_v47 = vrot.slane %v1047_v28, 4 }
  0xc9   :  { %v7584_v51 = vpop.permute.xlu1 %1021  ;;  %v858_v52 = vrot.slane %v857_v31, 2  ;;  %v797_v62 = vmul.f32 %v7527_v25, %v7476_v0  ;;  %v1351_v23 = vadd.f32 %v1350_v27, %v1303_v37  ;;  %v7592_v57 = vpop.permute.xlu0 %1297  ;;  %v1104_v48 = vrot.slane %v1103_v22, 1 }
  0xca   :  { %v1077_v59 = vadd.f32 %v1076_v41, %v1044_v39  ;;  %v1083_v26 = vadd.f32 %v1082_v55, %v1045_v12  ;;  %v1089_v58 = vadd.f32 %v1088_v35, %v1046_v1  ;;  %11518 = vst [vmem:[#allocation52_spill] sm:$0xff] %v7592_v57  ;;  %v853_v54 = vadd.f32 %v852_v53, %v851_v42 }
  0xcb   :  { %v1334_v60 = vrot.slane %v1333_v4, 2  ;;  %v1095_v45 = vadd.f32 %v1094_v47, %v1047_v28  ;;  %v847_v39 = vadd.f32 %v846_v13, %v845_v8  ;;  %v859_v37 = vadd.f32 %v858_v52, %v857_v31 }
  0xcc   :  { %v1078_v32 = vrot.slane %v1077_v59, 2  ;;  %v874_v55 = vrot.slane %v797_v62, 4  ;;  %v1352_v12 = vrot.slane %v1351_v23, 2  ;;  %v1084_v1 = vrot.slane %v1083_v26, 2 }
  0xcd   :  { %v7588_v18 = vpop.permute.xlu1 %1025  ;;  %v1090_v27 = vrot.slane %v1089_v58, 2  ;;  %v7599_v35 = vpop.permute.xlu0 %6362  ;;  %v1053_v42 = vmul.f32 %v7584_v51, %v7476_v0  ;;  %v7603_v28 = vadd.f32 %v1122_v56, %v1121_v36  ;;  %v854_v6 = vrot.slane %v853_v54, 1 }
  0xce   :  { %11517 = vst [vmem:[#allocation51_spill] sm:$0xff] %v7588_v18  ;;  %v865_v18 = vadd.f32 %v864_v46, %v863_v49  ;;  %v1335_v49 = vadd.f32 %v1334_v60, %v1333_v4  ;;  %v1096_v9 = vrot.slane %v1095_v45, 2  ;;  %v1341_v47 = vadd.f32 %v1340_v2, %v1339_v7 }
  0xcf   :  { %11521 = vst [vmem:[#allocation55_spill] sm:$0xff] %v7603_v28  ;;  %v848_v46 = vrot.slane %v847_v39, 1  ;;  %v7607_v31 = vadd.f32 %v1104_v48, %v1103_v22  ;;  %v1347_v52 = vadd.f32 %v1346_v40, %v1345_v50  ;;  %v1079_v13 = vadd.f32 %v1078_v32, %v1077_v59 }
  0xd0   :  { %v866_v53 = vrot.slane %v865_v18, 1  ;;  %v860_v16 = vrot.slane %v859_v37, 1  ;;  %v875_v57 = vadd.f32 %v874_v55, %v797_v62  ;;  %v1085_v63 = vadd.f32 %v1084_v1, %v1083_v26 }
  0xd1   :  { %v7597_v41 = vpop.permute.xlu1 %1033  ;;  %11523 = vst [vmem:[#allocation57_spill] sm:$0xff] %v7607_v31  ;;  %v1091_v21 = vadd.f32 %v1090_v27, %v1089_v58  ;;  %v6373_v36 = vpop.permute.xlu0 %6372  ;;  %v1130_v56 = vrot.slane %v1053_v42, 4  ;;  %v7609_v28 = vadd.f32 %v854_v6, %v853_v54  ;;  %v1336_v4 = vrot.slane %v1335_v49, 1 }
  0xd2   :  { %11520 = vst [vmem:[#allocation54_spill] sm:$0xff] %v7597_v41  ;;  %v1353_v41 = vadd.f32 %v1352_v12, %v1351_v23  ;;  %v1097_v60 = vadd.f32 %v1096_v9, %v1095_v45  ;;  %v11525_v7 = vrot.slane %v7538_v11, 2  ;;  %v7614_v22 = vadd.f32 %v866_v53, %v865_v18 }
  0xd3   :  { %11524 = vst [vmem:[#allocation58_spill] sm:$0xff] %v7609_v28  ;;  %v1342_v50 = vrot.slane %v1341_v47, 1  ;;  %v7616_v32 = vadd.f32 %v848_v46, %v847_v39  ;;  %v7619_v59 = vadd.f32 %v1116_v34, %v7586_v24  ;;  %v1348_v62 = vrot.slane %v1347_v52, 1 }
  0xd4   :  { %v621_v2 = vadd.f32 %v11525_v7, %v7538_v11  ;;  %11526 = vst [vmem:[#allocation59_spill] sm:$0xff] %v7614_v22  ;;  %v1080_v23 = vrot.slane %v1079_v13, 1  ;;  %v7621_v58 = vadd.f32 %v860_v16, %v859_v37  ;;  %v876_v48 = vrot.slane %v875_v57, 2 }
  0xd5   :  { %v7605_v8 = vpop.permute.xlu1 %1041  ;;  %11527 = vst [vmem:[#allocation60_spill] sm:$0xff] %v7616_v32  ;;  %11528 = vst [vmem:[#allocation61_spill] sm:$0xff] %v7619_v59  ;;  %v1354_v45 = vrot.slane %v1353_v41, 1  ;;  %v1086_v54 = vrot.slane %v1085_v63, 1  ;;  %v1092_v40 = vrot.slane %v1091_v21, 1  ;;  %v7623_v55 = vpop.permute.xlu0 %6382  ;;  %v1131_v11 = vadd.f32 %v1130_v56, %v1053_v42 }
  0xd6   :  { %11522 = vst [vmem:[#allocation56_spill] sm:$0xff] %v7605_v8  ;;  %11529 = vst [vmem:[#allocation62_spill] sm:$0xff] %v7621_v58  ;;  %v1337_v18 = vadd.f32 %v1336_v4, %v1335_v49  ;;  %v1098_v12 = vrot.slane %v1097_v60, 1  ;;  %v622_v39 = vrot.slane %v621_v2, 1  ;;  %v11530_v24 = vrot.slane %v7540_v33, 2 }
  0xd7   :  { %v1343_v1 = vadd.f32 %v1342_v50, %v1341_v47  ;;  %v6365_v27 = vunpack.i.h.bf16 %v7599_v35  ;;  %v6364_v16 = vunpack.i.l.bf16 %v7599_v35  ;;  %v6374_v37 = vunpack.i.l.bf16 %v6373_v36 }
  0xd8   :  { %v633_v34 = vadd.f32 %v11530_v24, %v7540_v33  ;;  %v1349_v6 = vadd.f32 %v1348_v62, %v1347_v52  ;;  %v1081_v9 = vadd.f32 %v1080_v23, %v1079_v13  ;;  %v877_v46 = vadd.f32 %v876_v48, %v875_v57  ;;  %v7640_v52 = vld [vmem:[%s11181_s1] sm:$0xff] }
  0xd9   :  { %v799_v42 = vmul.f32 %v7527_v25, %v7463_v43  ;;  %v1355_v49 = vadd.f32 %v1354_v45, %v1353_v41  ;;  %v1087_v56 = vadd.f32 %v1086_v54, %v1085_v63  ;;  %v1093_v4 = vadd.f32 %v1092_v40, %v1091_v21  ;;  %v7634_v7 = vpop.permute.xlu0 %6392 }
  0xda   :  { %v1274_v26 = vpop.permute.xlu1 %1273  ;;  %v1132_v33 = vrot.slane %v1131_v11, 2  ;;  %v1099_v47 = vadd.f32 %v1098_v12, %v1097_v60  ;;  %v6375_v50 = vunpack.i.h.bf16 %v6373_v36  ;;  %v623_v24 = vadd.f32 %v622_v39, %v621_v2 }
  0xdb   :  { %v634_v59 = vrot.slane %v633_v34, 1  ;;  %v1305_v35 = vmul.f32 %v1274_v26, %v7424_v29  ;;  %v7643_v57 = vmul.f32 %v7640_v52, %v6364_v16  ;;  %v7646_v63 = vmul.f32 %v7640_v52, %v6365_v27 }
  0xdc   :  { %v7649_v21 = vmul.f32 %v7640_v52, %v6374_v37  ;;  %v1558_v41 = vsel %vm11275_vm8, %v7545_v19, %v1081_v9  ;;  %v1307_v13 = vmul.f32 %v1274_v26, %v7412_v20  ;;  %v878_v60 = vrot.slane %v877_v46, 1 }
  0xdd   :  { %v886_v2 = vrot.slane %v799_v42, 4  ;;  %v1559_v62 = vsel %vm11275_vm8, %v7554_v44, %v1087_v56  ;;  %v1560_v23 = vsel %vm11275_vm8, %v7561_v14, %v1093_v4  ;;  %v7660_v48 = vpop.permute.xlu0 %6402  ;;  %v1304_v45 = vmul.f32 %v1274_v26, %v7434_v10 }
  0xde   :  { %v7630_v53 = vpop.permute.xlu1 %1277  ;;  %v1133_v54 = vadd.f32 %v1132_v33, %v1131_v11  ;;  %v1561_v19 = vsel %vm11275_vm8, %v7566_v38, %v1099_v47  ;;  %v7666_v40 = vmul.f32 %v7640_v52, %v6375_v50  ;;  %v1306_v12 = vmul.f32 %v1274_v26, %v7438_v61 }
  0xdf   :  { %v1055_v39 = vmul.f32 %v7584_v51, %v7463_v43  ;;  %v7672_v44 = vsel %vm11274_vm9, %v1558_v41, %v1337_v18  ;;  %v1362_v14 = vrot.slane %v1305_v35, 4  ;;  %v6385_v27 = vunpack.i.h.bf16 %v7623_v55 }
  0xe0   :  { %11531 = vst [vmem:[#allocation63_spill] sm:$0xff] %v7672_v44  ;;  %v6384_v16 = vunpack.i.l.bf16 %v7623_v55  ;;  %v7677_v11 = vsel %vm11274_vm9, %v1559_v62, %v1343_v1  ;;  %v7680_v38 = vsel %vm11274_vm9, %v1560_v23, %v1349_v6  ;;  %v1374_v37 = vrot.slane %v1307_v13, 4 }
  0xe1   :  { %11532 = vst [vmem:[#allocation64_spill] sm:$0xff] %v7677_v11  ;;  %11533 = vst [vmem:[#allocation65_spill] sm:$0xff] %v7680_v38  ;;  %v887_v26 = vadd.f32 %v886_v2, %v799_v42  ;;  %v7685_v56 = vsel %vm11274_vm9, %v1561_v19, %v1355_v49  ;;  %v7687_v18 = vpop.permute.xlu0 %6412  ;;  %v1356_v4 = vrot.slane %v1304_v45, 4  ;;  %v879_v33 = vadd.f32 %v878_v60, %v877_v46  ;;  %v7696_v42 = vld [vmem:[%s11181_s1 + $0x8] sm:$0xff] }
  0xe2   :  { %v7654_v36 = vpop.permute.xlu1 %1285  ;;  %11535 = vst [vmem:[#allocation67_spill] sm:$0xff] %v7685_v56  ;;  %v1134_v47 = vrot.slane %v1133_v54, 1  ;;  %v1368_v50 = vrot.slane %v1306_v12, 4  ;;  %v1309_v55 = vmul.f32 %v7630_v53, %v7476_v0  ;;  %v7691_v1 = vadd.f32 %v634_v59, %v633_v34 }
  0xe3   :  { %v1142_v6 = vrot.slane %v1055_v39, 4  ;;  %v1363_v41 = vadd.f32 %v1362_v14, %v1305_v35  ;;  %v7699_v49 = vmul.f32 %v7696_v42, %v6384_v16  ;;  %v7702_v2 = vmul.f32 %v7696_v42, %v6385_v27 }
  0xe4   :  { %11536 = vst [vmem:[#allocation68_spill] sm:$0xff] %v7691_v1  ;;  %v11537_v46 = vrot.slane %v7542_v3, 2  ;;  %v1375_v59 = vadd.f32 %v1374_v37, %v1307_v13  ;;  %v6395_v35 = vunpack.i.h.bf16 %v7634_v7  ;;  %v6394_v62 = vunpack.i.l.bf16 %v7634_v7 }
  0xe5   :  { %v888_v23 = vrot.slane %v887_v26, 2  ;;  %v7711_v1 = vpop.permute.xlu0 %6422  ;;  %v1357_v16 = vadd.f32 %v1356_v4, %v1304_v45  ;;  %v7713_v31 = vadd.f32 %v1134_v47, %v1133_v54  ;;  %v1369_v27 = vadd.f32 %v1368_v50, %v1306_v12 }
  0xe6   :  { %v7682_v9 = vpop.permute.xlu1 %1293  ;;  %v7707_v60 = vadd.f32 %v11537_v46, %v7542_v3  ;;  %v1386_v22 = vrot.slane %v1309_v55, 4  ;;  %v7716_v58 = vsel %vm11292_vm7, %v623_v24, %v879_v33  ;;  %v7718_v3 = vadd.f32 %v1142_v6, %v1055_v39 }
  0xe7   :  { %11534 = vst [vmem:[#allocation66_spill] sm:$0xff] %v7682_v9  ;;  %11538 = vst [vmem:[#allocation69_spill] sm:$0xff] %v7713_v31  ;;  %v1364_v13 = vrot.slane %v1363_v41, 2  ;;  %v1376_v46 = vrot.slane %v1375_v59, 2  ;;  %v7726_v45 = vmul.f32 %v7696_v42, %v6395_v35  ;;  %v889_v54 = vadd.f32 %v888_v23, %v887_v26 }
  0xe8   :  { %11539 = vst [vmem:[#allocation70_spill] sm:$0xff] %v7716_v58  ;;  %v6405_v24 = vunpack.i.h.bf16 %v7660_v48  ;;  %v6404_v39 = vunpack.i.l.bf16 %v7660_v48  ;;  %v1358_v33 = vrot.slane %v1357_v16, 2  ;;  %v6819_v47 = vmov 1966171168  }
  0xe9   :  { %v7730_v4 = vpop.permute.xlu0 %6432  ;;  %v3942_v50 = vunpack.c.l.s4 %v6819_v47  ;;  %v1370_v6 = vrot.slane %v1369_v27, 2  ;;  %v1365_v35 = vadd.f32 %v1364_v13, %v1363_v41  ;;  %v6414_v23 = vunpack.i.l.bf16 %v7687_v18 }
  0xea   :  { %v6358_v34 = vpop.permute.xlu1 %6357  ;;  %v6415_v48 = vunpack.i.h.bf16 %v7687_v18  ;;  %v890_v58 = vrot.slane %v889_v54, 1  ;;  %v796_v47 = vmul.f32 %v7527_v25, %v7480_v5  ;;  %v1359_v18 = vadd.f32 %v1358_v33, %v1357_v16 }
  0xeb   :  { %v6360_v19 = vunpack.i.h.bf16 %v6358_v34  ;;  %v6359_v14 = vunpack.i.l.bf16 %v6358_v34  ;;  %v7723_v34 = vmul.f32 %v7696_v42, %v6394_v62  ;;  %v1311_v62 = vmul.f32 %v7630_v53, %v7463_v43  ;;  %v7744_v43 = vld [vmem:[%s11181_s1 + $0x10] sm:$0xff] }
  0xec   :  { %v1371_v13 = vadd.f32 %v1370_v6, %v1369_v27  ;;  %v7756_v32 = vmul.f32 %v7744_v43, %v6414_v23  ;;  %v7763_v16 = vadd.f32 %v890_v58, %v889_v54  ;;  %v868_v27 = vrot.slane %v796_v47, 4 }
  0xed   :  { %v2116_v37 = vmul.f32 %v7640_v52, %v6360_v19  ;;  %v2115_v7 = vmul.f32 %v7640_v52, %v6359_v14  ;;  %v1387_v19 = vadd.f32 %v1386_v22, %v1309_v55  ;;  %v1144_v14 = vrot.slane %v7718_v3, 2  ;;  %v7749_v41 = vpop.permute.xlu0 %6442 }
  0xee   :  { %v6368_v28 = vpop.permute.xlu1 %6367  ;;  %v7747_v55 = vmul.f32 %v7744_v43, %v6405_v24  ;;  %v7761_v24 = vmul.f32 %v7744_v43, %v6415_v48  ;;  %11540 = vst [vmem:[#allocation71_spill] sm:$0xff] %v7763_v16  ;;  %v1052_v6 = vmul.f32 %v7584_v51, %v7480_v5  ;;  %v6425_v58 = vunpack.i.h.bf16 %v7711_v1 }
  0xef   :  { %v6369_v12 = vunpack.i.l.bf16 %v6368_v28  ;;  %2191 = vperm.xlu0 %6517, %v2116_v37   ;;  %2188 = vperm.xlu1 %6516, %v2115_v7   ;;  %v1377_v37 = vadd.f32 %v1376_v46, %v1375_v59  ;;  %v6370_v31 = vunpack.i.h.bf16 %v6368_v28  ;;  %v3943_v59 = vunpack.c.0.s8 %v3942_v50 }
  0xf0   :  { %v1388_v46 = vrot.slane %v1387_v19, 2  ;;  %v1366_v28 = vrot.slane %v1365_v35, 1  ;;  %v6424_v54 = vunpack.i.l.bf16 %v7711_v1  ;;  %v1310_v29 = vmul.f32 %v7630_v53, %v7490_v17 }
  0xf1   :  { %v2119_v26 = vmul.f32 %v7640_v52, %v6369_v12  ;;  %v1398_v12 = vrot.slane %v1311_v62, 4  ;;  %v1378_v20 = vrot.slane %v1377_v37, 1  ;;  %v2120_v50 = vmul.f32 %v7640_v52, %v6370_v31  ;;  %v7779_v31 = vld [vmem:[%s11182_s2] sm:$0xff] }
  0xf2   :  { %v6378_v7 = vpop.permute.xlu1 %6377  ;;  %v7770_v23 = vsub.s32 %v3943_v59, %v6916_v15  ;;  %v1389_v38 = vadd.f32 %v1388_v46, %v1387_v19  ;;  %v7772_v11 = vadd.f32 %v1366_v28, %v1365_v35  ;;  %v1145_v52 = vadd.f32 %v1144_v14, %v7718_v3 }
  0xf3   :  { %v6379_v22 = vunpack.i.l.bf16 %v6378_v7  ;;  %2200 = vperm.xlu0 %6517, %v2119_v26   ;;  %2194 = vperm.xlu1 %6516, %v7643_v57   ;;  %v7753_v57 = vmul.f32 %v7744_v43, %v6404_v39  ;;  %v6380_v33 = vunpack.i.h.bf16 %v6378_v7  ;;  %v1360_v39 = vrot.slane %v1359_v18, 1  ;;  %v6453_v7 = vpop.permute.xlu0 %6452 }
  0xf4   :  { %v1399_v48 = vadd.f32 %v1398_v12, %v1311_v62  ;;  %11541 = vst [vmem:[#allocation72_spill] sm:$0xff] %v7772_v11  ;;  %v6435_v15 = vunpack.i.h.bf16 %v7730_v4  ;;  %v6434_v19 = vunpack.i.l.bf16 %v7730_v4  ;;  %v869_v62 = vadd.f32 %v868_v27, %v796_v47 }
  0xf5   :  { %v2123_v26 = vmul.f32 %v7696_v42, %v6379_v22  ;;  %v1372_v22 = vrot.slane %v1371_v13, 1  ;;  %v2124_v35 = vmul.f32 %v7696_v42, %v6380_v33  ;;  %v7789_v59 = vadd.f32 %v1360_v39, %v1359_v18 }
  0xf6   :  { %v7758_v56 = vpop.permute.xlu1 %6387  ;;  %v1124_v46 = vrot.slane %v1052_v6, 4  ;;  %v1390_v14 = vrot.slane %v1389_v38, 1  ;;  %v1400_v4 = vrot.slane %v1399_v48, 2  ;;  %v1146_v28 = vrot.slane %v1145_v52, 1 }
  0xf7   :  { %2411 = vperm.xlu0 %6517, %v2123_v26   ;;  %2197 = vperm.xlu1 %6516, %v7646_v63   ;;  %v7782_v63 = vadd.f32 %v1378_v20, %v1377_v37  ;;  %v6389_v1 = vunpack.i.l.bf16 %v7758_v56  ;;  %11543 = vst [vmem:[#allocation74_spill] sm:$0xff] %v7789_v59  ;;  %v3947_v20 = vrot.slane %v7779_v31, %v7770_v23  ;;  %v6463_v18 = vpop.permute.xlu0 %6462  ;;  %v616_v26 = vrot.slane %v7707_v60, 1 }
  0xf8   :  { %v7795_v3 = vadd.f32 %v1372_v22, %v1371_v13  ;;  %v6445_v33 = vunpack.i.h.bf16 %v7749_v41  ;;  %v6454_v11 = vunpack.i.l.bf16 %v6453_v7  ;;  %v6465_v59 = vunpack.i.h.bf16 %v6463_v18 }
  0xf9   :  { %11542 = vst [vmem:[#allocation73_spill] sm:$0xff] %v7782_v63  ;;  %v2127_v22 = vmul.f32 %v7696_v42, %v6389_v1  ;;  %v3955_v16 = vcombine.high %v3947_v20, %v3947_v20  ;;  %v7822_v63 = vadd.f32 %v1390_v14, %v1389_v38  ;;  %v7837_v38 = vadd.f32 %v616_v26, %v7707_v60 }
  0xfa   :  { %v7791_v12 = vpop.permute.xlu1 %6397  ;;  %11544 = vst [vmem:[#allocation75_spill] sm:$0xff] %v7795_v3  ;;  %v6455_v3 = vunpack.i.h.bf16 %v6453_v7  ;;  %v6390_v7 = vunpack.i.h.bf16 %v7758_v56  ;;  %v7851_v56 = vld [vmem:[%s11181_s1 + $0x28] sm:$0xff] }
  0xfb   :  { %2206 = vperm.xlu0 %6517, %v7649_v21   ;;  %2203 = vperm.xlu1 %6516, %v2120_v50   ;;  %v7800_v21 = vld [vmem:[%s11181_s1 + $0x18] sm:$0xff]  ;;  %v870_v50 = vrot.slane %v869_v62, 2  ;;  %v6399_v39 = vunpack.i.l.bf16 %v7791_v12  ;;  %11545 = vst [vmem:[#allocation76_spill] sm:$0xff] %v7822_v63  ;;  %v6473_v44 = vpop.permute.xlu0 %6472  ;;  %11547 = vst [vmem:[#allocation78_spill] sm:$0xff] %v7837_v38 }
  0xfc   :  { %v7803_v37 = vmul.f32 %v7800_v21, %v6425_v58  ;;  %v7806_v47 = vmul.f32 %v7800_v21, %v6424_v54  ;;  %v7810_v13 = vmul.f32 %v7800_v21, %v6435_v15  ;;  %v7813_v27 = vmul.f32 %v7800_v21, %v6434_v19 }
  0xfd   :  { %v1125_v58 = vadd.f32 %v1124_v46, %v1052_v6  ;;  %v1308_v54 = vmul.f32 %v7630_v53, %v7480_v5  ;;  %v6444_v15 = vunpack.i.l.bf16 %v7749_v41  ;;  %v1401_v19 = vadd.f32 %v1400_v4, %v1399_v48  ;;  %v7829_v6 = vld [vmem:[%s11181_s1 + $0x20] sm:$0xff]  ;;  %v11565_v53 = vld [vmem:[#allocation49_spill] sm:$0xff] }
  0xfe   :  { %v7832_v1 = vmul.f32 %v7829_v6, %v6445_v33  ;;  %v7834_v41 = vadd.f32 %v1146_v28, %v1145_v52  ;;  %v871_v48 = vadd.f32 %v870_v50, %v869_v62  ;;  %v6464_v33 = vunpack.i.l.bf16 %v6463_v18 }
  0xff   :  { %2209 = vperm.xlu0 %6517, %v7666_v40   ;;  %2414 = vperm.xlu1 %6516, %v2124_v35   ;;  %v3940_v40 = vcombine.high %v7779_v31, %v7779_v31  ;;  %v2131_v31 = vmul.f32 %v7744_v43, %v6399_v39  ;;  %v6408_v35 = vpop.permute.xlu1 %6407  ;;  %v1126_v46 = vrot.slane %v1125_v58, 2  ;;  %v1380_v14 = vrot.slane %v1308_v54, 4  ;;  %v6483_v26 = vpop.permute.xlu0 %6482 }
 0x100   :  { %11546 = vst [vmem:[#allocation77_spill] sm:$0xff] %v7834_v41  ;;  %v7843_v4 = vmul.f32 %v7829_v6, %v6444_v15  ;;  %v7846_v52 = vrot.slane %v3955_v16, %v7770_v23  ;;  %v1402_v60 = vrot.slane %v1401_v19, 1  ;;  %v7857_v62 = vmul.f32 %v7851_v56, %v6454_v11 }
 0x101   :  { %v7860_v28 = vmul.f32 %v7851_v56, %v6465_v59  ;;  %v7863_v18 = vrot.slane %v3940_v40, %v7770_v23  ;;  %v6475_v16 = vunpack.i.h.bf16 %v6473_v44  ;;  %v6474_v50 = vunpack.i.l.bf16 %v6473_v44 }
 0x102   :  { %11548 = vst [vmem:[#allocation79_spill] sm:$0xff] %v7846_v52  ;;  %v7866_v39 = vrot.slane %v3947_v20, %v7770_v23  ;;  %v2128_v15 = vmul.f32 %v7696_v42, %v6390_v7  ;;  %v1127_v11 = vadd.f32 %v1126_v46, %v1125_v58  ;;  %v1381_v59 = vadd.f32 %v1380_v14, %v1308_v54  ;;  %v11558_v7 = vld [vmem:[#allocation38_spill] sm:$0xff] }
 0x103   :  { %2423 = vperm.xlu0 %6517, %v2127_v22   ;;  %2417 = vperm.xlu1 %6516, %v7699_v49   ;;  %v7854_v49 = vmul.f32 %v7851_v56, %v6455_v3  ;;  %11549 = vst [vmem:[#allocation80_spill] sm:$0xff] %v7860_v28  ;;  %v872_v22 = vrot.slane %v871_v48, 1  ;;  %v6400_v3 = vunpack.i.h.bf16 %v7791_v12  ;;  %v7872_v63 = vmul.f32 %v7829_v6, %v6464_v33  ;;  %v6418_v0 = vpop.permute.xlu1 %6417 }
 0x104   :  { %11550 = vst [vmem:[#allocation81_spill] sm:$0xff] %v7866_v39  ;;  %v6485_v40 = vunpack.i.h.bf16 %v6483_v26  ;;  %v6484_v41 = vunpack.i.l.bf16 %v6483_v26  ;;  %v7874_v38 = vadd.f32 %v1402_v60, %v1401_v19  ;;  %v6410_v44 = vunpack.i.h.bf16 %v6408_v35  ;;  %v6493_v19 = vpop.permute.xlu0 %6492 }
 0x105   :  { %v6409_v20 = vunpack.i.l.bf16 %v6408_v35  ;;  %v7878_v42 = vcombine.high %v7866_v39, %v7866_v39  ;;  %v798_v12 = vmul.f32 %v7527_v25, %v7490_v17  ;;  %v2132_v35 = vmul.f32 %v7744_v43, %v6400_v3 }
 0x106   :  { %11551 = vst [vmem:[#allocation82_spill] sm:$0xff] %v7874_v38  ;;  %v1128_v25 = vrot.slane %v1127_v11, 1  ;;  %v1382_v46 = vrot.slane %v1381_v59, 2  ;;  %v1054_v14 = vmul.f32 %v7584_v51, %v7490_v17  ;;  %v7904_v60 = vmul.f32 %v7851_v56, %v6484_v41  ;;  %v11559_v38 = vld [vmem:[#allocation23_spill] sm:$0xff] }
 0x107   :  { %2626 = vperm.xlu0 %6517, %v2131_v31   ;;  %2420 = vperm.xlu1 %6516, %v7702_v2   ;;  %v7885_v2 = vld [vmem:[%s11181_s1 + $0x30] sm:$0xff]  ;;  %v7894_v31 = vadd.f32 %v872_v22, %v871_v48  ;;  %v6495_v26 = vunpack.i.h.bf16 %v6493_v19  ;;  %v11557_v48 = vrot.slane %v7551_v30, 2  ;;  %v7913_v22 = vpop.permute.xlu1 %6427  ;;  %v880_v51 = vrot.slane %v798_v12, 4 }
 0x108   :  { %v7888_v58 = vmul.f32 %v7885_v2, %v6475_v16  ;;  %v7891_v54 = vmul.f32 %v7885_v2, %v6474_v50  ;;  %v7901_v33 = vmul.f32 %v7885_v2, %v6485_v40  ;;  %11556 = vst [vmem:[#allocation87_spill] sm:$0xff] %v7904_v60  ;;  %v7910_v50 = vmul.f32 %v7744_v43, %v6410_v44  ;;  %v6503_v41 = vpop.permute.xlu0 %6502 }
 0x109   :  { %11554 = vst [vmem:[#allocation85_spill] sm:$0xff] %v7894_v31  ;;  %v627_v16 = vadd.f32 %v11557_v48, %v7551_v30  ;;  %v6420_v3 = vunpack.i.h.bf16 %v6418_v0  ;;  %v7917_v40 = vcombine.high %v7846_v52, %v7846_v52  ;;  %v545_v31 = vmul.f32 %v11559_v38, %v11558_v7 }
 0x10a   :  { %11552 = vst [vmem:[#allocation83_spill] sm:$0xff] %v7888_v58  ;;  %11553 = vst [vmem:[#allocation84_spill] sm:$0xff] %v7891_v54  ;;  %v6419_v30 = vunpack.i.l.bf16 %v6418_v0  ;;  %v7923_v44 = vadd.f32 %v1128_v25, %v1127_v11  ;;  %v11564_v25 = vld [vmem:[#allocation51_spill] sm:$0xff]  ;;  %v1313_v17 = vmul.f32 %v11565_v53, %v11558_v7  ;;  %v6504_v8 = vunpack.i.l.bf16 %v6503_v41 }
 0x10b   :  { %2429 = vperm.xlu0 %6517, %v7723_v34   ;;  %2426 = vperm.xlu1 %6516, %v2128_v15   ;;  %11555 = vst [vmem:[#allocation86_spill] sm:$0xff] %v7901_v33  ;;  %v2135_v34 = vmul.f32 %v7744_v43, %v6409_v20  ;;  %v6494_v15 = vunpack.i.l.bf16 %v6493_v19  ;;  %v1383_v43 = vadd.f32 %v1382_v46, %v1381_v59  ;;  %v1136_v20 = vrot.slane %v1054_v14, 4  ;;  %v7928_v19 = vld [vmem:[%s11181_s1 + $0x38] sm:$0xff]  ;;  %v6438_v10 = vpop.permute.xlu1 %6437 }
 0x10c   :  { %11560 = vst [vmem:[#allocation23_spill] sm:$0xff] %v7923_v44  ;;  %v7931_v48 = vmul.f32 %v7928_v19, %v6495_v26  ;;  %v628_v5 = vrot.slane %v627_v16, 1  ;;  %v7942_v59 = vrot.slane %v7863_v18, %v7770_v23  ;;  %v1057_v46 = vmul.f32 %v11564_v25, %v11558_v7 }
 0x10d   :  { %v7938_v11 = vmul.f32 %v7928_v19, %v6494_v15  ;;  %v2140_v26 = vmul.f32 %v7800_v21, %v6420_v3  ;;  %v6505_v44 = vunpack.i.h.bf16 %v6503_v41  ;;  %v642_v61 = vrot.slane %v545_v31, 4  ;;  %v6513_v41 = vpop.permute.xlu0 %6512 }
 0x10e   :  { %11561 = vst [vmem:[#allocation88_spill] sm:$0xff] %v7931_v48  ;;  %v2139_v15 = vmul.f32 %v7800_v21, %v6419_v30  ;;  %v1384_v39 = vrot.slane %v1383_v43, 1  ;;  %v1137_v9 = vadd.f32 %v1136_v20, %v1054_v14  ;;  %v1392_v52 = vrot.slane %v1310_v29, 4  ;;  %v11569_v20 = vld [vmem:[#allocation34_spill] sm:$0xff] }
 0x10f   :  { %2432 = vperm.xlu0 %6517, %v7726_v45   ;;  %2629 = vperm.xlu1 %6516, %v2132_v35   ;;  %v11562_v45 = vld [vmem:[#allocation20_spill] sm:$0xff]  ;;  %v881_v35 = vadd.f32 %v880_v51, %v798_v12  ;;  %v6430_v12 = vunpack.i.h.bf16 %v7913_v22  ;;  %v7952_v51 = vadd.f32 %v628_v5, %v627_v16  ;;  %v6429_v48 = vunpack.i.l.bf16 %v7913_v22  ;;  %v6448_v16 = vpop.permute.xlu1 %6447 }
 0x110   :  { %v801_v0 = vmul.f32 %v11562_v45, %v11558_v7  ;;  %11563 = vst [vmem:[#allocation20_spill] sm:$0xff] %v7938_v11  ;;  %v7957_v7 = vcombine.high %v7942_v59, %v7942_v59  ;;  %v7960_v30 = vmul.f32 %v7928_v19, %v6505_v44  ;;  %v643_v33 = vadd.f32 %v642_v61, %v545_v31 }
 0x111   :  { %11566 = vst [vmem:[#allocation51_spill] sm:$0xff] %v7952_v51  ;;  %v1410_v14 = vrot.slane %v1313_v17, 4  ;;  %v547_v5 = vmul.f32 %v11559_v38, %v11569_v20  ;;  %v7966_v22 = vmul.f32 %v7885_v2, %v6504_v8  ;;  %v3956_v51 = vcombine.high %v7863_v18, %v7863_v18 }
 0x112   :  { %v898_v3 = vrot.slane %v801_v0, 4  ;;  %11567 = vst [vmem:[#allocation49_spill] sm:$0xff] %v7957_v7  ;;  %11568 = vst [vmem:[#allocation89_spill] sm:$0xff] %v7960_v30  ;;  %v7970_v11 = vadd.f32 %v1384_v39, %v1383_v43  ;;  %v1138_v44 = vrot.slane %v1137_v9, 2  ;;  %v7973_v30 = vmul.f32 %v7800_v21, %v6430_v12 }
 0x113   :  { %2638 = vperm.xlu0 %6517, %v2135_v34   ;;  %2632 = vperm.xlu1 %6516, %v7753_v57   ;;  %v882_v34 = vrot.slane %v881_v35, 2  ;;  %v1154_v57 = vrot.slane %v1057_v46, 4  ;;  %11570 = vst [vmem:[#allocation34_spill] sm:$0xff] %v7966_v22  ;;  %v6515_v61 = vunpack.i.h.bf16 %v6513_v41  ;;  %v1393_v31 = vadd.f32 %v1392_v52, %v1310_v29  ;;  %v6458_v39 = vpop.permute.xlu1 %6457 }
 0x114   :  { %11571 = vst [vmem:[#allocation90_spill] sm:$0xff] %v7970_v11  ;;  %v899_v7 = vadd.f32 %v898_v3, %v801_v0  ;;  %v6440_v58 = vunpack.i.h.bf16 %v6438_v10  ;;  %v6439_v28 = vunpack.i.l.bf16 %v6438_v10  ;;  %v644_v54 = vrot.slane %v643_v33, 2  ;;  %v11574_v11 = vld [vmem:[#allocation40_spill] sm:$0xff] }
 0x115   :  { %v883_v60 = vadd.f32 %v882_v34, %v881_v35  ;;  %v1411_v8 = vadd.f32 %v1410_v14, %v1313_v17  ;;  %v654_v22 = vrot.slane %v547_v5, 4  ;;  %v2143_v18 = vmul.f32 %v7800_v21, %v6429_v48 }
 0x116   :  { %v7979_v43 = vrot.slane %v3956_v51, %v7770_v23  ;;  %v1139_v52 = vadd.f32 %v1138_v44, %v1137_v9  ;;  %v7983_v0 = vmul.f32 %v7928_v19, %v6515_v61  ;;  %v1394_v10 = vrot.slane %v1393_v31, 2 }
 0x117   :  { %2841 = vperm.xlu0 %6517, %v2139_v15   ;;  %2635 = vperm.xlu1 %6516, %v7747_v55   ;;  %v6514_v15 = vunpack.i.l.bf16 %v6513_v41  ;;  %v1155_v55 = vadd.f32 %v1154_v57, %v1057_v46  ;;  %v900_v35 = vrot.slane %v899_v7, 2  ;;  %v803_v17 = vmul.f32 %v11562_v45, %v11569_v20  ;;  %v6468_v34 = vpop.permute.xlu1 %6467 }
 0x118   :  { %v2147_v48 = vmul.f32 %v7829_v6, %v6439_v28  ;;  %v645_v46 = vadd.f32 %v644_v54, %v643_v33  ;;  %v1412_v9 = vrot.slane %v1411_v8, 2  ;;  %v655_v12 = vadd.f32 %v654_v22, %v547_v5 }
 0x119   :  { %v7991_v21 = vmul.f32 %v7928_v19, %v6514_v15  ;;  %v1156_v23 = vrot.slane %v1155_v55, 2  ;;  %v6450_v51 = vunpack.i.h.bf16 %v6448_v16  ;;  %v6449_v3 = vunpack.i.l.bf16 %v6448_v16 }
 0x11a   :  { %v1140_v57 = vrot.slane %v1139_v52, 1  ;;  %v6460_v41 = vunpack.i.h.bf16 %v6458_v39  ;;  %v1395_v14 = vadd.f32 %v1394_v10, %v1393_v31  ;;  %v901_v44 = vadd.f32 %v900_v35, %v899_v7 }
 0x11b   :  { %2644 = vperm.xlu0 %6517, %v7756_v32   ;;  %2641 = vperm.xlu1 %6516, %v7910_v50   ;;  %v7988_v32 = vmul.f32 %v7829_v6, %v6440_v58  ;;  %v884_v50 = vrot.slane %v883_v60, 1  ;;  %v1059_v58 = vmul.f32 %v11564_v25, %v11569_v20  ;;  %v910_v61 = vrot.slane %v803_v17, 4  ;;  %v6478_v15 = vpop.permute.xlu1 %6477 }
 0x11c   :  { %v7999_v28 = vcombine.high %v7979_v43, %v7979_v43  ;;  %v1157_v33 = vadd.f32 %v1156_v23, %v1155_v55  ;;  %v646_v5 = vrot.slane %v645_v46, 1  ;;  %v1413_v16 = vadd.f32 %v1412_v9, %v1411_v8 }
 0x11d   :  { %v8001_v54 = vadd.f32 %v884_v50, %v883_v60  ;;  %v656_v22 = vrot.slane %v655_v12, 2  ;;  %v8007_v7 = vmul.f32 %v7829_v6, %v6450_v51  ;;  %v8010_v31 = vmul.f32 %v7829_v6, %v6449_v3 }
 0x11e   :  { %v8012_v60 = vadd.f32 %v1140_v57, %v1139_v52  ;;  %v1166_v55 = vrot.slane %v1059_v58, 4  ;;  %v8015_v10 = vmul.f32 %v7851_v56, %v6460_v41  ;;  %v911_v8 = vadd.f32 %v910_v61, %v803_v17 }
 0x11f   :  { %2647 = vperm.xlu0 %6517, %v7761_v24   ;;  %2844 = vperm.xlu1 %6516, %v2140_v26   ;;  %11572 = vst [vmem:[#allocation91_spill] sm:$0xff] %v8001_v54  ;;  %v1315_v24 = vmul.f32 %v11565_v53, %v11569_v20  ;;  %v6459_v26 = vunpack.i.l.bf16 %v6458_v39  ;;  %v1396_v20 = vrot.slane %v1395_v14, 1  ;;  %v902_v39 = vrot.slane %v901_v44, 1  ;;  %v6488_v41 = vpop.permute.xlu1 %6487 }
 0x120   :  { %11573 = vst [vmem:[#allocation92_spill] sm:$0xff] %v8012_v60  ;;  %v6470_v35 = vunpack.i.h.bf16 %v6468_v34  ;;  %v1158_v50 = vrot.slane %v1157_v33, 1  ;;  %v647_v9 = vadd.f32 %v646_v5, %v645_v46  ;;  %v1414_v51 = vrot.slane %v1413_v16, 1 }
 0x121   :  { %v8018_v23 = vmul.f32 %v7829_v6, %v6459_v26  ;;  %v657_v3 = vadd.f32 %v656_v22, %v655_v12  ;;  %v6480_v52 = vunpack.i.h.bf16 %v6478_v15  ;;  %v6479_v57 = vunpack.i.l.bf16 %v6478_v15 }
 0x122   :  { %v1167_v29 = vadd.f32 %v1166_v55, %v1059_v58  ;;  %v544_v17 = vmul.f32 %v11559_v38, %v11574_v11  ;;  %v8023_v61 = vadd.f32 %v1396_v20, %v1395_v14  ;;  %v912_v60 = vrot.slane %v911_v8, 2 }
 0x123   :  { %2853 = vperm.xlu0 %6517, %v2143_v18   ;;  %2847 = vperm.xlu1 %6516, %v7806_v47   ;;  %v6469_v18 = vunpack.i.l.bf16 %v6468_v34  ;;  %v1422_v47 = vrot.slane %v1315_v24, 4  ;;  %v903_v34 = vadd.f32 %v902_v39, %v901_v44  ;;  %v800_v6 = vmul.f32 %v11562_v45, %v11574_v11 }
 0x124   :  { %11575 = vst [vmem:[#allocation93_spill] sm:$0xff] %v8023_v61  ;;  %v8028_v46 = vmul.f32 %v7851_v56, %v6470_v35  ;;  %v8035_v58 = vadd.f32 %v1414_v51, %v1413_v16  ;;  %v658_v14 = vrot.slane %v657_v3, 1  ;;  %v1056_v44 = vmul.f32 %v11564_v25, %v11574_v11 }
 0x125   :  { %v1423_v12 = vadd.f32 %v1422_v47, %v1315_v24  ;;  %v8038_v26 = vsel %vm11292_vm7, %v647_v9, %v903_v34  ;;  %v8045_v5 = vmul.f32 %v7885_v2, %v6480_v52  ;;  %v6498_v24 = vpop.permute.xlu1 %6497  ;;  %v1168_v16 = vrot.slane %v1167_v29, 2 }
 0x126   :  { %11577 = vst [vmem:[#allocation95_spill] sm:$0xff] %v8035_v58  ;;  %11578 = vst [vmem:[#allocation96_spill] sm:$0xff] %v8038_v26  ;;  %v636_v22 = vrot.slane %v544_v17, 4  ;;  %v6490_v15 = vunpack.i.h.bf16 %v6488_v41  ;;  %v913_v55 = vadd.f32 %v912_v60, %v911_v8  ;;  %v892_v20 = vrot.slane %v800_v6, 4  ;;  %v11584_v58 = vld [vmem:[#allocation12_spill] sm:$0xff]  ;;  %v11586_v26 = vld [vmem:[#allocation41_spill] sm:$0xff] }
 0x127   :  { %3056 = vperm.xlu0 %6517, %v2147_v48   ;;  %2850 = vperm.xlu1 %6516, %v7803_v37   ;;  %v8031_v48 = vmul.f32 %v7851_v56, %v6469_v18  ;;  %v8033_v37 = vadd.f32 %v1158_v50, %v1157_v33  ;;  %v8048_v33 = vmul.f32 %v7851_v56, %v6479_v57  ;;  %v6489_v35 = vunpack.i.l.bf16 %v6488_v41  ;;  %v11580_v56 = vld [vmem:[#allocation42_spill] sm:$0xff] }
 0x128   :  { %v1312_v39 = vmul.f32 %v11565_v53, %v11574_v11  ;;  %v6500_v18 = vunpack.i.h.bf16 %v6498_v24  ;;  %v6499_v50 = vunpack.i.l.bf16 %v6498_v24  ;;  %v8053_v47 = vadd.f32 %v658_v14, %v657_v3 }
 0x129   :  { %11576 = vst [vmem:[#allocation94_spill] sm:$0xff] %v8033_v37  ;;  %v1148_v9 = vrot.slane %v1056_v44, 4  ;;  %v546_v51 = vmul.f32 %v11559_v38, %v11580_v56  ;;  %v1169_v60 = vadd.f32 %v1168_v16, %v1167_v29  ;;  %v637_v52 = vadd.f32 %v636_v22, %v544_v17  ;;  %v6508_v38 = vpop.permute.xlu1 %6507 }
 0x12a   :  { %11579 = vst [vmem:[#allocation97_spill] sm:$0xff] %v8053_v47  ;;  %v802_v57 = vmul.f32 %v11562_v45, %v11580_v56  ;;  %v8063_v41 = vmul.f32 %v7885_v2, %v6490_v15  ;;  %v914_v3 = vrot.slane %v913_v55, 1  ;;  %v893_v34 = vadd.f32 %v892_v20, %v800_v6 }
 0x12b   :  { %2859 = vperm.xlu0 %6517, %v7813_v27   ;;  %2856 = vperm.xlu1 %6516, %v7973_v30   ;;  %v1424_v27 = vrot.slane %v1423_v12, 2  ;;  %v1404_v14 = vrot.slane %v1312_v39, 4  ;;  %v8066_v24 = vmul.f32 %v7885_v2, %v6489_v35  ;;  %v8074_v17 = vmul.f32 %v7885_v2, %v6499_v50  ;;  %v11581_v35 = vld [vmem:[#allocation45_spill] sm:$0xff] }
 0x12c   :  { %v1149_v45 = vadd.f32 %v1148_v9, %v1056_v44  ;;  %v648_v16 = vrot.slane %v546_v51, 4  ;;  %v1314_v6 = vmul.f32 %v11565_v53, %v11580_v56  ;;  %v1170_v22 = vrot.slane %v1169_v60, 1  ;;  %v11585_v53 = vld [vmem:[#allocation6_spill] sm:$0xff] }
 0x12d   :  { %v1425_v29 = vadd.f32 %v1424_v27, %v1423_v12  ;;  %v638_v15 = vrot.slane %v637_v52, 2  ;;  %v904_v20 = vrot.slane %v802_v57, 4  ;;  %v11582_v12 = vld [vmem:[#allocation47_spill] sm:$0xff]  ;;  %v6510_v27 = vunpack.i.h.bf16 %v6508_v38 }
 0x12e   :  { %v894_v50 = vrot.slane %v893_v34, 2  ;;  %v1405_v8 = vadd.f32 %v1404_v14, %v1312_v39  ;;  %v6509_v44 = vunpack.i.l.bf16 %v6508_v38  ;;  %vm11290_vm14 = vcmp.eq.f32.partialorder %v11585_v53, %v11584_v58 }
 0x12f   :  { %2862 = vperm.xlu0 %6517, %v7810_v13   ;;  %3059 = vperm.xlu1 %6516, %v7988_v32   ;;  %v8069_v13 = vmul.f32 %v7928_v19, %v6500_v18  ;;  %v1058_v32 = vmul.f32 %v11564_v25, %v11580_v56  ;;  %v805_v18 = vmul.f32 %v11582_v12, %v11581_v35  ;;  %v1426_v9 = vrot.slane %v1425_v29, 1 }
 0x130   :  { %v8082_v25 = vadd.f32 %v914_v3, %v913_v55  ;;  %v649_v47 = vadd.f32 %v648_v16, %v546_v51  ;;  %v1061_v37 = vmul.f32 %v11586_v26, %v11581_v35  ;;  %v8090_v55 = vadd.f32 %v1170_v22, %v1169_v60 }
 0x131   :  { %v1160_v30 = vrot.slane %v1058_v32, 4  ;;  %v639_v3 = vadd.f32 %v638_v15, %v637_v52  ;;  %v905_v39 = vadd.f32 %v904_v20, %v802_v57  ;;  %v922_v14 = vrot.slane %v805_v18, 4 }
 0x132   :  { %11583 = vst [vmem:[#allocation47_spill] sm:$0xff] %v8082_v25  ;;  %11587 = vst [vmem:[#allocation12_spill] sm:$0xff] %v8090_v55  ;;  %v895_v38 = vadd.f32 %v894_v50, %v893_v34  ;;  %v1406_v25 = vrot.slane %v1405_v8, 2  ;;  %v1317_v61 = vmul.f32 %v7654_v36, %v11581_v35  ;;  %v11588_v54 = vmov 0.0   ;;  %v11590_v55 = vld [vmem:[#allocation15_spill] sm:$0xff] }
 0x133   :  { %3068 = vperm.xlu0 %6517, %v8010_v31   ;;  %3062 = vperm.xlu1 %6516, %v7843_v4   ;;  %v1150_v31 = vrot.slane %v1149_v45, 2  ;;  %v1416_v4 = vrot.slane %v1314_v6, 4  ;;  %v6209_v51 = vsel %vm11290_vm14, 1.0, %v11588_v54  ;;  %v8099_v16 = vmul.f32 %v7928_v19, %v6510_v27 }
 0x134   :  { %v1161_v60 = vadd.f32 %v1160_v30, %v1058_v32  ;;  %v650_v57 = vrot.slane %v649_v47, 2  ;;  %v1178_v22 = vrot.slane %v1061_v37, 4  ;;  %v640_v15 = vrot.slane %v639_v3, 1 }
 0x135   :  { %v1151_v52 = vadd.f32 %v1150_v31, %v1149_v45  ;;  %v1417_v34 = vadd.f32 %v1416_v4, %v1314_v6  ;;  %v906_v20 = vrot.slane %v905_v39, 2  ;;  %v923_v50 = vadd.f32 %v922_v14, %v805_v18  ;;  %v11593_v4 = vld [vmem:[#allocation8_spill] sm:$0xff] }
 0x136   :  { %v8109_v27 = vmul.f32 %v6209_v51, %v11590_v55  ;;  %v896_v56 = vrot.slane %v895_v38, 1  ;;  %v1162_v30 = vrot.slane %v1161_v60, 2  ;;  %v651_v6 = vadd.f32 %v650_v57, %v649_v47 }
 0x137   :  { %3271 = vperm.xlu0 %6517, %v7857_v62   ;;  %3065 = vperm.xlu1 %6516, %v7832_v1   ;;  %v8102_v1 = vmul.f32 %v7928_v19, %v6509_v44  ;;  %v8104_v62 = vadd.f32 %v1426_v9, %v1425_v29  ;;  %v1407_v19 = vadd.f32 %v1406_v25, %v1405_v8  ;;  %v1434_v44 = vrot.slane %v1317_v61, 4  ;;  %v11592_v29 = vld [vmem:[#allocation7_spill] sm:$0xff] }
 0x138   :  { %11591 = vst [vmem:[#allocation41_spill] sm:$0xff] %v8109_v27  ;;  %vm11289_vm15 = vcmp.eq.f32.partialorder %v11592_v29, %v11584_v58  ;;  %v1152_v45 = vrot.slane %v1151_v52, 1  ;;  %v1418_v18 = vrot.slane %v1417_v34, 2  ;;  %v1179_v9 = vadd.f32 %v1178_v22, %v1061_v37 }
 0x139   :  { %11589 = vst [vmem:[#allocation6_spill] sm:$0xff] %v8104_v62  ;;  %v907_v8 = vadd.f32 %v906_v20, %v905_v39  ;;  %v924_v25 = vrot.slane %v923_v50, 2  ;;  %v6206_v31 = vsel %vm11289_vm15, 1.0, %v11588_v54  ;;  %vm11288_vm9 = vcmp.eq.f32.partialorder %v11593_v4, %v11584_v58 }
 0x13a   :  { %v8126_v14 = vadd.f32 %v640_v15, %v639_v3  ;;  %v8128_v51 = vadd.f32 %v896_v56, %v895_v38  ;;  %v1408_v47 = vrot.slane %v1407_v19, 1  ;;  %v1435_v37 = vadd.f32 %v1434_v44, %v1317_v61 }
 0x13b   :  { %3074 = vperm.xlu0 %6517, %v8018_v23   ;;  %3071 = vperm.xlu1 %6516, %v8007_v7   ;;  %v807_v23 = vmul.f32 %v11582_v12, %v8109_v27  ;;  %v1063_v7 = vmul.f32 %v11586_v26, %v8109_v27  ;;  %v1163_v57 = vadd.f32 %v1162_v30, %v1161_v60  ;;  %v1180_v20 = vrot.slane %v1179_v9, 2 }
 0x13c   :  { %11594 = vst [vmem:[#allocation15_spill] sm:$0xff] %v8126_v14  ;;  %11595 = vst [vmem:[#allocation7_spill] sm:$0xff] %v8128_v51  ;;  %v1419_v39 = vadd.f32 %v1418_v18, %v1417_v34  ;;  %v8133_v32 = vmul.f32 %v6206_v31, %v11590_v55  ;;  %v6208_v3 = vsel %vm11288_vm9, 1.0, %v11588_v54  ;;  %v8141_v61 = vadd.f32 %v1152_v45, %v1151_v52  ;;  %v11620_v51 = vld [vmem:[#allocation50_spill] sm:$0xff] }
 0x13d   :  { %v1190_v22 = vrot.slane %v1063_v7, 4  ;;  %v652_v56 = vrot.slane %v651_v6, 1  ;;  %v908_v38 = vrot.slane %v907_v8, 1  ;;  %v925_v60 = vadd.f32 %v924_v25, %v923_v50  ;;  %v11601_v25 = vld [vmem:[#allocation80_spill] sm:$0xff] }
 0x13e   :  { %11596 = vst [vmem:[#allocation8_spill] sm:$0xff] %v8133_v32  ;;  %11597 = vst [vmem:[#allocation98_spill] sm:$0xff] %v8141_v61  ;;  %v8143_v15 = vadd.f32 %v1408_v47, %v1407_v19  ;;  %v1436_v34 = vrot.slane %v1435_v37, 2  ;;  %v804_v44 = vmul.f32 %v11582_v12, %v8133_v32  ;;  %v1060_v30 = vmul.f32 %v11586_v26, %v8133_v32  ;;  %v11600_v19 = vld [vmem:[#allocation84_spill] sm:$0xff] }
 0x13f   :  { %3077 = vperm.xlu0 %6517, %v7872_v63   ;;  %3274 = vperm.xlu1 %6516, %v7854_v49   ;;  %v934_v63 = vrot.slane %v807_v23, 4  ;;  %v1319_v49 = vmul.f32 %v7654_v36, %v8109_v27  ;;  %v1191_v31 = vadd.f32 %v1190_v22, %v1063_v7  ;;  %v1420_v52 = vrot.slane %v1419_v39, 1 }
 0x140   :  { %11598 = vst [vmem:[#allocation99_spill] sm:$0xff] %v8143_v15  ;;  %v1181_v45 = vadd.f32 %v1180_v20, %v1179_v9  ;;  %v1316_v50 = vmul.f32 %v7654_v36, %v8133_v32  ;;  %v8156_v47 = vadd.f32 %v652_v56, %v651_v6  ;;  %v8158_v15 = vadd.f32 %v908_v38, %v907_v8  ;;  %v11605_v9 = vld [vmem:[#allocation4_spill] sm:$0xff] }
 0x141   :  { %v935_v18 = vadd.f32 %v934_v63, %v807_v23  ;;  %v1446_v62 = vrot.slane %v1319_v49, 4  ;;  %v926_v23 = vrot.slane %v925_v60, 1  ;;  %v916_v63 = vrot.slane %v804_v44, 4 }
 0x142   :  { %11602 = vst [vmem:[#allocation84_spill] sm:$0xff] %v8156_v47  ;;  %11603 = vst [vmem:[#allocation80_spill] sm:$0xff] %v8158_v15  ;;  %v1172_v22 = vrot.slane %v1060_v30, 4  ;;  %v1192_v61 = vrot.slane %v1191_v31, 2  ;;  %v8168_v8 = vadd.f32 %v1420_v52, %v1419_v39  ;;  %v1182_v56 = vrot.slane %v1181_v45, 1  ;;  %v11609_v39 = vld [vmem:[#allocation16_spill] sm:$0xff] }
 0x143   :  { %3283 = vperm.xlu0 %6517, %v8031_v48   ;;  %3277 = vperm.xlu1 %6516, %v8015_v10   ;;  %v8150_v48 = vmul.f32 %v6208_v3, %v11590_v55  ;;  %v1164_v10 = vrot.slane %v1163_v57, 1  ;;  %v1437_v55 = vadd.f32 %v1436_v34, %v1435_v37  ;;  %v11604_v3 = vld [vmem:[#allocation11_spill] sm:$0xff]  ;;  %v936_v20 = vrot.slane %v935_v18, 2 }
 0x144   :  { %vm11276_vm8 = vcmp.eq.f32.partialorder %v11605_v9, %v11604_v3  ;;  %v1447_v14 = vadd.f32 %v1446_v62, %v1319_v49  ;;  %11607 = vst [vmem:[#allocation4_spill] sm:$0xff] %v8168_v8  ;;  %v1428_v38 = vrot.slane %v1316_v50, 4  ;;  %v1173_v49 = vadd.f32 %v1172_v22, %v1060_v30  ;;  %v11612_v8 = vld [vmem:[#allocation29_spill] sm:$0xff]  ;;  %v11613_v47 = vld [vmem:[#allocation87_spill] sm:$0xff] }
 0x145   :  { %11599 = vst [vmem:[#allocation100_spill] sm:$0xff] %v8150_v48  ;;  %v806_v7 = vmul.f32 %v11582_v12, %v8150_v48  ;;  %v8166_v6 = vadd.f32 %v1164_v10, %v1163_v57  ;;  %v8172_v12 = vadd.f32 %v926_v23, %v925_v60  ;;  %v1438_v62 = vrot.slane %v1437_v55, 1  ;;  %v11615_v30 = vld [vmem:[#allocation49_spill] sm:$0xff] }
 0x146   :  { %v917_v57 = vadd.f32 %v916_v63, %v804_v44  ;;  %v937_v52 = vadd.f32 %v936_v20, %v935_v18  ;;  %v8182_v60 = vadd.f32 %v1182_v56, %v1181_v45  ;;  %v1429_v23 = vadd.f32 %v1428_v38, %v1316_v50  ;;  %v11614_v44 = vld [vmem:[#allocation83_spill] sm:$0xff] }
 0x147   :  { %3486 = vperm.xlu0 %6517, %v11600_v19   ;;  %3280 = vperm.xlu1 %6516, %v11601_v25   ;;  %v1062_v19 = vmul.f32 %v11586_v26, %v8150_v48  ;;  %11606 = vst [vmem:[#allocation11_spill] sm:$0xff] %v8166_v6  ;;  %11608 = vst [vmem:[#allocation101_spill] sm:$0xff] %v8172_v12  ;;  %v928_v34 = vrot.slane %v806_v7, 4  ;;  %v6211_v26 = vsel %vm11276_vm8, 1.0, %v11588_v54  ;;  %v1448_v25 = vrot.slane %v1447_v14, 2 }
 0x148   :  { %v8180_v10 = vmul.f32 %v6211_v26, %v11609_v39  ;;  %11611 = vst [vmem:[#allocation102_spill] sm:$0xff] %v8182_v60  ;;  %v1318_v37 = vmul.f32 %v7654_v36, %v8150_v48  ;;  %vm11282_vm8 = vcmp.eq.f32.partialorder %v11585_v53, %v11604_v3  ;;  %v422_v36 = vrot.slane %v8109_v27, 4 }
 0x149   :  { %v929_v22 = vadd.f32 %v928_v34, %v806_v7  ;;  %v918_v45 = vrot.slane %v917_v57, 2  ;;  %v1174_v50 = vrot.slane %v1173_v49, 2  ;;  %v938_v20 = vrot.slane %v937_v52, 1 }
 0x14a   :  { %11610 = vst [vmem:[#allocation16_spill] sm:$0xff] %v8180_v10  ;;  %v553_v6 = vmul.f32 %v11612_v8, %v8180_v10  ;;  %v1430_v26 = vrot.slane %v1429_v23, 2  ;;  %v6213_v7 = vsel %vm11282_vm8, 1.0, %v11588_v54  ;;  %vm11286_vm8 = vcmp.eq.f32.partialorder %v11592_v29, %v11604_v3 }
 0x14b   :  { %3289 = vperm.xlu0 %6517, %v8048_v33   ;;  %3286 = vperm.xlu1 %6516, %v8028_v46   ;;  %v1193_v33 = vadd.f32 %v1192_v61, %v1191_v31  ;;  %v1184_v46 = vrot.slane %v1062_v19, 4  ;;  %v11616_v61 = vld [vmem:[#allocation24_spill] sm:$0xff]  ;;  %v8195_v31 = vadd.f32 %v1438_v62, %v1437_v55  ;;  %v930_v55 = vrot.slane %v929_v22, 2  ;;  %v11618_v62 = vld [vmem:[#allocation54_spill] sm:$0xff] }
 0x14c   :  { %v809_v18 = vmul.f32 %v11616_v61, %v8180_v10  ;;  %v690_v63 = vrot.slane %v553_v6, 4  ;;  %v1065_v15 = vmul.f32 %v11618_v62, %v8180_v10  ;;  %v8214_v60 = vadd.f32 %v938_v20, %v937_v52 }
 0x14d   :  { %11617 = vst [vmem:[#allocation29_spill] sm:$0xff] %v8195_v31  ;;  %v1194_v56 = vrot.slane %v1193_v33, 1  ;;  %v1185_v38 = vadd.f32 %v1184_v46, %v1062_v19  ;;  %v8210_v19 = vadd.f32 %v422_v36, %v8109_v27  ;;  %v1175_v46 = vadd.f32 %v1174_v50, %v1173_v49 }
 0x14e   :  { %v946_v34 = vrot.slane %v809_v18, 4  ;;  %v1321_v31 = vmul.f32 %v11620_v51, %v8180_v10  ;;  %11621 = vst [vmem:[#allocation83_spill] sm:$0xff] %v8214_v60  ;;  %v1431_v49 = vadd.f32 %v1430_v26, %v1429_v23  ;;  %v1202_v50 = vrot.slane %v1065_v15, 4 }
 0x14f   :  { %3292 = vperm.xlu0 %6517, %v11613_v47   ;;  %3489 = vperm.xlu1 %6516, %v11614_v44   ;;  %v1449_v47 = vadd.f32 %v1448_v25, %v1447_v14  ;;  %v1440_v44 = vrot.slane %v1318_v37, 4  ;;  %v8207_v14 = vmul.f32 %v6213_v7, %v11609_v39  ;;  %11619 = vst [vmem:[#allocation87_spill] sm:$0xff] %v8210_v19  ;;  %v11623_v19 = vld [vmem:[#allocation20_spill] sm:$0xff]  ;;  %v1176_v60 = vrot.slane %v1175_v46, 1 }
 0x150   :  { %v919_v25 = vadd.f32 %v918_v45, %v917_v57  ;;  %v8218_v48 = vadd.f32 %v1194_v56, %v1193_v33  ;;  %v691_v7 = vadd.f32 %v690_v63, %v553_v6  ;;  %v11624_v57 = vld [vmem:[#allocation86_spill] sm:$0xff]  ;;  %v931_v45 = vadd.f32 %v930_v55, %v929_v22 }
 0x151   :  { %v555_v12 = vmul.f32 %v11612_v8, %v8207_v14  ;;  %v1441_v35 = vadd.f32 %v1440_v44, %v1318_v37  ;;  %v811_v36 = vmul.f32 %v11616_v61, %v8207_v14  ;;  %v947_v52 = vadd.f32 %v946_v34, %v809_v18 }
 0x152   :  { %11622 = vst [vmem:[#allocation49_spill] sm:$0xff] %v8218_v48  ;;  %v920_v20 = vrot.slane %v919_v25, 1  ;;  %v1458_v27 = vrot.slane %v1321_v31, 4  ;;  %v1067_v33 = vmul.f32 %v11618_v62, %v8207_v14  ;;  %v1323_v63 = vmul.f32 %v11620_v51, %v8207_v14 }
 0x153   :  { %3498 = vperm.xlu0 %6517, %v8066_v24   ;;  %3492 = vperm.xlu1 %6516, %v8045_v5   ;;  %v1450_v24 = vrot.slane %v1449_v47, 1  ;;  %v1186_v5 = vrot.slane %v1185_v38, 2  ;;  %v702_v37 = vrot.slane %v555_v12, 4  ;;  %v1442_v44 = vrot.slane %v1441_v35, 2 }
 0x154   :  { %v1432_v23 = vrot.slane %v1431_v49, 1  ;;  %v932_v22 = vrot.slane %v931_v45, 1  ;;  %v948_v18 = vrot.slane %v947_v52, 2  ;;  %v8234_v26 = vadd.f32 %v920_v20, %v919_v25 }
 0x155   :  { %v8226_v56 = vadd.f32 %v1450_v24, %v1449_v47  ;;  %v1187_v6 = vadd.f32 %v1186_v5, %v1185_v38  ;;  %v1203_v47 = vadd.f32 %v1202_v50, %v1065_v15  ;;  %v8236_v38 = vadd.f32 %v1176_v60, %v1175_v46  ;;  %v11629_v15 = vld [vmem:[#allocation34_spill] sm:$0xff]  ;;  %v11630_v60 = vld [vmem:[#allocation88_spill] sm:$0xff] }
 0x156   :  { %11626 = vst [vmem:[#allocation54_spill] sm:$0xff] %v8234_v26  ;;  %v1459_v55 = vadd.f32 %v1458_v27, %v1321_v31  ;;  %v1214_v34 = vrot.slane %v1067_v33, 4  ;;  %v703_v5 = vadd.f32 %v702_v37, %v555_v12  ;;  %v1443_v48 = vadd.f32 %v1442_v44, %v1441_v35 }
 0x157   :  { %3701 = vperm.xlu0 %6517, %v11623_v19   ;;  %3495 = vperm.xlu1 %6516, %v11624_v57   ;;  %11625 = vst [vmem:[#allocation24_spill] sm:$0xff] %v8226_v56  ;;  %v692_v19 = vrot.slane %v691_v7, 2  ;;  %v958_v57 = vrot.slane %v811_v36, 4  ;;  %11627 = vst [vmem:[#allocation50_spill] sm:$0xff] %v8236_v38  ;;  %v1188_v24 = vrot.slane %v1187_v6, 1  ;;  %v1470_v56 = vrot.slane %v1323_v63, 4 }
 0x158   :  { %v8247_v27 = vadd.f32 %v1432_v23, %v1431_v49  ;;  %v8249_v31 = vadd.f32 %v932_v22, %v931_v45  ;;  %v949_v12 = vadd.f32 %v948_v18, %v947_v52  ;;  %v1204_v25 = vrot.slane %v1203_v47, 2 }
 0x159   :  { %v959_v32 = vadd.f32 %v958_v57, %v811_v36  ;;  %v1460_v46 = vrot.slane %v1459_v55, 2  ;;  %v1215_v50 = vadd.f32 %v1214_v34, %v1067_v33  ;;  %v446_v36 = vrot.slane %v8207_v14, 4 }
 0x15a   :  { %11631 = vst [vmem:[#allocation86_spill] sm:$0xff] %v8247_v27  ;;  %11632 = vst [vmem:[#allocation34_spill] sm:$0xff] %v8249_v31  ;;  %v704_v20 = vrot.slane %v703_v5, 2  ;;  %v1471_v37 = vadd.f32 %v1470_v56, %v1323_v63  ;;  %v1444_v49 = vrot.slane %v1443_v48, 1  ;;  %v950_v33 = vrot.slane %v949_v12, 1 }
 0x15b   :  { %3504 = vperm.xlu0 %6517, %v8074_v17   ;;  %3501 = vperm.xlu1 %6516, %v8063_v41   ;;  %v6210_v17 = vsel %vm11286_vm8, 1.0, %v11588_v54  ;;  %v693_v41 = vadd.f32 %v692_v19, %v691_v7  ;;  %vm11287_vm8 = vcmp.eq.f32.partialorder %v11593_v4, %v11604_v3  ;;  %v8255_v7 = vadd.f32 %v1188_v24, %v1187_v6 }
 0x15c   :  { %v8243_v11 = vmul.f32 %v6210_v17, %v11609_v39  ;;  %v960_v45 = vrot.slane %v959_v32, 2  ;;  %v1205_v19 = vadd.f32 %v1204_v25, %v1203_v47  ;;  %v6212_v56 = vsel %vm11287_vm8, 1.0, %v11588_v54 }
 0x15d   :  { %11633 = vst [vmem:[#allocation88_spill] sm:$0xff] %v8255_v7  ;;  %v694_v44 = vrot.slane %v693_v41, 1  ;;  %v1461_v63 = vadd.f32 %v1460_v46, %v1459_v55  ;;  %v1216_v57 = vrot.slane %v1215_v50, 2  ;;  %v8269_v22 = vmul.f32 %v6212_v56, %v11609_v39 }
 0x15e   :  { %11628 = vst [vmem:[#allocation20_spill] sm:$0xff] %v8243_v11  ;;  %v552_v35 = vmul.f32 %v11612_v8, %v8243_v11  ;;  %v808_v52 = vmul.f32 %v11616_v61, %v8243_v11  ;;  %v1064_v6 = vmul.f32 %v11618_v62, %v8243_v11  ;;  %v1472_v18 = vrot.slane %v1471_v37, 2 }
 0x15f   :  { %3507 = vperm.xlu0 %6517, %v11629_v15   ;;  %3704 = vperm.xlu1 %6516, %v11630_v60   ;;  %11634 = vst [vmem:[#allocation103_spill] sm:$0xff] %v8269_v22  ;;  %v1320_v47 = vmul.f32 %v11620_v51, %v8243_v11  ;;  %v8276_v34 = vadd.f32 %v1444_v49, %v1443_v48  ;;  %v11637_v15 = vld [vmem:[#allocation89_spill] sm:$0xff]  ;;  %v1206_v60 = vrot.slane %v1205_v19, 1  ;;  %vm2243_vm8 = vcmask 1041409  }
 0x160   :  { %v684_v23 = vrot.slane %v552_v35, 4  ;;  %v961_v24 = vadd.f32 %v960_v45, %v959_v32  ;;  %v940_v17 = vrot.slane %v808_v52, 4  ;;  %v554_v55 = vmul.f32 %v11612_v8, %v8269_v22 }
 0x161   :  { %11636 = vst [vmem:[#allocation105_spill] sm:$0xff] %v8276_v34  ;;  %v695_v39 = vadd.f32 %v694_v44, %v693_v41  ;;  %v951_v25 = vadd.f32 %v950_v33, %v949_v12  ;;  %v1462_v46 = vrot.slane %v1461_v63, 1  ;;  %v1217_v48 = vadd.f32 %v1216_v57, %v1215_v50 }
 0x162   :  { %vm2245_vm9 = vcmask 1042434   ;;  %v1452_v49 = vrot.slane %v1320_v47, 4  ;;  %vm2247_vm15 = vcmask 1043459   ;;  %v962_v41 = vrot.slane %v961_v24, 1 }
 0x163   :  { %3713 = vperm.xlu0 %6517, %v8102_v1   ;;  %3707 = vperm.xlu1 %6516, %v8069_v13   ;;  %v8272_v1 = vadd.f32 %v446_v36, %v8207_v14  ;;  %v705_v13 = vadd.f32 %v704_v20, %v703_v5  ;;  %v1196_v14 = vrot.slane %v1064_v6, 4  ;;  %v810_v5 = vmul.f32 %v11616_v61, %v8269_v22 }
 0x164   :  { %v685_v36 = vadd.f32 %v684_v23, %v552_v35  ;;  %v1473_v20 = vadd.f32 %v1472_v18, %v1471_v37  ;;  %v941_v44 = vadd.f32 %v940_v17, %v808_v52  ;;  %v696_v56 = vrot.slane %v554_v55, 4  ;;  %v6791_v37 = vld [vmem:[%s11181_s1 + $0x8] sm:$0xff] }
 0x165   :  { %11635 = vst [vmem:[#allocation104_spill] sm:$0xff] %v8272_v1  ;;  %v706_v32 = vrot.slane %v705_v13, 1  ;;  %v11639_v61 = vmov 1   ;;  %v8290_v12 = vadd.f32 %v1206_v60, %v1205_v19  ;;  %v8293_v50 = vsel %vm11292_vm7, %v695_v39, %v951_v25 }
 0x166   :  { %v1197_v35 = vadd.f32 %v1196_v14, %v1064_v6  ;;  %v8298_v52 = vadd.f32 %v1462_v46, %v1461_v63  ;;  %v1218_v33 = vrot.slane %v1217_v48, 1  ;;  %v686_v57 = vrot.slane %v685_v36, 2  ;;  %v11645_v46 = vld [vmem:[#allocation19_spill] sm:$0xff] }
 0x167   :  { %3719 = vperm.xlu0 %6517, %v7991_v21   ;;  %3710 = vperm.xlu1 %6516, %v11637_v15   ;;  %v1066_v21 = vmul.f32 %v11618_v62, %v8269_v22  ;;  %v11638_v15 = vld [vmem:[#allocation14_spill] sm:$0xff]  ;;  %11640 = vst [vmem:[#allocation89_spill] sm:$0xff] %v8290_v12  ;;  %v952_v62 = vrot.slane %v810_v5, 4  ;;  %v1322_v23 = vmul.f32 %v11620_v51, %v8269_v22  ;;  %vm2251_vm7 = vcmask 1045509  }
 0x168   :  { %vm11293_vm14 = vcmp.eq.f32.partialorder %v11605_v9, %v11638_v15  ;;  %11641 = vst [vmem:[#allocation14_spill] sm:$0xff] %v8293_v50  ;;  %11642 = vst [vmem:[#allocation106_spill] sm:$0xff] %v8298_v52  ;;  %v1453_v19 = vadd.f32 %v1452_v49, %v1320_v47  ;;  %v8306_v60 = vadd.f32 %v706_v32, %v705_v13  ;;  %v942_v14 = vrot.slane %v941_v44, 2  ;;  %v6792_v50 = vld [vmem:[%s11181_s1 + $0x20] sm:$0xff]  ;;  %v11646_v32 = vld [vmem:[#allocation17_spill] sm:$0xff] }
 0x169   :  { %v1208_v18 = vrot.slane %v1066_v21, 4  ;;  %v6215_v6 = vsel %vm11293_vm14, 1.0, %v11588_v54  ;;  %v8308_v63 = vadd.f32 %v962_v41, %v961_v24  ;;  %v697_v25 = vadd.f32 %v696_v56, %v554_v55 }
 0x16a   :  { %v2192_v8 = vpop.permute.xlu0 %2191  ;;  %v2189_v45 = vpop.permute.xlu1 %2188  ;;  %11643 = vst [vmem:[#allocation107_spill] sm:$0xff] %v8306_v60  ;;  %v1198_v47 = vrot.slane %v1197_v35, 2  ;;  %v953_v49 = vadd.f32 %v952_v62, %v810_v5  ;;  %v687_v13 = vadd.f32 %v686_v57, %v685_v36  ;;  %v1464_v24 = vrot.slane %v1322_v23, 4 }
 0x16b   :  { %6518 = vset.pattern.permute.xlu0 %v11639_v61  ;;  %3716 = vperm.xlu1 %6516, %v8099_v16   ;;  %v1474_v16 = vrot.slane %v1473_v20, 1  ;;  %11644 = vst [vmem:[#allocation108_spill] sm:$0xff] %v8308_v63  ;;  %v2218_v51 = vrot.slane %v2192_v8, %v11645_v46  ;;  %v8318_v41 = vmul.f32 %v6215_v6, %v11646_v32  ;;  %vm2253_vm14 = vcmask 1046534  }
 0x16c   :  { %505 = vperm.xlu0 %6518, %v6791_v37   ;;  %v2214_v37 = vrot.slane %v2189_v45, %v11645_v46  ;;  %v8320_v55 = vadd.f32 %v1218_v33, %v1217_v48  ;;  %v1209_v45 = vadd.f32 %v1208_v18, %v1066_v21  ;;  %v943_v62 = vadd.f32 %v942_v14, %v941_v44  ;;  %v11651_v21 = vld [vmem:[#allocation46_spill] sm:$0xff] }
 0x16d   :  { %11647 = vst [vmem:[#allocation17_spill] sm:$0xff] %v8318_v41  ;;  %v8322_v8 = vadd.f32 %v1474_v16, %v1473_v20  ;;  %vm11302_vm2 = vcmp.eq.f32.partialorder %v11585_v53, %v11638_v15  ;;  %v954_v20 = vrot.slane %v953_v49, 2  ;;  %v1069_v33 = vmul.f32 %v11651_v21, %v8318_v41  ;;  %v11652_v16 = vld [vmem:[#allocation79_spill] sm:$0xff] }
 0x16e   :  { %v2201_v17 = vpop.permute.xlu0 %2200  ;;  %v2195_v39 = vpop.permute.xlu1 %2194  ;;  %11648 = vst [vmem:[#allocation109_spill] sm:$0xff] %v8320_v55  ;;  %v2244_v57 = vsel %vm2243_vm8, %v2218_v51, %v2214_v37  ;;  %v688_v18 = vrot.slane %v687_v13, 1  ;;  %v1199_v6 = vadd.f32 %v1198_v47, %v1197_v35  ;;  %v1465_v14 = vadd.f32 %v1464_v24, %v1322_v23  ;;  %v11653_v47 = vld [vmem:[#allocation66_spill] sm:$0xff] }
 0x16f   :  { %3722 = vperm.xlu1 %6516, %v7983_v0   ;;  %v2222_v52 = vrot.slane %v2195_v39, %v11645_v46  ;;  %11649 = vst [vmem:[#allocation110_spill] sm:$0xff] %v8322_v8  ;;  %v1454_v0 = vrot.slane %v1453_v19, 2  ;;  %v698_v39 = vrot.slane %v697_v25, 2  ;;  %v6217_v8 = vsel %vm11302_vm2, 1.0, %v11588_v54 }
 0x170   :  { %517 = vperm.xlu0 %6518, %v6792_v50   ;;  %v11650_v50 = vld [vmem:[#allocation48_spill] sm:$0xff]  ;;  %v2230_v55 = vrot.slane %v2201_v17, %v11645_v46  ;;  %v955_v35 = vadd.f32 %v954_v20, %v953_v49  ;;  %v1226_v23 = vrot.slane %v1069_v33, 4  ;;  %v1466_v17 = vrot.slane %v1465_v14, 2 }
 0x171   :  { %v813_v36 = vmul.f32 %v11650_v50, %v8318_v41  ;;  %v2246_v44 = vsel %vm2245_vm9, %v2222_v52, %v2244_v57  ;;  %v1455_v37 = vadd.f32 %v1454_v0, %v1453_v19  ;;  %v944_v57 = vrot.slane %v943_v62, 1 }
 0x172   :  { %v8324_v5 = vpop.permute.xlu0 %2411  ;;  %v2198_v56 = vpop.permute.xlu1 %2197  ;;  %v1325_v19 = vmul.f32 %v11653_v47, %v8318_v41  ;;  %v8352_v1 = vmul.f32 %v6217_v8, %v11646_v32  ;;  %v8356_v49 = vadd.f32 %v688_v18, %v687_v13  ;;  %v956_v27 = vrot.slane %v955_v35, 1 }
 0x173   :  { %v2226_v48 = vrot.slane %v2198_v56, %v11645_v46  ;;  %6519 = vset.pattern.permute.xlu1 %v11639_v61  ;;  %v1210_v56 = vrot.slane %v1209_v45, 2  ;;  %v970_v60 = vrot.slane %v813_v36, 4  ;;  %v1456_v22 = vrot.slane %v1455_v37, 1 }
 0x174   :  { %525 = vperm.xlu0 %6518, %v7885_v2   ;;  %4070 = vperm.xlu1 %6519, %v11652_v16   ;;  %v699_v2 = vadd.f32 %v698_v39, %v697_v25  ;;  %11656 = vst [vmem:[#allocation48_spill] sm:$0xff] %v8352_v1  ;;  %11657 = vst [vmem:[#allocation46_spill] sm:$0xff] %v8356_v49  ;;  %v1200_v39 = vrot.slane %v1199_v6, 1  ;;  %v815_v11 = vmul.f32 %v11650_v50, %v8352_v1 }
 0x175   :  { %v2248_v51 = vsel %vm2247_vm15, %v2226_v48, %v2246_v44  ;;  %v11654_v48 = vld [vmem:[#allocation81_spill] sm:$0xff]  ;;  %v11655_v44 = vmov 0   ;;  %v1211_v20 = vadd.f32 %v1210_v56, %v1209_v45  ;;  %v8361_v8 = vadd.f32 %v944_v57, %v943_v62 }
 0x176   :  { %v2207_v12 = vpop.permute.xlu0 %2206  ;;  %v2204_v52 = vpop.permute.xlu1 %2203  ;;  %v2250_v0 = vsel %vm2249_vm6, %v2230_v55, %v2248_v51  ;;  %v700_v55 = vrot.slane %v699_v2, 1  ;;  %v971_v51 = vadd.f32 %v970_v60, %v813_v36  ;;  %v1467_v18 = vadd.f32 %v1466_v17, %v1465_v14 }
 0x177   :  { %v2234_v63 = vrot.slane %v2204_v52, %v11645_v46  ;;  %v2238_v24 = vrot.slane %v2207_v12, %v11645_v46  ;;  %11658 = vst [vmem:[#allocation79_spill] sm:$0xff] %v8361_v8  ;;  %v1482_v45 = vrot.slane %v1325_v19, 4  ;;  %vm172_vm2 = vcmp.eq.f32.partialorder %v11592_v29, %v11638_v15 }
 0x178   :  { %4062 = vperm.xlu0 %6518, %v11654_v48   ;;  %6520 = vset.pattern.permute.xlu1 %v11655_v44  ;;  %v11659_v60 = vsub.f32 1.0, %v11654_v48  ;;  %v8370_v56 = vadd.f32 %v1200_v39, %v1199_v6  ;;  %v1212_v62 = vrot.slane %v1211_v20, 1  ;;  %v11663_v6 = vmov 1.0  }
 0x179   :  { %v2252_v25 = vsel %vm2251_vm7, %v2234_v63, %v2250_v0  ;;  %4927 = vperm.xlu1 %6520, %v11654_v48   ;;  %v1227_v63 = vadd.f32 %v1226_v23, %v1069_v33  ;;  %v1071_v33 = vmul.f32 %v11651_v21, %v8352_v1  ;;  %v8376_v23 = vadd.f32 %v1456_v22, %v1455_v37 }
 0x17a   :  { %v2210_v52 = vpop.permute.xlu0 %2209  ;;  %v2415_v12 = vpop.permute.xlu1 %2414  ;;  %v2254_v13 = vsel %vm2253_vm14, %v2238_v24, %v2252_v25  ;;  %11660 = vst [vmem:[#allocation66_spill] sm:$0xff] %v8370_v56  ;;  %v8378_v24 = vadd.f32 %v700_v55, %v699_v2  ;;  %v972_v0 = vrot.slane %v971_v51, 2  ;;  %v982_v48 = vrot.slane %v815_v11, 4 }
 0x17b   :  { %v2242_v34 = vrot.slane %v2210_v52, %v11645_v46  ;;  %11661 = vst [vmem:[#allocation81_spill] sm:$0xff] %v8376_v23  ;;  %v1228_v25 = vrot.slane %v1227_v63, 2  ;;  %v1327_v22 = vmul.f32 %v11653_v47, %v8352_v1  ;;  %v6214_v37 = vsel %vm172_vm2, 1.0, %v11588_v54 }
 0x17c   :  { %4078 = vperm.xlu0 %6518, %v7878_v42   ;;  %11662 = vst [vmem:[#allocation111_spill] sm:$0xff] %v8378_v24  ;;  %v8404_v52 = vadd.f32 %v956_v27, %v955_v35  ;;  %v1483_v55 = vadd.f32 %v1482_v45, %v1325_v19  ;;  %v973_v35 = vadd.f32 %v972_v0, %v971_v51 }
 0x17d   :  { %5032 = vperm.xlu1 %6520, %v11659_v60   ;;  %v2256_v36 = vsel %vm2255_vm3, %v2242_v34, %v2254_v13  ;;  %v2441_v34 = vrot.slane %v2415_v12, %v11645_v46  ;;  %v1468_v12 = vrot.slane %v1467_v18, 1  ;;  %v2437_v13 = vrot.slane %v8324_v5, %v11645_v46 }
 0x17e   :  { %v2424_v57 = vpop.permute.xlu0 %2423  ;;  %6288 = vmatmul.mubr.msk.f32.vlgmr.msra.gmra.mxu0 %vm2257_vm13, %v2256_v36  ;;  %6291 = vmatmul.mubr.msk.f32.vlgmr.msra.gmra.mxu1 %vm2257_vm13, %v2256_v36  ;;  %v2418_v14 = vpop.permute.xlu1 %2417  ;;  %11666 = vst [vmem:[#allocation10_spill] sm:$0xff] %v8404_v52  ;;  %v11667_v60 = vsub.f32 1.0, %v11652_v16  ;;  %v8411_v36 = vadd.f32 %v1212_v62, %v1211_v20  ;;  %v983_v19 = vadd.f32 %v982_v48, %v815_v11  ;;  %v1494_v23 = vrot.slane %v1327_v22, 4 }
 0x17f   :  { %6293 = vmatpush1.msk.msra.mxu0 %vm152_vm5, %v11663_v6  ;;  %6296 = vmatpush1.msk.msra.mxu1 %vm154_vm10, %v11663_v6  ;;  %v2445_v2 = vrot.slane %v2418_v14, %v11645_v46  ;;  %v1238_v14 = vrot.slane %v1071_v33, 4  ;;  %v8421_v45 = vmul.f32 %v6214_v37, %v11646_v32  ;;  %v2466_v20 = vsel %vm2243_vm8, %v2441_v34, %v2437_v13 }
 0x180   :  { %6298 = vmatprep.subr.msk.mxu0 %vm157_vm0, %v11663_v6  ;;  %6301 = vmatprep.subr.msk.mxu1 %vm159_vm1, %v11663_v6  ;;  %11668 = vst [vmem:[#allocation5_spill] sm:$0xff] %v8411_v36  ;;  %vm174_vm0 = vcmp.eq.f32.partialorder %v11593_v4, %v11638_v15  ;;  %v8426_v56 = vadd.f32 %v1468_v12, %v1467_v18  ;;  %v1484_v24 = vrot.slane %v1483_v55, 2  ;;  %v984_v37 = vrot.slane %v983_v19, 2 }
 0x181   :  { %4086 = vperm.xlu0 %6518, %v7917_v40   ;;  %5041 = vperm.xlu1 %6520, %v11667_v60   ;;  %11669 = vst [vmem:[#allocation112_spill] sm:$0xff] %v8421_v45  ;;  %v1229_v60 = vadd.f32 %v1228_v25, %v1227_v63  ;;  %v2467_v36 = vsel %vm2245_vm9, %v2445_v2, %v2466_v20  ;;  %v6216_v63 = vsel %vm174_vm0, 1.0, %v11588_v54  ;;  %v470_v25 = vrot.slane %v8352_v1, 4 }
 0x182   :  { %v8415_v17 = vpop.permute.xlu0 %2626  ;;  %v2421_v27 = vpop.permute.xlu1 %2420  ;;  %2539 = vmatprep.mubr.f32.mxu0 %v11588_v54  ;;  %2610 = vmatprep.mubr.f32.mxu1 %v11588_v54  ;;  %11670 = vst [vmem:[#allocation113_spill] sm:$0xff] %v8426_v56  ;;  %v812_v52 = vmul.f32 %v11650_v50, %v8421_v45  ;;  %v1239_v11 = vadd.f32 %v1238_v14, %v1071_v33  ;;  %v974_v12 = vrot.slane %v973_v35, 1  ;;  %v11672_v5 = vsub.f32 1.0, %v7878_v42 }
 0x183   :  { %v2449_v62 = vrot.slane %v2421_v27, %v11645_v46  ;;  %v1068_v0 = vmul.f32 %v11651_v21, %v8421_v45  ;;  %v2453_v18 = vrot.slane %v2424_v57, %v11645_v46  ;;  %v1324_v2 = vmul.f32 %v11653_v47, %v8421_v45 }
 0x184   :  { %v1230_v13 = vrot.slane %v1229_v60, 1  ;;  %v964_v20 = vrot.slane %v812_v52, 4  ;;  %v8447_v57 = vmul.f32 %v6216_v63, %v11646_v32  ;;  %v1485_v56 = vadd.f32 %v1484_v24, %v1483_v55 }
 0x185   :  { %v2468_v51 = vsel %vm2247_vm15, %v2449_v62, %v2467_v36  ;;  %4110 = vperm.xlu0 %6518, %v11615_v30   ;;  %4943 = vperm.xlu1 %6520, %v7878_v42   ;;  %v1495_v36 = vadd.f32 %v1494_v23, %v1327_v22  ;;  %v1220_v49 = vrot.slane %v1068_v0, 4  ;;  %v8454_v22 = vadd.f32 %v470_v25, %v8352_v1  ;;  %v11676_v42 = vld [vmem:[#allocation13_spill] sm:$0xff] }
 0x186   :  { %v2430_v48 = vpop.permute.xlu0 %2429  ;;  %v2427_v34 = vpop.permute.xlu1 %2426  ;;  %v2469_v27 = vsel %vm2249_vm6, %v2453_v18, %v2468_v51  ;;  %11671 = vst [vmem:[#allocation114_spill] sm:$0xff] %v8447_v57  ;;  %v985_v51 = vadd.f32 %v984_v37, %v983_v19  ;;  %v1476_v18 = vrot.slane %v1324_v2, 4  ;;  %v814_v32 = vmul.f32 %v11650_v50, %v8447_v57 }
 0x187   :  { %v2457_v33 = vrot.slane %v2427_v34, %v11645_v46  ;;  %v2461_v14 = vrot.slane %v2430_v48, %v11645_v46  ;;  %v1240_v34 = vrot.slane %v1239_v11, 2  ;;  %11673 = vst [vmem:[#allocation115_spill] sm:$0xff] %v8454_v22  ;;  %v8459_v48 = vadd.f32 %v974_v12, %v973_v35 }
 0x188   :  { %vm177_vm1 = vcmp.eq.f32.partialorder %v11605_v9, %v11676_v42  ;;  %v1496_v55 = vrot.slane %v1495_v36, 2  ;;  %v1070_v19 = vmul.f32 %v11651_v21, %v8447_v57  ;;  %v1486_v50 = vrot.slane %v1485_v56, 1 }
 0x189   :  { %v2470_v62 = vsel %vm2251_vm7, %v2457_v33, %v2469_v27  ;;  %4118 = vperm.xlu0 %6518, %v7999_v28   ;;  %5050 = vperm.xlu1 %6520, %v11672_v5   ;;  %11674 = vst [vmem:[#allocation116_spill] sm:$0xff] %v8459_v48  ;;  %v8461_v33 = vadd.f32 %v1230_v13, %v1229_v60  ;;  %v976_v13 = vrot.slane %v814_v32, 4  ;;  %v6219_v21 = vsel %vm177_vm1, 1.0, %v11588_v54  ;;  %v11679_v27 = vld [vmem:[#allocation9_spill] sm:$0xff] }
 0x18a   :  { %v2433_v8 = vpop.permute.xlu0 %2432  ;;  %v2630_v23 = vpop.permute.xlu1 %2629  ;;  %v2471_v24 = vsel %vm2253_vm14, %v2461_v14, %v2470_v62  ;;  %v965_v5 = vadd.f32 %v964_v20, %v812_v52  ;;  %v1221_v35 = vadd.f32 %v1220_v49, %v1068_v0  ;;  %v986_v52 = vrot.slane %v985_v51, 1 }
 0x18b   :  { %v2465_v63 = vrot.slane %v2433_v8, %v11645_v46  ;;  %11675 = vst [vmem:[#allocation117_spill] sm:$0xff] %v8461_v33  ;;  %v1241_v8 = vadd.f32 %v1240_v34, %v1239_v11  ;;  %v1477_v12 = vadd.f32 %v1476_v18, %v1324_v2  ;;  %v2656_v14 = vrot.slane %v2630_v23, %v11645_v46  ;;  %v11677_v11 = vld [vmem:[#allocation18_spill] sm:$0xff]  ;;  %v11681_v23 = vld [vmem:[#allocation35_spill] sm:$0xff] }
 0x18c   :  { %v1326_v49 = vmul.f32 %v11653_v47, %v8447_v57  ;;  %v8489_v0 = vmul.f32 %v6219_v21, %v11677_v11  ;;  %v1497_v20 = vadd.f32 %v1496_v55, %v1495_v36  ;;  %v966_v62 = vrot.slane %v965_v5, 2 }
 0x18d   :  { %v2472_v25 = vsel %vm2255_vm3, %v2465_v63, %v2471_v24  ;;  %6525 = vset.pattern.permute.xlu0 %v11655_v44  ;;  %4951 = vperm.xlu1 %6520, %v7917_v40   ;;  %v1232_v34 = vrot.slane %v1070_v19, 4  ;;  %v2652_v47 = vrot.slane %v8415_v17, %v11645_v46  ;;  %v1222_v39 = vrot.slane %v1221_v35, 2  ;;  %v11682_v63 = vld [vmem:[#allocation30_spill] sm:$0xff] }
 0x18e   :  { %4935 = vperm.xlu0 %6525, %v11652_v16   ;;  %v8472_v60 = vpop.permute.xlu0 %2638  ;;  %6294 = vmatmul.mubr.msk.f32.vlgmr.msra.gmra.mxu0 %vm2257_vm13, %v2472_v25  ;;  %v2633_v37 = vpop.permute.xlu1 %2632  ;;  %11678 = vst [vmem:[#allocation13_spill] sm:$0xff] %v8489_v0  ;;  %v561_v18 = vmul.f32 %v11681_v23, %v8489_v0  ;;  %v817_v24 = vmul.f32 %v11682_v63, %v8489_v0  ;;  %v11683_v36 = vsub.f32 1.0, %v7917_v40  ;;  %v1242_v21 = vrot.slane %v1241_v8, 1 }
 0x18f   :  { %6297 = vmatmul.mubr.msk.f32.vlgmr.msra.gmra.mxu1 %vm2257_vm13, %v2472_v25  ;;  %6299 = vmatpush1.msk.msra.mxu0 %vm156_vm4, %v11663_v6  ;;  %v2660_v2 = vrot.slane %v2633_v37, %v11645_v46  ;;  %vm11680_vm4 = vcmp.eq.f32.partialorder %v11585_v53, %v11679_v27  ;;  %v8516_v25 = vadd.f32 %v1486_v50, %v1485_v56  ;;  %v1478_v40 = vrot.slane %v1477_v12, 2 }
 0x190   :  { %6302 = vmatpush1.msk.msra.mxu1 %vm158_vm11, %v11663_v6  ;;  %6304 = vmatprep.subr.msk.mxu0 %vm161_vm12, %v11663_v6  ;;  %v8518_v37 = vadd.f32 %v986_v52, %v985_v51  ;;  %v977_v16 = vadd.f32 %v976_v13, %v814_v32  ;;  %v2681_v10 = vsel %vm2243_vm8, %v2656_v14, %v2652_v47  ;;  %v1498_v22 = vrot.slane %v1497_v20, 1 }
 0x191   :  { %6307 = vmatprep.subr.msk.mxu1 %vm11680_vm4, %v11663_v6  ;;  %6521 = vset.pattern.permute.xlu1 %v11639_v61  ;;  %11684 = vst [vmem:[#allocation18_spill] sm:$0xff] %v8516_v25  ;;  %v2682_v38 = vsel %vm2245_vm9, %v2660_v2, %v2681_v10  ;;  %v967_v33 = vadd.f32 %v966_v62, %v965_v5  ;;  %v738_v52 = vrot.slane %v561_v18, 4  ;;  %v994_v32 = vrot.slane %v817_v24, 4  ;;  %v11687_v10 = vld [vmem:[#allocation56_spill] sm:$0xff] }
 0x192   :  { %5059 = vperm.xlu0 %6525, %v11683_v36   ;;  %v8513_v55 = vpop.permute.xlu0 %2841  ;;  %4094 = vperm.xlu1 %6521, %v7942_v59   ;;  %v2636_v17 = vpop.permute.xlu1 %2635  ;;  %11685 = vst [vmem:[#allocation9_spill] sm:$0xff] %v8518_v37  ;;  %v1488_v36 = vrot.slane %v1326_v49, 4  ;;  %v1233_v56 = vadd.f32 %v1232_v34, %v1070_v19  ;;  %v1223_v50 = vadd.f32 %v1222_v39, %v1221_v35  ;;  %v978_v25 = vrot.slane %v977_v16, 2  ;;  %v11688_v19 = vld [vmem:[#allocation52_spill] sm:$0xff] }
 0x193   :  { %v2664_v7 = vrot.slane %v2636_v17, %v11645_v46  ;;  %2754 = vmatprep.mubr.f32.mxu0 %v11588_v54  ;;  %2825 = vmatprep.mubr.f32.mxu1 %v11588_v54  ;;  %v2668_v13 = vrot.slane %v8472_v60, %v11645_v46  ;;  %v11686_v17 = vsub.f32 1.0, %v7942_v59  ;;  %v1073_v5 = vmul.f32 %v11687_v10, %v8489_v0 }
 0x194   :  { %v8538_v60 = vadd.f32 %v1242_v21, %v1241_v8  ;;  %v1479_v2 = vadd.f32 %v1478_v40, %v1477_v12  ;;  %v1489_v62 = vadd.f32 %v1488_v36, %v1326_v49  ;;  %v1234_v37 = vrot.slane %v1233_v56, 2 }
 0x195   :  { %v2683_v51 = vsel %vm2247_vm15, %v2664_v7, %v2682_v38  ;;  %v1329_v38 = vmul.f32 %v11688_v19, %v8489_v0  ;;  %v11689_v7 = vld [vmem:[#allocation3_spill] sm:$0xff]  ;;  %v739_v31 = vadd.f32 %v738_v52, %v561_v18  ;;  %v995_v26 = vadd.f32 %v994_v32, %v817_v24 }
 0x196   :  { %v2645_v14 = vpop.permute.xlu0 %2644  ;;  %6522 = vset.pattern.permute.xlu1 %v11655_v44  ;;  %v2642_v47 = vpop.permute.xlu1 %2641  ;;  %5068 = vperm.xlu0 %6525, %v11686_v17   ;;  %vm95_vm5 = vcmp.lt.s32.totalorder %v11689_v7, 507  ;;  %v2684_v39 = vsel %vm2249_vm6, %v2668_v13, %v2683_v51  ;;  %v968_v17 = vrot.slane %v967_v33, 1  ;;  %vm179_vm10 = vcmp.eq.f32.partialorder %v11585_v53, %v11676_v42 }
 0x197   :  { %v2672_v35 = vrot.slane %v2642_v47, %v11645_v46  ;;  %4959 = vperm.xlu1 %6522, %v7942_v59   ;;  %v2676_v34 = vrot.slane %v2645_v14, %v11645_v46  ;;  %v1224_v59 = vrot.slane %v1223_v50, 1  ;;  %v979_v8 = vadd.f32 %v978_v25, %v977_v16 }
 0x198   :  { %v1250_v12 = vrot.slane %v1073_v5, 4  ;;  %v1506_v49 = vrot.slane %v1329_v38, 4  ;;  %v8548_v40 = vadd.f32 %v1498_v22, %v1497_v20  ;;  %v1480_v36 = vrot.slane %v1479_v2, 1 }
 0x199   :  { %v2685_v48 = vsel %vm2251_vm7, %v2672_v35, %v2684_v39  ;;  %v1490_v18 = vrot.slane %v1489_v62, 2  ;;  %v8552_v51 = vadd.f32 %v968_v17, %v967_v33  ;;  %v1235_v52 = vadd.f32 %v1234_v37, %v1233_v56 }
 0x19a   :  { %v2648_v47 = vpop.permute.xlu0 %2647  ;;  %v2845_v1 = vpop.permute.xlu1 %2844  ;;  %4967 = vperm.xlu0 %6525, %v7979_v43   ;;  %11690 = vst [vmem:[#allocation35_spill] sm:$0xff] %v8548_v40  ;;  %v2686_v24 = vsel %vm2253_vm14, %v2676_v34, %v2685_v48  ;;  %v6221_v16 = vsel %vm179_vm10, 1.0, %v11588_v54  ;;  %v740_v32 = vrot.slane %v739_v31, 2  ;;  %v8564_v33 = vadd.f32 %v1224_v59, %v1223_v50 }
 0x19b   :  { %v2680_v21 = vrot.slane %v2648_v47, %v11645_v46  ;;  %6523 = vset.pattern.permute.xlu1 %v11639_v61  ;;  %v996_v61 = vrot.slane %v995_v26, 2  ;;  %v8560_v22 = vmul.f32 %v6221_v16, %v11677_v11  ;;  %v980_v37 = vrot.slane %v979_v8, 1 }
 0x19c   :  { %4102 = vperm.xlu1 %6523, %v7979_v43   ;;  %v1251_v56 = vadd.f32 %v1250_v12, %v1073_v5  ;;  %v1507_v13 = vadd.f32 %v1506_v49, %v1329_v38  ;;  %v2871_v14 = vrot.slane %v2845_v1, %v11645_v46  ;;  %vm11691_vm11 = vcmp.eq.f32.partialorder %v11592_v29, %v11679_v27 }
 0x19d   :  { %v2687_v25 = vsel %vm2255_vm3, %v2680_v21, %v2686_v24  ;;  %vm11692_vm12 = vcmp.eq.f32.partialorder %v11593_v4, %v11679_v27  ;;  %v1491_v34 = vadd.f32 %v1490_v18, %v1489_v62  ;;  %v563_v50 = vmul.f32 %v11681_v23, %v8560_v22 }
 0x19e   :  { %v2854_v20 = vpop.permute.xlu0 %2853  ;;  %6300 = vmatmul.mubr.msk.f32.vlgmr.msra.gmra.mxu0 %vm2257_vm13, %v2687_v25  ;;  %6303 = vmatmul.mubr.msk.f32.vlgmr.msra.gmra.mxu1 %vm2257_vm13, %v2687_v25  ;;  %v2848_v48 = vpop.permute.xlu1 %2847  ;;  %v2867_v5 = vrot.slane %v8513_v55, %v11645_v46  ;;  %vm11693_vm4 = vcmp.eq.f32.partialorder %v11605_v9, %v11584_v58  ;;  %v8589_v27 = vadd.f32 %v1480_v36, %v1479_v2  ;;  %v1236_v38 = vrot.slane %v1235_v52, 1 }
 0x19f   :  { %6305 = vmatpush1.msk.msra.mxu0 %vm11691_vm11, %v11663_v6  ;;  %6308 = vmatpush1.msk.msra.mxu1 %vm11692_vm12, %v11663_v6  ;;  %v2875_v1 = vrot.slane %v2848_v48, %v11645_v46  ;;  %vm11694_vm11 = vcmp.eq.f32.partialorder %v11585_v53, %v11584_v58  ;;  %v11696_v62 = vsub.f32 1.0, %v7999_v28  ;;  %v741_v55 = vadd.f32 %v740_v32, %v739_v31 }
 0x1a0   :  { %6310 = vmatprep.subr.msk.mxu0 %vm11693_vm4, %v11663_v6  ;;  %6313 = vmatprep.subr.msk.mxu1 %vm11694_vm11, %v11663_v6  ;;  %11695 = vst [vmem:[#allocation30_spill] sm:$0xff] %v8589_v27  ;;  %v997_v39 = vadd.f32 %v996_v61, %v995_v26  ;;  %v819_v17 = vmul.f32 %v11682_v63, %v8560_v22  ;;  %v8599_v47 = vsel %vm95_vm5, 1.0, %v11588_v54  ;;  %v11698_v59 = vsub.f32 1.0, %v7979_v43 }
 0x1a1   :  { %6524 = vset.pattern.permute.xlu1 %v11655_v44  ;;  %5095 = vperm.xlu0 %6525, %v11696_v62   ;;  %11697 = vst [vmem:[#allocation56_spill] sm:$0xff] %v8599_v47  ;;  %v8606_v44 = vadd.f32 %v980_v37, %v979_v8  ;;  %v1252_v31 = vrot.slane %v1251_v56, 2  ;;  %v1508_v26 = vrot.slane %v1507_v13, 2  ;;  %v1075_v49 = vmul.f32 %v11687_v10, %v8560_v22 }
 0x1a2   :  { %5077 = vperm.xlu1 %6524, %v11698_v59   ;;  %v8603_v2 = vpop.permute.xlu0 %3056  ;;  %v2851_v12 = vpop.permute.xlu1 %2850  ;;  %2969 = vmatprep.mubr.f32.mxu0 %v11588_v54  ;;  %v2896_v21 = vsel %vm2243_vm8, %v2871_v14, %v2867_v5  ;;  %v1492_v43 = vrot.slane %v1491_v34, 1  ;;  %v750_v36 = vrot.slane %v563_v50, 4  ;;  %v8614_v24 = vadd.f32 %v1236_v38, %v1235_v52 }
 0x1a3   :  { %v2879_v7 = vrot.slane %v2851_v12, %v11645_v46  ;;  %3040 = vmatprep.mubr.f32.mxu1 %v11588_v54  ;;  %v2897_v18 = vsel %vm2245_vm9, %v2875_v1, %v2896_v21  ;;  %v1331_v8 = vmul.f32 %v11688_v19, %v8560_v22  ;;  %vm176_vm5 = vcmp.eq.f32.partialorder %v11592_v29, %v11676_v42 }
 0x1a4   :  { %v742_v25 = vrot.slane %v741_v55, 1  ;;  %v998_v32 = vrot.slane %v997_v39, 1  ;;  %v1006_v61 = vrot.slane %v819_v17, 4  ;;  %v2883_v48 = vrot.slane %v2854_v20, %v11645_v46 }
 0x1a5   :  { %v2898_v16 = vsel %vm2247_vm15, %v2879_v7, %v2897_v18  ;;  %v1253_v5 = vadd.f32 %v1252_v31, %v1251_v56  ;;  %v1509_v52 = vadd.f32 %v1508_v26, %v1507_v13  ;;  %v1262_v1 = vrot.slane %v1075_v49, 4 }
 0x1a6   :  { %4975 = vperm.xlu1 %6524, %v11615_v30   ;;  %v2860_v37 = vpop.permute.xlu0 %2859  ;;  %v2857_v14 = vpop.permute.xlu1 %2856  ;;  %v8624_v62 = vadd.f32 %v1492_v43, %v1491_v34  ;;  %v494_v59 = vrot.slane %v8560_v22, 4  ;;  %v751_v12 = vadd.f32 %v750_v36, %v563_v50  ;;  %v2899_v7 = vsel %vm2249_vm6, %v2883_v48, %v2898_v16 }
 0x1a7   :  { %v2887_v38 = vrot.slane %v2857_v14, %v11645_v46  ;;  %v2891_v21 = vrot.slane %v2860_v37, %v11645_v46  ;;  %v1518_v18 = vrot.slane %v1331_v8, 4  ;;  %v6218_v20 = vsel %vm176_vm5, 1.0, %v11588_v54 }
 0x1a8   :  { %11699 = vst [vmem:[#allocation52_spill] sm:$0xff] %v8624_v62  ;;  %v8634_v13 = vadd.f32 %v742_v25, %v741_v55  ;;  %v1007_v31 = vadd.f32 %v1006_v61, %v819_v17  ;;  %v8637_v34 = vmul.f32 %v6218_v20, %v11677_v11  ;;  %v11702_v50 = vsub.f32 1.0, %v11615_v30 }
 0x1a9   :  { %v2900_v56 = vsel %vm2251_vm7, %v2887_v38, %v2899_v7  ;;  %v8641_v36 = vadd.f32 %v998_v32, %v997_v39  ;;  %v1254_v16 = vrot.slane %v1253_v5, 1  ;;  %v1510_v48 = vrot.slane %v1509_v52, 1 }
 0x1aa   :  { %11700 = vst [vmem:[#allocation3_spill] sm:$0xff] %v8634_v13  ;;  %11701 = vst [vmem:[#allocation118_spill] sm:$0xff] %v8637_v34  ;;  %5086 = vperm.xlu1 %6524, %v11702_v50   ;;  %v2863_v26 = vpop.permute.xlu0 %2862  ;;  %v3060_v43 = vpop.permute.xlu1 %3059  ;;  %v1263_v37 = vadd.f32 %v1262_v1, %v1075_v49  ;;  %v752_v35 = vrot.slane %v751_v12, 2  ;;  %v560_v55 = vmul.f32 %v11681_v23, %v8637_v34  ;;  %v1008_v61 = vrot.slane %v1007_v31, 2 }
 0x1ab   :  { %11703 = vst [vmem:[#allocation119_spill] sm:$0xff] %v8641_v36  ;;  %v2895_v14 = vrot.slane %v2863_v26, %v11645_v46  ;;  %vm11307_vm12 = vcmp.eq.f32.partialorder %v11593_v4, %v11676_v42  ;;  %v2901_v17 = vsel %vm2253_vm14, %v2891_v21, %v2900_v56  ;;  %v1519_v30 = vadd.f32 %v1518_v18, %v1331_v8 }
 0x1ac   :  { %v816_v25 = vmul.f32 %v11682_v63, %v8637_v34  ;;  %v1072_v39 = vmul.f32 %v11687_v10, %v8637_v34  ;;  %v8655_v32 = vadd.f32 %v494_v59, %v8560_v22  ;;  %v1328_v1 = vmul.f32 %v11688_v19, %v8637_v34 }
 0x1ad   :  { %v2902_v49 = vsel %vm2255_vm3, %v2895_v14, %v2901_v17  ;;  %v8661_v21 = vadd.f32 %v1254_v16, %v1253_v5  ;;  %v8663_v7 = vadd.f32 %v1510_v48, %v1509_v52  ;;  %v1264_v18 = vrot.slane %v1263_v37, 2  ;;  %v11712_v14 = vld [vmem:[#allocation25_spill] sm:$0xff] }
 0x1ae   :  { %11704 = vst [vmem:[#allocation120_spill] sm:$0xff] %v8655_v32  ;;  %4983 = vperm.xlu1 %6524, %v7999_v28   ;;  %v3069_v38 = vpop.permute.xlu0 %3068  ;;  %6306 = vmatmul.mubr.msk.f32.vlgmr.msra.gmra.mxu0 %vm2257_vm13, %v2902_v49  ;;  %v3063_v8 = vpop.permute.xlu1 %3062  ;;  %v6220_v22 = vsel %vm11307_vm12, 1.0, %v11588_v54  ;;  %v3086_v59 = vrot.slane %v3060_v43, %v11645_v46  ;;  %vm11707_vm4 = vcmp.eq.f32.partialorder %v11592_v29, %v11584_v58  ;;  %v732_v5 = vrot.slane %v560_v55, 4 }
 0x1af   :  { %11705 = vst [vmem:[#allocation121_spill] sm:$0xff] %v8661_v21  ;;  %11706 = vst [vmem:[#allocation122_spill] sm:$0xff] %v8663_v7  ;;  %6309 = vmatmul.mubr.msk.f32.vlgmr.msra.gmra.mxu1 %vm2257_vm13, %v2902_v49  ;;  %6311 = vmatpush1.msk.msra.mxu0 %vm11707_vm4, %v11663_v6  ;;  %v753_v28 = vadd.f32 %v752_v35, %v751_v12  ;;  %v8676_v52 = vmul.f32 %v6220_v22, %v11677_v11  ;;  %v1520_v56 = vrot.slane %v1519_v30, 2  ;;  %v11713_v49 = vld [vmem:[#allocation26_spill] sm:$0xff] }
 0x1b0   :  { %vm11709_vm11 = vcmp.eq.f32.partialorder %v11593_v4, %v11584_v58  ;;  %v3090_v20 = vrot.slane %v3063_v8, %v11645_v46  ;;  %vm11710_vm12 = vcmp.eq.f32.partialorder %v11605_v9, %v11604_v3  ;;  %v988_v50 = vrot.slane %v816_v25, 4  ;;  %3184 = vmatprep.mubr.f32.mxu0 %v11588_v54  ;;  %3255 = vmatprep.mubr.f32.mxu1 %v11588_v54 }
 0x1b1   :  { %11708 = vst [vmem:[#allocation123_spill] sm:$0xff] %v8676_v52  ;;  %6314 = vmatpush1.msk.msra.mxu1 %vm11709_vm11, %v11663_v6  ;;  %6316 = vmatprep.subr.msk.mxu0 %vm11710_vm12, %v11663_v6  ;;  %v1244_v26 = vrot.slane %v1072_v39, 4  ;;  %v3082_v35 = vrot.slane %v8603_v2, %v11645_v46  ;;  %vm11711_vm4 = vcmp.eq.f32.partialorder %v11585_v53, %v11604_v3  ;;  %v1500_v11 = vrot.slane %v1328_v1, 4 }
 0x1b2   :  { %6319 = vmatprep.subr.msk.mxu1 %vm11711_vm4, %v11663_v6  ;;  %v1009_v58 = vadd.f32 %v1008_v61, %v1007_v31  ;;  %v562_v12 = vmul.f32 %v11681_v23, %v8676_v52  ;;  %v8696_v43 = vpop.permute.xlu0 %3271  ;;  %v3066_v16 = vpop.permute.xlu1 %3065  ;;  %v1265_v48 = vadd.f32 %v1264_v18, %v1263_v37  ;;  %v818_v2 = vmul.f32 %v11682_v63, %v8676_v52 }
 0x1b3   :  { %v332_v17 = vrot.slane %v11712_v14, 4  ;;  %v344_v8 = vrot.slane %v11713_v49, 4  ;;  %v3111_v22 = vsel %vm2243_vm8, %v3086_v59, %v3082_v35  ;;  %v3094_v31 = vrot.slane %v3066_v16, %v11645_v46 }
 0x1b4   :  { %v754_v61 = vrot.slane %v753_v28, 1  ;;  %v733_v7 = vadd.f32 %v732_v5, %v560_v55  ;;  %v3112_v23 = vsel %vm2245_vm9, %v3090_v20, %v3111_v22  ;;  %v1521_v21 = vadd.f32 %v1520_v56, %v1519_v30 }
 0x1b5   :  { %v989_v13 = vadd.f32 %v988_v50, %v816_v25  ;;  %v1245_v36 = vadd.f32 %v1244_v26, %v1072_v39  ;;  %v3113_v37 = vsel %vm2247_vm15, %v3094_v31, %v3112_v23  ;;  %v1010_v18 = vrot.slane %v1009_v58, 1 }
 0x1b6   :  { %v1501_v32 = vadd.f32 %v1500_v11, %v1328_v1  ;;  %v744_v63 = vrot.slane %v562_v12, 4  ;;  %v3098_v34 = vrot.slane %v3069_v38, %v11645_v46  ;;  %v3075_v40 = vpop.permute.xlu0 %3074  ;;  %v3072_v62 = vpop.permute.xlu1 %3071  ;;  %v1266_v27 = vrot.slane %v1265_v48, 1 }
 0x1b7   :  { %v1000_v59 = vrot.slane %v818_v2, 4  ;;  %v333_v35 = vadd.f32 %v332_v17, %v11712_v14  ;;  %v3102_v55 = vrot.slane %v3072_v62, %v11645_v46  ;;  %v734_v5 = vrot.slane %v733_v7, 2 }
 0x1b8   :  { %v1074_v30 = vmul.f32 %v11687_v10, %v8676_v52  ;;  %v1330_v25 = vmul.f32 %v11688_v19, %v8676_v52  ;;  %v3106_v39 = vrot.slane %v3075_v40, %v11645_v46  ;;  %v3114_v1 = vsel %vm2249_vm6, %v3098_v34, %v3113_v37 }
 0x1b9   :  { %v990_v38 = vrot.slane %v989_v13, 2  ;;  %v1246_v20 = vrot.slane %v1245_v36, 2  ;;  %v3115_v56 = vsel %vm2251_vm7, %v3102_v55, %v3114_v1  ;;  %v8717_v50 = vadd.f32 %v754_v61, %v753_v28 }
 0x1ba   :  { %v1502_v26 = vrot.slane %v1501_v32, 2  ;;  %v745_v11 = vadd.f32 %v744_v63, %v562_v12  ;;  %v3078_v62 = vpop.permute.xlu0 %3077  ;;  %v3275_v16 = vpop.permute.xlu1 %3274  ;;  %v8719_v17 = vadd.f32 %v1010_v18, %v1009_v58  ;;  %v1522_v10 = vrot.slane %v1521_v21, 1  ;;  %v11717_v58 = vld [vmem:[#allocation22_spill] sm:$0xff] }
 0x1bb   :  { %11714 = vst [vmem:[#allocation25_spill] sm:$0xff] %v8717_v50  ;;  %v1001_v22 = vadd.f32 %v1000_v59, %v818_v2  ;;  %v334_v31 = vrot.slane %v333_v35, 2  ;;  %v3110_v19 = vrot.slane %v3078_v62, %v11645_v46  ;;  %v8722_v40 = vadd.f32 %v1266_v27, %v1265_v48 }
 0x1bc   :  { %11715 = vst [vmem:[#allocation26_spill] sm:$0xff] %v8719_v17  ;;  %v1256_v34 = vrot.slane %v1074_v30, 4  ;;  %v1512_v23 = vrot.slane %v1330_v25, 4  ;;  %v3116_v37 = vsel %vm2253_vm14, %v3106_v39, %v3115_v56  ;;  %v735_v55 = vadd.f32 %v734_v5, %v733_v7 }
 0x1bd   :  { %11716 = vst [vmem:[#allocation124_spill] sm:$0xff] %v8722_v40  ;;  %v991_v28 = vadd.f32 %v990_v38, %v989_v13  ;;  %v1247_v61 = vadd.f32 %v1246_v20, %v1245_v36  ;;  %v3117_v12 = vsel %vm2255_vm3, %v3110_v19, %v3116_v37  ;;  %v1503_v63 = vadd.f32 %v1502_v26, %v1501_v32  ;;  %v11724_v19 = vld [vmem:[#allocation33_spill] sm:$0xff] }
 0x1be   :  { %v746_v1 = vrot.slane %v745_v11, 2  ;;  %v11718_v18 = vrot.slane %v11717_v58, 4  ;;  %v3284_v59 = vpop.permute.xlu0 %3283  ;;  %6312 = vmatmul.mubr.msk.f32.vlgmr.msra.gmra.mxu0 %vm2257_vm13, %v3117_v12  ;;  %6315 = vmatmul.mubr.msk.f32.vlgmr.msra.gmra.mxu1 %vm2257_vm13, %v3117_v12  ;;  %v3278_v27 = vpop.permute.xlu1 %3277  ;;  %v8731_v48 = vadd.f32 %v1522_v10, %v1521_v21  ;;  %v1002_v39 = vrot.slane %v1001_v22, 2 }
 0x1bf   :  { %v335_v7 = vadd.f32 %v334_v31, %v333_v35  ;;  %v345_v13 = vadd.f32 %v344_v8, %v11713_v49  ;;  %v3301_v36 = vrot.slane %v3275_v16, %v11645_v46  ;;  %vm11720_vm12 = vcmp.eq.f32.partialorder %v11592_v29, %v11604_v3  ;;  %3399 = vmatprep.mubr.f32.mxu0 %v11588_v54 }
 0x1c0   :  { %v339_v2 = vadd.f32 %v11718_v18, %v11717_v58  ;;  %11719 = vst [vmem:[#allocation22_spill] sm:$0xff] %v8731_v48  ;;  %6317 = vmatpush1.msk.msra.mxu0 %vm11720_vm12, %v11663_v6  ;;  %vm11721_vm11 = vcmp.eq.f32.partialorder %v11593_v4, %v11604_v3  ;;  %v1257_v21 = vadd.f32 %v1256_v34, %v1074_v30  ;;  %v736_v8 = vrot.slane %v735_v55, 1 }
 0x1c1   :  { %6320 = vmatpush1.msk.msra.mxu1 %vm11721_vm11, %v11663_v6  ;;  %v1513_v5 = vadd.f32 %v1512_v23, %v1330_v25  ;;  %v3305_v35 = vrot.slane %v3278_v27, %v11645_v46  ;;  %vm11722_vm4 = vcmp.eq.f32.partialorder %v11605_v9, %v11638_v15  ;;  %vm11723_vm12 = vcmp.eq.f32.partialorder %v11585_v53, %v11638_v15 }
 0x1c2   :  { %6322 = vmatprep.subr.msk.mxu0 %vm11722_vm4, %v11663_v6  ;;  %6325 = vmatprep.subr.msk.mxu1 %vm11723_vm12, %v11663_v6  ;;  %v992_v38 = vrot.slane %v991_v28, 1  ;;  %v1248_v3 = vrot.slane %v1247_v61, 1  ;;  %v3297_v20 = vrot.slane %v8696_v43, %v11645_v46  ;;  %v1504_v30 = vrot.slane %v1503_v63, 1  ;;  %v8757_v26 = vpop.permute.xlu0 %3486  ;;  %v3281_v62 = vpop.permute.xlu1 %3280 }
 0x1c3   :  { %3470 = vmatprep.mubr.f32.mxu1 %v11588_v54  ;;  %v747_v25 = vadd.f32 %v746_v1, %v745_v11  ;;  %v340_v56 = vrot.slane %v339_v2, 2  ;;  %v1003_v16 = vadd.f32 %v1002_v39, %v1001_v22  ;;  %v336_v10 = vrot.slane %v335_v7, 1 }
 0x1c4   :  { %v346_v31 = vrot.slane %v345_v13, 2  ;;  %v352_v34 = vrot.slane %v11724_v19, 2  ;;  %v3326_v23 = vsel %vm2243_vm8, %v3301_v36, %v3297_v20  ;;  %v3309_v37 = vrot.slane %v3281_v62, %v11645_v46 }
 0x1c5   :  { %v1258_v43 = vrot.slane %v1257_v21, 2  ;;  %v1514_v12 = vrot.slane %v1513_v5, 2  ;;  %v3327_v18 = vsel %vm2245_vm9, %v3305_v35, %v3326_v23  ;;  %v8763_v27 = vadd.f32 %v736_v8, %v735_v55  ;;  %v8777_v55 = vld [vmem:[%s11183_s0] sm:$0xff] }
 0x1c6   :  { %v8765_v11 = vadd.f32 %v992_v38, %v991_v28  ;;  %v8767_v1 = vadd.f32 %v1248_v3, %v1247_v61  ;;  %v3328_v22 = vsel %vm2247_vm15, %v3309_v37, %v3327_v18  ;;  %v8770_v39 = vadd.f32 %v1504_v30, %v1503_v63  ;;  %v3290_v20 = vpop.permute.xlu0 %3289  ;;  %v3287_v62 = vpop.permute.xlu1 %3286  ;;  %11729 = vst [vmem:[#allocation128_spill] sm:$0xff] %v8777_v55  ;;  %v11732_v38 = vld [vmem:[#allocation31_spill] sm:$0xff] }
 0x1c7   :  { %11725 = vst [vmem:[#allocation33_spill] sm:$0xff] %v8763_v27  ;;  %v748_v32 = vrot.slane %v747_v25, 1  ;;  %v341_v48 = vadd.f32 %v340_v56, %v339_v2  ;;  %v3313_v36 = vrot.slane %v3284_v59, %v11645_v46  ;;  %v1004_v40 = vrot.slane %v1003_v16, 1  ;;  %v8785_v2 = vld [vmem:[%s11183_s0 + $0x8] sm:$0xff] }
 0x1c8   :  { %11726 = vst [vmem:[#allocation125_spill] sm:$0xff] %v8765_v11  ;;  %11727 = vst [vmem:[#allocation126_spill] sm:$0xff] %v8767_v1  ;;  %v347_v50 = vadd.f32 %v346_v31, %v345_v13  ;;  %v353_v35 = vadd.f32 %v352_v34, %v11724_v19  ;;  %v3317_v28 = vrot.slane %v3287_v62, %v11645_v46  ;;  %v310_v3 = vrot.slane %v11732_v38, 2  ;;  %v11733_v30 = vld [vmem:[#allocation27_spill] sm:$0xff]  ;;  %v11738_v62 = vld [vmem:[#allocation32_spill] sm:$0xff] }
 0x1c9   :  { %11728 = vst [vmem:[#allocation127_spill] sm:$0xff] %v8770_v39  ;;  %v1259_v61 = vadd.f32 %v1258_v43, %v1257_v21  ;;  %v1515_v63 = vadd.f32 %v1514_v12, %v1513_v5  ;;  %v8780_v8 = vadd.f32 %v336_v10, %v335_v7  ;;  %11731 = vst [vmem:[#allocation130_spill] sm:$0xff] %v8785_v2  ;;  %v316_v56 = vrot.slane %v11733_v30, 2  ;;  %v8794_v21 = vld [vmem:[%s11183_s0 + $0x10] sm:$0xff]  ;;  %v8805_v12 = vld [vmem:[%s11183_s0 + $0x18] sm:$0xff] }
 0x1ca   :  { %v3321_v59 = vrot.slane %v3290_v20, %v11645_v46  ;;  %v3329_v13 = vsel %vm2249_vm6, %v3313_v36, %v3328_v22  ;;  %11734 = vst [vmem:[#allocation31_spill] sm:$0xff] %v8794_v21  ;;  %v8797_v5 = vadd.f32 %v748_v32, %v747_v25  ;;  %v342_v10 = vrot.slane %v341_v48, 1  ;;  %v3293_v19 = vpop.permute.xlu0 %3292  ;;  %v3490_v34 = vpop.permute.xlu1 %3489  ;;  %11737 = vst [vmem:[#allocation132_spill] sm:$0xff] %v8805_v12 }
 0x1cb   :  { %11730 = vst [vmem:[#allocation129_spill] sm:$0xff] %v8780_v8  ;;  %v3330_v7 = vsel %vm2251_vm7, %v3317_v28, %v3329_v13  ;;  %v8800_v23 = vadd.f32 %v1004_v40, %v1003_v16  ;;  %v348_v37 = vrot.slane %v347_v50, 1  ;;  %v354_v43 = vrot.slane %v353_v35, 1 }
 0x1cc   :  { %11735 = vst [vmem:[#allocation27_spill] sm:$0xff] %v8797_v5  ;;  %v3325_v22 = vrot.slane %v3293_v19, %v11645_v46  ;;  %v1260_v32 = vrot.slane %v1259_v61, 1  ;;  %v1516_v25 = vrot.slane %v1515_v63, 1  ;;  %v11312_v36 = vsub.f32 0.0, %v8794_v21 }
 0x1cd   :  { %11736 = vst [vmem:[#allocation131_spill] sm:$0xff] %v8800_v23  ;;  %v3331_v20 = vsel %vm2253_vm14, %v3321_v59, %v3330_v7  ;;  %v311_v40 = vadd.f32 %v310_v3, %v11732_v38  ;;  %v317_v16 = vadd.f32 %v316_v56, %v11733_v30  ;;  %v322_v28 = vrot.slane %v11738_v62, 2 }
 0x1ce   :  { %v3332_v13 = vsel %vm2255_vm3, %v3325_v22, %v3331_v20  ;;  %v8815_v31 = vadd.f32 %v342_v10, %v341_v48  ;;  %v11311_v18 = vsub.f32 0.0, %v8805_v12  ;;  %v11740_v19 = vsub.f32 0.0, %v8777_v55  ;;  %v3499_v17 = vpop.permute.xlu0 %3498  ;;  %v3493_v59 = vpop.permute.xlu1 %3492 }
 0x1cf   :  { %6318 = vmatmul.mubr.msk.f32.vlgmr.msra.gmra.mxu0 %vm2257_vm13, %v3332_v13  ;;  %6321 = vmatmul.mubr.msk.f32.vlgmr.msra.gmra.mxu1 %vm2257_vm13, %v3332_v13  ;;  %v8822_v38 = vadd.f32 %v348_v37, %v347_v50  ;;  %v8824_v3 = vadd.f32 %v354_v43, %v353_v35  ;;  %v11743_v48 = vsub.f32 0.0, %v8785_v2  ;;  %v3516_v7 = vrot.slane %v3490_v34, %v11645_v46  ;;  %v11748_v43 = vld [vmem:[#allocation37_spill] sm:$0xff] }
 0x1d0   :  { %11739 = vst [vmem:[#allocation32_spill] sm:$0xff] %v8815_v31  ;;  %v4221_v39 = vand.u32 2147483647, %v11740_v19  ;;  %6323 = vmatpush1.msk.msra.mxu0 %vm172_vm2, %v11663_v6  ;;  %6326 = vmatpush1.msk.msra.mxu1 %vm174_vm0, %v11663_v6  ;;  %v8838_v50 = vadd.f32 %v1260_v32, %v1259_v61  ;;  %v8840_v35 = vadd.f32 %v1516_v25, %v1515_v63  ;;  %v4223_v10 = vand.u32 2147483647, %v11312_v36 }
 0x1d1   :  { %11741 = vst [vmem:[#allocation133_spill] sm:$0xff] %v8822_v38  ;;  %11742 = vst [vmem:[#allocation134_spill] sm:$0xff] %v8824_v3  ;;  %v4222_v56 = vand.u32 2147483647, %v11743_v48  ;;  %v3520_v37 = vrot.slane %v3493_v59, %v11645_v46  ;;  %6328 = vmatprep.subr.msk.mxu0 %vm177_vm1, %v11663_v6  ;;  %6331 = vmatprep.subr.msk.mxu1 %vm179_vm10, %v11663_v6  ;;  %v312_v15 = vrot.slane %v311_v40, 1  ;;  %v318_v61 = vrot.slane %v317_v16, 1 }
 0x1d2   :  { %11744 = vst [vmem:[#allocation135_spill] sm:$0xff] %v8838_v50  ;;  %11745 = vst [vmem:[#allocation136_spill] sm:$0xff] %v8840_v35  ;;  %v323_v63 = vadd.f32 %v322_v28, %v11738_v62  ;;  %v3512_v34 = vrot.slane %v8757_v26, %v11645_v46  ;;  %3614 = vmatprep.mubr.f32.mxu0 %v11588_v54  ;;  %3685 = vmatprep.mubr.f32.mxu1 %v11588_v54  ;;  %v4224_v9 = vand.u32 2147483647, %v11311_v18  ;;  %v8861_v32 = vpop.permute.xlu0 %3701  ;;  %v3496_v53 = vpop.permute.xlu1 %3495  ;;  %v11746_v62 = vld [vmem:[#allocation28_spill] sm:$0xff] }
 0x1d3   :  { %v4253_v22 = vsub.f32 0.0, %v4221_v39  ;;  %v4004_v20 = vsub.f32 1.0, %v8824_v3  ;;  %v11747_v26 = vrot.slane %v11746_v62, 2  ;;  %v4254_v13 = vsub.f32 0.0, %v4222_v56 }
 0x1d4   :  { %v3541_v19 = vsel %vm2243_vm8, %v3516_v7, %v3512_v34  ;;  %v3524_v59 = vrot.slane %v3496_v53, %v11645_v46  ;;  %v4255_v48 = vsub.f32 0.0, %v4223_v10  ;;  %v356_v30 = vrot.slane %v11748_v43, 4 }
 0x1d5   :  { %v329_v28 = vadd.f32 %v11747_v26, %v11746_v62  ;;  %v3542_v39 = vsel %vm2245_vm9, %v3520_v37, %v3541_v19  ;;  %v8872_v18 = vadd.f32 %v312_v15, %v311_v40  ;;  %v8874_v36 = vadd.f32 %v318_v61, %v317_v16  ;;  %v11751_v62 = vld [vmem:[#allocation39_spill] sm:$0xff]  ;;  %v11752_v26 = vld [vmem:[#allocation36_spill] sm:$0xff] }
 0x1d6   :  { %v324_v25 = vrot.slane %v323_v63, 1  ;;  %v3543_v35 = vsel %vm2247_vm15, %v3524_v59, %v3542_v39  ;;  %v4256_v50 = vsub.f32 0.0, %v4224_v9  ;;  %v4285_v5 = vmul.f32 1.442695, %v4253_v22  ;;  %v3505_v34 = vpop.permute.xlu0 %3504  ;;  %v3502_v53 = vpop.permute.xlu1 %3501  ;;  %v11754_v40 = vld [vmem:[#allocation43_spill] sm:$0xff] }
 0x1d7   :  { %11749 = vst [vmem:[#allocation28_spill] sm:$0xff] %v8872_v18  ;;  %11750 = vst [vmem:[#allocation37_spill] sm:$0xff] %v8874_v36  ;;  %v368_v56 = vrot.slane %v11751_v62, 4  ;;  %v3528_v7 = vrot.slane %v3499_v17, %v11645_v46  ;;  %v4287_v10 = vmul.f32 1.442695, %v4254_v13  ;;  %v11753_v23 = vrot.slane %v11752_v26, 4 }
 0x1d8   :  { %v376_v15 = vrot.slane %v11754_v40, 2  ;;  %v3532_v16 = vrot.slane %v3502_v53, %v11645_v46  ;;  %v8885_v61 = vmul.f32 %v8599_v47, %v4004_v20  ;;  %v4289_v9 = vmul.f32 1.442695, %v4255_v48 }
 0x1d9   :  { %v363_v37 = vadd.f32 %v11753_v23, %v11752_v26  ;;  %v357_v22 = vadd.f32 %v356_v30, %v11748_v43  ;;  %v3536_v19 = vrot.slane %v3505_v34, %v11645_v46  ;;  %v3544_v17 = vsel %vm2249_vm6, %v3528_v7, %v3543_v35  ;;  %v11756_v26 = vld [vmem:[#allocation40_spill] sm:$0xff] }
 0x1da   :  { %v8890_v59 = vadd.f32 %v324_v25, %v323_v63  ;;  %v330_v13 = vrot.slane %v329_v28, 1  ;;  %v3545_v39 = vsel %vm2251_vm7, %v3532_v16, %v3544_v17  ;;  %6527 = vpow2.f32 %v4285_v5  ;;  %v3508_v1 = vpop.permute.xlu0 %3507  ;;  %v3705_v20 = vpop.permute.xlu1 %3704 }
 0x1db   :  { %v369_v23 = vadd.f32 %v368_v56, %v11751_v62  ;;  %v380_v53 = vrot.slane %v11756_v26, 4  ;;  %6529 = vpow2.f32 %v4287_v10  ;;  %v4291_v48 = vmul.f32 1.442695, %v4256_v50 }
 0x1dc   :  { %11755 = vst [vmem:[#allocation39_spill] sm:$0xff] %v8890_v59  ;;  %v364_v27 = vrot.slane %v363_v37, 2  ;;  %v377_v30 = vadd.f32 %v376_v15, %v11754_v40  ;;  %v3540_v43 = vrot.slane %v3508_v1, %v11645_v46  ;;  %6531 = vpow2.f32 %v4289_v9  ;;  %v11759_v15 = vld [vmem:[#allocation63_spill] sm:$0xff] }
 0x1dd   :  { %v358_v63 = vrot.slane %v357_v22, 2  ;;  %v3546_v25 = vsel %vm2253_vm14, %v3536_v19, %v3545_v39  ;;  %v8899_v5 = vadd.f32 %v330_v13, %v329_v28  ;;  %v11758_v56 = vsub.f32 0.0, %v8777_v55 }
 0x1de   :  { %v3547_v50 = vsel %vm2255_vm3, %v3540_v43, %v3546_v25  ;;  %v370_v10 = vrot.slane %v369_v23, 2  ;;  %v381_v1 = vadd.f32 %v380_v53, %v11756_v26  ;;  %v3714_v40 = vpop.permute.xlu0 %3713  ;;  %v3708_v28 = vpop.permute.xlu1 %3707  ;;  %6533 = vpow2.f32 %v4291_v48  ;;  %v11762_v26 = vld [vmem:[#allocation64_spill] sm:$0xff] }
 0x1df   :  { %11757 = vst [vmem:[#allocation36_spill] sm:$0xff] %v8899_v5  ;;  %v8904_v7 = vmax.f32 %v11758_v56, 0.0  ;;  %6324 = vmatmul.mubr.msk.f32.vlgmr.msra.gmra.mxu0 %vm2257_vm13, %v3547_v50  ;;  %6327 = vmatmul.mubr.msk.f32.vlgmr.msra.gmra.mxu1 %vm2257_vm13, %v3547_v50  ;;  %v4509_v16 = vsub.f32 %v8777_v55, %v11759_v15  ;;  %v365_v9 = vadd.f32 %v364_v27, %v363_v37  ;;  %v378_v19 = vrot.slane %v377_v30, 1  ;;  %v11768_v50 = vld [vmem:[#allocation67_spill] sm:$0xff] }
 0x1e0   :  { %v3731_v17 = vrot.slane %v3705_v20, %v11645_v46  ;;  %6329 = vmatpush1.msk.msra.mxu0 %vm176_vm5, %v11663_v6  ;;  %vm11760_vm2 = vcmp.eq.f32.partialorder %v11593_v4, %v11676_v42  ;;  %v11761_v13 = vsub.f32 0.0, %v8785_v2  ;;  %v4510_v27 = vsub.f32 %v8785_v2, %v11762_v26  ;;  %3829 = vmatprep.mubr.f32.mxu0 %v11588_v54 }
 0x1e1   :  { %6332 = vmatpush1.msk.msra.mxu1 %vm11760_vm2, %v11663_v6  ;;  %v359_v37 = vadd.f32 %v358_v63, %v357_v22  ;;  %v3735_v53 = vrot.slane %v3708_v28, %v11645_v46  ;;  %3900 = vmatprep.mubr.f32.mxu1 %v11588_v54  ;;  %v4000_v29 = vsub.f32 1.0, %v8899_v5  ;;  %v11763_v20 = vsub.f32 0.0, %v8794_v21  ;;  %v11765_v6 = vld [vmem:[#allocation65_spill] sm:$0xff]  ;;  %v11772_v5 = vld [vmem:[#allocation42_spill] sm:$0xff] }
 0x1e2   :  { %v8924_v39 = vmax.f32 %v11761_v13, 0.0  ;;  %v4511_v42 = vsub.f32 %v8794_v21, %v11765_v6  ;;  %v3727_v48 = vrot.slane %v8861_v32, %v11645_v46  ;;  %v11766_v22 = vsub.f32 0.0, %v8805_v12  ;;  %v3720_v56 = vpop.permute.xlu0 %3719  ;;  %v3711_v54 = vpop.permute.xlu1 %3710 }
 0x1e3   :  { %v8934_v4 = vmax.f32 %v11763_v20, 0.0  ;;  %v371_v63 = vadd.f32 %v370_v10, %v369_v23  ;;  %v382_v25 = vrot.slane %v381_v1, 2  ;;  %v4512_v28 = vsub.f32 %v8805_v12, %v11768_v50  ;;  %v11770_v23 = vld [vmem:[#allocation38_spill] sm:$0xff] }
 0x1e4   :  { %v8942_v43 = vmax.f32 %v11766_v22, 0.0  ;;  %v4541_v15 = vmul.f32 %v4509_v16, %v4509_v16  ;;  %v366_v13 = vrot.slane %v365_v9, 1  ;;  %v8946_v26 = vadd.f32 %v378_v19, %v377_v30 }
 0x1e5   :  { %11764 = vst [vmem:[#allocation43_spill] sm:$0xff] %v8934_v4  ;;  %v3756_v20 = vsel %vm2243_vm8, %v3731_v17, %v3727_v48  ;;  %v3739_v6 = vrot.slane %v3711_v54, %v11645_v46  ;;  %v4542_v32 = vmul.f32 %v4510_v27, %v4510_v27  ;;  %v360_v34 = vrot.slane %v359_v37, 1 }
 0x1e6   :  { %11767 = vst [vmem:[#allocation40_spill] sm:$0xff] %v8942_v43  ;;  %11769 = vst [vmem:[#allocation63_spill] sm:$0xff] %v8946_v26  ;;  %v3757_v22 = vsel %vm2245_vm9, %v3735_v53, %v3756_v20  ;;  %v4543_v62 = vmul.f32 %v4511_v42, %v4511_v42  ;;  %v11771_v10 = vrot.slane %v11770_v23, 4  ;;  %v392_v11 = vrot.slane %v11772_v5, 4  ;;  %v3717_v54 = vpop.permute.xlu1 %3716 }
 0x1e7   :  { %v3758_v16 = vsel %vm2247_vm15, %v3739_v6, %v3757_v22  ;;  %v8957_v30 = vmul.f32 %v8599_v47, %v4000_v29  ;;  %v372_v19 = vrot.slane %v371_v63, 1  ;;  %v383_v17 = vadd.f32 %v382_v25, %v381_v1  ;;  %v6528_v48 = vpop.eup %6527 }
 0x1e8   :  { %v387_v35 = vadd.f32 %v11771_v10, %v11770_v23  ;;  %v3743_v27 = vrot.slane %v3714_v40, %v11645_v46  ;;  %v8960_v50 = vmul.f32 %v4512_v28, %v4512_v28  ;;  %v8962_v53 = vadd.f32 %v366_v13, %v365_v9  ;;  %v6530_v20 = vpop.eup %6529  ;;  %v506_v10 = vpop.permute.xlu0 %505 }
 0x1e9   :  { %v4008_v42 = vsub.f32 1.0, %v8946_v26  ;;  %v3747_v23 = vrot.slane %v3717_v54, %v11645_v46  ;;  %v8967_v6 = vmul.f32 %v4541_v15, %v8872_v18  ;;  %v8970_v29 = vmul.f32 %v4542_v32, %v8874_v36  ;;  %v6532_v40 = vpop.eup %6531 }
 0x1ea   :  { %11773 = vst [vmem:[#allocation64_spill] sm:$0xff] %v8960_v50  ;;  %11774 = vst [vmem:[#allocation65_spill] sm:$0xff] %v8962_v53  ;;  %v8972_v1 = vadd.f32 %v360_v34, %v359_v37  ;;  %v3759_v25 = vsel %vm2249_vm6, %v3743_v27, %v3758_v16  ;;  %v8976_v9 = vmul.f32 %v4543_v62, %v8890_v59  ;;  %v388_v28 = vrot.slane %v387_v35, 2  ;;  %v3723_v50 = vpop.permute.xlu1 %3722 }
 0x1eb   :  { %11775 = vst [vmem:[#allocation67_spill] sm:$0xff] %v8967_v6  ;;  %11776 = vst [vmem:[#allocation38_spill] sm:$0xff] %v8970_v29  ;;  %v393_v13 = vadd.f32 %v392_v11, %v11772_v5  ;;  %v3760_v22 = vsel %vm2251_vm7, %v3747_v23, %v3759_v25  ;;  %v4349_v54 = vadd.f32 1.0, %v6528_v48  ;;  %v8980_v26 = vadd.f32 %v372_v19, %v371_v63  ;;  %v6534_v62 = vpop.eup %6533  ;;  %v11781_v25 = vld [vmem:[#allocation44_spill] sm:$0xff]  ;;  %v11785_v48 = vld [vmem:[#allocation45_spill] sm:$0xff] }
 0x1ec   :  { %11777 = vst [vmem:[#allocation42_spill] sm:$0xff] %v8972_v1  ;;  %11778 = vst [vmem:[#allocation137_spill] sm:$0xff] %v8976_v9  ;;  %v384_v15 = vrot.slane %v383_v17, 1  ;;  %v3751_v32 = vrot.slane %v3720_v56, %v11645_v46  ;;  %v4350_v34 = vadd.f32 1.0, %v6530_v20  ;;  %v8985_v16 = vmul.f32 %v8599_v47, %v4008_v42  ;;  %v518_v19 = vpop.permute.xlu0 %517 }
 0x1ed   :  { %11779 = vst [vmem:[#allocation138_spill] sm:$0xff] %v8980_v26  ;;  %v536_v27 = vmul.f32 %v506_v10, %v11712_v14  ;;  %v3755_v11 = vrot.slane %v3723_v50, %v11645_v46  ;;  %v4351_v5 = vadd.f32 1.0, %v6532_v40  ;;  %v389_v23 = vadd.f32 %v388_v28, %v387_v35  ;;  %v11783_v35 = vld [vmem:[#allocation21_spill] sm:$0xff]  ;;  %v9021_v46 = vld [vmem:[%s11183_s0 + $0x50] sm:$0xff] }
 0x1ee   :  { %11780 = vst [vmem:[#allocation139_spill] sm:$0xff] %v8985_v16  ;;  %v3761_v63 = vsel %vm2253_vm14, %v3751_v32, %v3760_v22  ;;  %v394_v56 = vrot.slane %v393_v13, 2  ;;  %v400_v20 = vrot.slane %v11781_v25, 2  ;;  %v537_v37 = vmul.f32 %v506_v10, %v11717_v58  ;;  %v11784_v32 = vld [vmem:[#allocation8_spill] sm:$0xff] }
 0x1ef   :  { %v538_v42 = vmul.f32 %v506_v10, %v11713_v49  ;;  %v3762_v9 = vsel %vm2255_vm3, %v3755_v11, %v3761_v63  ;;  %6535 = vlog2.f32 %v4349_v54  ;;  %v4352_v14 = vadd.f32 1.0, %v6534_v62  ;;  %v9006_v54 = vld [vmem:[%s11183_s0 + $0x40] sm:$0xff]  ;;  %v11788_v11 = vld [vmem:[#allocation100_spill] sm:$0xff] }
 0x1f0   :  { %6330 = vmatmul.mubr.msk.f32.vlgmr.msra.gmra.mxu0 %vm2257_vm13, %v3762_v9  ;;  %6333 = vmatmul.mubr.msk.f32.vlgmr.msra.gmra.mxu1 %vm2257_vm13, %v3762_v9  ;;  %6537 = vlog2.f32 %v4350_v34  ;;  %v8998_v40 = vadd.f32 %v384_v15, %v383_v17  ;;  %v539_v28 = vmul.f32 %v506_v10, %v11783_v35  ;;  %v588_v22 = vrot.slane %v536_v27, 4  ;;  %11786 = vst [vmem:[#allocation21_spill] sm:$0xff] %v9006_v54  ;;  %v9011_v9 = vld [vmem:[%s11183_s0 + $0x48] sm:$0xff]  ;;  %v11789_v35 = vld [vmem:[#allocation41_spill] sm:$0xff] }
 0x1f1   :  { %v548_v58 = vmul.f32 %v518_v19, %v11784_v32  ;;  %v549_v49 = vmul.f32 %v518_v19, %v11785_v48  ;;  %11787 = vst [vmem:[#allocation140_spill] sm:$0xff] %v9011_v9  ;;  %6539 = vlog2.f32 %v4351_v5  ;;  %v390_v17 = vrot.slane %v389_v23, 1  ;;  %11790 = vst [vmem:[#allocation41_spill] sm:$0xff] %v9021_v46 }
 0x1f2   :  { %11782 = vst [vmem:[#allocation44_spill] sm:$0xff] %v8998_v40  ;;  %v395_v15 = vadd.f32 %v394_v56, %v393_v13  ;;  %v9014_v10 = vadd.f32 %v400_v20, %v11781_v25  ;;  %v594_v34 = vrot.slane %v537_v37, 4  ;;  %v600_v62 = vrot.slane %v538_v42, 4 }
 0x1f3   :  { %v550_v63 = vmul.f32 %v518_v19, %v11788_v11  ;;  %v551_v50 = vmul.f32 %v518_v19, %v11789_v35  ;;  %6541 = vlog2.f32 %v4352_v14  ;;  %v589_v56 = vadd.f32 %v588_v22, %v536_v27  ;;  %v9029_v19 = vld [vmem:[%s11183_s0 + $0x58] sm:$0xff]  ;;  %v526_v27 = vpop.permute.xlu0 %525 }
 0x1f4   :  { %v606_v25 = vrot.slane %v539_v28, 4  ;;  %v660_v20 = vrot.slane %v548_v58, 4  ;;  %v666_v6 = vrot.slane %v549_v49, 4  ;;  %v9031_v35 = vadd.f32 %v390_v17, %v389_v23 }
 0x1f5   :  { %v396_v11 = vrot.slane %v395_v15, 1  ;;  %v402_v14 = vrot.slane %v9014_v10, 1  ;;  %v11329_v29 = vsub.f32 0.0, %v9021_v46  ;;  %v595_v48 = vadd.f32 %v594_v34, %v537_v37 }
 0x1f6   :  { %11791 = vst [vmem:[#allocation141_spill] sm:$0xff] %v9031_v35  ;;  %v601_v5 = vadd.f32 %v600_v62, %v538_v42  ;;  %v672_v32 = vrot.slane %v550_v63, 4  ;;  %v678_v13 = vrot.slane %v551_v50, 4  ;;  %v11792_v0 = vsub.f32 0.0, %v9006_v54 }
 0x1f7   :  { %v11794_v3 = vsub.f32 0.0, %v9011_v9  ;;  %v9046_v17 = vmax.f32 %v11329_v29, 0.0  ;;  %v590_v40 = vrot.slane %v589_v56, 2  ;;  %v607_v37 = vadd.f32 %v606_v25, %v539_v28 }
 0x1f8   :  { %v9038_v52 = vmax.f32 %v11792_v0, 0.0  ;;  %v661_v42 = vadd.f32 %v660_v20, %v548_v58  ;;  %v667_v34 = vadd.f32 %v666_v6, %v549_v49  ;;  %v556_v62 = vmul.f32 %v526_v27, %v8421_v45  ;;  %v11797_v0 = vld [vmem:[#allocation48_spill] sm:$0xff] }
 0x1f9   :  { %v9042_v23 = vmax.f32 %v11794_v3, 0.0  ;;  %11796 = vst [vmem:[#allocation144_spill] sm:$0xff] %v9046_v17  ;;  %v557_v22 = vmul.f32 %v526_v27, %v8318_v41  ;;  %v558_v12 = vmul.f32 %v526_v27, %v8447_v57  ;;  %v596_v16 = vrot.slane %v595_v48, 2 }
 0x1fa   :  { %11793 = vst [vmem:[#allocation142_spill] sm:$0xff] %v9038_v52  ;;  %v559_v52 = vmul.f32 %v526_v27, %v11797_v0  ;;  %v602_v21 = vrot.slane %v601_v5, 2  ;;  %v673_v3 = vadd.f32 %v672_v32, %v550_v63  ;;  %v708_v29 = vrot.slane %v556_v62, 4 }
 0x1fb   :  { %11795 = vst [vmem:[#allocation143_spill] sm:$0xff] %v9042_v23  ;;  %v679_v23 = vadd.f32 %v678_v13, %v551_v50  ;;  %v714_v17 = vrot.slane %v557_v22, 4  ;;  %v720_v55 = vrot.slane %v558_v12, 4  ;;  %v591_v6 = vadd.f32 %v590_v40, %v589_v56 }
 0x1fc   :  { %v9052_v2 = vpop.eup %6535  ;;  %v726_v28 = vrot.slane %v559_v52, 4  ;;  %v608_v49 = vrot.slane %v607_v37, 2  ;;  %v662_v25 = vrot.slane %v661_v42, 2  ;;  %v668_v20 = vrot.slane %v667_v34, 2 }
 0x1fd   :  { %v9054_v58 = vpop.eup %6537  ;;  %v709_v41 = vadd.f32 %v708_v29, %v556_v62  ;;  %v715_v57 = vadd.f32 %v714_v17, %v557_v22  ;;  %v721_v45 = vadd.f32 %v720_v55, %v558_v12  ;;  %v597_v32 = vadd.f32 %v596_v16, %v595_v48 }
 0x1fe   :  { %v727_v27 = vadd.f32 %v726_v28, %v559_v52  ;;  %v9056_v0 = vpop.eup %6539  ;;  %v674_v50 = vrot.slane %v673_v3, 2  ;;  %v680_v63 = vrot.slane %v679_v23, 2  ;;  %v9058_v13 = vadd.f32 %v396_v11, %v395_v15 }
 0x1ff   :  { %v710_v26 = vrot.slane %v709_v41, 2  ;;  %v716_v53 = vrot.slane %v715_v57, 2  ;;  %v722_v1 = vrot.slane %v721_v45, 2  ;;  %v603_v40 = vadd.f32 %v602_v21, %v601_v5 }
 0x200   :  { %11798 = vst [vmem:[#allocation48_spill] sm:$0xff] %v9058_v13  ;;  %v728_v43 = vrot.slane %v727_v27, 2  ;;  %v9060_v4 = vpop.eup %6541  ;;  %v609_v56 = vadd.f32 %v608_v49, %v607_v37  ;;  %v9063_v29 = vadd.f32 %v402_v14, %v9014_v10  ;;  %v592_v55 = vrot.slane %v591_v6, 1  ;;  %v4071_v37 = vpop.permute.xlu1 %4070 }
 0x201   :  { %v663_v12 = vadd.f32 %v662_v25, %v661_v42  ;;  %v669_v16 = vadd.f32 %v668_v20, %v667_v34  ;;  %v11800_v48 = vsub.f32 0.0, %v9029_v19  ;;  %v598_v11 = vrot.slane %v597_v32, 1 }
 0x202   :  { %11799 = vst [vmem:[#allocation145_spill] sm:$0xff] %v9063_v29  ;;  %v675_v22 = vadd.f32 %v674_v50, %v673_v3  ;;  %v681_v17 = vadd.f32 %v680_v63, %v679_v23  ;;  %v11802_v62 = vsub.f32 0.0, %v9006_v54  ;;  %v711_v21 = vadd.f32 %v710_v26, %v709_v41  ;;  %v11806_v50 = vld [vmem:[#allocation60_spill] sm:$0xff]  ;;  %v11809_v54 = vld [vmem:[#allocation58_spill] sm:$0xff] }
 0x203   :  { %v9068_v15 = vmax.f32 %v11800_v48, 0.0  ;;  %v717_v5 = vadd.f32 %v716_v53, %v715_v57  ;;  %v723_v10 = vadd.f32 %v722_v1, %v721_v45  ;;  %v729_v14 = vadd.f32 %v728_v43, %v727_v27  ;;  %v11804_v57 = vld [vmem:[#allocation2_spill] sm:$0xff]  ;;  %v4063_v27 = vpop.permute.xlu0 %4062 }
 0x204   :  { %v9072_v28 = vand.u32 2147483647, %v11802_v62  ;;  %v604_v49 = vrot.slane %v603_v40, 1  ;;  %v610_v52 = vrot.slane %v609_v56, 1  ;;  %v4012_v42 = vsub.f32 1.0, %v9063_v29 }
 0x205   :  { %11801 = vst [vmem:[#allocation146_spill] sm:$0xff] %v9068_v15  ;;  %v11803_v34 = vsub.f32 0.0, %v9011_v9  ;;  %v593_v20 = vadd.f32 %v592_v55, %v591_v6  ;;  %v664_v3 = vrot.slane %v663_v12, 1  ;;  %v670_v23 = vrot.slane %v669_v16, 1 }
 0x206   :  { %v599_v63 = vadd.f32 %v598_v11, %v597_v32  ;;  %v676_v48 = vrot.slane %v675_v22, 1  ;;  %v682_v41 = vrot.slane %v681_v17, 1  ;;  %v4076_v45 = vrot.slane %v4071_v37, %v11804_v57 }
 0x207   :  { %v9077_v25 = vand.u32 2147483647, %v11803_v34  ;;  %v712_v43 = vrot.slane %v711_v21, 1  ;;  %v718_v26 = vrot.slane %v717_v5, 1  ;;  %v724_v53 = vrot.slane %v723_v10, 1 }
 0x208   :  { %v730_v1 = vrot.slane %v729_v14, 1  ;;  %v605_v62 = vadd.f32 %v604_v49, %v603_v40  ;;  %v611_v29 = vadd.f32 %v610_v52, %v609_v56  ;;  %v9082_v34 = vmul.f32 %v8599_v47, %v4012_v42 }
 0x209   :  { %v11805_v6 = vsub.f32 0.0, %v9021_v46  ;;  %vm11807_vm13 = vcmask 1040384   ;;  %v665_v11 = vadd.f32 %v664_v3, %v663_v12  ;;  %v671_v37 = vadd.f32 %v670_v23, %v669_v16  ;;  %v11814_v16 = vld [vmem:[#allocation59_spill] sm:$0xff] }
 0x20a   :  { %v9090_v32 = vsel %vm11807_vm13, %v593_v20, %v11806_v50  ;;  %v11808_v15 = vsub.f32 0.0, %v9029_v19  ;;  %vm11810_vm0 = vmmov %vm11807_vm13  ;;  %v677_v56 = vadd.f32 %v676_v48, %v675_v22  ;;  %v683_v52 = vadd.f32 %v682_v41, %v681_v17  ;;  %v11812_v50 = vld [vmem:[#allocation62_spill] sm:$0xff]  ;;  %v4079_v48 = vpop.permute.xlu0 %4078 }
 0x20b   :  { %v9086_v55 = vand.u32 2147483647, %v11805_v6  ;;  %v9098_v40 = vsel %vm11810_vm0, %v599_v63, %v11809_v54  ;;  %v11811_v49 = vsub.f32 1.0, %v8780_v8  ;;  %v713_v6 = vadd.f32 %v712_v43, %v711_v21  ;;  %vm11813_vm1 = vmmov %vm11810_vm0  ;;  %v11817_v17 = vld [vmem:[#allocation54_spill] sm:$0xff]  ;;  %v11819_v21 = vld [vmem:[#allocation101_spill] sm:$0xff] }
 0x20c   :  { %v9094_v9 = vand.u32 2147483647, %v11808_v15  ;;  %v719_v47 = vadd.f32 %v718_v26, %v717_v5  ;;  %v725_v46 = vadd.f32 %v724_v53, %v723_v10  ;;  %v731_v20 = vadd.f32 %v730_v1, %v729_v14  ;;  %vm11815_vm10 = vmmov %vm11810_vm0  ;;  %v11822_v41 = vld [vmem:[#allocation34_spill] sm:$0xff]  ;;  %v11824_v26 = vld [vmem:[#allocation83_spill] sm:$0xff] }
 0x20d   :  { %v4129_v42 = vmul.f32 %v4076_v45, %v11811_v49  ;;  %v9104_v12 = vsel %vm11813_vm1, %v605_v62, %v11812_v50  ;;  %v9108_v15 = vsel %vm11815_vm10, %v611_v29, %v11814_v16  ;;  %v11816_v54 = vsub.f32 1.0, %v8815_v31  ;;  %vm11818_vm5 = vmmov %vm11810_vm0  ;;  %v4928_v29 = vpop.permute.xlu1 %4927 }
 0x20e   :  { %v4068_v22 = vrot.slane %v4063_v27, %v11804_v57  ;;  %v9115_v23 = vsel %vm11818_vm5, %v665_v11, %v11817_v17  ;;  %vm11820_vm11 = vmmov %vm11810_vm0  ;;  %v11821_v10 = vsub.f32 1.0, %v8822_v38  ;;  %v4132_v63 = vmul.f32 %v4076_v45, %v8885_v61  ;;  %v11827_v11 = vld [vmem:[#allocation116_spill] sm:$0xff] }
 0x20f   :  { %v4130_v3 = vmul.f32 %v4076_v45, %v11816_v54  ;;  %v9119_v5 = vsel %vm11820_vm11, %v671_v37, %v11819_v21  ;;  %vm11823_vm4 = vmmov %vm11810_vm0  ;;  %v9132_v1 = vmul.f32 100.0, %v4129_v42  ;;  %v4382_v27 = vmul.f32 0.6931472, %v9052_v2  ;;  %v11829_v37 = vld [vmem:[#allocation9_spill] sm:$0xff] }
 0x210   :  { %v4131_v14 = vmul.f32 %v4076_v45, %v11821_v10  ;;  %v9126_v43 = vsel %vm11823_vm4, %v677_v56, %v11822_v41  ;;  %vm11825_vm12 = vmmov %vm11810_vm0  ;;  %v1551_v45 = vsel %vm11810_vm0, %v725_v46, %v8606_v44  ;;  %v11832_v50 = vsub.f32 1.0, %v8874_v36  ;;  %v11835_v54 = vld [vmem:[#allocation117_spill] sm:$0xff] }
 0x211   :  { %v9130_v53 = vsel %vm11825_vm12, %v683_v52, %v11824_v26  ;;  %vm11826_vm2 = vmmov %vm11810_vm0  ;;  %v9143_v49 = vmul.f32 100.0, %v4130_v3  ;;  %v11831_v52 = vsub.f32 1.0, %v8872_v18  ;;  %v4384_v16 = vmul.f32 0.6931472, %v9054_v58 }
 0x212   :  { %v1549_v62 = vsel %vm11826_vm2, %v713_v6, %v8552_v51  ;;  %vm11828_vm13 = vmmov %vm11810_vm0  ;;  %v4126_v2 = vmul.f32 %v4068_v22, %v11832_v50  ;;  %v9150_v51 = vmul.f32 100.0, %v4131_v14  ;;  %v9152_v6 = vmul.f32 100.0, %v4132_v63  ;;  %v4087_v63 = vpop.permute.xlu0 %4086 }
 0x213   :  { %v1550_v61 = vsel %vm11828_vm13, %v719_v47, %v11827_v11  ;;  %vm11830_vm1 = vmmov %vm11810_vm0  ;;  %v4125_v42 = vmul.f32 %v4068_v22, %v11831_v52  ;;  %v11833_v47 = vsub.f32 1.0, %v8890_v59  ;;  %v4128_v44 = vmul.f32 %v4068_v22, %v8957_v30  ;;  %v11853_v52 = vld [vmem:[#allocation40_spill] sm:$0xff]  ;;  %v11866_v59 = vld [vmem:[#allocation57_spill] sm:$0xff] }
 0x214   :  { %v1552_v56 = vsel %vm11830_vm1, %v731_v20, %v11829_v37  ;;  %vm11834_vm10 = vcmask 1041408   ;;  %v4386_v21 = vmul.f32 0.6931472, %v9056_v0  ;;  %v4388_v10 = vmul.f32 0.6931472, %v9060_v4  ;;  %v11842_v0 = vld [vmem:[#allocation18_spill] sm:$0xff] }
 0x215   :  { %v4127_v46 = vmul.f32 %v4068_v22, %v11833_v47  ;;  %v1582_v20 = vsel %vm11834_vm10, %v1549_v62, %v8564_v33  ;;  %vm11836_vm5 = vmmov %vm11834_vm10  ;;  %v4445_v14 = vadd.f32 %v4382_v27, %v8904_v7  ;;  %v4933_v30 = vrot.slane %v4928_v29, %v11804_v57  ;;  %v5033_v22 = vpop.permute.xlu1 %5032  ;;  %v11839_v62 = vld [vmem:[#allocation30_spill] sm:$0xff]  ;;  %v11845_v27 = vld [vmem:[#allocation52_spill] sm:$0xff] }
 0x216   :  { %v1583_v3 = vsel %vm11836_vm5, %v1550_v61, %v11835_v54  ;;  %vm11837_vm11 = vmmov %vm11836_vm5  ;;  %v9169_v33 = vmul.f32 100.0, %v4125_v42  ;;  %v9171_v41 = vmul.f32 100.0, %v4126_v2  ;;  %v4446_v26 = vadd.f32 %v4384_v16, %v8924_v39  ;;  %v11848_v61 = vld [vmem:[#allocation35_spill] sm:$0xff]  ;;  %v11857_v47 = vld [vmem:[#allocation42_spill] sm:$0xff] }
 0x217   :  { %v1584_v17 = vsel %vm11837_vm11, %v1551_v45, %v8614_v24  ;;  %vm11838_vm4 = vmmov %vm11836_vm5  ;;  %v4084_v24 = vrot.slane %v4079_v48, %v11804_v57  ;;  %vm11840_vm12 = vcmask 1042432   ;;  %v9183_v7 = vmul.f32 100.0, %v4127_v46  ;;  %v11851_v37 = vld [vmem:[#allocation43_spill] sm:$0xff] }
 0x218   :  { %v1585_v58 = vsel %vm11838_vm4, %v1552_v56, %v8538_v60  ;;  %v9177_v60 = vsel %vm11840_vm12, %v1582_v20, %v11839_v62  ;;  %vm11843_vm2 = vmmov %vm11840_vm12  ;;  %v9185_v29 = vmul.f32 100.0, %v4128_v44  ;;  %v5038_v48 = vrot.slane %v5033_v22, %v11804_v57  ;;  %v11859_v20 = vld [vmem:[#allocation65_spill] sm:$0xff] }
 0x219   :  { %11841 = vst [vmem:[#allocation2_spill] sm:$0xff] %v9177_v60  ;;  %v9181_v4 = vsel %vm11843_vm2, %v1583_v3, %v11842_v0  ;;  %vm11846_vm13 = vmmov %vm11843_vm2  ;;  %v4092_v45 = vrot.slane %v4087_v63, %v11804_v57  ;;  %v9198_v56 = vadd.f32 %v4386_v21, %v11851_v37  ;;  %v9201_v42 = vadd.f32 %v4388_v10, %v11853_v52 }
 0x21a   :  { %11844 = vst [vmem:[#allocation60_spill] sm:$0xff] %v9181_v4  ;;  %v9189_v11 = vsel %vm11846_vm13, %v1584_v17, %v11845_v27  ;;  %vm11849_vm0 = vmmov %vm11843_vm2  ;;  %v9204_v50 = vmul.f32 %v4445_v14, %v8872_v18  ;;  %v4990_v2 = vmul.f32 %v4933_v30, %v4445_v14  ;;  %v9207_v16 = vmul.f32 %v4446_v26, %v8874_v36  ;;  %v11861_v17 = vld [vmem:[#allocation138_spill] sm:$0xff]  ;;  %v11863_v27 = vld [vmem:[#allocation128_spill] sm:$0xff] }
 0x21b   :  { %11847 = vst [vmem:[#allocation58_spill] sm:$0xff] %v9189_v11  ;;  %v9193_v39 = vsel %vm11849_vm0, %v1585_v58, %v11848_v61  ;;  %11852 = vst [vmem:[#allocation59_spill] sm:$0xff] %v9198_v56  ;;  %v11858_v46 = vsub.f32 1.0, %v11857_v47  ;;  %v11860_v54 = vsub.f32 1.0, %v11859_v20  ;;  %v11862_v58 = vsub.f32 1.0, %v11861_v17  ;;  %v11865_v36 = vld [vmem:[#allocation31_spill] sm:$0xff] }
 0x21c   :  { %11850 = vst [vmem:[#allocation62_spill] sm:$0xff] %v9193_v39  ;;  %11854 = vst [vmem:[#allocation54_spill] sm:$0xff] %v9201_v42  ;;  %v4991_v22 = vmul.f32 %v4933_v30, %v4446_v26  ;;  %v4992_v10 = vmul.f32 %v4933_v30, %v9198_v56  ;;  %v4257_v63 = vsub.f32 0.0, %v9072_v28  ;;  %v4258_v62 = vsub.f32 0.0, %v9077_v25  ;;  %v11868_v25 = vld [vmem:[#allocation53_spill] sm:$0xff]  ;;  %v11912_v11 = vld [vmem:[#allocation134_spill] sm:$0xff] }
 0x21d   :  { %11855 = vst [vmem:[#allocation101_spill] sm:$0xff] %v9204_v50  ;;  %11856 = vst [vmem:[#allocation34_spill] sm:$0xff] %v9207_v16  ;;  %v4133_v44 = vmul.f32 %v4084_v24, %v11858_v46  ;;  %v4134_v3 = vmul.f32 %v4084_v24, %v11860_v54  ;;  %v4135_v21 = vmul.f32 %v4084_v24, %v11862_v58  ;;  %v4259_v37 = vsub.f32 0.0, %v9086_v55  ;;  %v11864_v46 = vld [vmem:[#allocation130_spill] sm:$0xff] }
 0x21e   :  { %v4993_v0 = vmul.f32 %v4933_v30, %v9201_v42  ;;  %v4477_v61 = vadd.f32 %v4445_v14, %v11863_v27  ;;  %v4260_v52 = vsub.f32 0.0, %v9094_v9  ;;  %v4478_v54 = vadd.f32 %v4446_v26, %v11864_v46  ;;  %vm11867_vm1 = vmmov %vm11838_vm4  ;;  %v11870_v9 = vld [vmem:[#allocation139_spill] sm:$0xff]  ;;  %v11871_v26 = vld [vmem:[#allocation132_spill] sm:$0xff] }
 0x21f   :  { %v4479_v58 = vadd.f32 %v9198_v56, %v11865_v36  ;;  %v4293_v17 = vmul.f32 1.442695, %v4257_v63  ;;  %v4295_v18 = vmul.f32 1.442695, %v4258_v62  ;;  %v1562_v28 = vsel %vm11867_vm1, %v9090_v32, %v11866_v59  ;;  %vm11869_vm10 = vmmov %vm11867_vm1  ;;  %v11873_v62 = vld [vmem:[#allocation44_spill] sm:$0xff]  ;;  %v11875_v32 = vld [vmem:[#allocation61_spill] sm:$0xff] }
 0x220   :  { %v1563_v30 = vsel %vm11869_vm10, %v9098_v40, %v11868_v25  ;;  %v4297_v14 = vmul.f32 1.442695, %v4259_v37  ;;  %v4299_v27 = vmul.f32 1.442695, %v4260_v52  ;;  %v4136_v39 = vmul.f32 %v4084_v24, %v11870_v9  ;;  %vm11876_vm5 = vmmov %vm11867_vm1  ;;  %v11877_v37 = vld [vmem:[#allocation74_spill] sm:$0xff]  ;;  %v11879_v25 = vld [vmem:[#allocation72_spill] sm:$0xff] }
 0x221   :  { %v4480_v46 = vadd.f32 %v9201_v42, %v11871_v26  ;;  %6543 = vpow2.f32 %v4293_v17  ;;  %v9235_v36 = vmul.f32 100.0, %v4133_v44  ;;  %v5102_v63 = vmul.f32 %v5038_v48, %v4477_v61  ;;  %vm11878_vm11 = vmmov %vm11849_vm0  ;;  %v11881_v44 = vld [vmem:[#allocation55_spill] sm:$0xff] }
 0x222   :  { %v11874_v56 = vsub.f32 1.0, %v11873_v62  ;;  %6545 = vpow2.f32 %v4295_v18  ;;  %v1564_v40 = vsel %vm11876_vm5, %v9104_v12, %v11875_v32  ;;  %v1595_v52 = vsel %vm11878_vm11, %v1562_v28, %v11877_v37  ;;  %vm11880_vm4 = vmmov %vm11849_vm0  ;;  %v11933_v62 = vld [vmem:[#allocation143_spill] sm:$0xff] }
 0x223   :  { %11872 = vst [vmem:[#allocation83_spill] sm:$0xff] %v9235_v36  ;;  %v1596_v24 = vsel %vm11880_vm4, %v1563_v30, %v11879_v25  ;;  %6547 = vpow2.f32 %v4297_v14  ;;  %v5103_v9 = vmul.f32 %v5038_v48, %v4478_v54  ;;  %v5104_v17 = vmul.f32 %v5038_v48, %v4479_v58  ;;  %vm11882_vm12 = vmmov %vm11867_vm1  ;;  %v11886_v30 = vld [vmem:[#allocation75_spill] sm:$0xff]  ;;  %v11888_v58 = vld [vmem:[#allocation21_spill] sm:$0xff] }
 0x224   :  { %v4137_v59 = vmul.f32 %v4092_v45, %v11874_v56  ;;  %v1565_v61 = vsel %vm11882_vm12, %v9108_v15, %v11881_v44  ;;  %6549 = vpow2.f32 %v4299_v27  ;;  %v9250_v56 = vmul.f32 100.0, %v4134_v3  ;;  %vm11887_vm2 = vmmov %vm11849_vm0  ;;  %v11889_v25 = vld [vmem:[#allocation140_spill] sm:$0xff]  ;;  %v11891_v44 = vld [vmem:[#allocation73_spill] sm:$0xff] }
 0x225   :  { %v5105_v26 = vmul.f32 %v5038_v48, %v4480_v46  ;;  %v11884_v12 = vsub.f32 1.0, %v9031_v35  ;;  %v11885_v28 = vsub.f32 1.0, %v9058_v13  ;;  %v1597_v54 = vsel %vm11887_vm2, %v1564_v40, %v11886_v30  ;;  %vm11892_vm13 = vmmov %vm11849_vm0  ;;  %v9272_v40 = vld [vmem:[%s11183_s0 + $0x80] sm:$0xff]  ;;  %v11907_v13 = vld [vmem:[#allocation115_spill] sm:$0xff] }
 0x226   :  { %11883 = vst [vmem:[#allocation116_spill] sm:$0xff] %v9250_v56  ;;  %v4513_v14 = vsub.f32 %v11888_v58, %v1595_v52  ;;  %v4514_v55 = vsub.f32 %v11889_v25, %v1596_v24  ;;  %v9260_v15 = vmul.f32 100.0, %v4135_v21  ;;  %v5134_v27 = vadd.f32 %v5102_v63, %v4990_v2  ;;  %v9277_v2 = vld [vmem:[%s11183_s0 + $0x88] sm:$0xff]  ;;  %v9286_v63 = vld [vmem:[%s11183_s0 + $0x90] sm:$0xff]  ;;  %vm11968_vm10 = vmmov %vm11867_vm1 }
 0x227   :  { %v4138_v32 = vmul.f32 %v4092_v45, %v11884_v12  ;;  %v4139_v37 = vmul.f32 %v4092_v45, %v11885_v28  ;;  %v4140_v3 = vmul.f32 %v4092_v45, %v9082_v34  ;;  %v1598_v48 = vsel %vm11892_vm13, %v1565_v61, %v11891_v44  ;;  %vm11970_vm5 = vmmov %vm11867_vm1 }
 0x228   :  { %11890 = vst [vmem:[#allocation9_spill] sm:$0xff] %v9260_v15  ;;  %v9265_v46 = vmul.f32 100.0, %v4136_v39  ;;  %v5135_v12 = vadd.f32 %v5103_v9, %v4991_v22  ;;  %v5136_v18 = vadd.f32 %v5104_v17, %v4992_v10  ;;  %v9267_v28 = vmul.f32 100.0, %v4137_v59  ;;  %v11896_v39 = vld [vmem:[#allocation41_spill] sm:$0xff]  ;;  %v11897_v22 = vld [vmem:[#allocation112_spill] sm:$0xff]  ;;  %vm11972_vm11 = vmmov %vm11867_vm1 }
 0x229   :  { %v5137_v34 = vadd.f32 %v5105_v26, %v4993_v0  ;;  %v9279_v45 = vmul.f32 100.0, %v4138_v32  ;;  %vm4605_vm0 = vcmask 1043456   ;;  %v4515_v21 = vsub.f32 %v11896_v39, %v1597_v54  ;;  %v9291_v59 = vld [vmem:[%s11183_s0 + $0x98] sm:$0xff]  ;;  %vm11975_vm4 = vmmov %vm11887_vm2 }
 0x22a   :  { %11893 = vst [vmem:[#allocation117_spill] sm:$0xff] %v9265_v46  ;;  %11894 = vst [vmem:[#allocation30_spill] sm:$0xff] %v9267_v28  ;;  %v452_v10 = vrot.slane %v11897_v22, 4  ;;  %v9293_v52 = vmul.f32 100.0, %v4139_v37  ;;  %v4516_v0 = vsub.f32 %v9029_v19, %v1598_v48  ;;  %v4545_v24 = vmul.f32 %v4513_v14, %v4513_v14 }
 0x22b   :  { %11895 = vst [vmem:[#allocation18_spill] sm:$0xff] %v9279_v45  ;;  %v4546_v9 = vmul.f32 %v4514_v55, %v4514_v55  ;;  %v9297_v17 = vmul.f32 %v5134_v27, %v9169_v33  ;;  %v9299_v61 = vmul.f32 100.0, %v4140_v3  ;;  %v9304_v30 = vmul.f32 %v5135_v12, %v9171_v41  ;;  %v11904_v3 = vld [vmem:[#allocation114_spill] sm:$0xff]  ;;  %vm11991_vm12 = vmmov %vm11887_vm2 }
 0x22c   :  { %11898 = vst [vmem:[#allocation52_spill] sm:$0xff] %v9293_v52  ;;  %v9307_v54 = vmul.f32 %v5136_v18, %v9183_v7  ;;  %v9312_v55 = vmul.f32 %v5137_v34, %v9185_v29  ;;  %v4547_v33 = vmul.f32 %v4515_v21, %v4515_v21  ;;  %v453_v27 = vadd.f32 %v452_v10, %v11897_v22  ;;  %v11905_v7 = vld [vmem:[#allocation17_spill] sm:$0xff]  ;;  %v11930_v45 = vld [vmem:[#allocation142_spill] sm:$0xff]  ;;  %vm11997_vm13 = vmmov %vm11887_vm2 }
 0x22d   :  { %11899 = vst [vmem:[#allocation35_spill] sm:$0xff] %v9297_v17  ;;  %11900 = vst [vmem:[#allocation43_spill] sm:$0xff] %v9299_v61  ;;  %v464_v44 = vrot.slane %v11904_v3, 4  ;;  %v4548_v32 = vmul.f32 %v4516_v0, %v4516_v0  ;;  %v4577_v41 = vmul.f32 %v4545_v24, %v8780_v8  ;;  %v4578_v12 = vmul.f32 %v4546_v9, %v8815_v31 }
 0x22e   :  { %11901 = vst [vmem:[#allocation40_spill] sm:$0xff] %v9304_v30  ;;  %11902 = vst [vmem:[#allocation128_spill] sm:$0xff] %v9307_v54  ;;  %v6544_v48 = vpop.eup %6543  ;;  %v11906_v18 = vrot.slane %v11905_v7, 4  ;;  %v472_v29 = vrot.slane %v11907_v13, 2  ;;  %v11908_v34 = vsub.f32 0.0, %v9272_v40  ;;  %v11909_v22 = vsub.f32 0.0, %v9277_v2 }
 0x22f   :  { %11903 = vst [vmem:[#allocation130_spill] sm:$0xff] %v9312_v55  ;;  %v6546_v26 = vpop.eup %6545  ;;  %v4353_v14 = vadd.f32 1.0, %v6544_v48  ;;  %v11910_v9 = vsub.f32 0.0, %v9286_v63  ;;  %v11911_v8 = vsub.f32 0.0, %v9291_v59  ;;  %v4579_v50 = vmul.f32 %v4547_v33, %v8822_v38 }
 0x230   :  { %v459_v37 = vadd.f32 %v11906_v18, %v11905_v7  ;;  %v4229_v21 = vand.u32 2147483647, %v11908_v34  ;;  %v4230_v10 = vand.u32 2147483647, %v11909_v22  ;;  %v6548_v16 = vpop.eup %6547  ;;  %v4354_v24 = vadd.f32 1.0, %v6546_v26 }
 0x231   :  { %v4231_v31 = vand.u32 2147483647, %v11910_v9  ;;  %v4232_v7 = vand.u32 2147483647, %v11911_v8  ;;  %v6550_v18 = vpop.eup %6549  ;;  %v4355_v48 = vadd.f32 1.0, %v6548_v16  ;;  %v454_v55 = vrot.slane %v453_v27, 2 }
 0x232   :  { %v465_v34 = vadd.f32 %v464_v44, %v11904_v3  ;;  %v4356_v42 = vadd.f32 1.0, %v6550_v18  ;;  %v4580_v22 = vmul.f32 %v4548_v32, %v11912_v11  ;;  %v4634_v4 = vsel %vm4605_vm0, %v4577_v41, 0.0  ;;  %v4111_v44 = vpop.permute.xlu0 %4110 }
 0x233   :  { %v4641_v26 = vsel %vm4605_vm0, %v4578_v12, 0.0  ;;  %6551 = vlog2.f32 %v4353_v14  ;;  %v460_v0 = vrot.slane %v459_v37, 2  ;;  %v473_v9 = vadd.f32 %v472_v29, %v11907_v13  ;;  %v11913_v14 = vld [vmem:[#allocation123_spill] sm:$0xff] }
 0x234   :  { %v4261_v17 = vsub.f32 0.0, %v4229_v21  ;;  %6553 = vlog2.f32 %v4354_v24  ;;  %v4262_v8 = vsub.f32 0.0, %v4230_v10  ;;  %v4263_v16 = vsub.f32 0.0, %v4231_v31 }
 0x235   :  { %v4264_v60 = vsub.f32 0.0, %v4232_v7  ;;  %6555 = vlog2.f32 %v4355_v48  ;;  %v455_v33 = vadd.f32 %v454_v55, %v453_v27  ;;  %v466_v38 = vrot.slane %v465_v34, 2  ;;  %v11914_v55 = vld [vmem:[#allocation118_spill] sm:$0xff]  ;;  %v11915_v27 = vld [vmem:[#allocation13_spill] sm:$0xff] }
 0x236   :  { %v4301_v3 = vmul.f32 1.442695, %v4261_v17  ;;  %6557 = vlog2.f32 %v4356_v42  ;;  %v4303_v32 = vmul.f32 1.442695, %v4262_v8  ;;  %v4305_v18 = vmul.f32 1.442695, %v4263_v16  ;;  %v4119_v16 = vpop.permute.xlu0 %4118 }
 0x237   :  { %v4307_v41 = vmul.f32 1.442695, %v4264_v60  ;;  %v4635_v11 = vrot.slane %v4634_v4, 4  ;;  %v461_v12 = vadd.f32 %v460_v0, %v459_v37  ;;  %v488_v61 = vrot.slane %v11913_v14, 4 }
 0x238   :  { %6559 = vpow2.f32 %v4301_v3  ;;  %v4642_v13 = vrot.slane %v4641_v26, 4  ;;  %v4648_v29 = vsel %vm4605_vm0, %v4579_v50, 0.0  ;;  %v474_v21 = vrot.slane %v473_v9, 1  ;;  %v5042_v3 = vpop.permute.xlu1 %5041 }
 0x239   :  { %6561 = vpow2.f32 %v4303_v32  ;;  %v456_v31 = vrot.slane %v455_v33, 1  ;;  %v467_v10 = vadd.f32 %v466_v38, %v465_v34  ;;  %v489_v17 = vadd.f32 %v488_v61, %v11913_v14  ;;  %v11922_v14 = vld [vmem:[#allocation120_spill] sm:$0xff] }
 0x23a   :  { %6563 = vpow2.f32 %v4305_v18  ;;  %v476_v60 = vrot.slane %v11914_v55, 4  ;;  %v11916_v37 = vrot.slane %v11915_v27, 4  ;;  %v4649_v24 = vrot.slane %v4648_v29, 4 }
 0x23b   :  { %6565 = vpow2.f32 %v4307_v41  ;;  %v9346_v7 = vsel %vm4605_vm0, %v4580_v22, 0.0  ;;  %v462_v50 = vrot.slane %v461_v12, 1  ;;  %v490_v48 = vrot.slane %v489_v17, 2 }
 0x23c   :  { %v483_v0 = vadd.f32 %v11916_v37, %v11915_v27  ;;  %11917 = vst [vmem:[#allocation31_spill] sm:$0xff] %v9346_v7  ;;  %v9349_v34 = vadd.f32 %v4635_v11, %v4634_v4  ;;  %v9351_v61 = vadd.f32 %v4642_v13, %v4641_v26  ;;  %v9353_v8 = vadd.f32 %v474_v21, %v473_v9  ;;  %v11929_v7 = vld [vmem:[#allocation56_spill] sm:$0xff] }
 0x23d   :  { %v9355_v32 = vadd.f32 %v456_v31, %v455_v33  ;;  %v468_v18 = vrot.slane %v467_v10, 1  ;;  %v491_v41 = vadd.f32 %v490_v48, %v489_v17  ;;  %v496_v27 = vrot.slane %v11922_v14, 2 }
 0x23e   :  { %11918 = vst [vmem:[#allocation57_spill] sm:$0xff] %v9349_v34  ;;  %11919 = vst [vmem:[#allocation53_spill] sm:$0xff] %v9351_v61  ;;  %v9360_v37 = vrot.slane %v5042_v3, %v11804_v57  ;;  %v477_v4 = vadd.f32 %v476_v60, %v11914_v55  ;;  %v484_v11 = vrot.slane %v483_v0, 2  ;;  %v9363_v26 = vadd.f32 %v4649_v24, %v4648_v29 }
 0x23f   :  { %11920 = vst [vmem:[#allocation139_spill] sm:$0xff] %v9353_v8  ;;  %11921 = vst [vmem:[#allocation132_spill] sm:$0xff] %v9355_v32  ;;  %v9365_v9 = vadd.f32 %v462_v50, %v461_v12  ;;  %v9368_v13 = vrot.slane %v4111_v44, %v11804_v57  ;;  %v492_v33 = vrot.slane %v491_v41, 1  ;;  %v4024_v48 = vsub.f32 1.0, %v9353_v8  ;;  %v9380_v12 = vld [vmem:[%s11183_s0 + $0xc0] sm:$0xff]  ;;  %v9391_v50 = vld [vmem:[%s11183_s0 + $0xc8] sm:$0xff] }
 0x240   :  { %11923 = vst [vmem:[#allocation61_spill] sm:$0xff] %v9363_v26  ;;  %v6552_v21 = vpop.eup %6551  ;;  %v11925_v3 = vsub.f32 0.0, %v9272_v40  ;;  %v9382_v44 = vadd.f32 %v468_v18, %v467_v10  ;;  %v4021_v55 = vsub.f32 1.0, %v9355_v32  ;;  %v497_v24 = vadd.f32 %v496_v27, %v11922_v14  ;;  %v4936_v18 = vpop.permute.xlu0 %4935  ;;  %v9409_v8 = vld [vmem:[%s11183_s0 + $0xd0] sm:$0xff] }
 0x241   :  { %11924 = vst [vmem:[#allocation74_spill] sm:$0xff] %v9365_v9  ;;  %v6554_v29 = vpop.eup %6553  ;;  %v9385_v60 = vadd.f32 %v492_v33, %v491_v41  ;;  %v11928_v17 = vsub.f32 0.0, %v9277_v2  ;;  %v478_v38 = vrot.slane %v477_v4, 2  ;;  %v9397_v42 = vadd.f32 %v484_v11, %v483_v0  ;;  %v11936_v32 = vld [vmem:[#allocation144_spill] sm:$0xff] }
 0x242   :  { %v9375_v22 = vmax.f32 %v11925_v3, 0.0  ;;  %11926 = vst [vmem:[#allocation72_spill] sm:$0xff] %v9382_v44  ;;  %v6556_v3 = vpop.eup %6555  ;;  %v9400_v10 = vrot.slane %v4119_v16, %v11804_v57  ;;  %v4390_v33 = vmul.f32 0.6931472, %v6552_v21  ;;  %v9404_v27 = vmul.f32 %v9368_v13, %v4021_v55  ;;  %v9417_v21 = vld [vmem:[%s11183_s0 + $0xd8] sm:$0xff] }
 0x243   :  { %11927 = vst [vmem:[#allocation55_spill] sm:$0xff] %v9385_v60  ;;  %v9395_v31 = vmax.f32 %v11928_v17, 0.0  ;;  %v6558_v41 = vpop.eup %6557  ;;  %v4392_v11 = vmul.f32 0.6931472, %v6554_v29  ;;  %v4056_v16 = vmul.f32 %v11929_v7, %v4024_v48  ;;  %v4027_v26 = vsub.f32 1.0, %v9385_v60 }
 0x244   :  { %v4394_v61 = vmul.f32 0.6931472, %v6556_v3  ;;  %v4023_v34 = vsub.f32 1.0, %v9382_v44  ;;  %v498_v54 = vrot.slane %v497_v24, 1  ;;  %v4941_v17 = vrot.slane %v4936_v18, %v11804_v57 }
 0x245   :  { %v6560_v0 = vpop.eup %6559  ;;  %v479_v29 = vadd.f32 %v478_v38, %v477_v4  ;;  %v486_v48 = vrot.slane %v9397_v42, 1  ;;  %v9424_v60 = vmul.f32 %v9400_v10, %v4027_v26  ;;  %v9428_v28 = vadd.f32 %v4390_v33, %v11930_v45  ;;  %v4944_v4 = vpop.permute.xlu1 %4943 }
 0x246   :  { %v6562_v14 = vpop.eup %6561  ;;  %v4357_v55 = vadd.f32 1.0, %v6560_v0  ;;  %v4172_v3 = vsub.f32 0.0, %v9417_v21  ;;  %v11932_v44 = vsub.f32 0.0, %v9380_v12  ;;  %v4396_v18 = vmul.f32 0.6931472, %v6558_v41 }
 0x247   :  { %v6564_v30 = vpop.eup %6563  ;;  %11931 = vst [vmem:[#allocation75_spill] sm:$0xff] %v9428_v28  ;;  %v9434_v38 = vadd.f32 %v4392_v11, %v11933_v62  ;;  %v4358_v46 = vadd.f32 1.0, %v6562_v14  ;;  %v11935_v26 = vsub.f32 0.0, %v9391_v50  ;;  %v9439_v56 = vadd.f32 %v4394_v61, %v11936_v32 }
 0x248   :  { %v6566_v52 = vpop.eup %6565  ;;  %v4233_v35 = vand.u32 2147483647, %v11932_v44  ;;  %v4481_v45 = vadd.f32 %v9428_v28, %v11888_v58  ;;  %v4359_v33 = vadd.f32 1.0, %v6564_v30  ;;  %v9443_v0 = vadd.f32 %v498_v54, %v497_v24  ;;  %v11940_v58 = vld [vmem:[#allocation146_spill] sm:$0xff] }
 0x249   :  { %11934 = vst [vmem:[#allocation21_spill] sm:$0xff] %v9434_v38  ;;  %v4234_v15 = vand.u32 2147483647, %v11935_v26  ;;  %11937 = vst [vmem:[#allocation140_spill] sm:$0xff] %v9439_v56  ;;  %v4482_v44 = vadd.f32 %v9434_v38, %v11889_v25  ;;  %v4360_v41 = vadd.f32 1.0, %v6566_v52  ;;  %v480_v62 = vrot.slane %v479_v29, 1 }
 0x24a   :  { %11938 = vst [vmem:[#allocation73_spill] sm:$0xff] %v9443_v0  ;;  %v11939_v11 = vsub.f32 0.0, %v9409_v8  ;;  %v4483_v26 = vadd.f32 %v9439_v56, %v11896_v39  ;;  %6567 = vlog2.f32 %v4357_v55  ;;  %v4236_v61 = vand.u32 2147483647, %v4172_v3  ;;  %v5051_v39 = vpop.permute.xlu1 %5050 }
 0x24b   :  { %v4265_v32 = vsub.f32 0.0, %v4233_v35  ;;  %v9454_v30 = vadd.f32 %v4396_v18, %v11940_v58  ;;  %6569 = vlog2.f32 %v4358_v46  ;;  %v4266_v54 = vsub.f32 0.0, %v4234_v15 }
 0x24c   :  { %v4235_v14 = vand.u32 2147483647, %v11939_v11  ;;  %v5106_v25 = vmul.f32 %v9360_v37, %v4481_v45  ;;  %6571 = vlog2.f32 %v4359_v33  ;;  %v4268_v52 = vsub.f32 0.0, %v4236_v61 }
 0x24d   :  { %11941 = vst [vmem:[#allocation41_spill] sm:$0xff] %v9454_v30  ;;  %v4309_v36 = vmul.f32 1.442695, %v4265_v32  ;;  %v4484_v11 = vadd.f32 %v9454_v30, %v9029_v19  ;;  %6573 = vlog2.f32 %v4360_v41  ;;  %v4311_v55 = vmul.f32 1.442695, %v4266_v54 }
 0x24e   :  { %v4267_v24 = vsub.f32 0.0, %v4235_v14  ;;  %v5107_v35 = vmul.f32 %v9360_v37, %v4482_v44  ;;  %v5108_v18 = vmul.f32 %v9360_v37, %v4483_v26  ;;  %v4994_v46 = vmul.f32 %v4941_v17, %v9428_v28  ;;  %v11982_v28 = vld [vmem:[#allocation83_spill] sm:$0xff] }
 0x24f   :  { %6575 = vpow2.f32 %v4309_v36  ;;  %v4995_v15 = vmul.f32 %v4941_v17, %v9434_v38  ;;  %v4996_v45 = vmul.f32 %v4941_v17, %v9439_v56  ;;  %v4315_v33 = vmul.f32 1.442695, %v4268_v52 }
 0x250   :  { %v4313_v20 = vmul.f32 1.442695, %v4267_v24  ;;  %6577 = vpow2.f32 %v4311_v55  ;;  %v11942_v14 = vsub.f32 1.0, %v9365_v9  ;;  %v4151_v41 = vmul.f32 %v9368_v13, %v4023_v34 }
 0x251   :  { %v4152_v61 = vmul.f32 %v9368_v13, %v4056_v16  ;;  %v5109_v44 = vmul.f32 %v9360_v37, %v4484_v11  ;;  %v11943_v26 = vsub.f32 0.0, %v9286_v63  ;;  %v9475_v32 = vadd.f32 %v486_v48, %v9397_v42  ;;  %v4952_v11 = vpop.permute.xlu1 %4951 }
 0x252   :  { %v4150_v19 = vmul.f32 %v9368_v13, %v11942_v14  ;;  %6579 = vpow2.f32 %v4313_v20  ;;  %v4997_v58 = vmul.f32 %v4941_v17, %v9454_v30  ;;  %v11945_v54 = vsub.f32 0.0, %v9291_v59 }
 0x253   :  { %v9472_v36 = vmax.f32 %v11943_v26, 0.0  ;;  %11944 = vst [vmem:[#allocation112_spill] sm:$0xff] %v9475_v32  ;;  %v9482_v52 = vadd.f32 %v480_v62, %v479_v29  ;;  %v4028_v34 = vsub.f32 1.0, %v9443_v0  ;;  %v5138_v20 = vadd.f32 %v5106_v25, %v4994_v46 }
 0x254   :  { %v9480_v24 = vmax.f32 %v11945_v54, 0.0  ;;  %v9486_v37 = vmul.f32 100.0, %v9404_v27  ;;  %v5139_v13 = vadd.f32 %v5107_v35, %v4995_v15  ;;  %v5140_v16 = vadd.f32 %v5108_v18, %v4996_v45  ;;  %v11952_v45 = vld [vmem:[#allocation8_spill] sm:$0xff] }
 0x255   :  { %11946 = vst [vmem:[#allocation114_spill] sm:$0xff] %v9482_v52  ;;  %6581 = vpow2.f32 %v4315_v33  ;;  %v9488_v42 = vmul.f32 100.0, %v4150_v19  ;;  %v9490_v48 = vmul.f32 100.0, %v4151_v41  ;;  %v9492_v17 = vmul.f32 100.0, %v4152_v61 }
 0x256   :  { %v9495_v55 = vrot.slane %v4944_v4, %v11804_v57  ;;  %v4026_v29 = vsub.f32 1.0, %v9475_v32  ;;  %v9499_v62 = vrot.slane %v5051_v39, %v11804_v57  ;;  %v5141_v27 = vadd.f32 %v5109_v44, %v4997_v58 }
 0x257   :  { %11947 = vst [vmem:[#allocation17_spill] sm:$0xff] %v9488_v42  ;;  %11948 = vst [vmem:[#allocation115_spill] sm:$0xff] %v9490_v48  ;;  %v11950_v25 = vsub.f32 0.0, %v9380_v12  ;;  %v4025_v18 = vsub.f32 1.0, %v9482_v52  ;;  %v4060_v46 = vmul.f32 %v11929_v7, %v4028_v34  ;;  %v9508_v15 = vmul.f32 %v5138_v20, %v9132_v1  ;;  %v6568_v33 = vpop.eup %6567 }
 0x258   :  { %11949 = vst [vmem:[#allocation123_spill] sm:$0xff] %v9492_v17  ;;  %v404_v4 = vrot.slane %v11952_v45, 4  ;;  %v9512_v14 = vmul.f32 %v5139_v13, %v9143_v49  ;;  %v9515_v39 = vmul.f32 %v5140_v16, %v9150_v51  ;;  %v11955_v19 = vsub.f32 0.0, %v9391_v50  ;;  %v6570_v26 = vpop.eup %6569  ;;  %v5060_v13 = vpop.permute.xlu0 %5059  ;;  %v11962_v16 = vld [vmem:[#allocation45_spill] sm:$0xff] }
 0x259   :  { %v9503_v35 = vmax.f32 %v11950_v25, 0.0  ;;  %11951 = vst [vmem:[#allocation118_spill] sm:$0xff] %v9508_v15  ;;  %v11956_v61 = vsub.f32 0.0, %v9409_v8  ;;  %v9526_v1 = vmul.f32 %v9400_v10, %v4025_v18  ;;  %v9529_v58 = vmul.f32 %v9400_v10, %v4026_v29  ;;  %v6572_v54 = vpop.eup %6571  ;;  %v11964_v18 = vld [vmem:[#allocation100_spill] sm:$0xff] }
 0x25a   :  { %11953 = vst [vmem:[#allocation13_spill] sm:$0xff] %v9512_v14  ;;  %11954 = vst [vmem:[#allocation120_spill] sm:$0xff] %v9515_v39  ;;  %v9519_v41 = vmax.f32 %v11955_v19, 0.0  ;;  %v9532_v49 = vmul.f32 %v9400_v10, %v4060_v46  ;;  %v9536_v51 = vmax.f32 %v4172_v3, 0.0  ;;  %v9539_v34 = vmul.f32 100.0, %v9424_v60  ;;  %v4095_v10 = vpop.permute.xlu1 %4094  ;;  %v6574_v46 = vpop.eup %6573  ;;  %v11967_v39 = vld [vmem:[#allocation102_spill] sm:$0xff] }
 0x25b   :  { %v9523_v44 = vmax.f32 %v11956_v61, 0.0  ;;  %11957 = vst [vmem:[#allocation56_spill] sm:$0xff] %v9526_v1  ;;  %11958 = vst [vmem:[#allocation142_spill] sm:$0xff] %v9529_v58  ;;  %v9542_v20 = vmul.f32 %v5141_v27, %v9152_v6  ;;  %v11963_v25 = vrot.slane %v11962_v16, 4  ;;  %v416_v19 = vrot.slane %v11964_v18, 4  ;;  %v11965_v1 = vld [vmem:[#allocation87_spill] sm:$0xff] }
 0x25c   :  { %11959 = vst [vmem:[#allocation143_spill] sm:$0xff] %v9532_v49  ;;  %11960 = vst [vmem:[#allocation144_spill] sm:$0xff] %v9539_v34  ;;  %v4398_v61 = vmul.f32 0.6931472, %v6568_v33  ;;  %v405_v49 = vadd.f32 %v404_v4, %v11952_v45  ;;  %v424_v60 = vrot.slane %v11965_v1, 2  ;;  %v6576_v58 = vpop.eup %6575  ;;  %v9554_v17 = vrot.slane %v4952_v11, %v11804_v57  ;;  %v11966_v45 = vld [vmem:[#allocation50_spill] sm:$0xff] }
 0x25d   :  { %11961 = vst [vmem:[#allocation146_spill] sm:$0xff] %v9542_v20  ;;  %v411_v29 = vadd.f32 %v11963_v25, %v11962_v16  ;;  %v4400_v34 = vmul.f32 0.6931472, %v6570_v26  ;;  %v6578_v16 = vpop.eup %6577  ;;  %v4402_v25 = vmul.f32 0.6931472, %v6572_v54  ;;  %v9557_v48 = vrot.slane %v5060_v13, %v11804_v57 }
 0x25e   :  { %v9560_v33 = vrot.slane %v4095_v10, %v11804_v57  ;;  %v1574_v4 = vsel %vm11867_vm1, %v9115_v23, %v11966_v45  ;;  %v4361_v3 = vadd.f32 1.0, %v6576_v58  ;;  %v417_v27 = vadd.f32 %v416_v19, %v11964_v18  ;;  %v11969_v23 = vld [vmem:[#allocation88_spill] sm:$0xff]  ;;  %v11971_v18 = vld [vmem:[#allocation49_spill] sm:$0xff] }
 0x25f   :  { %v6580_v26 = vpop.eup %6579  ;;  %v412_v6 = vrot.slane %v411_v29, 2  ;;  %v9569_v11 = vsel %vm11968_vm10, %v9119_v5, %v11967_v39  ;;  %v4404_v54 = vmul.f32 0.6931472, %v6574_v46  ;;  %v4453_v13 = vadd.f32 %v4398_v61, %v9375_v22  ;;  %v11974_v46 = vld [vmem:[#allocation86_spill] sm:$0xff]  ;;  %v9606_v61 = vld [vmem:[%s11183_s0 + $0x110] sm:$0xff] }
 0x260   :  { %v406_v14 = vrot.slane %v405_v49, 2  ;;  %v425_v10 = vadd.f32 %v424_v60, %v11965_v1  ;;  %v4454_v15 = vadd.f32 %v4400_v34, %v9395_v31  ;;  %v4362_v20 = vadd.f32 1.0, %v6578_v16 }
 0x261   :  { %v9577_v58 = vsel %vm11970_vm5, %v9126_v43, %v11969_v23  ;;  %v9582_v19 = vsel %vm11972_vm11, %v9130_v53, %v11971_v18  ;;  %v9585_v39 = vadd.f32 %v4402_v25, %v9472_v36  ;;  %v4485_v22 = vadd.f32 %v4453_v13, %v9272_v40  ;;  %v9595_v43 = vld [vmem:[%s11183_s0 + $0x100] sm:$0xff]  ;;  %v9600_v53 = vld [vmem:[%s11183_s0 + $0x108] sm:$0xff] }
 0x262   :  { %v6582_v5 = vpop.eup %6581  ;;  %v4363_v1 = vadd.f32 1.0, %v6580_v26  ;;  %v9590_v31 = vsel %vm11975_vm4, %v1574_v4, %v11974_v46  ;;  %v4486_v36 = vadd.f32 %v4454_v15, %v9277_v2  ;;  %6583 = vlog2.f32 %v4361_v3  ;;  %v9616_v2 = vld [vmem:[%s11183_s0 + $0x118] sm:$0xff] }
 0x263   :  { %11973 = vst [vmem:[#allocation8_spill] sm:$0xff] %v9585_v39  ;;  %v413_v34 = vadd.f32 %v412_v6, %v411_v29  ;;  %v418_v40 = vrot.slane %v417_v27, 2  ;;  %v9609_v60 = vadd.f32 %v4404_v54, %v9480_v24  ;;  %v4487_v16 = vadd.f32 %v9585_v39, %v9286_v63 }
 0x264   :  { %v407_v25 = vadd.f32 %v406_v14, %v405_v49  ;;  %v426_v45 = vrot.slane %v425_v10, 1  ;;  %v4364_v29 = vadd.f32 1.0, %v6582_v5  ;;  %6585 = vlog2.f32 %v4362_v20 }
 0x265   :  { %11976 = vst [vmem:[#allocation45_spill] sm:$0xff] %v9609_v60  ;;  %v11395_v3 = vsub.f32 0.0, %v9595_v43  ;;  %v11397_v6 = vsub.f32 0.0, %v9600_v53  ;;  %v4998_v4 = vmul.f32 %v9495_v55, %v4453_v13  ;;  %v5110_v24 = vmul.f32 %v9499_v62, %v4485_v22 }
 0x266   :  { %6587 = vlog2.f32 %v4363_v1  ;;  %v11399_v63 = vsub.f32 0.0, %v9606_v61  ;;  %v4999_v14 = vmul.f32 %v9495_v55, %v4454_v15  ;;  %v4488_v49 = vadd.f32 %v9609_v60, %v9291_v59 }
 0x267   :  { %v5111_v26 = vmul.f32 %v9499_v62, %v4486_v36  ;;  %v5000_v54 = vmul.f32 %v9495_v55, %v9585_v39  ;;  %v5112_v23 = vmul.f32 %v9499_v62, %v4487_v16  ;;  %v414_v18 = vrot.slane %v413_v34, 1 }
 0x268   :  { %v419_v5 = vadd.f32 %v418_v40, %v417_v27  ;;  %v5001_v22 = vmul.f32 %v9495_v55, %v9609_v60  ;;  %6589 = vlog2.f32 %v4364_v29  ;;  %v4237_v1 = vand.u32 2147483647, %v11395_v3 }
 0x269   :  { %v4238_v59 = vand.u32 2147483647, %v11397_v6  ;;  %v5142_v46 = vadd.f32 %v5110_v24, %v4998_v4  ;;  %v408_v36 = vrot.slane %v407_v25, 1  ;;  %v4239_v20 = vand.u32 2147483647, %v11399_v63  ;;  %v11980_v4 = vld [vmem:[#allocation65_spill] sm:$0xff] }
 0x26a   :  { %v11977_v39 = vsub.f32 0.0, %v9616_v2  ;;  %v5113_v27 = vmul.f32 %v9499_v62, %v4488_v49  ;;  %v5143_v40 = vadd.f32 %v5111_v26, %v4999_v14  ;;  %v4269_v30 = vsub.f32 0.0, %v4237_v1 }
 0x26b   :  { %v4270_v55 = vsub.f32 0.0, %v4238_v59  ;;  %v9643_v29 = vmul.f32 %v4453_v13, %v11857_v47  ;;  %v5144_v3 = vadd.f32 %v5112_v23, %v5000_v54  ;;  %v9645_v60 = vadd.f32 %v426_v45, %v425_v10  ;;  %v11985_v13 = vld [vmem:[#allocation116_spill] sm:$0xff]  ;;  %v11992_v54 = vld [vmem:[#allocation105_spill] sm:$0xff] }
 0x26c   :  { %v4240_v16 = vand.u32 2147483647, %v11977_v39  ;;  %v4271_v6 = vsub.f32 0.0, %v4239_v20  ;;  %v9648_v24 = vmul.f32 %v4454_v15, %v11980_v4  ;;  %v420_v56 = vrot.slane %v419_v5, 1  ;;  %v11988_v15 = vld [vmem:[#allocation9_spill] sm:$0xff]  ;;  %v12077_v4 = vld [vmem:[#allocation122_spill] sm:$0xff] }
 0x26d   :  { %11978 = vst [vmem:[#allocation100_spill] sm:$0xff] %v9643_v29  ;;  %11979 = vst [vmem:[#allocation87_spill] sm:$0xff] %v9645_v60  ;;  %v4317_v63 = vmul.f32 1.442695, %v4269_v30  ;;  %v4319_v38 = vmul.f32 1.442695, %v4270_v55  ;;  %v9651_v39 = vmul.f32 %v5142_v46, %v11982_v28  ;;  %v9653_v62 = vadd.f32 %v408_v36, %v407_v25 }
 0x26e   :  { %11981 = vst [vmem:[#allocation50_spill] sm:$0xff] %v9648_v24  ;;  %v4272_v14 = vsub.f32 0.0, %v4240_v16  ;;  %v4321_v49 = vmul.f32 1.442695, %v4271_v6  ;;  %v5145_v26 = vadd.f32 %v5113_v27, %v5001_v22  ;;  %v9656_v1 = vmul.f32 %v5143_v40, %v11985_v13  ;;  %v11990_v30 = vld [vmem:[#allocation29_spill] sm:$0xff]  ;;  %v11996_v27 = vld [vmem:[#allocation24_spill] sm:$0xff] }
 0x26f   :  { %11983 = vst [vmem:[#allocation102_spill] sm:$0xff] %v9651_v39  ;;  %11984 = vst [vmem:[#allocation88_spill] sm:$0xff] %v9653_v62  ;;  %v9658_v10 = vadd.f32 %v414_v18, %v413_v34  ;;  %6591 = vpow2.f32 %v4317_v63  ;;  %v6584_v45 = vpop.eup %6583  ;;  %v9661_v20 = vmul.f32 %v5144_v3, %v11988_v15  ;;  %v1608_v28 = vsel %vm11991_vm12, %v9569_v11, %v11990_v30  ;;  %v11994_v46 = vld [vmem:[#allocation117_spill] sm:$0xff]  ;;  %v9761_v3 = vld [vmem:[%s11183_s0 + $0x148] sm:$0xff] }
 0x270   :  { %11986 = vst [vmem:[#allocation49_spill] sm:$0xff] %v9656_v1  ;;  %v1609_v25 = vsel %vm11887_vm2, %v9577_v58, %v11992_v54  ;;  %6593 = vpow2.f32 %v4319_v38  ;;  %v9670_v23 = vadd.f32 %v420_v56, %v419_v5  ;;  %v4016_v34 = vsub.f32 1.0, %v9645_v60  ;;  %v12006_v38 = vld [vmem:[#allocation141_spill] sm:$0xff]  ;;  %v12009_v6 = vld [vmem:[#allocation16_spill] sm:$0xff]  ;;  %v12014_v39 = vld [vmem:[#allocation30_spill] sm:$0xff] }
 0x271   :  { %11987 = vst [vmem:[#allocation86_spill] sm:$0xff] %v9658_v10  ;;  %11989 = vst [vmem:[#allocation83_spill] sm:$0xff] %v9661_v20  ;;  %6595 = vpow2.f32 %v4321_v49  ;;  %v6586_v63 = vpop.eup %6585  ;;  %v4013_v22 = vsub.f32 1.0, %v9653_v62  ;;  %v4323_v11 = vmul.f32 1.442695, %v4272_v14  ;;  %v9677_v36 = vmul.f32 %v5145_v26, %v11994_v46 }
 0x272   :  { %11993 = vst [vmem:[#allocation116_spill] sm:$0xff] %v9670_v23  ;;  %v4406_v58 = vmul.f32 0.6931472, %v6584_v45  ;;  %v4014_v56 = vsub.f32 1.0, %v9658_v10  ;;  %v1610_v40 = vsel %vm11997_vm13, %v9582_v19, %v11996_v27  ;;  %v4525_v55 = vsub.f32 %v9595_v43, %v9590_v31  ;;  %vm12070_vm12 = vmmov %vm11970_vm5 }
 0x273   :  { %v6588_v59 = vpop.eup %6587  ;;  %11995 = vst [vmem:[#allocation9_spill] sm:$0xff] %v9677_v36  ;;  %v4141_v16 = vmul.f32 %v9560_v33, %v4013_v22  ;;  %v4015_v14 = vsub.f32 1.0, %v9670_v23  ;;  %v4048_v49 = vmul.f32 %v11929_v7, %v4016_v34  ;;  %v4526_v13 = vsub.f32 %v9600_v53, %v1608_v28  ;;  %vm12072_vm2 = vmmov %vm11970_vm5 }
 0x274   :  { %v4142_v26 = vmul.f32 %v9560_v33, %v4014_v56  ;;  %v4408_v15 = vmul.f32 0.6931472, %v6586_v63  ;;  %v4410_v30 = vmul.f32 0.6931472, %v6588_v59  ;;  %6597 = vpow2.f32 %v4323_v11  ;;  %vm12074_vm13 = vmmov %vm12072_vm2 }
 0x275   :  { %v6590_v45 = vpop.eup %6589  ;;  %v4527_v54 = vsub.f32 %v9606_v61, %v1609_v25  ;;  %v4457_v22 = vadd.f32 %v4406_v58, %v9503_v35  ;;  %v4143_v19 = vmul.f32 %v9560_v33, %v4015_v14  ;;  %v4144_v31 = vmul.f32 %v9560_v33, %v4048_v49 }
 0x276   :  { %v11998_v46 = vsub.f32 0.0, %v9595_v43  ;;  %v9700_v34 = vmul.f32 100.0, %v4141_v16  ;;  %v11999_v28 = vsub.f32 0.0, %v9600_v53  ;;  %v4528_v63 = vsub.f32 %v9616_v2, %v1610_v40 }
 0x277   :  { %v4557_v11 = vmul.f32 %v4525_v55, %v4525_v55  ;;  %v4412_v25 = vmul.f32 0.6931472, %v6590_v45  ;;  %v4489_v35 = vadd.f32 %v4457_v22, %v9380_v12  ;;  %v9708_v59 = vmul.f32 100.0, %v4142_v26 }
 0x278   :  { %v9698_v27 = vmax.f32 %v11998_v46, 0.0  ;;  %v9704_v56 = vmax.f32 %v11999_v28, 0.0  ;;  %v4558_v58 = vmul.f32 %v4526_v13, %v4526_v13  ;;  %v4458_v33 = vadd.f32 %v4408_v15, %v9519_v41  ;;  %v12002_v28 = vld [vmem:[#allocation44_spill] sm:$0xff] }
 0x279   :  { %v9712_v14 = vadd.f32 %v4410_v30, %v9523_v44  ;;  %v12001_v16 = vsub.f32 0.0, %v9606_v61  ;;  %v4559_v46 = vmul.f32 %v4527_v54, %v4527_v54  ;;  %v9719_v5 = vmul.f32 %v4457_v22, %v12002_v28 }
 0x27a   :  { %v9721_v40 = vmul.f32 100.0, %v4143_v19  ;;  %v9723_v55 = vmul.f32 100.0, %v4144_v31  ;;  %v12004_v12 = vsub.f32 0.0, %v9616_v2  ;;  %v4490_v44 = vadd.f32 %v4458_v33, %v9391_v50 }
 0x27b   :  { %12000 = vst [vmem:[#allocation29_spill] sm:$0xff] %v9712_v14  ;;  %v9716_v49 = vmax.f32 %v12001_v16, 0.0  ;;  %12003 = vst [vmem:[#allocation105_spill] sm:$0xff] %v9719_v5  ;;  %v4491_v13 = vadd.f32 %v9712_v14, %v9409_v8  ;;  %v4560_v45 = vmul.f32 %v4528_v63, %v4528_v63  ;;  %v4589_v15 = vmul.f32 %v4557_v11, %v9653_v62  ;;  %v12011_v5 = vld [vmem:[#allocation103_spill] sm:$0xff] }
 0x27c   :  { %v9727_v26 = vmax.f32 %v12004_v12, 0.0  ;;  %v6592_v41 = vpop.eup %6591  ;;  %v9734_v54 = vadd.f32 %v4412_v25, %v9536_v51  ;;  %v5002_v19 = vmul.f32 %v9554_v17, %v4457_v22  ;;  %v5114_v31 = vmul.f32 %v9557_v48, %v4489_v35  ;;  %v9747_v51 = vld [vmem:[%s11183_s0 + $0x140] sm:$0xff] }
 0x27d   :  { %v6594_v30 = vpop.eup %6593  ;;  %v4590_v16 = vmul.f32 %v4558_v58, %v9658_v10  ;;  %v9740_v18 = vmul.f32 %v4458_v33, %v12006_v38  ;;  %v5003_v50 = vmul.f32 %v9554_v17, %v4458_v33  ;;  %v4365_v8 = vadd.f32 1.0, %v6592_v41 }
 0x27e   :  { %12005 = vst [vmem:[#allocation117_spill] sm:$0xff] %v9734_v54  ;;  %v6596_v12 = vpop.eup %6595  ;;  %v4591_v63 = vmul.f32 %v4559_v46, %v9670_v23  ;;  %v5004_v22 = vmul.f32 %v9554_v17, %v9712_v14  ;;  %v5005_v11 = vmul.f32 %v9554_v17, %v9734_v54  ;;  %v4366_v35 = vadd.f32 1.0, %v6594_v30  ;;  %v9766_v17 = vld [vmem:[%s11183_s0 + $0x150] sm:$0xff]  ;;  %v9771_v30 = vld [vmem:[%s11183_s0 + $0x158] sm:$0xff] }
 0x27f   :  { %12007 = vst [vmem:[#allocation24_spill] sm:$0xff] %v9740_v18  ;;  %v4492_v58 = vadd.f32 %v9734_v54, %v9417_v21  ;;  %v5115_v33 = vmul.f32 %v9557_v48, %v4490_v44  ;;  %v5116_v46 = vmul.f32 %v9557_v48, %v4491_v13  ;;  %v4367_v41 = vadd.f32 1.0, %v6596_v12  ;;  %v12008_v13 = vld [vmem:[#allocation20_spill] sm:$0xff]  ;;  %v12069_v18 = vld [vmem:[#allocation121_spill] sm:$0xff] }
 0x280   :  { %v5146_v21 = vadd.f32 %v5114_v31, %v5002_v19  ;;  %v4592_v44 = vmul.f32 %v4560_v45, %v9645_v60  ;;  %v428_v12 = vrot.slane %v12008_v13, 4  ;;  %6599 = vlog2.f32 %v4365_v8  ;;  %v12012_v54 = vld [vmem:[#allocation104_spill] sm:$0xff] }
 0x281   :  { %v12010_v10 = vrot.slane %v12009_v6, 4  ;;  %v440_v62 = vrot.slane %v12011_v5, 4  ;;  %v448_v14 = vrot.slane %v12012_v54, 2  ;;  %v6598_v38 = vpop.eup %6597  ;;  %6601 = vlog2.f32 %v4366_v35 }
 0x282   :  { %v5117_v31 = vmul.f32 %v9557_v48, %v4492_v58  ;;  %v5147_v25 = vadd.f32 %v5115_v33, %v5003_v50  ;;  %v4368_v8 = vadd.f32 1.0, %v6598_v38  ;;  %6603 = vlog2.f32 %v4367_v41 }
 0x283   :  { %v435_v23 = vadd.f32 %v12010_v10, %v12009_v6  ;;  %v4718_v60 = vsel %vm4605_vm0, %v4589_v15, 0.0  ;;  %v4725_v10 = vsel %vm4605_vm0, %v4590_v16, 0.0  ;;  %v429_v6 = vadd.f32 %v428_v12, %v12008_v13 }
 0x284   :  { %v12013_v20 = vsub.f32 0.0, %v9747_v51  ;;  %v5148_v1 = vadd.f32 %v5116_v46, %v5004_v22  ;;  %v441_v19 = vadd.f32 %v440_v62, %v12011_v5  ;;  %v449_v45 = vadd.f32 %v448_v14, %v12012_v54 }
 0x285   :  { %v436_v28 = vrot.slane %v435_v23, 2  ;;  %v9793_v48 = vmul.f32 %v5146_v21, %v12014_v39  ;;  %v12016_v38 = vsub.f32 0.0, %v9761_v3  ;;  %v12017_v15 = vsub.f32 0.0, %v9766_v17 }
 0x286   :  { %v4241_v35 = vand.u32 2147483647, %v12013_v20  ;;  %v12018_v58 = vsub.f32 0.0, %v9771_v30  ;;  %6605 = vlog2.f32 %v4368_v8  ;;  %v4719_v20 = vrot.slane %v4718_v60, 4 }
 0x287   :  { %12015 = vst [vmem:[#allocation20_spill] sm:$0xff] %v9793_v48  ;;  %v4242_v50 = vand.u32 2147483647, %v12016_v38  ;;  %v4243_v16 = vand.u32 2147483647, %v12017_v15  ;;  %v4726_v22 = vrot.slane %v4725_v10, 4  ;;  %v437_v54 = vadd.f32 %v436_v28, %v435_v23 }
 0x288   :  { %v4244_v33 = vand.u32 2147483647, %v12018_v58  ;;  %v4273_v46 = vsub.f32 0.0, %v4241_v35  ;;  %v430_v41 = vrot.slane %v429_v6, 2  ;;  %v442_v39 = vrot.slane %v441_v19, 2  ;;  %v12019_v15 = vld [vmem:[#allocation18_spill] sm:$0xff]  ;;  %v4960_v35 = vpop.permute.xlu1 %4959 }
 0x289   :  { %v4274_v62 = vsub.f32 0.0, %v4242_v50  ;;  %v4275_v5 = vsub.f32 0.0, %v4243_v16  ;;  %v450_v21 = vrot.slane %v449_v45, 1  ;;  %v5149_v12 = vadd.f32 %v5117_v31, %v5005_v11  ;;  %v12022_v50 = vld [vmem:[#allocation52_spill] sm:$0xff]  ;;  %v9816_v11 = vld [vmem:[%s11183_s0 + $0x180] sm:$0xff] }
 0x28a   :  { %v4276_v14 = vsub.f32 0.0, %v4244_v33  ;;  %v4325_v13 = vmul.f32 1.442695, %v4273_v46  ;;  %v9802_v36 = vmul.f32 %v5147_v25, %v12019_v15  ;;  %v4732_v8 = vsel %vm4605_vm0, %v4591_v63, 0.0  ;;  %v9821_v63 = vld [vmem:[%s11183_s0 + $0x188] sm:$0xff] }
 0x28b   :  { %v4327_v38 = vmul.f32 1.442695, %v4274_v62  ;;  %v4329_v24 = vmul.f32 1.442695, %v4275_v5  ;;  %v9806_v58 = vsel %vm4605_vm0, %v4592_v44, 0.0  ;;  %v9809_v16 = vmul.f32 %v5148_v1, %v12022_v50  ;;  %v12027_v46 = vld [vmem:[#allocation43_spill] sm:$0xff]  ;;  %v5069_v62 = vpop.permute.xlu0 %5068 }
 0x28c   :  { %v4331_v29 = vmul.f32 1.442695, %v4276_v14  ;;  %12020 = vst [vmem:[#allocation16_spill] sm:$0xff] %v9802_v36  ;;  %12021 = vst [vmem:[#allocation103_spill] sm:$0xff] %v9806_v58  ;;  %6607 = vpow2.f32 %v4325_v13  ;;  %v9811_v23 = vadd.f32 %v4719_v20, %v4718_v60  ;;  %v431_v28 = vadd.f32 %v430_v41, %v429_v6 }
 0x28d   :  { %12023 = vst [vmem:[#allocation104_spill] sm:$0xff] %v9809_v16  ;;  %6609 = vpow2.f32 %v4327_v38  ;;  %v9823_v25 = vadd.f32 %v4726_v22, %v4725_v10  ;;  %v438_v44 = vrot.slane %v437_v54, 1  ;;  %v443_v31 = vadd.f32 %v442_v39, %v441_v19  ;;  %v6600_v1 = vpop.eup %6599  ;;  %v4103_v38 = vpop.permute.xlu1 %4102  ;;  %v9848_v39 = vld [vmem:[%s11183_s0 + $0x190] sm:$0xff] }
 0x28e   :  { %12024 = vst [vmem:[#allocation30_spill] sm:$0xff] %v9811_v23  ;;  %6611 = vpow2.f32 %v4329_v24  ;;  %v9827_v33 = vadd.f32 %v450_v21, %v449_v45  ;;  %v6602_v20 = vpop.eup %6601  ;;  %v9830_v41 = vmul.f32 %v5149_v12, %v12027_v46  ;;  %v4733_v5 = vrot.slane %v4732_v8, 4 }
 0x28f   :  { %12025 = vst [vmem:[#allocation18_spill] sm:$0xff] %v9823_v25  ;;  %6613 = vpow2.f32 %v4331_v29  ;;  %v11419_v10 = vsub.f32 0.0, %v9816_v11  ;;  %v11418_v22 = vsub.f32 0.0, %v9821_v63  ;;  %v6604_v19 = vpop.eup %6603  ;;  %v432_v45 = vrot.slane %v431_v28, 1  ;;  %v4968_v23 = vpop.permute.xlu0 %4967 }
 0x290   :  { %12026 = vst [vmem:[#allocation52_spill] sm:$0xff] %v9827_v33  ;;  %12028 = vst [vmem:[#allocation43_spill] sm:$0xff] %v9830_v41  ;;  %v9839_v13 = vadd.f32 %v438_v44, %v437_v54  ;;  %v444_v12 = vrot.slane %v443_v31, 1  ;;  %v4414_v15 = vmul.f32 0.6931472, %v6600_v1  ;;  %v9842_v46 = vrot.slane %v5069_v62, %v11804_v57 }
 0x291   :  { %v4416_v50 = vmul.f32 0.6931472, %v6602_v20  ;;  %v4020_v24 = vsub.f32 1.0, %v9827_v33  ;;  %v4418_v14 = vmul.f32 0.6931472, %v6604_v19  ;;  %v9850_v29 = vadd.f32 %v4733_v5, %v4732_v8  ;;  %v9867_v8 = vld [vmem:[%s11183_s0 + $0x198] sm:$0xff] }
 0x292   :  { %v4245_v54 = vand.u32 2147483647, %v11419_v10  ;;  %v4246_v44 = vand.u32 2147483647, %v11418_v22  ;;  %v4965_v20 = vrot.slane %v4960_v35, %v11804_v57  ;;  %v9857_v62 = vadd.f32 %v432_v45, %v431_v28  ;;  %12031 = vst [vmem:[#allocation148_spill] sm:$0xff] %v9867_v8 }
 0x293   :  { %12029 = vst [vmem:[#allocation147_spill] sm:$0xff] %v9850_v29  ;;  %v6606_v1 = vpop.eup %6605  ;;  %v4108_v21 = vrot.slane %v4103_v38, %v11804_v57  ;;  %v12030_v6 = vsub.f32 0.0, %v9747_v51  ;;  %v9869_v5 = vadd.f32 %v444_v12, %v443_v31  ;;  %v4018_v19 = vsub.f32 1.0, %v9839_v13 }
 0x294   :  { %v4277_v22 = vsub.f32 0.0, %v4245_v54  ;;  %v4278_v10 = vsub.f32 0.0, %v4246_v44  ;;  %v9873_v35 = vadd.f32 %v4414_v15, %v9698_v27  ;;  %v9876_v28 = vadd.f32 %v4416_v50, %v9704_v56 }
 0x295   :  { %v9862_v60 = vmax.f32 %v12030_v6, 0.0  ;;  %12032 = vst [vmem:[#allocation149_spill] sm:$0xff] %v9869_v5  ;;  %v4052_v6 = vmul.f32 %v11929_v7, %v4020_v24  ;;  %v11426_v45 = vsub.f32 0.0, %v9848_v39  ;;  %v4420_v38 = vmul.f32 0.6931472, %v6606_v1 }
 0x296   :  { %12033 = vst [vmem:[#allocation150_spill] sm:$0xff] %v9873_v35  ;;  %12034 = vst [vmem:[#allocation151_spill] sm:$0xff] %v9876_v28  ;;  %v9881_v33 = vadd.f32 %v4418_v14, %v9716_v49  ;;  %v11427_v31 = vsub.f32 0.0, %v9867_v8  ;;  %v4333_v12 = vmul.f32 1.442695, %v4277_v22  ;;  %v4493_v54 = vadd.f32 %v9873_v35, %v9595_v43 }
 0x297   :  { %v4494_v27 = vadd.f32 %v9876_v28, %v9600_v53  ;;  %v4017_v56 = vsub.f32 1.0, %v9857_v62  ;;  %v4335_v15 = vmul.f32 1.442695, %v4278_v10  ;;  %v4019_v49 = vsub.f32 1.0, %v9869_v5 }
 0x298   :  { %12035 = vst [vmem:[#allocation152_spill] sm:$0xff] %v9881_v33  ;;  %v4495_v24 = vadd.f32 %v9881_v33, %v9606_v61  ;;  %6615 = vpow2.f32 %v4333_v12  ;;  %v4146_v22 = vmul.f32 %v4108_v21, %v4018_v19  ;;  %v4247_v43 = vand.u32 2147483647, %v11426_v45 }
 0x299   :  { %v6608_v58 = vpop.eup %6607  ;;  %6617 = vpow2.f32 %v4335_v15  ;;  %v9895_v53 = vadd.f32 %v4420_v38, %v9727_v26  ;;  %v4248_v61 = vand.u32 2147483647, %v11427_v31  ;;  %v5118_v5 = vmul.f32 %v9842_v46, %v4493_v54 }
 0x29a   :  { %v6610_v7 = vpop.eup %6609  ;;  %v4369_v14 = vadd.f32 1.0, %v6608_v58  ;;  %v5119_v58 = vmul.f32 %v9842_v46, %v4494_v27  ;;  %v5006_v19 = vmul.f32 %v4965_v20, %v9873_v35  ;;  %v5007_v12 = vmul.f32 %v4965_v20, %v9876_v28 }
 0x29b   :  { %v6612_v50 = vpop.eup %6611  ;;  %v4370_v44 = vadd.f32 1.0, %v6610_v7  ;;  %12036 = vst [vmem:[#allocation153_spill] sm:$0xff] %v9895_v53  ;;  %v5078_v7 = vpop.permute.xlu1 %5077  ;;  %v4496_v15 = vadd.f32 %v9895_v53, %v9616_v2  ;;  %v5120_v26 = vmul.f32 %v9842_v46, %v4495_v24  ;;  %v5008_v38 = vmul.f32 %v4965_v20, %v9881_v33 }
 0x29c   :  { %v6614_v1 = vpop.eup %6613  ;;  %v4371_v10 = vadd.f32 1.0, %v6612_v50  ;;  %6619 = vlog2.f32 %v4369_v14  ;;  %v4145_v50 = vmul.f32 %v4108_v21, %v4017_v56  ;;  %v4148_v45 = vmul.f32 %v4108_v21, %v4052_v6 }
 0x29d   :  { %v4372_v14 = vadd.f32 1.0, %v6614_v1  ;;  %6621 = vlog2.f32 %v4370_v44  ;;  %v4279_v31 = vsub.f32 0.0, %v4247_v43  ;;  %v4147_v54 = vmul.f32 %v4108_v21, %v4019_v49 }
 0x29e   :  { %v12037_v27 = vsub.f32 0.0, %v9761_v3  ;;  %6623 = vlog2.f32 %v4371_v10  ;;  %v4280_v28 = vsub.f32 0.0, %v4248_v61  ;;  %v5150_v35 = vadd.f32 %v5118_v5, %v5006_v19  ;;  %v9924_v5 = vld [vmem:[%s11183_s0 + $0x1c0] sm:$0xff] }
 0x29f   :  { %v5151_v25 = vadd.f32 %v5119_v58, %v5007_v12  ;;  %v12038_v2 = vsub.f32 0.0, %v9766_v17  ;;  %v12039_v1 = vsub.f32 0.0, %v9771_v30  ;;  %v5121_v6 = vmul.f32 %v9842_v46, %v4496_v15  ;;  %v4976_v61 = vpop.permute.xlu1 %4975  ;;  %v12040_v12 = vld [vmem:[#allocation2_spill] sm:$0xff] }
 0x2a0   :  { %v9909_v29 = vmax.f32 %v12037_v27, 0.0  ;;  %v5009_v21 = vmul.f32 %v4965_v20, %v9895_v53  ;;  %v5152_v49 = vadd.f32 %v5120_v26, %v5008_v38  ;;  %6625 = vlog2.f32 %v4372_v14  ;;  %v12048_v27 = vld [vmem:[#allocation62_spill] sm:$0xff] }
 0x2a1   :  { %v9913_v24 = vmax.f32 %v12038_v2, 0.0  ;;  %v9917_v56 = vmax.f32 %v12039_v1, 0.0  ;;  %v9926_v44 = vmul.f32 100.0, %v4145_v50  ;;  %v9928_v43 = vmul.f32 100.0, %v4146_v22  ;;  %v12045_v50 = vld [vmem:[#allocation60_spill] sm:$0xff] }
 0x2a2   :  { %v9930_v10 = vmul.f32 100.0, %v4148_v45  ;;  %v4337_v58 = vmul.f32 1.442695, %v4279_v31  ;;  %v9932_v19 = vmul.f32 100.0, %v4147_v54  ;;  %v9935_v46 = vrot.slane %v4968_v23, %v11804_v57 }
 0x2a3   :  { %v4339_v20 = vmul.f32 1.442695, %v4280_v28  ;;  %v4533_v15 = vsub.f32 %v9816_v11, %v12040_v12  ;;  %v9940_v26 = vmul.f32 %v5150_v35, %v9700_v34  ;;  %v9943_v38 = vmul.f32 %v5151_v25, %v9708_v59  ;;  %v9961_v59 = vld [vmem:[%s11183_s0 + $0x1c8] sm:$0xff] }
 0x2a4   :  { %v9946_v45 = vrot.slane %v5078_v7, %v11804_v57  ;;  %v5153_v22 = vadd.f32 %v5121_v6, %v5009_v21  ;;  %v9950_v14 = vmul.f32 %v5152_v49, %v9721_v40  ;;  %v12044_v23 = vsub.f32 0.0, %v9816_v11  ;;  %v12047_v40 = vld [vmem:[#allocation58_spill] sm:$0xff] }
 0x2a5   :  { %12041 = vst [vmem:[#allocation2_spill] sm:$0xff] %v9940_v26  ;;  %12042 = vst [vmem:[#allocation154_spill] sm:$0xff] %v9943_v38  ;;  %v4534_v34 = vsub.f32 %v9821_v63, %v12045_v50  ;;  %v6616_v25 = vpop.eup %6615  ;;  %v12046_v35 = vsub.f32 0.0, %v9821_v63  ;;  %6627 = vpow2.f32 %v4337_v58  ;;  %v4535_v54 = vsub.f32 %v9848_v39, %v12047_v40  ;;  %v5087_v40 = vpop.permute.xlu1 %5086  ;;  %v12054_v26 = vld [vmem:[#allocation132_spill] sm:$0xff] }
 0x2a6   :  { %12043 = vst [vmem:[#allocation155_spill] sm:$0xff] %v9950_v14  ;;  %v9954_v28 = vmax.f32 %v12044_v23, 0.0  ;;  %v4536_v2 = vsub.f32 %v9867_v8, %v12048_v27  ;;  %v6618_v1 = vpop.eup %6617  ;;  %v12049_v6 = vsub.f32 0.0, %v9848_v39  ;;  %v12050_v49 = vsub.f32 0.0, %v9867_v8  ;;  %v12067_v14 = vld [vmem:[#allocation25_spill] sm:$0xff] }
 0x2a7   :  { %v9965_v7 = vmax.f32 %v12046_v35, 0.0  ;;  %6629 = vpow2.f32 %v4339_v20  ;;  %v4565_v23 = vmul.f32 %v4533_v15, %v4533_v15  ;;  %v4186_v31 = vsub.f32 0.0, %v9961_v59 }
 0x2a8   :  { %v9973_v21 = vmax.f32 %v12049_v6, 0.0  ;;  %v9977_v12 = vmax.f32 %v12050_v49, 0.0  ;;  %v12051_v27 = vsub.f32 0.0, %v9924_v5  ;;  %v9985_v6 = vmul.f32 %v5153_v22, %v9723_v55  ;;  %v12056_v55 = vld [vmem:[#allocation125_spill] sm:$0xff] }
 0x2a9   :  { %v6620_v50 = vpop.eup %6619  ;;  %v4373_v49 = vadd.f32 1.0, %v6616_v25  ;;  %v4566_v16 = vmul.f32 %v4534_v34, %v4534_v34  ;;  %v4374_v20 = vadd.f32 1.0, %v6618_v1  ;;  %v4567_v15 = vmul.f32 %v4535_v54, %v4535_v54  ;;  %v12057_v22 = vld [vmem:[#allocation33_spill] sm:$0xff]  ;;  %v10005_v34 = vld [vmem:[%s11183_s0 + $0x1d0] sm:$0xff] }
 0x2aa   :  { %v4249_v53 = vand.u32 2147483647, %v12051_v27  ;;  %12052 = vst [vmem:[#allocation60_spill] sm:$0xff] %v9985_v6  ;;  %v9988_v36 = vmul.f32 %v4536_v2, %v4536_v2  ;;  %v9991_v58 = vrot.slane %v4976_v61, %v11804_v57  ;;  %v6622_v35 = vpop.eup %6621  ;;  %v4422_v38 = vmul.f32 0.6931472, %v6620_v50  ;;  %v12059_v61 = vld [vmem:[#allocation119_spill] sm:$0xff] }
 0x2ab   :  { %v9994_v48 = vmul.f32 %v4565_v23, %v12054_v26  ;;  %v9997_v27 = vrot.slane %v5087_v40, %v11804_v57  ;;  %vm12058_vm1 = vcmask 1040384   ;;  %v6624_v54 = vpop.eup %6623  ;;  %v12060_v2 = vld [vmem:[#allocation3_spill] sm:$0xff]  ;;  %v12062_v50 = vld [vmem:[#allocation126_spill] sm:$0xff]  ;;  %v4250_v33 = vand.u32 2147483647, %v4186_v31 }
 0x2ac   :  { %12053 = vst [vmem:[#allocation58_spill] sm:$0xff] %v9988_v36  ;;  %v1553_v25 = vsel %vm12058_vm1, %v12057_v22, %v12056_v55  ;;  %vm12061_vm10 = vmmov %vm12058_vm1  ;;  %v4281_v40 = vsub.f32 0.0, %v4249_v53  ;;  %6631 = vlog2.f32 %v4373_v49  ;;  %v12064_v36 = vld [vmem:[#allocation27_spill] sm:$0xff]  ;;  %v12066_v22 = vld [vmem:[#allocation26_spill] sm:$0xff] }
 0x2ad   :  { %12055 = vst [vmem:[#allocation62_spill] sm:$0xff] %v9994_v48  ;;  %v1554_v1 = vsel %vm12061_vm10, %v12060_v2, %v12059_v61  ;;  %v1586_v23 = vsel %vm11970_vm5, %v1553_v25, %v12062_v50  ;;  %v12063_v48 = vld [vmem:[#allocation131_spill] sm:$0xff]  ;;  %vm12065_vm11 = vmmov %vm12058_vm1  ;;  %v10023_v61 = vld [vmem:[%s11183_s0 + $0x1d8] sm:$0xff]  ;;  %v6626_v25 = vpop.eup %6625  ;;  %6633 = vlog2.f32 %v4374_v20  ;;  %v4424_v50 = vmul.f32 0.6931472, %v6622_v35 }
 0x2ae   :  { %v1555_v55 = vsel %vm12065_vm11, %v12064_v36, %v12063_v48  ;;  %vm12068_vm4 = vmmov %vm12058_vm1  ;;  %v1587_v41 = vsel %vm12070_vm12, %v1554_v1, %v12069_v18  ;;  %v12071_v53 = vld [vmem:[#allocation135_spill] sm:$0xff]  ;;  %v12073_v2 = vld [vmem:[#allocation124_spill] sm:$0xff]  ;;  %v4187_v48 = vsub.f32 0.0, %v10005_v34  ;;  %vm12076_vm1 = vcmask 1042432  }
 0x2af   :  { %v1556_v6 = vsel %vm12068_vm4, %v12067_v14, %v12066_v22  ;;  %v1588_v49 = vsel %vm12072_vm2, %v1555_v55, %v12071_v53  ;;  %v4426_v14 = vmul.f32 0.6931472, %v6624_v54  ;;  %v4465_v22 = vadd.f32 %v4422_v38, %v9862_v60  ;;  %v12075_v18 = vld [vmem:[#allocation127_spill] sm:$0xff]  ;;  %vm12078_vm10 = vmmov %vm12076_vm1  ;;  %v12080_v35 = vld [vmem:[#allocation72_spill] sm:$0xff] }
 0x2b0   :  { %v1589_v36 = vsel %vm12074_vm13, %v1556_v6, %v12073_v2  ;;  %v1619_v1 = vsel %vm12076_vm1, %v1586_v23, %v12075_v18  ;;  %v1620_v47 = vsel %vm12078_vm10, %v1587_v41, %v12077_v4  ;;  %v4188_v20 = vsub.f32 0.0, %v10023_v61  ;;  %v12082_v60 = vld [vmem:[#allocation136_spill] sm:$0xff]  ;;  %vm12083_vm5 = vmmov %vm12076_vm1  ;;  %v12084_v23 = vld [vmem:[#allocation22_spill] sm:$0xff] }
 0x2b1   :  { %v4282_v42 = vsub.f32 0.0, %v4250_v33  ;;  %v4341_v8 = vmul.f32 1.442695, %v4281_v40  ;;  %v4428_v55 = vmul.f32 0.6931472, %v6626_v25  ;;  %v4497_v53 = vadd.f32 %v4465_v22, %v9747_v51  ;;  %vm12085_vm11 = vmmov %vm12076_vm1 }
 0x2b2   :  { %v10038_v6 = vmul.f32 %v4566_v16, %v9365_v9  ;;  %v10041_v54 = vmul.f32 %v4567_v15, %v12080_v35  ;;  %v1621_v38 = vsel %vm12083_vm5, %v1588_v49, %v12082_v60  ;;  %v1622_v2 = vsel %vm12085_vm11, %v1589_v36, %v12084_v23  ;;  %v6628_v33 = vpop.eup %6627  ;;  %vm12122_vm12 = vmmov %vm12068_vm4 }
 0x2b3   :  { %v4251_v4 = vand.u32 2147483647, %v4187_v48  ;;  %v4537_v41 = vsub.f32 %v9924_v5, %v1619_v1  ;;  %v4466_v40 = vadd.f32 %v4424_v50, %v9909_v29  ;;  %v10050_v51 = vadd.f32 %v4426_v14, %v9913_v24  ;;  %vm12128_vm13 = vmmov %vm12072_vm2 }
 0x2b4   :  { %12079 = vst [vmem:[#allocation132_spill] sm:$0xff] %v10038_v6  ;;  %12081 = vst [vmem:[#allocation125_spill] sm:$0xff] %v10041_v54  ;;  %v12086_v16 = vsub.f32 0.0, %v9924_v5  ;;  %v4538_v15 = vsub.f32 %v9961_v59, %v1620_v47  ;;  %v6630_v18 = vpop.eup %6629  ;;  %v5010_v49 = vmul.f32 %v9935_v46, %v4465_v22  ;;  %v4252_v60 = vand.u32 2147483647, %v4188_v20 }
 0x2b5   :  { %6635 = vpow2.f32 %v4341_v8  ;;  %v4343_v36 = vmul.f32 1.442695, %v4282_v42  ;;  %v10059_v1 = vadd.f32 %v4428_v55, %v9917_v56  ;;  %v4498_v29 = vadd.f32 %v4466_v40, %v9761_v3  ;;  %vm12131_vm1 = vmmov %vm12068_vm4 }
 0x2b6   :  { %v10054_v25 = vmax.f32 %v12086_v16, 0.0  ;;  %v4499_v24 = vadd.f32 %v10050_v51, %v9766_v17  ;;  %v5122_v5 = vmul.f32 %v9946_v45, %v4497_v53  ;;  %v4375_v50 = vadd.f32 1.0, %v6628_v33  ;;  %vm12137_vm10 = vmmov %vm12072_vm2 }
 0x2b7   :  { %v10065_v14 = vmax.f32 %v4186_v31, 0.0  ;;  %v4283_v47 = vsub.f32 0.0, %v4251_v4  ;;  %v4539_v59 = vsub.f32 %v10005_v34, %v1621_v38  ;;  %v4500_v8 = vadd.f32 %v10059_v1, %v9771_v30  ;;  %vm12141_vm5 = vmmov %vm12131_vm1 }
 0x2b8   :  { %v4376_v42 = vadd.f32 1.0, %v6630_v18  ;;  %v4540_v56 = vsub.f32 %v10023_v61, %v1622_v2  ;;  %v4569_v55 = vmul.f32 %v4537_v41, %v4537_v41  ;;  %v5011_v3 = vmul.f32 %v9935_v46, %v4466_v40  ;;  %vm12143_vm11 = vmmov %vm12072_vm2 }
 0x2b9   :  { %12087 = vst [vmem:[#allocation33_spill] sm:$0xff] %v10065_v14  ;;  %v5012_v17 = vmul.f32 %v9935_v46, %v10050_v51  ;;  %v4284_v23 = vsub.f32 0.0, %v4252_v60  ;;  %v4570_v53 = vmul.f32 %v4538_v15, %v4538_v15  ;;  %v5123_v31 = vmul.f32 %v9946_v45, %v4498_v29  ;;  %v6632_v34 = vpop.eup %6631 }
 0x2ba   :  { %v5124_v4 = vmul.f32 %v9946_v45, %v4499_v24  ;;  %v5154_v33 = vadd.f32 %v5122_v5, %v5010_v49  ;;  %6637 = vpow2.f32 %v4343_v36  ;;  %v10077_v30 = vmul.f32 %v4465_v22, %v9857_v62  ;;  %v6634_v2 = vpop.eup %6633 }
 0x2bb   :  { %v5013_v61 = vmul.f32 %v9935_v46, %v10059_v1  ;;  %6639 = vlog2.f32 %v4375_v50  ;;  %v4345_v38 = vmul.f32 1.442695, %v4283_v47  ;;  %v5125_v41 = vmul.f32 %v9946_v45, %v4500_v8  ;;  %v10095_v45 = vld [vmem:[%s11183_s0 + $0x20] sm:$0xff] }
 0x2bc   :  { %6641 = vlog2.f32 %v4376_v42  ;;  %v4571_v16 = vmul.f32 %v4539_v59, %v4539_v59  ;;  %v4601_v15 = vmul.f32 %v4569_v55, %v9482_v52  ;;  %v10084_v18 = vmul.f32 %v4466_v40, %v9839_v13  ;;  %v12089_v59 = vld [vmem:[#allocation55_spill] sm:$0xff] }
 0x2bd   :  { %v10086_v49 = vmax.f32 %v4187_v48, 0.0  ;;  %v4572_v60 = vmul.f32 %v4540_v56, %v4540_v56  ;;  %v4602_v22 = vmul.f32 %v4570_v53, %v9475_v32  ;;  %v5155_v36 = vadd.f32 %v5123_v31, %v5011_v3 }
 0x2be   :  { %v5156_v29 = vadd.f32 %v5124_v4, %v5012_v17  ;;  %v10090_v46 = vmul.f32 %v5154_v33, %v9926_v44  ;;  %v4430_v24 = vmul.f32 0.6931472, %v6632_v34  ;;  %v4432_v5 = vmul.f32 0.6931472, %v6634_v2 }
 0x2bf   :  { %v10097_v50 = vmax.f32 %v4188_v20, 0.0  ;;  %6643 = vpow2.f32 %v4345_v38  ;;  %v4347_v48 = vmul.f32 1.442695, %v4284_v23  ;;  %v5157_v47 = vadd.f32 %v5125_v41, %v5013_v61  ;;  %v10109_v20 = vld [vmem:[%s11183_s0 + $0x30] sm:$0xff] }
 0x2c0   :  { %v4603_v8 = vmul.f32 %v4571_v16, %v12089_v59  ;;  %v4802_v42 = vsel %vm4605_vm0, %v4601_v15, 0.0  ;;  %v4604_v56 = vmul.f32 %v4572_v60, %v9443_v0  ;;  %v4809_v55 = vsel %vm4605_vm0, %v4602_v22, 0.0 }
 0x2c1   :  { %12088 = vst [vmem:[#allocation119_spill] sm:$0xff] %v10097_v50  ;;  %v5230_v3 = vand.u32 2147483647, %v10095_v45  ;;  %v10112_v23 = vmul.f32 %v5155_v36, %v9928_v43  ;;  %v10115_v53 = vmul.f32 %v5156_v29, %v9932_v19  ;;  %v4469_v4 = vadd.f32 %v4430_v24, %v9954_v28  ;;  %v10137_v36 = vld [vmem:[%s11183_s0 + $0x28] sm:$0xff] }
 0x2c2   :  { %v6636_v17 = vpop.eup %6635  ;;  %v4470_v33 = vadd.f32 %v4432_v5, %v9965_v7  ;;  %6645 = vpow2.f32 %v4347_v48  ;;  %v4803_v34 = vrot.slane %v4802_v42, 4  ;;  %v10121_v38 = vmul.f32 %v5157_v47, %v9930_v10 }
 0x2c3   :  { %v5262_v61 = vsub.f32 0.0, %v5230_v3  ;;  %v4810_v2 = vrot.slane %v4809_v55, 4  ;;  %v4816_v41 = vsel %vm4605_vm0, %v4603_v8, 0.0  ;;  %v5232_v43 = vand.u32 2147483647, %v10109_v20  ;;  %v10150_v3 = vld [vmem:[%s11183_s0 + $0x38] sm:$0xff] }
 0x2c4   :  { %v4501_v19 = vadd.f32 %v4469_v4, %v9816_v11  ;;  %v4377_v16 = vadd.f32 1.0, %v6636_v17  ;;  %v10127_v15 = vsel %vm4605_vm0, %v4604_v56, 0.0  ;;  %v10131_v60 = vmul.f32 %v4469_v4, %v12054_v26  ;;  %v10162_v11 = vld [vmem:[%s11183_s0 + $0x60] sm:$0xff] }
 0x2c5   :  { %12090 = vst [vmem:[#allocation3_spill] sm:$0xff] %v10127_v15  ;;  %v5294_v28 = vmul.f32 1.442695, %v5262_v61  ;;  %v4502_v10 = vadd.f32 %v4470_v33, %v9821_v63  ;;  %v5264_v22 = vsub.f32 0.0, %v5232_v43  ;;  %v10141_v24 = vmul.f32 %v4470_v33, %v9365_v9  ;;  %v5096_v43 = vpop.permute.xlu0 %5095  ;;  %v12108_v15 = vld [vmem:[#allocation64_spill] sm:$0xff] }
 0x2c6   :  { %12091 = vst [vmem:[#allocation126_spill] sm:$0xff] %v10131_v60  ;;  %v10143_v5 = vadd.f32 %v4803_v34, %v4802_v42  ;;  %v4817_v48 = vrot.slane %v4816_v41, 4  ;;  %v5014_v8 = vmul.f32 %v9991_v58, %v4469_v4  ;;  %v5126_v61 = vmul.f32 %v9997_v27, %v4501_v19 }
 0x2c7   :  { %v6638_v29 = vpop.eup %6637  ;;  %12092 = vst [vmem:[#allocation131_spill] sm:$0xff] %v10141_v24  ;;  %6647 = vpow2.f32 %v5294_v28  ;;  %v5298_v56 = vmul.f32 1.442695, %v5264_v22  ;;  %v10153_v42 = vadd.f32 %v4810_v2, %v4809_v55  ;;  %v5231_v34 = vand.u32 2147483647, %v10137_v36  ;;  %v4984_v22 = vpop.permute.xlu1 %4983 }
 0x2c8   :  { %12093 = vst [vmem:[#allocation27_spill] sm:$0xff] %v10143_v5  ;;  %v6640_v47 = vpop.eup %6639  ;;  %6649 = vlog2.f32 %v4377_v16  ;;  %v5015_v4 = vmul.f32 %v9991_v58, %v4470_v33  ;;  %v5127_v28 = vmul.f32 %v9997_v27, %v4502_v10  ;;  %v2326_v55 = vpop.f32.mrf.mxu0  ;;  %v5233_v7 = vand.u32 2147483647, %v10150_v3 }
 0x2c9   :  { %v6642_v17 = vpop.eup %6641  ;;  %12094 = vst [vmem:[#allocation26_spill] sm:$0xff] %v10153_v42  ;;  %6651 = vpow2.f32 %v5298_v56  ;;  %v4434_v19 = vmul.f32 0.6931472, %v6640_v47  ;;  %v5263_v2 = vsub.f32 0.0, %v5231_v34  ;;  %v4378_v44 = vadd.f32 1.0, %v6638_v29  ;;  %v10177_v34 = vld [vmem:[%s11183_s0 + $0x70] sm:$0xff] }
 0x2ca   :  { %v4436_v33 = vmul.f32 0.6931472, %v6642_v17  ;;  %v10166_v63 = vadd.f32 %v4817_v48, %v4816_v41  ;;  %v10169_v10 = vrot.slane %v5096_v43, %v11804_v57  ;;  %v5158_v56 = vadd.f32 %v5126_v61, %v5014_v8  ;;  %v2397_v41 = vpop.f32.mrf.mxu1 }
 0x2cb   :  { %v10172_v40 = vrot.slane %v4984_v22, %v11804_v57  ;;  %v5296_v0 = vmul.f32 1.442695, %v5263_v2  ;;  %v5265_v47 = vsub.f32 0.0, %v5233_v7  ;;  %v5159_v16 = vadd.f32 %v5127_v28, %v5015_v4  ;;  %v10187_v7 = vld [vmem:[%s11183_s0 + $0x68] sm:$0xff]  ;;  %v12101_v22 = vld [vmem:[#allocation148_spill] sm:$0xff] }
 0x2cc   :  { %v6644_v31 = vpop.eup %6643  ;;  %12095 = vst [vmem:[#allocation25_spill] sm:$0xff] %v10166_v63  ;;  %12096 = vst [vmem:[#allocation121_spill] sm:$0xff] %v10169_v10  ;;  %v3907_v32 = vmin.f32 %v2326_v55, 1.0  ;;  %v5234_v48 = vand.u32 2147483647, %v10162_v11  ;;  %v10182_v17 = vadd.f32 %v4434_v19, %v9973_v21  ;;  %v10190_v43 = vadd.f32 %v4436_v33, %v9977_v12  ;;  %v2328_v55 = vpop.f32.mrf.mxu0 }
 0x2cd   :  { %12097 = vst [vmem:[#allocation135_spill] sm:$0xff] %v10172_v40  ;;  %v4379_v8 = vadd.f32 1.0, %v6644_v31  ;;  %6653 = vpow2.f32 %v5296_v0  ;;  %v5300_v57 = vmul.f32 1.442695, %v5265_v47  ;;  %v5236_v28 = vand.u32 2147483647, %v10177_v34 }
 0x2ce   :  { %12098 = vst [vmem:[#allocation124_spill] sm:$0xff] %v10182_v17  ;;  %12099 = vst [vmem:[#allocation127_spill] sm:$0xff] %v10190_v43  ;;  %6655 = vlog2.f32 %v4378_v44  ;;  %v5266_v4 = vsub.f32 0.0, %v5234_v48  ;;  %v4503_v21 = vadd.f32 %v10182_v17, %v9848_v39  ;;  %v10196_v31 = vmul.f32 %v5158_v56, %v9486_v37  ;;  %v12102_v44 = vld [vmem:[#allocation17_spill] sm:$0xff]  ;;  %v2399_v56 = vpop.f32.mrf.mxu1  ;;  %v2541_v29 = vpop.f32.mrf.mxu0  ;;  %v12120_v40 = vld [vmem:[#allocation34_spill] sm:$0xff] }
 0x2cf   :  { %v6646_v61 = vpop.eup %6645  ;;  %v3909_v0 = vmin.f32 %v2397_v41, 1.0  ;;  %6657 = vpow2.f32 %v5300_v57  ;;  %v4504_v19 = vadd.f32 %v10190_v43, %v12101_v22  ;;  %v5268_v47 = vsub.f32 0.0, %v5236_v28 }
 0x2d0   :  { %12100 = vst [vmem:[#allocation122_spill] sm:$0xff] %v10196_v31  ;;  %v5302_v2 = vmul.f32 1.442695, %v5266_v4  ;;  %v5235_v12 = vand.u32 2147483647, %v10187_v7  ;;  %v10202_v33 = vmul.f32 %v5159_v16, %v12102_v44  ;;  %v4380_v48 = vadd.f32 1.0, %v6646_v61 }
 0x2d1   :  { %6659 = vlog2.f32 %v4379_v8  ;;  %v10205_v39 = vmul.f32 %v3907_v32, %v10095_v45  ;;  %v5306_v41 = vmul.f32 1.442695, %v5268_v47  ;;  %v5016_v4 = vmul.f32 %v9991_v58, %v10182_v17 }
 0x2d2   :  { %12103 = vst [vmem:[#allocation72_spill] sm:$0xff] %v10202_v33  ;;  %6661 = vpow2.f32 %v5302_v2  ;;  %v5267_v57 = vsub.f32 0.0, %v5235_v12  ;;  %v5017_v28 = vmul.f32 %v9991_v58, %v10190_v43  ;;  %v5128_v16 = vmul.f32 %v9997_v27, %v4503_v21  ;;  %v10219_v58 = vld [vmem:[%s11183_s0 + $0x78] sm:$0xff] }
 0x2d3   :  { %v3908_v61 = vmin.f32 %v2328_v55, 1.0  ;;  %v5129_v32 = vmul.f32 %v9997_v27, %v4504_v19  ;;  %6663 = vpow2.f32 %v5306_v41  ;;  %v3910_v50 = vmin.f32 %v2399_v56, 1.0 }
 0x2d4   :  { %v6648_v22 = vpop.eup %6647  ;;  %v5304_v37 = vmul.f32 1.442695, %v5267_v57  ;;  %6665 = vlog2.f32 %v4380_v48  ;;  %v10222_v27 = vmul.f32 %v3909_v0, %v10109_v20  ;;  %v10225_v55 = vadd.f32 %v5128_v16, %v5016_v4  ;;  %v2612_v48 = vpop.f32.mrf.mxu1  ;;  %v12104_v16 = vld [vmem:[#allocation67_spill] sm:$0xff] }
 0x2d5   :  { %v6650_v8 = vpop.eup %6649  ;;  %v5358_v44 = vadd.f32 1.0, %v6648_v22  ;;  %v10228_v41 = vmul.f32 %v3908_v61, %v10137_v36  ;;  %v3911_v57 = vmin.f32 %v2541_v29, 1.0  ;;  %v10230_v56 = vadd.f32 %v5129_v32, %v5017_v28 }
 0x2d6   :  { %v6652_v2 = vpop.eup %6651  ;;  %v10237_v0 = vmul.f32 %v3910_v50, %v10150_v3  ;;  %v4606_v61 = vsel %vm4605_vm0, %v12104_v16, 0.0  ;;  %v3913_v12 = vmin.f32 %v2612_v48, 1.0  ;;  %v12107_v50 = vld [vmem:[#allocation36_spill] sm:$0xff]  ;;  %v2614_v33 = vpop.f32.mrf.mxu1 }
 0x2d7   :  { %6667 = vlog2.f32 %v5358_v44  ;;  %v5360_v21 = vadd.f32 1.0, %v6652_v2  ;;  %v5237_v44 = vand.u32 2147483647, %v10219_v58  ;;  %v10234_v2 = vmul.f32 0.6931472, %v6650_v8 }
 0x2d8   :  { %6669 = vpow2.f32 %v5304_v37  ;;  %v2543_v37 = vpop.f32.mrf.mxu0  ;;  %v4607_v32 = vrot.slane %v4606_v61, 4  ;;  %v10247_v19 = vmul.f32 %v3911_v57, %v10162_v11  ;;  %v4576_v4 = vmul.f32 %v12108_v15, %v12107_v50 }
 0x2d9   :  { %6671 = vlog2.f32 %v5360_v21  ;;  %v5269_v28 = vsub.f32 0.0, %v5237_v44  ;;  %v12105_v21 = vld [vmem:[#allocation38_spill] sm:$0xff]  ;;  %v12109_v44 = vld [vmem:[#allocation137_spill] sm:$0xff]  ;;  %v3912_v5 = vmin.f32 %v2543_v37, 1.0  ;;  %v10255_v57 = vmul.f32 %v3913_v12, %v10177_v34 }
 0x2da   :  { %v6654_v29 = vpop.eup %6653  ;;  %v4613_v47 = vsel %vm4605_vm0, %v12105_v21, 0.0  ;;  %v4608_v59 = vadd.f32 %v4607_v32, %v4606_v61  ;;  %v4620_v42 = vsel %vm4605_vm0, %v12109_v44, 0.0  ;;  %v4627_v32 = vsel %vm4605_vm0, %v4576_v4, 0.0  ;;  %v12112_v4 = vld [vmem:[#allocation59_spill] sm:$0xff] }
 0x2db   :  { %v10244_v22 = vpop.eup %6655  ;;  %v5359_v8 = vadd.f32 1.0, %v6654_v29  ;;  %v4614_v14 = vrot.slane %v4613_v47, 4  ;;  %v5308_v48 = vmul.f32 1.442695, %v5269_v28  ;;  %v4621_v31 = vrot.slane %v4620_v42, 4 }
 0x2dc   :  { %12106 = vst [vmem:[#allocation136_spill] sm:$0xff] %v10244_v22  ;;  %v6658_v52 = vpop.eup %6657  ;;  %v4609_v15 = vrot.slane %v4608_v59, 2  ;;  %v4628_v37 = vrot.slane %v4627_v32, 4  ;;  %v10262_v12 = vmul.f32 %v3912_v5, %v10187_v7 }
 0x2dd   :  { %6673 = vlog2.f32 %v5359_v8  ;;  %v5361_v21 = vadd.f32 1.0, %v6658_v52  ;;  %v4615_v22 = vadd.f32 %v4614_v14, %v4613_v47  ;;  %v4622_v52 = vadd.f32 %v4621_v31, %v4620_v42  ;;  %v12111_v31 = vld [vmem:[#allocation39_spill] sm:$0xff] }
 0x2de   :  { %v6660_v29 = vpop.eup %6659  ;;  %6675 = vpow2.f32 %v5308_v48  ;;  %v4610_v8 = vadd.f32 %v4609_v15, %v4608_v59  ;;  %v3914_v48 = vmin.f32 %v2614_v33, 1.0  ;;  %v4629_v42 = vadd.f32 %v4628_v37, %v4627_v32  ;;  %v12113_v32 = vld [vmem:[#allocation54_spill] sm:$0xff] }
 0x2df   :  { %v6662_v24 = vpop.eup %6661  ;;  %6677 = vlog2.f32 %v5361_v21  ;;  %v4616_v61 = vrot.slane %v4615_v22, 2  ;;  %v10259_v47 = vmul.f32 0.6931472, %v6660_v29  ;;  %v4623_v63 = vrot.slane %v4622_v52, 2 }
 0x2e0   :  { %v5362_v44 = vadd.f32 1.0, %v6662_v24  ;;  %v6664_v14 = vpop.eup %6663  ;;  %v4611_v28 = vrot.slane %v4610_v8, 1  ;;  %v10269_v29 = vmul.f32 %v12112_v4, %v12111_v31  ;;  %v4630_v24 = vrot.slane %v4629_v42, 2 }
 0x2e1   :  { %v4617_v16 = vadd.f32 %v4616_v61, %v4615_v22  ;;  %v10264_v60 = vpop.eup %6665  ;;  %v5364_v21 = vadd.f32 1.0, %v6664_v14  ;;  %v4624_v22 = vadd.f32 %v4623_v63, %v4622_v52  ;;  %v10274_v61 = vld [vmem:[%s11183_s0 + $0xa0] sm:$0xff]  ;;  %v10278_v37 = vmul.f32 %v12113_v32, %v12107_v50 }
 0x2e2   :  { %12110 = vst [vmem:[#allocation22_spill] sm:$0xff] %v10264_v60  ;;  %6679 = vlog2.f32 %v5362_v44  ;;  %v4612_v33 = vadd.f32 %v4611_v28, %v4610_v8  ;;  %v12114_v4 = vmax.f32 %v10095_v45, 0.0  ;;  %v10283_v28 = vmul.f32 %v3914_v48, %v10219_v58  ;;  %v12116_v48 = vld [vmem:[#allocation130_spill] sm:$0xff] }
 0x2e3   :  { %v4618_v59 = vrot.slane %v4617_v16, 1  ;;  %6681 = vlog2.f32 %v5364_v21  ;;  %v4625_v63 = vrot.slane %v4624_v22, 1  ;;  %v4631_v8 = vadd.f32 %v4630_v24, %v4629_v42  ;;  %v2756_v21 = vpop.f32.mrf.mxu0  ;;  %v12117_v24 = vld [vmem:[#allocation28_spill] sm:$0xff] }
 0x2e4   :  { %v6668_v43 = vpop.eup %6667  ;;  %v4830_v52 = vmul.f32 5.0, %v4612_v33  ;;  %v5808_v45 = vrot.slane %v10269_v29, 3  ;;  %v3915_v10 = vmin.f32 %v2756_v21, 1.0  ;;  %v12123_v21 = vmax.f32 %v10137_v36, 0.0 }
 0x2e5   :  { %v6670_v15 = vpop.eup %6669  ;;  %v5391_v5 = vmul.f32 0.6931472, %v6668_v43  ;;  %v4619_v60 = vadd.f32 %v4618_v59, %v4617_v16  ;;  %v12115_v59 = vmax.f32 %v10109_v20, 0.0 }
 0x2e6   :  { %v6672_v44 = vpop.eup %6671  ;;  %v5363_v14 = vadd.f32 1.0, %v6670_v15  ;;  %v5238_v15 = vand.u32 2147483647, %v10274_v61 }
 0x2e7   :  { %v5454_v17 = vadd.f32 %v5391_v5, %v12114_v4  ;;  %v5395_v43 = vmul.f32 0.6931472, %v6672_v44  ;;  %v4831_v54 = vmul.f32 5.0, %v4619_v60  ;;  %v4626_v5 = vadd.f32 %v4625_v63, %v4624_v22  ;;  %v12118_v60 = vld [vmem:[#allocation101_spill] sm:$0xff] }
 0x2e8   :  { %6683 = vlog2.f32 %v5363_v14  ;;  %v5270_v6 = vsub.f32 0.0, %v5238_v15 }
 0x2e9   :  { %v5518_v16 = vsub.f32 %v5454_v17, %v10205_v39  ;;  %v5456_v32 = vadd.f32 %v5395_v43, %v12115_v59  ;;  %v4632_v43 = vrot.slane %v4631_v8, 1  ;;  %v12119_v59 = vrot.slane %v12118_v60, 3  ;;  %v12124_v17 = vld [vmem:[#allocation35_spill] sm:$0xff] }
 0x2ea   :  { %v6674_v14 = vpop.eup %6673  ;;  %v5310_v22 = vmul.f32 1.442695, %v5270_v6  ;;  %v12125_v9 = vrot.slane %v12124_v17, 2 }
 0x2eb   :  { %v5550_v42 = vmul.f32 %v5518_v16, %v12117_v24  ;;  %v5520_v33 = vsub.f32 %v5456_v32, %v10222_v27  ;;  %v6676_v39 = vpop.eup %6675  ;;  %v5393_v20 = vmul.f32 0.6931472, %v6674_v14  ;;  %v5966_v29 = vsel %vm12068_vm4, %v4830_v52, %v12119_v59  ;;  %v12126_v59 = vld [vmem:[#allocation40_spill] sm:$0xff] }
 0x2ec   :  { %v6678_v63 = vpop.eup %6677  ;;  %v5365_v4 = vadd.f32 1.0, %v6676_v39  ;;  %v12121_v16 = vrot.slane %v12120_v40, 3  ;;  %v4832_v14 = vmul.f32 5.0, %v4626_v5  ;;  %v10307_v60 = vsel %vm12072_vm2, %v5966_v29, %v12125_v9  ;;  %v12130_v29 = vld [vmem:[#allocation37_spill] sm:$0xff] }
 0x2ed   :  { %v5582_v44 = vrot.slane %v5550_v42, 4  ;;  %v5552_v15 = vmul.f32 %v5520_v33, %v12111_v31  ;;  %v5455_v32 = vadd.f32 %v5393_v20, %v12123_v21  ;;  %v5397_v24 = vmul.f32 0.6931472, %v6678_v63 }
 0x2ee   :  { %v5967_v27 = vsel %vm12122_vm12, %v4831_v54, %v12121_v16  ;;  %6685 = vlog2.f32 %v5365_v4  ;;  %v12127_v31 = vrot.slane %v12126_v59, 2  ;;  %v10317_v54 = vld [vmem:[%s11183_s0 + $0xb0] sm:$0xff]  ;;  %v12129_v5 = vmax.f32 %v10150_v3, 0.0 }
 0x2ef   :  { %v5583_v6 = vadd.f32 %v5582_v44, %v5550_v42  ;;  %v5594_v52 = vrot.slane %v5552_v15, 4  ;;  %v6680_v40 = vpop.eup %6679  ;;  %v5519_v36 = vsub.f32 %v5455_v32, %v10228_v41  ;;  %v4633_v17 = vadd.f32 %v4632_v43, %v4631_v8 }
 0x2f0   :  { %v10312_v33 = vsel %vm12128_vm13, %v5967_v27, %v12127_v31  ;;  %v5457_v9 = vadd.f32 %v5397_v24, %v12129_v5  ;;  %6687 = vpow2.f32 %v5310_v22  ;;  %v5399_v42 = vmul.f32 0.6931472, %v6680_v40  ;;  %v6682_v20 = vpop.eup %6681  ;;  %v2827_v5 = vpop.f32.mrf.mxu1 }
 0x2f1   :  { %v5584_v44 = vrot.slane %v5583_v6, 2  ;;  %v5595_v4 = vadd.f32 %v5594_v52, %v5552_v15  ;;  %v10323_v39 = vmul.f32 %v3915_v10, %v10274_v61  ;;  %v5551_v63 = vmul.f32 %v5519_v36, %v12130_v29 }
 0x2f2   :  { %v5521_v16 = vsub.f32 %v5457_v9, %v10237_v0  ;;  %v5968_v27 = vsel %vm12131_vm1, %v4832_v14, %v5808_v45  ;;  %v5240_v41 = vand.u32 2147483647, %v10317_v54  ;;  %v12132_v8 = vmax.f32 %v10162_v11, 0.0 }
 0x2f3   :  { %v5585_v21 = vadd.f32 %v5584_v44, %v5583_v6  ;;  %v5596_v3 = vrot.slane %v5595_v4, 2  ;;  %v5403_v22 = vmul.f32 0.6931472, %v6682_v20  ;;  %v5588_v15 = vrot.slane %v5551_v63, 4  ;;  %v12134_v44 = vld [vmem:[#allocation129_spill] sm:$0xff] }
 0x2f4   :  { %v5458_v43 = vadd.f32 %v5399_v42, %v12132_v8  ;;  %v5553_v32 = vmul.f32 %v5521_v16, %v12107_v50  ;;  %v4833_v10 = vmul.f32 5.0, %v4633_v17  ;;  %v5272_v24 = vsub.f32 0.0, %v5240_v41  ;;  %v12135_v17 = vld [vmem:[#allocation128_spill] sm:$0xff] }
 0x2f5   :  { %v6684_v52 = vpop.eup %6683  ;;  %v5586_v59 = vrot.slane %v5585_v21, 1  ;;  %v5597_v31 = vadd.f32 %v5596_v3, %v5595_v4  ;;  %v12133_v45 = vmax.f32 %v10177_v34, 0.0  ;;  %v5589_v40 = vadd.f32 %v5588_v15, %v5551_v63  ;;  %v12139_v3 = vld [vmem:[#allocation133_spill] sm:$0xff] }
 0x2f6   :  { %v5522_v0 = vsub.f32 %v5458_v43, %v10247_v19  ;;  %v5600_v6 = vrot.slane %v5553_v32, 4  ;;  %v5401_v36 = vmul.f32 0.6931472, %v6684_v52  ;;  %v5314_v11 = vmul.f32 1.442695, %v5272_v24 }
 0x2f7   :  { %v5460_v14 = vadd.f32 %v5403_v22, %v12133_v45  ;;  %v5598_v9 = vrot.slane %v5597_v31, 1  ;;  %v12136_v20 = vrot.slane %v12135_v17, 2  ;;  %v5590_v4 = vrot.slane %v5589_v40, 2 }
 0x2f8   :  { %v5554_v42 = vmul.f32 %v5522_v0, %v12134_v44  ;;  %v5601_v16 = vadd.f32 %v5600_v6, %v5553_v32  ;;  %v12138_v19 = vmax.f32 %v10187_v7, 0.0  ;;  %6689 = vpow2.f32 %v5314_v11  ;;  %v12144_v6 = vld [vmem:[#allocation32_spill] sm:$0xff] }
 0x2f9   :  { %v5524_v50 = vsub.f32 %v5460_v14, %v10255_v57  ;;  %v6000_v29 = vsel %vm12137_vm10, %v5968_v27, %v12136_v20  ;;  %v5587_v63 = vadd.f32 %v5586_v59, %v5585_v21  ;;  %v3917_v43 = vmin.f32 %v2827_v5, 1.0  ;;  %vm12163_vm10 = vmmov %vm12131_vm1 }
 0x2fa   :  { %v5459_v34 = vadd.f32 %v5401_v36, %v12138_v19  ;;  %v5606_v41 = vrot.slane %v5554_v42, 4  ;;  %v5591_v22 = vadd.f32 %v5590_v4, %v5589_v40  ;;  %v5602_v15 = vrot.slane %v5601_v16, 2 }
 0x2fb   :  { %v5556_v8 = vmul.f32 %v5524_v50, %v12139_v3  ;;  %v12140_v57 = vrot.slane %v10278_v37, 3  ;;  %v5599_v32 = vadd.f32 %v5598_v9, %v5597_v31  ;;  %v12142_v7 = vrot.slane %v12116_v48, 2  ;;  %v6686_v21 = vpop.eup %6685 }
 0x2fc   :  { %v5523_v24 = vsub.f32 %v5459_v34, %v10262_v12  ;;  %v5607_v27 = vadd.f32 %v5606_v41, %v5554_v42  ;;  %v5592_v59 = vrot.slane %v5591_v22, 1  ;;  %v5603_v14 = vadd.f32 %v5602_v15, %v5601_v16  ;;  %v10355_v12 = vld [vmem:[%s11183_s0 + $0xa8] sm:$0xff] }
 0x2fd   :  { %v5969_v52 = vsel %vm12141_vm5, %v4833_v10, %v12140_v57  ;;  %v5618_v0 = vrot.slane %v5556_v8, 4  ;;  %v5208_v40 = vmax.f32 %v10317_v54, 0.0  ;;  %v6688_v37 = vpop.eup %6687  ;;  %v5405_v31 = vmul.f32 0.6931472, %v6686_v21  ;;  %vm12167_vm5 = vmmov %vm12143_vm11 }
 0x2fe   :  { %v6001_v45 = vsel %vm12143_vm11, %v5969_v52, %v12142_v7  ;;  %v5555_v36 = vmul.f32 %v5523_v24, %v12144_v6  ;;  %v5608_v10 = vrot.slane %v5607_v27, 2  ;;  %vm12145_vm4 = vcmask 1042432   ;;  %v10368_v24 = vpop.f32.mrf.mxu0  ;;  %vm12170_vm11 = vmmov %vm12167_vm5 }
 0x2ff   :  { %v5619_v5 = vadd.f32 %v5618_v0, %v5556_v8  ;;  %v6030_v48 = vsel %vm12145_vm4, %v10307_v60, %v5587_v63  ;;  %v5593_v11 = vadd.f32 %v5592_v59, %v5591_v22  ;;  %v5604_v42 = vrot.slane %v5603_v14, 1  ;;  %vm12147_vm12 = vmmov %vm12145_vm4  ;;  %v10374_v0 = vld [vmem:[%s11183_s0 + $0xb8] sm:$0xff] }
 0x300   :  { %v5612_v9 = vrot.slane %v5555_v36, 4  ;;  %v5366_v50 = vadd.f32 1.0, %v6688_v37  ;;  %v12146_v20 = vmax.f32 %v10219_v58, 0.0  ;;  %v6032_v16 = vsel %vm12147_vm12, %v6000_v29, %v5599_v32  ;;  %vm12148_vm2 = vmmov %vm12145_vm4 }
 0x301   :  { %v5620_v17 = vrot.slane %v5619_v5, 2  ;;  %v5239_v19 = vand.u32 2147483647, %v10355_v12  ;;  %v5605_v41 = vadd.f32 %v5604_v42, %v5603_v14  ;;  %v6031_v8 = vsel %vm12148_vm2, %v10312_v33, %v5593_v11  ;;  %vm12149_vm13 = vmmov %vm12148_vm2 }
 0x302   :  { %v5461_v4 = vadd.f32 %v5405_v31, %v12146_v20  ;;  %v5613_v34 = vadd.f32 %v5612_v9, %v5555_v36  ;;  %6691 = vlog2.f32 %v5366_v50  ;;  %v5609_v15 = vadd.f32 %v5608_v10, %v5607_v27  ;;  %v12150_v27 = vld [vmem:[#allocation134_spill] sm:$0xff]  ;;  %vm12171_vm4 = vmmov %vm12131_vm1 }
 0x303   :  { %v6062_v63 = vsel %vm4605_vm0, %v6030_v48, 0.0  ;;  %v6063_v22 = vsel %vm4605_vm0, %v6031_v8, 0.0  ;;  %v6033_v29 = vsel %vm12149_vm13, %v6001_v45, %v5605_v41  ;;  %v5271_v52 = vsub.f32 0.0, %v5239_v19  ;;  %v12153_v19 = vld [vmem:[#allocation53_spill] sm:$0xff]  ;;  %vm12172_vm12 = vmmov %vm12148_vm2 }
 0x304   :  { %v5525_v60 = vsub.f32 %v5461_v4, %v10283_v28  ;;  %v5614_v58 = vrot.slane %v5613_v34, 2  ;;  %v6064_v57 = vadd.f32 %v6063_v22, %v6062_v63  ;;  %v5621_v33 = vadd.f32 %v5620_v17, %v5619_v5  ;;  %v12151_v17 = vld [vmem:[#allocation57_spill] sm:$0xff]  ;;  %vm12176_vm13 = vmmov %vm12167_vm5 }
 0x305   :  { %v6065_v28 = vsel %vm4605_vm0, %v6032_v16, 0.0  ;;  %v10379_v7 = vmul.f32 %v3917_v43, %v10317_v54  ;;  %v3916_v14 = vmin.f32 %v10368_v24, 1.0  ;;  %v5312_v45 = vmul.f32 1.442695, %v5271_v52  ;;  %v6690_v36 = vpop.eup %6689  ;;  %v12155_v8 = vld [vmem:[#allocation61_spill] sm:$0xff]  ;;  %v10455_v54 = vld [vmem:[%s11183_s0 + $0xe8] sm:$0xff] }
 0x306   :  { %v5557_v32 = vmul.f32 %v5525_v60, %v12150_v27  ;;  %v5615_v21 = vadd.f32 %v5614_v58, %v5613_v34  ;;  %v6066_v59 = vadd.f32 %v6065_v28, %v6064_v57  ;;  %v6067_v10 = vsel %vm4605_vm0, %v6033_v29, 0.0  ;;  %v12156_v29 = vld [vmem:[#allocation31_spill] sm:$0xff] }
 0x307   :  { %v5241_v5 = vand.u32 2147483647, %v10374_v0  ;;  %v5610_v48 = vrot.slane %v5609_v15, 1  ;;  %v5368_v9 = vadd.f32 1.0, %v6690_v36  ;;  %6693 = vpow2.f32 %v5312_v45  ;;  %v12159_v36 = vld [vmem:[#allocation21_spill] sm:$0xff] }
 0x308   :  { %v5624_v37 = vrot.slane %v5557_v32, 4  ;;  %v6068_v11 = vadd.f32 %v6067_v10, %v6066_v59  ;;  %v5622_v42 = vrot.slane %v5621_v33, 1  ;;  %v12152_v20 = vrot.slane %v12151_v17, 2  ;;  %v12158_v59 = vld [vmem:[#allocation75_spill] sm:$0xff] }
 0x309   :  { %v5273_v50 = vsub.f32 0.0, %v5241_v5  ;;  %v5616_v16 = vrot.slane %v5615_v21, 1  ;;  %6695 = vlog2.f32 %v5368_v9  ;;  %v12154_v34 = vrot.slane %v12153_v19, 2 }
 0x30a   :  { %v5625_v43 = vadd.f32 %v5624_v37, %v5557_v32  ;;  %v4638_v4 = vadd.f32 %v12152_v20, %v12151_v17  ;;  %6069 = vadd.xlane.f32.xlu1 %v6068_v11  ;;  %v4651_v60 = vrot.slane %v12155_v8, 2  ;;  %v12157_v57 = vrot.slane %v12156_v29, 4  ;;  %v12160_v20 = vld [vmem:[#allocation140_spill] sm:$0xff] }
 0x30b   :  { %v4645_v41 = vadd.f32 %v12154_v34, %v12153_v19  ;;  %v5316_v22 = vmul.f32 1.442695, %v5273_v50  ;;  %v4866_v45 = vmul.f32 %v12158_v59, %v12134_v44  ;;  %v4867_v37 = vmul.f32 %v12159_v36, %v12144_v6 }
 0x30c   :  { %v5626_v63 = vrot.slane %v5625_v43, 2  ;;  %v4639_v58 = vrot.slane %v4638_v4, 1  ;;  %v4657_v52 = vadd.f32 %v12157_v57, %v12156_v29  ;;  %v4652_v28 = vadd.f32 %v4651_v60, %v12155_v8  ;;  %v12161_v8 = vld [vmem:[#allocation41_spill] sm:$0xff] }
 0x30d   :  { %v4646_v32 = vrot.slane %v4645_v41, 1  ;;  %6697 = vpow2.f32 %v5316_v22  ;;  %v5611_v9 = vadd.f32 %v5610_v48, %v5609_v15  ;;  %v4868_v19 = vmul.f32 %v12160_v20, %v12139_v3 }
 0x30e   :  { %v5627_v10 = vadd.f32 %v5626_v63, %v5625_v43  ;;  %v4640_v5 = vadd.f32 %v4639_v58, %v4638_v4  ;;  %v4658_v11 = vrot.slane %v4657_v52, 2  ;;  %v4653_v17 = vrot.slane %v4652_v28, 1 }
 0x30f   :  { %v4647_v50 = vadd.f32 %v4646_v32, %v4645_v41  ;;  %v6692_v34 = vpop.eup %6691  ;;  %v4869_v60 = vmul.f32 %v12161_v8, %v12150_v27  ;;  %v5617_v59 = vadd.f32 %v5616_v16, %v5615_v21  ;;  %v5623_v4 = vadd.f32 %v5622_v42, %v5621_v33  ;;  %v12164_v16 = vld [vmem:[#allocation146_spill] sm:$0xff]  ;;  %v12174_v8 = vld [vmem:[#allocation120_spill] sm:$0xff] }
 0x310   :  { %v4659_v29 = vadd.f32 %v4658_v11, %v4657_v52  ;;  %v4834_v57 = vmul.f32 5.0, %v4640_v5  ;;  %v5628_v44 = vrot.slane %v5627_v10, 1  ;;  %v5407_v31 = vmul.f32 0.6931472, %v6692_v34  ;;  %v12165_v11 = vld [vmem:[#allocation118_spill] sm:$0xff] }
 0x311   :  { %v4654_v6 = vadd.f32 %v4653_v17, %v4652_v28  ;;  %v4835_v43 = vmul.f32 5.0, %v4647_v50  ;;  %v5810_v22 = vrot.slane %v4866_v45, 3  ;;  %v5811_v15 = vrot.slane %v4867_v37, 3  ;;  %v12168_v45 = vld [vmem:[#allocation13_spill] sm:$0xff] }
 0x312   :  { %v4660_v63 = vrot.slane %v4659_v29, 1  ;;  %v12162_v48 = vmax.f32 %v10274_v61, 0.0  ;;  %v5629_v3 = vadd.f32 %v5628_v44, %v5627_v10  ;;  %v5812_v32 = vrot.slane %v4868_v19, 3  ;;  %v12173_v19 = vld [vmem:[#allocation42_spill] sm:$0xff] }
 0x313   :  { %v4836_v58 = vmul.f32 5.0, %v4654_v6  ;;  %v5813_v36 = vrot.slane %v4869_v60, 3  ;;  %v5970_v5 = vsel %vm12131_vm1, %v4834_v57, %v5810_v22  ;;  %v5971_v27 = vsel %vm12163_vm10, %v4835_v43, %v5811_v15  ;;  %v2829_v57 = vpop.f32.mrf.mxu1  ;;  %v10431_v6 = vld [vmem:[%s11183_s0 + $0xe0] sm:$0xff]  ;;  %vm12177_vm10 = vmmov %vm12148_vm2 }
 0x314   :  { %v5462_v41 = vadd.f32 %v5407_v31, %v12162_v48  ;;  %v4661_v52 = vadd.f32 %v4660_v63, %v4659_v29  ;;  %v5909_v28 = vrot.slane %v12164_v16, 2  ;;  %v12166_v33 = vrot.slane %v12165_v11, 2  ;;  %v6694_v37 = vpop.eup %6693  ;;  %v2971_v48 = vpop.f32.mrf.mxu0 }
 0x315   :  { %v12169_v61 = vrot.slane %v12168_v45, 2  ;;  %v5972_v50 = vsel %vm12171_vm4, %v4836_v58, %v5812_v32  ;;  %v5367_v34 = vadd.f32 1.0, %v6694_v37  ;;  %v10423_v29 = vmul.f32 %v3916_v14, %v10355_v12  ;;  %vm12182_vm4 = vmmov %vm12131_vm1 }
 0x316   :  { %v5526_v21 = vsub.f32 %v5462_v41, %v10323_v39  ;;  %v6002_v42 = vsel %vm12167_vm5, %v5970_v5, %v12166_v33  ;;  %v4837_v10 = vmul.f32 5.0, %v4661_v52  ;;  %v12175_v60 = vrot.slane %v12174_v8, 2  ;;  %v10465_v8 = vld [vmem:[%s11183_s0 + $0xf8] sm:$0xff] }
 0x317   :  { %v6003_v31 = vsel %vm12170_vm11, %v5971_v27, %v12169_v61  ;;  %v6034_v17 = vsel %vm12172_vm12, %v6002_v42, %v5611_v9  ;;  %v6696_v9 = vpop.eup %6695  ;;  %6699 = vlog2.f32 %v5367_v34  ;;  %v3918_v41 = vmin.f32 %v2829_v57, 1.0  ;;  %vm12178_vm11 = vmmov %vm12148_vm2 }
 0x318   :  { %v6035_v20 = vsel %vm12148_vm2, %v6003_v31, %v5617_v59  ;;  %v5558_v39 = vmul.f32 %v5526_v21, %v12173_v19  ;;  %v6004_v44 = vsel %vm12176_vm13, %v5972_v50, %v12175_v60  ;;  %v5973_v59 = vsel %vm12131_vm1, %v4837_v10, %v5813_v36  ;;  %v3042_v36 = vpop.f32.mrf.mxu1  ;;  %vm12185_vm12 = vmmov %vm12131_vm1 }
 0x319   :  { %v6036_v43 = vsel %vm12177_vm10, %v6004_v44, %v5623_v4  ;;  %v6071_v63 = vsel %vm4605_vm0, %v6034_v17, 0.0  ;;  %v6072_v24 = vsel %vm4605_vm0, %v6035_v20, 0.0  ;;  %v5411_v22 = vmul.f32 0.6931472, %v6696_v9  ;;  %v10443_v4 = vld [vmem:[%s11183_s0 + $0xf0] sm:$0xff]  ;;  %v2973_v17 = vpop.f32.mrf.mxu0  ;;  %v12179_v20 = vld [vmem:[#allocation138_spill] sm:$0xff]  ;;  %vm12188_vm2 = vmmov %vm12131_vm1 }
 0x31a   :  { %v5630_v14 = vrot.slane %v5558_v39, 4  ;;  %v6005_v15 = vsel %vm12167_vm5, %v5973_v59, %v5909_v28  ;;  %v6073_v32 = vadd.f32 %v6072_v24, %v6071_v63  ;;  %v5242_v52 = vand.u32 2147483647, %v10431_v6  ;;  %v6698_v5 = vpop.eup %6697  ;;  %vm12190_vm13 = vmmov %vm12167_vm5 }
 0x31b   :  { %v6037_v58 = vsel %vm12178_vm11, %v6005_v15, %v5629_v3  ;;  %v5464_v21 = vadd.f32 %v5411_v22, %v5208_v40  ;;  %v5209_v16 = vmax.f32 %v10374_v0, 0.0  ;;  %v6074_v28 = vsel %vm4605_vm0, %v6036_v43, 0.0  ;;  %vm12193_vm1 = vmmov %vm12167_vm5 }
 0x31c   :  { %v5631_v27 = vadd.f32 %v5630_v14, %v5558_v39  ;;  %v5369_v11 = vadd.f32 1.0, %v6698_v5  ;;  %v6075_v3 = vadd.f32 %v6074_v28, %v6073_v32  ;;  %v3919_v33 = vmin.f32 %v2971_v48, 1.0  ;;  %v12181_v32 = vld [vmem:[#allocation78_spill] sm:$0xff]  ;;  %v12184_v5 = vld [vmem:[#allocation51_spill] sm:$0xff]  ;;  %vm12195_vm10 = vmmov %vm12193_vm1 }
 0x31d   :  { %v5274_v42 = vsub.f32 0.0, %v5242_v52  ;;  %v5528_v45 = vsub.f32 %v5464_v21, %v10379_v7  ;;  %v6076_v61 = vsel %vm4605_vm0, %v6037_v58, 0.0  ;;  %v3921_v31 = vmin.f32 %v3042_v36, 1.0  ;;  %v12180_v58 = vld [vmem:[#allocation85_spill] sm:$0xff]  ;;  %v12183_v36 = vld [vmem:[#allocation91_spill] sm:$0xff]  ;;  %vm12197_vm5 = vmmov %vm12193_vm1 }
 0x31e   :  { %v5244_v37 = vand.u32 2147483647, %v10443_v4  ;;  %v5632_v40 = vrot.slane %v5631_v27, 2  ;;  %6701 = vlog2.f32 %v5369_v11  ;;  %v6077_v10 = vadd.f32 %v6076_v61, %v6075_v3  ;;  %v12186_v3 = vld [vmem:[#allocation71_spill] sm:$0xff] }
 0x31f   :  { %v5318_v50 = vmul.f32 1.442695, %v5274_v42  ;;  %v5560_v39 = vmul.f32 %v5528_v45, %v12179_v20  ;;  %v10459_v34 = vmul.f32 %v3918_v41, %v10374_v0  ;;  %v5210_v7 = vmax.f32 %v10431_v6, 0.0  ;;  %v12189_v42 = vld [vmem:[#allocation23_spill] sm:$0xff] }
 0x320   :  { %v5276_v57 = vsub.f32 0.0, %v5244_v37  ;;  %6078 = vadd.xlane.f32.xlu0 %v6077_v10  ;;  %v10468_v60 = vmul.f32 %v3919_v33, %v10431_v6  ;;  %v5212_v44 = vmax.f32 %v10443_v4, 0.0  ;;  %v5243_v9 = vand.u32 2147483647, %v10455_v54  ;;  %v12187_v33 = vld [vmem:[#allocation68_spill] sm:$0xff]  ;;  %v12192_v37 = vld [vmem:[#allocation70_spill] sm:$0xff] }
 0x321   :  { %6703 = vpow2.f32 %v5318_v50  ;;  %v5642_v59 = vrot.slane %v5560_v39, 4  ;;  %v10473_v63 = vmul.f32 %v3921_v31, %v10443_v4  ;;  %v3920_v24 = vmin.f32 %v2973_v17, 1.0  ;;  %v12191_v31 = vld [vmem:[#allocation69_spill] sm:$0xff]  ;;  %v12194_v10 = vld [vmem:[#allocation92_spill] sm:$0xff] }
 0x322   :  { %v5322_v43 = vmul.f32 1.442695, %v5276_v57  ;;  %v5633_v14 = vadd.f32 %v5632_v40, %v5631_v27  ;;  %v5211_v22 = vmax.f32 %v10455_v54, 0.0  ;;  %v5275_v15 = vsub.f32 0.0, %v5243_v9  ;;  %v12196_v17 = vld [vmem:[#allocation77_spill] sm:$0xff] }
 0x323   :  { %v5245_v48 = vand.u32 2147483647, %v10465_v8  ;;  %v5643_v41 = vadd.f32 %v5642_v59, %v5560_v39  ;;  %v1533_v52 = vsel %vm12182_vm4, %v12181_v32, %v12180_v58  ;;  %v1535_v21 = vsel %vm12185_vm12, %v12184_v5, %v12183_v36  ;;  %v12198_v59 = vld [vmem:[#allocation90_spill] sm:$0xff]  ;;  %vm12200_vm4 = vmmov %vm12178_vm11  ;;  %v12201_v36 = vld [vmem:[#allocation93_spill] sm:$0xff] }
 0x324   :  { %6705 = vpow2.f32 %v5322_v43  ;;  %v5320_v28 = vmul.f32 1.442695, %v5275_v15  ;;  %v1536_v27 = vsel %vm12188_vm2, %v12187_v33, %v12186_v3  ;;  %v1566_v45 = vsel %vm12190_vm13, %v1533_v52, %v12189_v42  ;;  %v6700_v57 = vpop.eup %6699  ;;  %v12199_v15 = vld [vmem:[#allocation76_spill] sm:$0xff]  ;;  %v10499_v52 = vpop.f32.mrf.mxu1  ;;  %vm12202_vm12 = vmmov %vm12200_vm4  ;;  %v6794_v33 = vld [vmem:[%s11183_s0 + $0x88] sm:$0xff] }
 0x325   :  { %v5277_v11 = vsub.f32 0.0, %v5245_v48  ;;  %v5644_v61 = vrot.slane %v5643_v41, 2  ;;  %v1567_v40 = vsel %vm12193_vm1, %v12192_v37, %v12191_v31  ;;  %v1568_v50 = vsel %vm12195_vm10, %v1535_v21, %v12194_v10  ;;  %v12203_v21 = vld [vmem:[#allocation82_spill] sm:$0xff]  ;;  %vm12204_vm2 = vmmov %vm12200_vm4  ;;  %v6795_v42 = vld [vmem:[%s11183_s0 + $0x90] sm:$0xff] }
 0x326   :  { %v1569_v39 = vsel %vm12197_vm5, %v1536_v27, %v12196_v17  ;;  %6707 = vpow2.f32 %v5320_v28  ;;  %v1599_v43 = vsel %vm12178_vm11, %v1566_v45, %v12198_v59  ;;  %v1600_v48 = vsel %vm12200_vm4, %v1567_v40, %v12199_v15  ;;  %v6793_v28 = vld [vmem:[%s11183_s0 + $0x80] sm:$0xff]  ;;  %vm12222_vm11 = vmmov %vm12197_vm5 }
 0x327   :  { %v5324_v9 = vmul.f32 1.442695, %v5277_v11  ;;  %v5634_v58 = vrot.slane %v5633_v14, 1  ;;  %v5409_v32 = vmul.f32 0.6931472, %v6700_v57  ;;  %v1601_v5 = vsel %vm12202_vm12, %v1568_v50, %v12201_v36  ;;  %v6796_v50 = vld [vmem:[%s11183_s0 + $0x98] sm:$0xff]  ;;  %vm12225_vm4 = vmmov %vm12197_vm5 }
 0x328   :  { %v1602_v3 = vsel %vm12204_vm2, %v1569_v39, %v12203_v21  ;;  %v4517_v11 = vsub.f32 %v6793_v28, %v1599_v43  ;;  %v4518_v27 = vsub.f32 %v6794_v33, %v1600_v48  ;;  %v4519_v45 = vsub.f32 %v6795_v42, %v1601_v5  ;;  %vm12226_vm12 = vmmov %vm12204_vm2 }
 0x329   :  { %6709 = vpow2.f32 %v5324_v9  ;;  %v5645_v31 = vadd.f32 %v5644_v61, %v5643_v41  ;;  %v12205_v37 = vmax.f32 %v10355_v12, 0.0  ;;  %v10517_v10 = vmul.f32 %v3920_v24, %v10455_v54 }
 0x32a   :  { %v4520_v17 = vsub.f32 %v6796_v50, %v1602_v3  ;;  %v3922_v39 = vmin.f32 %v10499_v52, 1.0  ;;  %v4549_v57 = vmul.f32 %v4517_v11, %v4517_v11  ;;  %v4550_v9 = vmul.f32 %v4518_v27, %v4518_v27  ;;  %v12207_v11 = vld [vmem:[#allocation63_spill] sm:$0xff]  ;;  %v3257_v52 = vpop.f32.mrf.mxu1 }
 0x32b   :  { %v5463_v40 = vadd.f32 %v5409_v32, %v12205_v37  ;;  %v4551_v59 = vmul.f32 %v4519_v45, %v4519_v45  ;;  %v6702_v43 = vpop.eup %6701  ;;  %v10523_v15 = vadd.f32 %v5634_v58, %v5633_v14  ;;  %v5213_v12 = vmax.f32 %v10465_v8, 0.0  ;;  %v12206_v32 = vld [vmem:[#allocation65_spill] sm:$0xff]  ;;  %v12208_v14 = vld [vmem:[#allocation8_spill] sm:$0xff] }
 0x32c   :  { %v4552_v61 = vmul.f32 %v4520_v17, %v4520_v17  ;;  %v5413_v24 = vmul.f32 0.6931472, %v6702_v43  ;;  %v4581_v48 = vmul.f32 %v4549_v57, %v12173_v19  ;;  %v4582_v36 = vmul.f32 %v4550_v9, %v12206_v32 }
 0x32d   :  { %v5527_v41 = vsub.f32 %v5463_v40, %v10423_v29  ;;  %v4583_v5 = vmul.f32 %v4551_v59, %v12179_v20  ;;  %v5646_v3 = vrot.slane %v5645_v31, 1  ;;  %v10534_v58 = vmul.f32 %v12208_v14, %v12179_v20 }
 0x32e   :  { %v6704_v21 = vpop.eup %6703  ;;  %v4584_v33 = vmul.f32 %v4552_v61, %v12207_v11  ;;  %v5465_v29 = vadd.f32 %v5413_v24, %v5209_v16  ;;  %v4662_v19 = vsel %vm4605_vm0, %v4581_v48, 0.0  ;;  %v4669_v42 = vsel %vm4605_vm0, %v4582_v36, 0.0  ;;  %v12209_v48 = vld [vmem:[#allocation45_spill] sm:$0xff] }
 0x32f   :  { %v5559_v28 = vmul.f32 %v5527_v41, %v12206_v32  ;;  %v5370_v27 = vadd.f32 1.0, %v6704_v21  ;;  %v4663_v37 = vrot.slane %v4662_v19, 4  ;;  %v4670_v40 = vrot.slane %v4669_v42, 4 }
 0x330   :  { %v4676_v50 = vsel %vm4605_vm0, %v4583_v5, 0.0  ;;  %v5529_v57 = vsub.f32 %v5465_v29, %v10459_v34  ;;  %v4683_v20 = vsel %vm4605_vm0, %v4584_v33, 0.0  ;;  %v10546_v32 = vmul.f32 %v12209_v48, %v12207_v11 }
 0x331   :  { %v5636_v45 = vrot.slane %v5559_v28, 4  ;;  %v6706_v17 = vpop.eup %6705  ;;  %6711 = vlog2.f32 %v5370_v27  ;;  %v4677_v9 = vrot.slane %v4676_v50, 4  ;;  %v4664_v16 = vadd.f32 %v4663_v37, %v4662_v19 }
 0x332   :  { %v5372_v0 = vadd.f32 1.0, %v6706_v17  ;;  %v4671_v43 = vadd.f32 %v4670_v40, %v4669_v42  ;;  %v5561_v41 = vmul.f32 %v5529_v57, %v12207_v11  ;;  %v4684_v24 = vrot.slane %v4683_v20, 4  ;;  %v10551_v40 = vld [vmem:[%s11183_s0 + $0x120] sm:$0xff] }
 0x333   :  { %v5637_v59 = vadd.f32 %v5636_v45, %v5559_v28  ;;  %v4678_v61 = vadd.f32 %v4677_v9, %v4676_v50  ;;  %v6708_v36 = vpop.eup %6707  ;;  %v4665_v34 = vrot.slane %v4664_v16, 2  ;;  %v5647_v37 = vadd.f32 %v5646_v3, %v5645_v31 }
 0x334   :  { %6713 = vlog2.f32 %v5372_v0  ;;  %v4672_v21 = vrot.slane %v4671_v43, 2  ;;  %v5648_v14 = vrot.slane %v5561_v41, 4  ;;  %v5371_v29 = vadd.f32 1.0, %v6708_v36 }
 0x335   :  { %v5638_v5 = vrot.slane %v5637_v59, 2  ;;  %v4679_v33 = vrot.slane %v4678_v61, 2  ;;  %v4685_v28 = vadd.f32 %v4684_v24, %v4683_v20  ;;  %v4666_v42 = vadd.f32 %v4665_v34, %v4664_v16 }
 0x336   :  { %v6710_v27 = vpop.eup %6709  ;;  %v4673_v45 = vadd.f32 %v4672_v21, %v4671_v43  ;;  %v5649_v11 = vadd.f32 %v5648_v14, %v5561_v41  ;;  %6715 = vlog2.f32 %v5371_v29  ;;  %v5816_v43 = vrot.slane %v10534_v58, 3 }
 0x337   :  { %v5639_v19 = vadd.f32 %v5638_v5, %v5637_v59  ;;  %v5373_v50 = vadd.f32 1.0, %v6710_v27  ;;  %v4680_v17 = vadd.f32 %v4679_v33, %v4678_v61  ;;  %v4667_v9 = vrot.slane %v4666_v42, 1  ;;  %v10559_v61 = vld [vmem:[%s11183_s0 + $0x130] sm:$0xff]  ;;  %v12210_v33 = vld [vmem:[#allocation9_spill] sm:$0xff] }
 0x338   :  { %v4674_v0 = vrot.slane %v4673_v45, 1  ;;  %v4686_v48 = vrot.slane %v4685_v28, 2  ;;  %v5650_v36 = vrot.slane %v5649_v11, 2  ;;  %v5246_v59 = vand.u32 2147483647, %v10551_v40 }
 0x339   :  { %v5640_v57 = vrot.slane %v5639_v19, 1  ;;  %6717 = vlog2.f32 %v5373_v50  ;;  %v4681_v20 = vrot.slane %v4680_v17, 1  ;;  %v4668_v16 = vadd.f32 %v4667_v9, %v4666_v42 }
 0x33a   :  { %v4675_v31 = vadd.f32 %v4674_v0, %v4673_v45  ;;  %v4687_v3 = vadd.f32 %v4686_v48, %v4685_v28  ;;  %v5651_v24 = vadd.f32 %v5650_v36, %v5649_v11  ;;  %v5817_v41 = vrot.slane %v10546_v32, 3  ;;  %v12214_v0 = vld [vmem:[#allocation50_spill] sm:$0xff] }
 0x33b   :  { %v4682_v5 = vadd.f32 %v4681_v20, %v4680_v17  ;;  %v5278_v34 = vsub.f32 0.0, %v5246_v59  ;;  %v4838_v14 = vmul.f32 5.0, %v4668_v16  ;;  %v5913_v27 = vrot.slane %v12210_v33, 2  ;;  %v12211_v17 = vld [vmem:[#allocation100_spill] sm:$0xff] }
 0x33c   :  { %v4688_v21 = vrot.slane %v4687_v3, 1  ;;  %v4839_v29 = vmul.f32 5.0, %v4675_v31  ;;  %v5641_v42 = vadd.f32 %v5640_v57, %v5639_v19  ;;  %v5652_v28 = vrot.slane %v5651_v24, 1  ;;  %v12218_v19 = vld [vmem:[#allocation102_spill] sm:$0xff] }
 0x33d   :  { %v4840_v45 = vmul.f32 5.0, %v4682_v5  ;;  %v5326_v50 = vmul.f32 1.442695, %v5278_v34  ;;  %v12212_v9 = vrot.slane %v12211_v17, 3  ;;  %vm12213_vm13 = vcmask 1040384  }
 0x33e   :  { %v6712_v58 = vpop.eup %6711  ;;  %v4689_v11 = vadd.f32 %v4688_v21, %v4687_v3  ;;  %v12215_v48 = vrot.slane %v12214_v0, 3  ;;  %vm12216_vm1 = vmmov %vm12213_vm13  ;;  %v5248_v20 = vand.u32 2147483647, %v10559_v61  ;;  %v5653_v16 = vadd.f32 %v5652_v28, %v5651_v24  ;;  %v12220_v3 = vld [vmem:[#allocation49_spill] sm:$0xff] }
 0x33f   :  { %v5974_v32 = vsel %vm12213_vm13, %v4838_v14, %v12212_v9  ;;  %v5415_v59 = vmul.f32 0.6931472, %v6712_v58  ;;  %vm12217_vm10 = vmmov %vm12216_vm1  ;;  %v12219_v57 = vrot.slane %v12218_v19, 2  ;;  %v12221_v21 = vrot.slane %v12220_v3, 2  ;;  %v12223_v14 = vld [vmem:[#allocation83_spill] sm:$0xff] }
 0x340   :  { %v5975_v36 = vsel %vm12216_vm1, %v4839_v29, %v12215_v48  ;;  %v5976_v31 = vsel %vm12217_vm10, %v4840_v45, %v5816_v43  ;;  %v4841_v34 = vmul.f32 5.0, %v4689_v11  ;;  %v12224_v17 = vrot.slane %v12223_v14, 2  ;;  %vm12227_vm13 = vmmov %vm12204_vm2 }
 0x341   :  { %v6006_v5 = vsel %vm12197_vm5, %v5974_v32, %v12219_v57  ;;  %v6007_v33 = vsel %vm12222_vm11, %v5975_v36, %v12221_v21  ;;  %v6714_v58 = vpop.eup %6713  ;;  %v5466_v43 = vadd.f32 %v5415_v59, %v5210_v7  ;;  %v5501_v24 = vmul.f32 %v3922_v39, %v10465_v8  ;;  %vm12228_vm10 = vmmov %vm12225_vm4 }
 0x342   :  { %v6008_v9 = vsel %vm12225_vm4, %v5976_v31, %v12224_v17  ;;  %v6038_v29 = vsel %vm12226_vm12, %v6006_v5, %v10523_v15  ;;  %v6039_v45 = vsel %vm12204_vm2, %v6007_v33, %v5641_v42  ;;  %v5419_v11 = vmul.f32 0.6931472, %v6714_v58  ;;  %v3186_v15 = vpop.f32.mrf.mxu0  ;;  %vm12229_vm5 = vmmov %vm12204_vm2  ;;  %v12230_v31 = vld [vmem:[#allocation44_spill] sm:$0xff]  ;;  %v10610_v17 = vld [vmem:[%s11183_s0 + $0x138] sm:$0xff] }
 0x343   :  { %v6040_v28 = vsel %vm12227_vm13, %v6008_v9, %v5647_v37  ;;  %v5977_v32 = vsel %vm12216_vm1, %v4841_v34, %v5817_v41  ;;  %v6080_v0 = vsel %vm4605_vm0, %v6038_v29, 0.0  ;;  %v6081_v48 = vsel %vm4605_vm0, %v6039_v45, 0.0  ;;  %v6716_v39 = vpop.eup %6715  ;;  %v12231_v9 = vld [vmem:[#allocation48_spill] sm:$0xff]  ;;  %vm12236_vm11 = vmmov %vm12216_vm1 }
 0x344   :  { %v5530_v36 = vsub.f32 %v5466_v43, %v10468_v60  ;;  %v6009_v6 = vsel %vm12228_vm10, %v5977_v32, %v5913_v27  ;;  %v6082_v7 = vadd.f32 %v6081_v48, %v6080_v0  ;;  %6719 = vpow2.f32 %v5326_v50  ;;  %v10601_v60 = vld [vmem:[%s11183_s0 + $0x128] sm:$0xff]  ;;  %v3188_v3 = vpop.f32.mrf.mxu0  ;;  %v12232_v48 = vld [vmem:[#allocation141_spill] sm:$0xff]  ;;  %vm12239_vm4 = vmmov %vm12216_vm1 }
 0x345   :  { %v5468_v42 = vadd.f32 %v5419_v11, %v5212_v44  ;;  %v6041_v37 = vsel %vm12229_vm5, %v6009_v6, %v5653_v16  ;;  %v6083_v41 = vsel %vm4605_vm0, %v6040_v28, 0.0  ;;  %v5280_v59 = vsub.f32 0.0, %v5248_v20  ;;  %vm12241_vm12 = vmmov %vm12228_vm10 }
 0x346   :  { %v5562_v19 = vmul.f32 %v5530_v36, %v12230_v31  ;;  %v5417_v57 = vmul.f32 0.6931472, %v6716_v39  ;;  %v6084_v5 = vadd.f32 %v6083_v41, %v6082_v7  ;;  %v3923_v34 = vmin.f32 %v3186_v15, 1.0  ;;  %v6718_v27 = vpop.eup %6717  ;;  %vm12244_vm2 = vmmov %vm12228_vm10 }
 0x347   :  { %v5532_v50 = vsub.f32 %v5468_v42, %v10473_v63  ;;  %v6085_v4 = vsel %vm4605_vm0, %v6041_v37, 0.0  ;;  %v3925_v44 = vmin.f32 %v3257_v52, 1.0  ;;  %v5330_v16 = vmul.f32 1.442695, %v5280_v59  ;;  %v12233_v42 = vld [vmem:[#allocation145_spill] sm:$0xff]  ;;  %vm12246_vm13 = vmmov %vm12244_vm2 }
 0x348   :  { %v5654_v21 = vrot.slane %v5562_v19, 4  ;;  %v5467_v20 = vadd.f32 %v5417_v57, %v5211_v22  ;;  %v5421_v33 = vmul.f32 0.6931472, %v6718_v27  ;;  %v6086_v14 = vadd.f32 %v6085_v4, %v6084_v5  ;;  %v12235_v57 = vld [vmem:[#allocation15_spill] sm:$0xff]  ;;  %v12238_v27 = vld [vmem:[#allocation84_spill] sm:$0xff]  ;;  %vm12250_vm10 = vmmov %vm12244_vm2 }
 0x349   :  { %v5564_v29 = vmul.f32 %v5532_v50, %v12231_v9  ;;  %v5214_v63 = vmax.f32 %v10551_v40, 0.0  ;;  %6721 = vpow2.f32 %v5330_v16  ;;  %v5247_v58 = vand.u32 2147483647, %v10601_v60 }
 0x34a   :  { %v5655_v43 = vadd.f32 %v5654_v21, %v5562_v19  ;;  %v5531_v45 = vsub.f32 %v5467_v20, %v10517_v10  ;;  %v5469_v54 = vadd.f32 %v5421_v33, %v5213_v12  ;;  %6087 = vadd.xlane.f32.xlu1 %v6086_v14  ;;  %v3924_v22 = vmin.f32 %v3188_v3, 1.0  ;;  %v3259_v3 = vpop.f32.mrf.mxu1  ;;  %v12240_v21 = vld [vmem:[#allocation98_spill] sm:$0xff] }
 0x34b   :  { %v5666_v28 = vrot.slane %v5564_v29, 4  ;;  %v10619_v11 = vmul.f32 %v3923_v34, %v10551_v40  ;;  %v5279_v32 = vsub.f32 0.0, %v5247_v58  ;;  %v5249_v0 = vand.u32 2147483647, %v10610_v17  ;;  %v12237_v34 = vld [vmem:[#allocation80_spill] sm:$0xff] }
 0x34c   :  { %v5563_v15 = vmul.f32 %v5531_v45, %v12232_v48  ;;  %v5533_v36 = vsub.f32 %v5469_v54, %v5501_v24  ;;  %v5216_v6 = vmax.f32 %v10559_v61, 0.0  ;;  %v10625_v7 = vmul.f32 %v3925_v44, %v10559_v61  ;;  %v12234_v24 = vld [vmem:[#allocation7_spill] sm:$0xff]  ;;  %v12243_v58 = vld [vmem:[#allocation96_spill] sm:$0xff] }
 0x34d   :  { %v5656_v10 = vrot.slane %v5655_v43, 2  ;;  %v5667_v8 = vadd.f32 %v5666_v28, %v5564_v29  ;;  %v5328_v12 = vmul.f32 1.442695, %v5279_v32  ;;  %v5281_v52 = vsub.f32 0.0, %v5249_v0  ;;  %v12242_v29 = vld [vmem:[#allocation94_spill] sm:$0xff]  ;;  %v12245_v54 = vld [vmem:[#allocation11_spill] sm:$0xff] }
 0x34e   :  { %v5660_v39 = vrot.slane %v5563_v15, 4  ;;  %v5565_v37 = vmul.f32 %v5533_v36, %v12233_v42  ;;  %v10630_v59 = vmul.f32 %v3924_v22, %v10601_v60  ;;  %v1537_v5 = vsel %vm12236_vm11, %v12235_v57, %v12234_v24  ;;  %v12247_v36 = vld [vmem:[#allocation47_spill] sm:$0xff]  ;;  %vm12253_vm11 = vmmov %vm12229_vm5  ;;  %v12261_v40 = vld [vmem:[#allocation88_spill] sm:$0xff] }
 0x34f   :  { %6723 = vpow2.f32 %v5328_v12  ;;  %v5332_v19 = vmul.f32 1.442695, %v5281_v52  ;;  %v1539_v50 = vsel %vm12239_vm4, %v12238_v27, %v12237_v34  ;;  %v5668_v4 = vrot.slane %v5667_v8, 2  ;;  %v12254_v27 = vld [vmem:[#allocation4_spill] sm:$0xff]  ;;  %vm12255_vm4 = vmmov %vm12229_vm5 }
 0x350   :  { %v5661_v44 = vadd.f32 %v5660_v39, %v5563_v15  ;;  %v5672_v16 = vrot.slane %v5565_v37, 4  ;;  %v1570_v20 = vsel %vm12241_vm12, %v1537_v5, %v12240_v21  ;;  %v5657_v14 = vadd.f32 %v5656_v10, %v5655_v43  ;;  %v12248_v15 = vld [vmem:[#allocation97_spill] sm:$0xff]  ;;  %v12249_v39 = vld [vmem:[#allocation12_spill] sm:$0xff]  ;;  %v12251_v43 = vld [vmem:[#allocation99_spill] sm:$0xff] }
 0x351   :  { %v6720_v33 = vpop.eup %6719  ;;  %6725 = vpow2.f32 %v5332_v19  ;;  %v1571_v45 = vsel %vm12244_vm2, %v12243_v58, %v12242_v29  ;;  %v1572_v22 = vsel %vm12246_vm13, %v1539_v50, %v12245_v54  ;;  %v1540_v12 = vsel %vm12216_vm1, %v12248_v15, %v12247_v36  ;;  %v12252_v19 = vld [vmem:[#allocation95_spill] sm:$0xff]  ;;  %v12256_v50 = vld [vmem:[#allocation6_spill] sm:$0xff]  ;;  %vm12257_vm12 = vmmov %vm12255_vm4 }
 0x352   :  { %v5662_v28 = vrot.slane %v5661_v44, 2  ;;  %v5673_v32 = vadd.f32 %v5672_v16, %v5565_v37  ;;  %v5374_v0 = vadd.f32 1.0, %v6720_v33  ;;  %v3926_v52 = vmin.f32 %v3259_v3, 1.0  ;;  %v6797_v3 = vld [vmem:[%s11183_s0 + $0xc0] sm:$0xff]  ;;  %v6800_v54 = vld [vmem:[%s11183_s0 + $0xd8] sm:$0xff]  ;;  %vm12264_vm2 = vmmov %vm12216_vm1 }
 0x353   :  { %v1573_v24 = vsel %vm12250_vm10, %v1540_v12, %v12249_v39  ;;  %v1603_v10 = vsel %vm12229_vm5, %v1570_v20, %v12251_v43  ;;  %v1604_v57 = vsel %vm12253_vm11, %v1571_v45, %v12252_v19  ;;  %v5669_v5 = vadd.f32 %v5668_v4, %v5667_v8  ;;  %v6798_v20 = vld [vmem:[%s11183_s0 + $0xc8] sm:$0xff]  ;;  %v6799_v8 = vld [vmem:[%s11183_s0 + $0xd0] sm:$0xff]  ;;  %vm12267_vm13 = vmmov %vm12216_vm1 }
 0x354   :  { %v5663_v34 = vadd.f32 %v5662_v28, %v5661_v44  ;;  %6727 = vlog2.f32 %v5374_v0  ;;  %v1605_v37 = vsel %vm12255_vm4, %v1572_v22, %v12254_v27  ;;  %v1606_v16 = vsel %vm12257_vm12, %v1573_v24, %v12256_v50  ;;  %vm12268_vm10 = vmmov %vm12216_vm1 }
 0x355   :  { %v4521_v21 = vsub.f32 %v6797_v3, %v1603_v10  ;;  %v4522_v33 = vsub.f32 %v6798_v20, %v1604_v57  ;;  %v4523_v4 = vsub.f32 %v6799_v8, %v1605_v37  ;;  %v5658_v29 = vrot.slane %v5657_v14, 1 }
 0x356   :  { %v6722_v44 = vpop.eup %6721  ;;  %v5664_v58 = vrot.slane %v5663_v34, 1  ;;  %v5674_v45 = vrot.slane %v5673_v32, 2  ;;  %v4524_v22 = vsub.f32 %v6800_v54, %v1606_v16  ;;  %v5670_v12 = vrot.slane %v5669_v5, 1  ;;  %v12258_v16 = vld [vmem:[#allocation29_spill] sm:$0xff] }
 0x357   :  { %v5376_v28 = vadd.f32 1.0, %v6722_v44  ;;  %v4553_v0 = vmul.f32 %v4521_v21, %v4521_v21  ;;  %v4554_v36 = vmul.f32 %v4522_v33, %v4522_v33  ;;  %v4555_v15 = vmul.f32 %v4523_v4, %v4523_v4  ;;  %v10693_v4 = vld [vmem:[%s11183_s0 + $0x160] sm:$0xff]  ;;  %v12259_v44 = vld [vmem:[#allocation117_spill] sm:$0xff] }
 0x358   :  { %v10672_v24 = vmul.f32 %v3926_v52, %v10610_v17  ;;  %v4556_v43 = vmul.f32 %v4524_v22, %v4524_v22  ;;  %v10677_v27 = vadd.f32 %v5658_v29, %v5657_v14  ;;  %v5675_v37 = vadd.f32 %v5674_v45, %v5673_v32 }
 0x359   :  { %6729 = vlog2.f32 %v5376_v28  ;;  %v4585_v10 = vmul.f32 %v4553_v0, %v12230_v31  ;;  %v4586_v19 = vmul.f32 %v4554_v36, %v12232_v48  ;;  %v4587_v57 = vmul.f32 %v4555_v15, %v12231_v9 }
 0x35a   :  { %v4588_v50 = vmul.f32 %v4556_v43, %v12233_v42  ;;  %v10682_v3 = vmul.f32 %v12258_v16, %v12231_v9  ;;  %v10684_v21 = vadd.f32 %v5664_v58, %v5663_v34  ;;  %v4877_v29 = vmul.f32 %v12259_v44, %v12233_v42  ;;  %v10704_v42 = vld [vmem:[%s11183_s0 + $0x170] sm:$0xff] }
 0x35b   :  { %v4690_v52 = vsel %vm4605_vm0, %v4585_v10, 0.0  ;;  %v4697_v20 = vsel %vm4605_vm0, %v4586_v19, 0.0  ;;  %v4704_v31 = vsel %vm4605_vm0, %v4587_v57, 0.0  ;;  %v10697_v58 = vadd.f32 %v5670_v12, %v5669_v5 }
 0x35c   :  { %v6724_v48 = vpop.eup %6723  ;;  %v4691_v33 = vrot.slane %v4690_v52, 4  ;;  %v4698_v8 = vrot.slane %v4697_v20, 4  ;;  %v4705_v14 = vrot.slane %v4704_v31, 4  ;;  %v4711_v32 = vsel %vm4605_vm0, %v4588_v50, 0.0 }
 0x35d   :  { %v5375_v9 = vadd.f32 1.0, %v6724_v48  ;;  %v4712_v34 = vrot.slane %v4711_v32, 4  ;;  %v5676_v0 = vrot.slane %v5675_v37, 1  ;;  %v5250_v43 = vand.u32 2147483647, %v10693_v4 }
 0x35e   :  { %v6726_v45 = vpop.eup %6725  ;;  %v4692_v54 = vadd.f32 %v4691_v33, %v4690_v52  ;;  %v4699_v22 = vadd.f32 %v4698_v8, %v4697_v20  ;;  %v4706_v28 = vadd.f32 %v4705_v14, %v4704_v31  ;;  %v5820_v50 = vrot.slane %v10682_v3, 3  ;;  %v12260_v14 = vld [vmem:[#allocation43_spill] sm:$0xff] }
 0x35f   :  { %6731 = vlog2.f32 %v5375_v9  ;;  %v5377_v36 = vadd.f32 1.0, %v6726_v45  ;;  %v4713_v15 = vadd.f32 %v4712_v34, %v4711_v32  ;;  %v5821_v16 = vrot.slane %v4877_v29, 3 }
 0x360   :  { %v4693_v10 = vrot.slane %v4692_v54, 2  ;;  %v4700_v19 = vrot.slane %v4699_v22, 2  ;;  %v4707_v57 = vrot.slane %v4706_v28, 2  ;;  %v5282_v52 = vsub.f32 0.0, %v5250_v43 }
 0x361   :  { %v6728_v5 = vpop.eup %6727  ;;  %6733 = vlog2.f32 %v5377_v36  ;;  %v4714_v12 = vrot.slane %v4713_v15, 2  ;;  %v5917_v32 = vrot.slane %v12260_v14, 2  ;;  %v5252_v3 = vand.u32 2147483647, %v10704_v42  ;;  %v3401_v36 = vpop.f32.mrf.mxu0 }
 0x362   :  { %v5423_v20 = vmul.f32 0.6931472, %v6728_v5  ;;  %v4694_v31 = vadd.f32 %v4693_v10, %v4692_v54  ;;  %v4701_v48 = vadd.f32 %v4700_v19, %v4699_v22  ;;  %v4708_v33 = vadd.f32 %v4707_v57, %v4706_v28 }
 0x363   :  { %v4715_v8 = vadd.f32 %v4714_v12, %v4713_v15  ;;  %v5334_v9 = vmul.f32 1.442695, %v5282_v52  ;;  %v5677_v29 = vadd.f32 %v5676_v0, %v5675_v37  ;;  %v5284_v43 = vsub.f32 0.0, %v5252_v3 }
 0x364   :  { %v5470_v34 = vadd.f32 %v5423_v20, %v5214_v63  ;;  %v4695_v44 = vrot.slane %v4694_v31, 1  ;;  %v4702_v45 = vrot.slane %v4701_v48, 1  ;;  %v4709_v39 = vrot.slane %v4708_v33, 1 }
 0x365   :  { %v4716_v41 = vrot.slane %v4715_v8, 1  ;;  %6735 = vpow2.f32 %v5334_v9  ;;  %v3927_v5 = vmin.f32 %v3401_v36, 1.0  ;;  %v5338_v12 = vmul.f32 1.442695, %v5284_v43  ;;  %v12272_v36 = vld [vmem:[#allocation16_spill] sm:$0xff] }
 0x366   :  { %v6730_v54 = vpop.eup %6729  ;;  %v5534_v22 = vsub.f32 %v5470_v34, %v10619_v11  ;;  %v4696_v28 = vadd.f32 %v4695_v44, %v4694_v31  ;;  %v4703_v15 = vadd.f32 %v4702_v45, %v4701_v48  ;;  %v4710_v10 = vadd.f32 %v4709_v39, %v4708_v33  ;;  %v12262_v31 = vld [vmem:[#allocation105_spill] sm:$0xff] }
 0x367   :  { %v5427_v19 = vmul.f32 0.6931472, %v6730_v54  ;;  %v4717_v57 = vadd.f32 %v4716_v41, %v4715_v8  ;;  %v5218_v9 = vmax.f32 %v10693_v4, 0.0  ;;  %6737 = vpow2.f32 %v5338_v12  ;;  %v12265_v41 = vld [vmem:[#allocation24_spill] sm:$0xff] }
 0x368   :  { %v5566_v63 = vmul.f32 %v5534_v22, %v12261_v40  ;;  %v4842_v52 = vmul.f32 5.0, %v4696_v28  ;;  %v4843_v20 = vmul.f32 5.0, %v4703_v15  ;;  %v4844_v14 = vmul.f32 5.0, %v4710_v10  ;;  %v12275_v15 = vld [vmem:[#allocation104_spill] sm:$0xff] }
 0x369   :  { %v5472_v37 = vadd.f32 %v5427_v19, %v5216_v6  ;;  %v4845_v0 = vmul.f32 5.0, %v4717_v57  ;;  %v12263_v48 = vrot.slane %v12262_v31, 3  ;;  %v12266_v33 = vrot.slane %v12265_v41, 3  ;;  %v12269_v6 = vld [vmem:[#allocation20_spill] sm:$0xff] }
 0x36a   :  { %v5678_v11 = vrot.slane %v5566_v63, 4  ;;  %v5980_v3 = vsel %vm12216_vm1, %v4844_v14, %v5820_v50  ;;  %v12270_v44 = vrot.slane %v12269_v6, 2  ;;  %vm12271_vm5 = vcmask 1041408   ;;  %v3472_v14 = vpop.f32.mrf.mxu1 }
 0x36b   :  { %v5978_v39 = vsel %vm12264_vm2, %v4842_v52, %v12263_v48  ;;  %v5979_v8 = vsel %vm12267_vm13, %v4843_v20, %v12266_v33  ;;  %v5536_v34 = vsub.f32 %v5472_v37, %v10625_v7  ;;  %v5981_v61 = vsel %vm12268_vm10, %v4845_v0, %v5821_v16  ;;  %vm12274_vm11 = vmmov %vm12271_vm5  ;;  %v12280_v16 = vld [vmem:[#allocation116_spill] sm:$0xff] }
 0x36c   :  { %v6010_v45 = vsel %vm12271_vm5, %v5978_v39, %v12270_v44  ;;  %v12273_v43 = vrot.slane %v12272_v36, 2  ;;  %v6732_v22 = vpop.eup %6731  ;;  %v5679_v28 = vadd.f32 %v5678_v11, %v5566_v63  ;;  %v12276_v10 = vrot.slane %v12275_v15, 2  ;;  %vm12277_vm4 = vmmov %vm12271_vm5  ;;  %v10744_v63 = vld [vmem:[%s11183_s0 + $0x168] sm:$0xff] }
 0x36d   :  { %vm12278_vm12 = vmmov %vm12277_vm4  ;;  %vm12279_vm2 = vcmask 1042432   ;;  %v5568_v57 = vmul.f32 %v5536_v34, %v12280_v16  ;;  %v5425_v12 = vmul.f32 0.6931472, %v6732_v22  ;;  %vm12299_vm5 = vcmask 1040384  }
 0x36e   :  { %v6011_v54 = vsel %vm12274_vm11, %v5979_v8, %v12273_v43  ;;  %v6012_v19 = vsel %vm12277_vm4, %v5980_v3, %v12276_v10  ;;  %v6013_v50 = vsel %vm12278_vm12, %v5981_v61, %v5917_v32  ;;  %v6042_v7 = vsel %vm12279_vm2, %v6010_v45, %v10677_v27  ;;  %vm12281_vm13 = vmmov %vm12279_vm2  ;;  %v6734_v37 = vpop.eup %6733  ;;  %v10758_v45 = vpop.f32.mrf.mxu0 }
 0x36f   :  { %v6043_v52 = vsel %vm12281_vm13, %v6011_v54, %v10684_v21  ;;  %vm12282_vm1 = vmmov %vm12279_vm2  ;;  %v5680_v32 = vrot.slane %v5679_v28, 2  ;;  %v6089_v27 = vsel %vm4605_vm0, %v6042_v7, 0.0  ;;  %v5690_v31 = vrot.slane %v5568_v57, 4 }
 0x370   :  { %v6044_v20 = vsel %vm12282_vm1, %v6012_v19, %v10697_v58  ;;  %vm12283_vm10 = vmmov %vm12282_vm1  ;;  %v6090_v11 = vsel %vm4605_vm0, %v6043_v52, 0.0  ;;  %v12284_v21 = vmax.f32 %v10601_v60, 0.0  ;;  %v5429_v39 = vmul.f32 0.6931472, %v6734_v37 }
 0x371   :  { %v6045_v0 = vsel %vm12283_vm10, %v6013_v50, %v5677_v29  ;;  %v6091_v58 = vadd.f32 %v6090_v11, %v6089_v27  ;;  %v10751_v41 = vadd.f32 %v5680_v32, %v5679_v28  ;;  %v6092_v33 = vsel %vm4605_vm0, %v6044_v20, 0.0  ;;  %v10768_v28 = vld [vmem:[%s11183_s0 + $0x178] sm:$0xff]  ;;  %v10772_v50 = vpop.f32.mrf.mxu1  ;;  %v12288_v27 = vld [vmem:[#allocation30_spill] sm:$0xff]  ;;  %vm12300_vm11 = vmmov %vm12299_vm5 }
 0x372   :  { %v5471_v48 = vadd.f32 %v5425_v12, %v12284_v21  ;;  %v3929_v8 = vmin.f32 %v3472_v14, 1.0  ;;  %v5251_v3 = vand.u32 2147483647, %v10744_v63  ;;  %v5691_v34 = vadd.f32 %v5690_v31, %v5568_v57  ;;  %v6736_v60 = vpop.eup %6735  ;;  %v12287_v14 = vld [vmem:[#allocation87_spill] sm:$0xff]  ;;  %v12290_v21 = vld [vmem:[#allocation18_spill] sm:$0xff]  ;;  %vm12304_vm12 = vmmov %vm12299_vm5 }
 0x373   :  { %v12285_v61 = vmax.f32 %v10610_v17, 0.0  ;;  %v6093_v44 = vadd.f32 %v6092_v33, %v6091_v58  ;;  %v6094_v36 = vsel %vm4605_vm0, %v6045_v0, 0.0  ;;  %v10762_v43 = vmul.f32 %v3927_v5, %v10693_v4  ;;  %v12286_v17 = vld [vmem:[#allocation86_spill] sm:$0xff]  ;;  %vm12307_vm2 = vmmov %vm12277_vm4  ;;  %v10836_v4 = vld [vmem:[%s11183_s0 + $0x1b0] sm:$0xff] }
 0x374   :  { %v5535_v29 = vsub.f32 %v5471_v48, %v10630_v59  ;;  %v5220_v54 = vmax.f32 %v10704_v42, 0.0  ;;  %v5283_v22 = vsub.f32 0.0, %v5251_v3  ;;  %v5692_v59 = vrot.slane %v5691_v34, 2  ;;  %v6738_v0 = vpop.eup %6737  ;;  %vm12308_vm13 = vmmov %vm12282_vm1 }
 0x375   :  { %v5473_v6 = vadd.f32 %v5429_v39, %v12285_v61  ;;  %v6095_v19 = vadd.f32 %v6094_v36, %v6093_v44  ;;  %v5378_v7 = vadd.f32 1.0, %v6736_v60  ;;  %v10775_v5 = vmul.f32 %v3929_v8, %v10704_v42  ;;  %v12292_v36 = vld [vmem:[#allocation147_spill] sm:$0xff]  ;;  %vm12311_vm1 = vmmov %vm12307_vm2 }
 0x376   :  { %v5567_v15 = vmul.f32 %v5535_v29, %v12286_v17  ;;  %v3928_v57 = vmin.f32 %v10758_v45, 1.0  ;;  %v5336_v12 = vmul.f32 1.442695, %v5283_v22  ;;  %v5682_v52 = vrot.slane %v10751_v41, 1  ;;  %v10864_v45 = vld [vmem:[%s11183_s0 + $0x1b8] sm:$0xff] }
 0x377   :  { %v5537_v10 = vsub.f32 %v5473_v6, %v10672_v24  ;;  %6096 = vadd.xlane.f32.xlu0 %v6095_v19  ;;  %v5253_v32 = vand.u32 2147483647, %v10768_v28  ;;  %6739 = vlog2.f32 %v5378_v7  ;;  %v12289_v11 = vrot.slane %v12288_v27, 2 }
 0x378   :  { %v5684_v20 = vrot.slane %v5567_v15, 4  ;;  %v12291_v48 = vrot.slane %v12290_v21, 2  ;;  %v5693_v58 = vadd.f32 %v5692_v59, %v5691_v34  ;;  %v5380_v3 = vadd.f32 1.0, %v6738_v0 }
 0x379   :  { %v5569_v37 = vmul.f32 %v5537_v10, %v12287_v14  ;;  %v4722_v31 = vadd.f32 %v12289_v11, %v12288_v27  ;;  %6741 = vpow2.f32 %v5336_v12  ;;  %v5285_v29 = vsub.f32 0.0, %v5253_v32  ;;  %v12293_v27 = vld [vmem:[#allocation103_spill] sm:$0xff]  ;;  %v12295_v12 = vld [vmem:[#allocation150_spill] sm:$0xff] }
 0x37a   :  { %v4729_v39 = vadd.f32 %v12291_v48, %v12290_v21  ;;  %v5685_v33 = vadd.f32 %v5684_v20, %v5567_v15  ;;  %6743 = vlog2.f32 %v5380_v3  ;;  %v4735_v22 = vrot.slane %v12292_v36, 2 }
 0x37b   :  { %v5696_v8 = vrot.slane %v5569_v37, 4  ;;  %v4723_v61 = vrot.slane %v4722_v31, 1  ;;  %v5340_v10 = vmul.f32 1.442695, %v5285_v29  ;;  %v12294_v11 = vrot.slane %v12293_v27, 4 }
 0x37c   :  { %v4730_v6 = vrot.slane %v4729_v39, 1  ;;  %v5686_v44 = vrot.slane %v5685_v33, 2  ;;  %v4736_v15 = vadd.f32 %v4735_v22, %v12292_v36  ;;  %v4878_v20 = vmul.f32 %v12295_v12, %v12261_v40 }
 0x37d   :  { %v5697_v60 = vadd.f32 %v5696_v8, %v5569_v37  ;;  %v4724_v19 = vadd.f32 %v4723_v61, %v4722_v31  ;;  %v4741_v21 = vadd.f32 %v12294_v11, %v12293_v27  ;;  %v5694_v32 = vrot.slane %v5693_v58, 1  ;;  %v12296_v31 = vld [vmem:[#allocation151_spill] sm:$0xff] }
 0x37e   :  { %v4731_v7 = vadd.f32 %v4730_v6, %v4729_v39  ;;  %v5687_v34 = vadd.f32 %v5686_v44, %v5685_v33  ;;  %6745 = vpow2.f32 %v5340_v10  ;;  %v4737_v3 = vrot.slane %v4736_v15, 1  ;;  %v12297_v33 = vld [vmem:[#allocation152_spill] sm:$0xff]  ;;  %v12298_v44 = vld [vmem:[#allocation153_spill] sm:$0xff] }
 0x37f   :  { %v5698_v59 = vrot.slane %v5697_v60, 2  ;;  %v4742_v37 = vrot.slane %v4741_v21, 2  ;;  %v4846_v0 = vmul.f32 5.0, %v4724_v19  ;;  %v4879_v39 = vmul.f32 %v12296_v31, %v12286_v17  ;;  %v12301_v31 = vld [vmem:[#allocation2_spill] sm:$0xff] }
 0x380   :  { %v5688_v48 = vrot.slane %v5687_v34, 1  ;;  %v4847_v61 = vmul.f32 5.0, %v4731_v7  ;;  %v4880_v6 = vmul.f32 %v12297_v33, %v12280_v16  ;;  %v4881_v36 = vmul.f32 %v12298_v44, %v12287_v14 }
 0x381   :  { %v5699_v8 = vadd.f32 %v5698_v59, %v5697_v60  ;;  %v4743_v29 = vadd.f32 %v4742_v37, %v4741_v21  ;;  %v5683_v40 = vadd.f32 %v5682_v52, %v10751_v41  ;;  %v4738_v22 = vadd.f32 %v4737_v3, %v4736_v15  ;;  %v10810_v52 = vld [vmem:[%s11183_s0 + $0x1a0] sm:$0xff] }
 0x382   :  { %v5822_v27 = vrot.slane %v4878_v20, 3  ;;  %v5689_v19 = vadd.f32 %v5688_v48, %v5687_v34  ;;  %v5695_v60 = vadd.f32 %v5694_v32, %v5693_v58  ;;  %v5823_v59 = vrot.slane %v4879_v39, 3  ;;  %v12303_v34 = vld [vmem:[#allocation60_spill] sm:$0xff]  ;;  %v12305_v32 = vld [vmem:[#allocation154_spill] sm:$0xff] }
 0x383   :  { %v5700_v10 = vrot.slane %v5699_v8, 1  ;;  %v4744_v11 = vrot.slane %v4743_v29, 1  ;;  %v4848_v12 = vmul.f32 5.0, %v4738_v22  ;;  %v5824_v24 = vrot.slane %v4880_v6, 3 }
 0x384   :  { %v5825_v17 = vrot.slane %v4881_v36, 3  ;;  %v5982_v7 = vsel %vm12299_vm5, %v4846_v0, %v5822_v27  ;;  %v5983_v16 = vsel %vm12300_vm11, %v4847_v61, %v5823_v59  ;;  %v12302_v14 = vrot.slane %v12301_v31, 2  ;;  %v6740_v58 = vpop.eup %6739  ;;  %vm12312_vm5 = vmmov %vm12283_vm10 }
 0x385   :  { %v4745_v21 = vadd.f32 %v4744_v11, %v4743_v29  ;;  %v5701_v37 = vadd.f32 %v5700_v10, %v5699_v8  ;;  %v5921_v15 = vrot.slane %v12303_v34, 2  ;;  %v5984_v20 = vsel %vm12304_vm12, %v4848_v12, %v5824_v24  ;;  %v12309_v29 = vld [vmem:[#allocation155_spill] sm:$0xff]  ;;  %vm12314_vm12 = vmmov %vm12312_vm5 }
 0x386   :  { %v6014_v41 = vsel %vm12277_vm4, %v5982_v7, %v12302_v14  ;;  %v12306_v0 = vrot.slane %v12305_v32, 2  ;;  %v5431_v3 = vmul.f32 0.6931472, %v6740_v58  ;;  %v12310_v61 = vrot.slane %v12309_v29, 2  ;;  %v6742_v44 = vpop.eup %6741  ;;  %vm12313_vm4 = vmmov %vm12311_vm1 }
 0x387   :  { %v6046_v8 = vsel %vm12308_vm13, %v6014_v41, %v5683_v40  ;;  %v4849_v39 = vmul.f32 5.0, %v4745_v21  ;;  %v5254_v10 = vand.u32 2147483647, %v10810_v52  ;;  %v6744_v27 = vpop.eup %6743  ;;  %v5379_v11 = vadd.f32 1.0, %v6742_v44 }
 0x388   :  { %v6015_v48 = vsel %vm12307_vm2, %v5983_v16, %v12306_v0  ;;  %v6016_v33 = vsel %vm12311_vm1, %v5984_v20, %v12310_v61  ;;  %v6098_v22 = vsel %vm4605_vm0, %v6046_v8, 0.0  ;;  %v5474_v40 = vadd.f32 %v5431_v3, %v5218_v9  ;;  %v10846_v0 = vld [vmem:[%s11183_s0 + $0x1a8] sm:$0xff]  ;;  %vm12319_vm2 = vmmov %vm12300_vm11 }
 0x389   :  { %v6047_v6 = vsel %vm12283_vm10, %v6015_v48, %v5689_v19  ;;  %v6048_v36 = vsel %vm12312_vm5, %v6016_v33, %v5695_v60  ;;  %v5985_v59 = vsel %vm12300_vm11, %v4849_v39, %v5825_v17  ;;  %v5435_v7 = vmul.f32 0.6931472, %v6744_v27  ;;  %v3616_v60 = vpop.f32.mrf.mxu0  ;;  %vm12322_vm13 = vmmov %vm12319_vm2 }
 0x38a   :  { %v6099_v24 = vsel %vm4605_vm0, %v6047_v6, 0.0  ;;  %v6017_v19 = vsel %vm12313_vm4, %v5985_v59, %v5921_v15  ;;  %v6101_v21 = vsel %vm4605_vm0, %v6048_v36, 0.0  ;;  %v5286_v16 = vsub.f32 0.0, %v5254_v10  ;;  %vm12325_vm1 = vmmov %vm12319_vm2 }
 0x38b   :  { %v6100_v12 = vadd.f32 %v6099_v24, %v6098_v22  ;;  %v5538_v31 = vsub.f32 %v5474_v40, %v10762_v43  ;;  %6747 = vlog2.f32 %v5379_v11  ;;  %v6049_v14 = vsel %vm12314_vm12, %v6017_v19, %v5701_v37  ;;  %v6746_v9 = vpop.eup %6745  ;;  %v3618_v44 = vpop.f32.mrf.mxu0  ;;  %v12317_v19 = vld [vmem:[#allocation79_spill] sm:$0xff]  ;;  %vm12327_vm10 = vmmov %vm12313_vm4 }
 0x38c   :  { %v5476_v17 = vadd.f32 %v5435_v7, %v5220_v54  ;;  %v5219_v58 = vmax.f32 %v10744_v63, 0.0  ;;  %v6103_v34 = vsel %vm4605_vm0, %v6049_v14, 0.0  ;;  %v5342_v15 = vmul.f32 1.442695, %v5286_v16  ;;  %v3687_v54 = vpop.f32.mrf.mxu1  ;;  %v12320_v16 = vld [vmem:[#allocation10_spill] sm:$0xff]  ;;  %vm12330_vm5 = vmmov %vm12313_vm4 }
 0x38d   :  { %v6102_v41 = vadd.f32 %v6101_v21, %v6100_v12  ;;  %v5570_v43 = vmul.f32 %v5538_v31, %v9857_v62  ;;  %v5381_v20 = vadd.f32 1.0, %v6746_v9  ;;  %v3931_v37 = vmin.f32 %v3616_v60, 1.0  ;;  %v12318_v21 = vld [vmem:[#allocation46_spill] sm:$0xff]  ;;  %v12321_v31 = vld [vmem:[#allocation111_spill] sm:$0xff]  ;;  %vm12332_vm11 = vmmov %vm12313_vm4 }
 0x38e   :  { %v5540_v48 = vsub.f32 %v5476_v17, %v10775_v5  ;;  %v10852_v42 = vmul.f32 %v3928_v57, %v10744_v63  ;;  %6749 = vpow2.f32 %v5342_v15  ;;  %v5256_v8 = vand.u32 2147483647, %v10836_v4  ;;  %v12316_v5 = vld [vmem:[#allocation149_spill] sm:$0xff]  ;;  %v12323_v15 = vld [vmem:[#allocation108_spill] sm:$0xff] }
 0x38f   :  { %v6104_v32 = vadd.f32 %v6103_v34, %v6102_v41  ;;  %v5702_v3 = vrot.slane %v5570_v43, 4  ;;  %v5221_v39 = vmax.f32 %v10768_v28, 0.0  ;;  %6751 = vlog2.f32 %v5381_v20  ;;  %v12341_v63 = vld [vmem:[#allocation52_spill] sm:$0xff] }
 0x390   :  { %v12315_v29 = vmin.f32 %v10772_v50, 1.0  ;;  %v5572_v57 = vmul.f32 %v5540_v48, %v12316_v5  ;;  %v5222_v33 = vmax.f32 %v10810_v52, 0.0  ;;  %v5288_v6 = vsub.f32 0.0, %v5256_v8  ;;  %v12328_v48 = vld [vmem:[#allocation89_spill] sm:$0xff] }
 0x391   :  { %6105 = vadd.xlane.f32.xlu1 %v6104_v32  ;;  %v5255_v36 = vand.u32 2147483647, %v10846_v0  ;;  %v5703_v22 = vadd.f32 %v5702_v3, %v5570_v43  ;;  %v10870_v24 = vmul.f32 %v3931_v37, %v10810_v52  ;;  %v3933_v50 = vmin.f32 %v3687_v54, 1.0  ;;  %v12324_v43 = vld [vmem:[#allocation107_spill] sm:$0xff]  ;;  %v12326_v32 = vld [vmem:[#allocation66_spill] sm:$0xff] }
 0x392   :  { %v10859_v61 = vmul.f32 %v12315_v29, %v10768_v28  ;;  %v5224_v10 = vmax.f32 %v10836_v4, 0.0  ;;  %v5714_v27 = vrot.slane %v5572_v57, 4  ;;  %v5346_v40 = vmul.f32 1.442695, %v5288_v6  ;;  %v12329_v54 = vld [vmem:[#allocation14_spill] sm:$0xff]  ;;  %v12331_v6 = vld [vmem:[#allocation5_spill] sm:$0xff] }
 0x393   :  { %v5287_v11 = vsub.f32 0.0, %v5255_v36  ;;  %v5257_v59 = vand.u32 2147483647, %v10864_v45  ;;  %v5704_v12 = vrot.slane %v5703_v22, 2  ;;  %v3932_v7 = vmin.f32 %v3618_v44, 1.0  ;;  %v12333_v36 = vld [vmem:[#allocation109_spill] sm:$0xff] }
 0x394   :  { %v1545_v60 = vsel %vm12319_vm2, %v12318_v21, %v12317_v19  ;;  %v1547_v14 = vsel %vm12322_vm13, %v12321_v31, %v12320_v16  ;;  %v5715_v41 = vadd.f32 %v5714_v27, %v5572_v57  ;;  %6753 = vpow2.f32 %v5346_v40  ;;  %v12334_v27 = vld [vmem:[#allocation81_spill] sm:$0xff]  ;;  %vm12336_vm2 = vmmov %vm12314_vm12  ;;  %v12339_v16 = vld [vmem:[#allocation110_spill] sm:$0xff] }
 0x395   :  { %v5344_v9 = vmul.f32 1.442695, %v5287_v11  ;;  %v5289_v17 = vsub.f32 0.0, %v5257_v59  ;;  %v5705_v34 = vadd.f32 %v5704_v12, %v5703_v22  ;;  %v1548_v20 = vsel %vm12325_vm1, %v12324_v43, %v12323_v15  ;;  %v12335_v11 = vld [vmem:[#allocation106_spill] sm:$0xff]  ;;  %v12337_v21 = vld [vmem:[#allocation113_spill] sm:$0xff]  ;;  %vm12338_vm13 = vmmov %vm12336_vm2 }
 0x396   :  { %v1578_v37 = vsel %vm12327_vm10, %v1545_v60, %v12326_v32  ;;  %v1579_v8 = vsel %vm12330_vm5, %v12329_v54, %v12328_v48  ;;  %v5716_v3 = vrot.slane %v5715_v41, 2  ;;  %v1580_v57 = vsel %vm12332_vm11, %v1547_v14, %v12331_v6  ;;  %vm12340_vm1 = vmmov %vm12336_vm2  ;;  %v6804_v48 = vld [vmem:[%s11183_s0 + $0x158] sm:$0xff] }
 0x397   :  { %6755 = vpow2.f32 %v5344_v9  ;;  %v5348_v29 = vmul.f32 1.442695, %v5289_v17  ;;  %v5706_v44 = vrot.slane %v5705_v34, 1  ;;  %v1581_v22 = vsel %vm12313_vm4, %v1548_v20, %v12333_v36  ;;  %v6801_v17 = vld [vmem:[%s11183_s0 + $0x140] sm:$0xff] }
 0x398   :  { %v1611_v40 = vsel %vm12314_vm12, %v1578_v37, %v12334_v27  ;;  %v1612_v59 = vsel %vm12336_vm2, %v1579_v8, %v12335_v11  ;;  %v6748_v12 = vpop.eup %6747  ;;  %v10896_v19 = vadd.f32 %v5716_v3, %v5715_v41  ;;  %v1613_v60 = vsel %vm12338_vm13, %v1580_v57, %v12337_v21  ;;  %v6802_v41 = vld [vmem:[%s11183_s0 + $0x148] sm:$0xff] }
 0x399   :  { %6757 = vpow2.f32 %v5348_v29  ;;  %v1614_v31 = vsel %vm12340_vm1, %v1581_v22, %v12339_v16  ;;  %v5433_v14 = vmul.f32 0.6931472, %v6748_v12  ;;  %v10903_v9 = vmul.f32 %v3933_v50, %v10836_v4  ;;  %v6803_v50 = vld [vmem:[%s11183_s0 + $0x150] sm:$0xff]  ;;  %v11002_v4 = vld [vmem:[%s11183_s0 + $0x1e8] sm:$0xff] }
 0x39a   :  { %v4529_v15 = vsub.f32 %v6801_v17, %v1611_v40  ;;  %v4530_v43 = vsub.f32 %v6802_v41, %v1612_v59  ;;  %v5223_v20 = vmax.f32 %v10846_v0, 0.0  ;;  %v10913_v32 = vmul.f32 %v3932_v7, %v10846_v0 }
 0x39b   :  { %v4531_v37 = vsub.f32 %v6803_v50, %v1613_v60  ;;  %v4532_v54 = vsub.f32 %v6804_v48, %v1614_v31  ;;  %v6750_v8 = vpop.eup %6749  ;;  %v10921_v3 = vadd.f32 %v5706_v44, %v5705_v34  ;;  %v5475_v29 = vadd.f32 %v5433_v14, %v5219_v58 }
 0x39c   :  { %v4561_v6 = vmul.f32 %v4529_v15, %v4529_v15  ;;  %v4562_v57 = vmul.f32 %v4530_v43, %v4530_v43  ;;  %v6752_v7 = vpop.eup %6751  ;;  %v5718_v36 = vrot.slane %v10896_v19, 1  ;;  %v5382_v22 = vadd.f32 1.0, %v6750_v8 }
 0x39d   :  { %v4563_v27 = vmul.f32 %v4531_v37, %v4531_v37  ;;  %v4564_v40 = vmul.f32 %v4532_v54, %v4532_v54  ;;  %v5539_v11 = vsub.f32 %v5475_v29, %v10852_v42  ;;  %v5437_v59 = vmul.f32 0.6931472, %v6752_v7 }
 0x39e   :  { %v4593_v12 = vmul.f32 %v4561_v6, %v9857_v62  ;;  %v4594_v21 = vmul.f32 %v4562_v57, %v9839_v13  ;;  %6759 = vlog2.f32 %v5382_v22  ;;  %v10933_v44 = vmul.f32 %v10050_v51, %v12316_v5 }
 0x39f   :  { %v4595_v34 = vmul.f32 %v4563_v27, %v12316_v5  ;;  %v4596_v58 = vmul.f32 %v4564_v40, %v12341_v63  ;;  %v5571_v60 = vmul.f32 %v5539_v11, %v9839_v13  ;;  %v5477_v16 = vadd.f32 %v5437_v59, %v5221_v39 }
 0x3a0   :  { %v4746_v42 = vsel %vm4605_vm0, %v4593_v12, 0.0  ;;  %v4753_v62 = vsel %vm4605_vm0, %v4594_v21, 0.0  ;;  %v4885_v39 = vmul.f32 %v10059_v1, %v12341_v63  ;;  %vm12343_vm10 = vcmask 1040384  }
 0x3a1   :  { %v4747_v31 = vrot.slane %v4746_v42, 4  ;;  %v4754_v14 = vrot.slane %v4753_v62, 4  ;;  %v4760_v17 = vsel %vm4605_vm0, %v4595_v34, 0.0  ;;  %v4767_v15 = vsel %vm4605_vm0, %v4596_v58, 0.0  ;;  %v6754_v41 = vpop.eup %6753  ;;  %vm12345_vm5 = vmmov %vm12343_vm10 }
 0x3a2   :  { %v5708_v43 = vrot.slane %v5571_v60, 4  ;;  %v5541_v51 = vsub.f32 %v5477_v16, %v10859_v61  ;;  %v4761_v5 = vrot.slane %v4760_v17, 4  ;;  %v4768_v50 = vrot.slane %v4767_v15, 4  ;;  %vm12346_vm11 = vmmov %vm12345_vm5 }
 0x3a3   :  { %v5384_v13 = vadd.f32 1.0, %v6754_v41  ;;  %v4748_v37 = vadd.f32 %v4747_v31, %v4746_v42  ;;  %v4755_v28 = vadd.f32 %v4754_v14, %v4753_v62  ;;  %v5719_v62 = vadd.f32 %v5718_v36, %v10896_v19  ;;  %v10950_v41 = vld [vmem:[%s11183_s0 + $0x1e0] sm:$0xff]  ;;  %vm12347_vm4 = vmmov %vm12345_vm5 }
 0x3a4   :  { %v6756_v48 = vpop.eup %6755  ;;  %v5709_v54 = vadd.f32 %v5708_v43, %v5571_v60  ;;  %v5573_v8 = vmul.f32 %v5541_v51, %v12341_v63  ;;  %v4762_v29 = vadd.f32 %v4761_v5, %v4760_v17  ;;  %v4769_v6 = vadd.f32 %v4768_v50, %v4767_v15 }
 0x3a5   :  { %6761 = vlog2.f32 %v5384_v13  ;;  %v5383_v57 = vadd.f32 1.0, %v6756_v48  ;;  %v4749_v7 = vrot.slane %v4748_v37, 2  ;;  %v4756_v22 = vrot.slane %v4755_v28, 2 }
 0x3a6   :  { %v6758_v27 = vpop.eup %6757  ;;  %v5710_v61 = vrot.slane %v5709_v54, 2  ;;  %v5720_v40 = vrot.slane %v5573_v8, 4  ;;  %v4763_v11 = vrot.slane %v4762_v29, 2  ;;  %v4770_v59 = vrot.slane %v4769_v6, 2 }
 0x3a7   :  { %6763 = vlog2.f32 %v5383_v57  ;;  %v5385_v12 = vadd.f32 1.0, %v6758_v27  ;;  %v4750_v21 = vadd.f32 %v4749_v7, %v4748_v37  ;;  %v4757_v34 = vadd.f32 %v4756_v22, %v4755_v28  ;;  %v3689_v28 = vpop.f32.mrf.mxu1 }
 0x3a8   :  { %v5711_v1 = vadd.f32 %v5710_v61, %v5709_v54  ;;  %v5721_v58 = vadd.f32 %v5720_v40, %v5573_v8  ;;  %v4764_v60 = vadd.f32 %v4763_v11, %v4762_v29  ;;  %v4771_v16 = vadd.f32 %v4770_v59, %v4769_v6 }
 0x3a9   :  { %6765 = vlog2.f32 %v5385_v12  ;;  %v4751_v63 = vrot.slane %v4750_v21, 1  ;;  %v4758_v42 = vrot.slane %v4757_v34, 1  ;;  %v5828_v5 = vrot.slane %v10933_v44, 3 }
 0x3aa   :  { %v5712_v31 = vrot.slane %v5711_v1, 1  ;;  %v5722_v14 = vrot.slane %v5721_v58, 2  ;;  %v4765_v17 = vrot.slane %v4764_v60, 1  ;;  %v4772_v15 = vrot.slane %v4771_v16, 1 }
 0x3ab   :  { %v4752_v43 = vadd.f32 %v4751_v63, %v4750_v21  ;;  %v4759_v51 = vadd.f32 %v4758_v42, %v4757_v34  ;;  %v5829_v50 = vrot.slane %v4885_v39, 3  ;;  %v6760_v13 = vpop.eup %6759  ;;  %v5925_v19 = vrot.slane %v10121_v38, 2 }
 0x3ac   :  { %v5723_v37 = vadd.f32 %v5722_v14, %v5721_v58  ;;  %v4766_v48 = vadd.f32 %v4765_v17, %v4764_v60  ;;  %v4773_v54 = vadd.f32 %v4772_v15, %v4771_v16  ;;  %v5439_v36 = vmul.f32 0.6931472, %v6760_v13 }
 0x3ad   :  { %v4850_v8 = vmul.f32 5.0, %v4752_v43  ;;  %v4851_v29 = vmul.f32 5.0, %v4759_v51  ;;  %v5258_v6 = vand.u32 2147483647, %v10950_v41  ;;  %v5713_v57 = vadd.f32 %v5712_v31, %v5711_v1 }
 0x3ae   :  { %v4852_v7 = vmul.f32 5.0, %v4766_v48  ;;  %v4853_v22 = vmul.f32 5.0, %v4773_v54  ;;  %v5724_v27 = vrot.slane %v5723_v37, 1  ;;  %v5478_v44 = vadd.f32 %v5439_v36, %v5222_v33 }
 0x3af   :  { %v3934_v39 = vmin.f32 %v3689_v28, 1.0  ;;  %v12342_v61 = vrot.slane %v10077_v30, 3  ;;  %v12344_v11 = vrot.slane %v10084_v18, 3  ;;  %v5290_v34 = vsub.f32 0.0, %v5258_v6 }
 0x3b0   :  { %v5725_v59 = vadd.f32 %v5724_v27, %v5723_v37  ;;  %v5988_v12 = vsel %vm12346_vm11, %v4852_v7, %v5828_v5  ;;  %v5989_v21 = vsel %vm12347_vm4, %v4853_v22, %v5829_v50  ;;  %v5542_v1 = vsub.f32 %v5478_v44, %v10870_v24  ;;  %v12360_v27 = vld [vmem:[#allocation123_spill] sm:$0xff] }
 0x3b1   :  { %v5986_v40 = vsel %vm12343_vm10, %v4850_v8, %v12342_v61  ;;  %v5987_v38 = vsel %vm12345_vm5, %v4851_v29, %v12344_v11  ;;  %v12348_v52 = vrot.slane %v10090_v46, 2  ;;  %vm12349_vm12 = vcmask 1041408  }
 0x3b2   :  { %v12350_v30 = vrot.slane %v10112_v23, 2  ;;  %vm12351_vm2 = vmmov %vm12349_vm12  ;;  %v12352_v18 = vrot.slane %v10115_v53, 2  ;;  %v6762_v16 = vpop.eup %6761  ;;  %vm12355_vm10 = vcmask 1042432   ;;  %v5574_v31 = vmul.f32 %v5542_v1, %v12054_v26  ;;  %v10986_v53 = vld [vmem:[%s11183_s0 + $0x1f0] sm:$0xff] }
 0x3b3   :  { %v6018_v33 = vsel %vm12349_vm12, %v5986_v40, %v12348_v52  ;;  %vm12353_vm13 = vmmov %vm12351_vm2  ;;  %v5443_v14 = vmul.f32 0.6931472, %v6762_v16  ;;  %v5225_v43 = vmax.f32 %v10864_v45, 0.0  ;;  %v5350_v5 = vmul.f32 1.442695, %v5290_v34  ;;  %v12361_v40 = vld [vmem:[#allocation74_spill] sm:$0xff]  ;;  %v3831_v34 = vpop.f32.mrf.mxu0 }
 0x3b4   :  { %v6019_v58 = vsel %vm12351_vm2, %v5987_v38, %v12350_v30  ;;  %v6020_v60 = vsel %vm12353_vm13, %v5988_v12, %v12352_v18  ;;  %vm12354_vm1 = vmmov %vm12351_vm2  ;;  %v6050_v42 = vsel %vm12355_vm10, %v6018_v33, %v10921_v3  ;;  %v6764_v15 = vpop.eup %6763  ;;  %v5513_v28 = vmul.f32 %v3934_v39, %v10864_v45  ;;  %v12362_v12 = vld [vmem:[#allocation135_spill] sm:$0xff] }
 0x3b5   :  { %v6021_v63 = vsel %vm12354_vm1, %v5989_v21, %v5925_v19  ;;  %vm12356_vm5 = vmmov %vm12355_vm10  ;;  %v6107_v23 = vsel %vm4605_vm0, %v6050_v42, 0.0  ;;  %v5480_v26 = vadd.f32 %v5443_v14, %v5224_v10  ;;  %v5441_v50 = vmul.f32 0.6931472, %v6764_v15  ;;  %v12359_v10 = vld [vmem:[#allocation115_spill] sm:$0xff] }
 0x3b6   :  { %v6051_v24 = vsel %vm12356_vm5, %v6019_v58, %v5713_v57  ;;  %vm12357_vm11 = vmmov %vm12356_vm5  ;;  %v6766_v37 = vpop.eup %6765  ;;  %6767 = vpow2.f32 %v5350_v5  ;;  %v5260_v54 = vand.u32 2147483647, %v10986_v53  ;;  %v11006_v45 = vmul.f32 %v10225_v55, %v12359_v10  ;;  %v6805_v55 = vld [vmem:[%s11183_s0 + $0x1d0] sm:$0xff]  ;;  %v12363_v33 = vld [vmem:[#allocation139_spill] sm:$0xff] }
 0x3b7   :  { %v6052_v46 = vsel %vm12357_vm11, %v6020_v60, %v5719_v62  ;;  %v6108_v17 = vsel %vm4605_vm0, %v6051_v24, 0.0  ;;  %vm12358_vm4 = vmmov %vm12356_vm5  ;;  %v5726_v62 = vrot.slane %v5574_v31, 4  ;;  %v5544_v19 = vsub.f32 %v5480_v26, %v10903_v9  ;;  %v12364_v58 = vld [vmem:[#allocation121_spill] sm:$0xff] }
 0x3b8   :  { %v6053_v3 = vsel %vm12358_vm4, %v6021_v63, %v5725_v59  ;;  %v6109_v51 = vadd.f32 %v6108_v17, %v6107_v23  ;;  %v6110_v13 = vsel %vm4605_vm0, %v6052_v46, 0.0  ;;  %v5479_v36 = vadd.f32 %v5441_v50, %v5223_v20  ;;  %v12365_v63 = vld [vmem:[#allocation58_spill] sm:$0xff]  ;;  %vm12380_vm13 = vmmov %vm12354_vm1 }
 0x3b9   :  { %v5445_v8 = vmul.f32 0.6931472, %v6766_v37  ;;  %v6112_v29 = vsel %vm4605_vm0, %v6053_v3, 0.0  ;;  %v11010_v6 = vadd.f32 %v10259_v47, %v10086_v49  ;;  %v5292_v57 = vsub.f32 0.0, %v5260_v54  ;;  %v12366_v17 = vld [vmem:[#allocation62_spill] sm:$0xff]  ;;  %v12368_v37 = vld [vmem:[#allocation125_spill] sm:$0xff]  ;;  %vm12383_vm10 = vmmov %vm12358_vm4 }
 0x3ba   :  { %v6111_v48 = vadd.f32 %v6110_v13, %v6109_v51  ;;  %v5727_v0 = vadd.f32 %v5726_v62, %v5574_v31  ;;  %v5576_v20 = vmul.f32 %v5544_v19, %v12080_v35  ;;  %v5543_v7 = vsub.f32 %v5479_v36, %v10913_v32  ;;  %vm12385_vm11 = vmmov %vm12358_vm4 }
 0x3bb   :  { %v5481_v22 = vadd.f32 %v5445_v8, %v5225_v43  ;;  %v11016_v44 = vmul.f32 %v10230_v56, %v12360_v27  ;;  %v4507_v39 = vadd.f32 %v6805_v55, %v11010_v6  ;;  %v5354_v49 = vmul.f32 1.442695, %v5292_v57  ;;  %v11031_v56 = vld [vmem:[%s11183_s0 + $0x1f8] sm:$0xff]  ;;  %v12367_v43 = vld [vmem:[#allocation132_spill] sm:$0xff] }
 0x3bc   :  { %v6113_v9 = vadd.f32 %v6112_v29, %v6111_v48  ;;  %v5259_v47 = vand.u32 2147483647, %v11002_v4  ;;  %v11025_v61 = vadd.f32 %v10234_v2, %v10054_v25  ;;  %v5738_v32 = vrot.slane %v5576_v20, 4 }
 0x3bd   :  { %v5575_v11 = vmul.f32 %v5543_v7, %v12361_v40  ;;  %v5545_v38 = vsub.f32 %v5481_v22, %v5513_v28  ;;  %v5928_v59 = vrot.slane %v11006_v45, 2  ;;  %v5020_v21 = vmul.f32 %v12362_v12, %v11010_v6 }
 0x3be   :  { %6114 = vadd.xlane.f32.xlu0 %v6113_v9  ;;  %6769 = vpow2.f32 %v5354_v49  ;;  %v5291_v1 = vsub.f32 0.0, %v5259_v47  ;;  %v5728_v52 = vrot.slane %v5727_v0, 2  ;;  %v5739_v25 = vadd.f32 %v5738_v32, %v5576_v20 }
 0x3bf   :  { %v5732_v2 = vrot.slane %v5575_v11, 4  ;;  %v5577_v30 = vmul.f32 %v5545_v38, %v12363_v33  ;;  %v5132_v18 = vmul.f32 %v12364_v58, %v4507_v39  ;;  %v5261_v16 = vand.u32 2147483647, %v11031_v56 }
 0x3c0   :  { %v5352_v60 = vmul.f32 1.442695, %v5291_v1  ;;  %v4600_v42 = vmul.f32 %v12365_v63, %v12363_v33  ;;  %v5740_v24 = vrot.slane %v5739_v25, 2  ;;  %v3935_v14 = vmin.f32 %v3831_v34, 1.0 }
 0x3c1   :  { %v5733_v46 = vadd.f32 %v5732_v2, %v5575_v11  ;;  %v5744_v31 = vrot.slane %v5577_v30, 4  ;;  %v5293_v23 = vsub.f32 0.0, %v5261_v16  ;;  %v4774_v15 = vsel %vm4605_vm0, %v12366_v17, 0.0 }
 0x3c2   :  { %6771 = vpow2.f32 %v5352_v60  ;;  %v4781_v3 = vsel %vm4605_vm0, %v12367_v43, 0.0  ;;  %v5729_v51 = vadd.f32 %v5728_v52, %v5727_v0  ;;  %v4775_v26 = vrot.slane %v4774_v15, 4 }
 0x3c3   :  { %v5734_v5 = vrot.slane %v5733_v46, 2  ;;  %v5745_v62 = vadd.f32 %v5744_v31, %v5577_v30  ;;  %v5356_v50 = vmul.f32 1.442695, %v5293_v23  ;;  %v4782_v13 = vrot.slane %v4781_v3, 4  ;;  %v6768_v54 = vpop.eup %6767  ;;  %v12369_v30 = vld [vmem:[#allocation124_spill] sm:$0xff] }
 0x3c4   :  { %v4788_v28 = vsel %vm4605_vm0, %v12368_v37, 0.0  ;;  %v4795_v48 = vsel %vm4605_vm0, %v4600_v42, 0.0  ;;  %v5741_v19 = vadd.f32 %v5740_v24, %v5739_v25  ;;  %v4776_v29 = vadd.f32 %v4775_v26, %v4774_v15  ;;  %v12370_v42 = vld [vmem:[#allocation127_spill] sm:$0xff]  ;;  %v12371_v26 = vld [vmem:[#allocation25_spill] sm:$0xff] }
 0x3c5   :  { %v5735_v36 = vadd.f32 %v5734_v5, %v5733_v46  ;;  %v5746_v8 = vrot.slane %v5745_v62, 2  ;;  %v5386_v10 = vadd.f32 1.0, %v6768_v54  ;;  %6773 = vpow2.f32 %v5356_v50  ;;  %v12372_v54 = vld [vmem:[#allocation126_spill] sm:$0xff] }
 0x3c6   :  { %v4783_v9 = vadd.f32 %v4782_v13, %v4781_v3  ;;  %v4789_v57 = vrot.slane %v4788_v28, 4  ;;  %v11048_v0 = vadd.f32 %v5132_v18, %v5020_v21  ;;  %v5730_v20 = vrot.slane %v5729_v51, 1 }
 0x3c7   :  { %v4777_v7 = vrot.slane %v4776_v29, 2  ;;  %v4796_v22 = vrot.slane %v4795_v48, 4  ;;  %v5226_v27 = vmax.f32 %v10950_v41, 0.0  ;;  %6775 = vlog2.f32 %v5386_v10  ;;  %v12375_v10 = vld [vmem:[#allocation131_spill] sm:$0xff] }
 0x3c8   :  { %v4784_v55 = vrot.slane %v4783_v9, 2  ;;  %v4790_v39 = vadd.f32 %v4789_v57, %v4788_v28  ;;  %v5742_v49 = vrot.slane %v5741_v19, 1  ;;  %v5736_v47 = vrot.slane %v5735_v36, 1 }
 0x3c9   :  { %v4778_v32 = vadd.f32 %v4777_v7, %v4776_v29  ;;  %v4797_v40 = vadd.f32 %v4796_v22, %v4795_v48  ;;  %v5747_v11 = vadd.f32 %v5746_v8, %v5745_v62  ;;  %v11052_v38 = vmul.f32 %v3935_v14, %v10950_v41 }
 0x3ca   :  { %v4785_v34 = vadd.f32 %v4784_v55, %v4783_v9  ;;  %v4791_v1 = vrot.slane %v4790_v39, 2  ;;  %v5731_v52 = vadd.f32 %v5730_v20, %v5729_v51  ;;  %v4888_v18 = vmul.f32 %v12369_v30, %v12080_v35  ;;  %v12378_v20 = vld [vmem:[#allocation122_spill] sm:$0xff]  ;;  %v3902_v30 = vpop.f32.mrf.mxu1 }
 0x3cb   :  { %v6770_v21 = vpop.eup %6769  ;;  %v4779_v25 = vrot.slane %v4778_v32, 1  ;;  %v4798_v2 = vrot.slane %v4797_v40, 2  ;;  %v4889_v24 = vmul.f32 %v12370_v42, %v12363_v33  ;;  %v5737_v46 = vadd.f32 %v5736_v47, %v5735_v36 }
 0x3cc   :  { %v5388_v60 = vadd.f32 1.0, %v6770_v21  ;;  %v4786_v16 = vrot.slane %v4785_v34, 1  ;;  %v4792_v63 = vadd.f32 %v4791_v1, %v4790_v39  ;;  %v5743_v14 = vadd.f32 %v5742_v49, %v5741_v19 }
 0x3cd   :  { %v4780_v31 = vadd.f32 %v4779_v25, %v4778_v32  ;;  %v4799_v23 = vadd.f32 %v4798_v2, %v4797_v40  ;;  %v5748_v43 = vrot.slane %v5747_v11, 1  ;;  %v5832_v62 = vrot.slane %v4888_v18, 3 }
 0x3ce   :  { %6777 = vlog2.f32 %v5388_v60  ;;  %v4787_v17 = vadd.f32 %v4786_v16, %v4785_v34  ;;  %v4793_v15 = vrot.slane %v4792_v63, 1  ;;  %v4819_v35 = vrot.slane %v12371_v26, 2 }
 0x3cf   :  { %v6772_v3 = vpop.eup %6771  ;;  %v4800_v51 = vrot.slane %v4799_v23, 1  ;;  %v4854_v5 = vmul.f32 5.0, %v4780_v31  ;;  %v5833_v28 = vrot.slane %v4889_v24, 3  ;;  %v5929_v33 = vrot.slane %v11016_v44, 2  ;;  %v12381_v44 = vld [vmem:[#allocation72_spill] sm:$0xff]  ;;  %v6806_v24 = vld [vmem:[%s11183_s0 + $0x1c0] sm:$0xff] }
 0x3d0   :  { %v5387_v50 = vadd.f32 1.0, %v6772_v3  ;;  %v4794_v13 = vadd.f32 %v4793_v15, %v4792_v63  ;;  %v4855_v37 = vmul.f32 5.0, %v4787_v17  ;;  %v12373_v36 = vrot.slane %v12372_v54, 3  ;;  %v12390_v31 = vld [vmem:[#allocation27_spill] sm:$0xff] }
 0x3d1   :  { %v4801_v48 = vadd.f32 %v4800_v51, %v4799_v23  ;;  %vm12374_vm12 = vcmask 1040384   ;;  %v4820_v8 = vadd.f32 %v4819_v35, %v12371_v26  ;;  %v12376_v9 = vrot.slane %v12375_v10, 3  ;;  %v12394_v35 = vld [vmem:[#allocation144_spill] sm:$0xff] }
 0x3d2   :  { %v5990_v19 = vsel %vm12374_vm12, %v4854_v5, %v12373_v36  ;;  %6779 = vlog2.f32 %v5387_v50  ;;  %v4856_v29 = vmul.f32 5.0, %v4794_v13  ;;  %vm12377_vm2 = vmmov %vm12374_vm12  ;;  %v12379_v7 = vrot.slane %v12378_v20, 2  ;;  %v6774_v55 = vpop.eup %6773  ;;  %v12397_v20 = vld [vmem:[#allocation22_spill] sm:$0xff] }
 0x3d3   :  { %v5991_v57 = vsel %vm12377_vm2, %v4855_v37, %v12376_v9  ;;  %v4857_v39 = vmul.f32 5.0, %v4801_v48  ;;  %v5749_v49 = vadd.f32 %v5748_v43, %v5747_v11  ;;  %v12382_v47 = vrot.slane %v12381_v44, 2  ;;  %vm12384_vm5 = vmmov %vm12377_vm2  ;;  %v3833_v43 = vpop.f32.mrf.mxu0  ;;  %v3904_v9 = vpop.f32.mrf.mxu1 }
 0x3d4   :  { %v6022_v22 = vsel %vm12380_vm13, %v5990_v19, %v12379_v7  ;;  %v5389_v34 = vadd.f32 1.0, %v6774_v55  ;;  %v5992_v1 = vsel %vm12384_vm5, %v4856_v29, %v5832_v62  ;;  %v6776_v2 = vpop.eup %6775  ;;  %vm12386_vm4 = vmmov %vm12377_vm2  ;;  %v4821_v16 = vrot.slane %v4820_v8, 1  ;;  %v12393_v62 = vld [vmem:[#allocation26_spill] sm:$0xff] }
 0x3d5   :  { %v6023_v32 = vsel %vm12354_vm1, %v5991_v57, %v12382_v47  ;;  %v6054_v40 = vsel %vm12383_vm10, %v6022_v22, %v5731_v52  ;;  %v5993_v18 = vsel %vm12386_vm4, %v4857_v39, %v5833_v28  ;;  %vm12387_vm12 = vmmov %vm12354_vm1  ;;  %v5447_v63 = vmul.f32 0.6931472, %v6776_v2  ;;  %v12396_v29 = vld [vmem:[#allocation114_spill] sm:$0xff]  ;;  %v12398_v22 = vld [vmem:[#allocation33_spill] sm:$0xff] }
 0x3d6   :  { %v6055_v21 = vsel %vm12385_vm11, %v6023_v32, %v5737_v46  ;;  %v6116_v25 = vsel %vm4605_vm0, %v6054_v40, 0.0  ;;  %v6024_v11 = vsel %vm12387_vm12, %v5992_v1, %v5928_v59  ;;  %6781 = vlog2.f32 %v5389_v34  ;;  %vm12388_vm2 = vmmov %vm12354_vm1  ;;  %v12399_v39 = vld [vmem:[#allocation3_spill] sm:$0xff] }
 0x3d7   :  { %v6117_v60 = vsel %vm4605_vm0, %v6055_v21, 0.0  ;;  %v6025_v52 = vsel %vm12388_vm2, %v5993_v18, %v5929_v33  ;;  %vm12389_vm13 = vmmov %vm12383_vm10  ;;  %v4505_v46 = vadd.f32 %v6806_v24, %v11025_v61  ;;  %v4805_v23 = vrot.slane %v12390_v31, 2 }
 0x3d8   :  { %v6056_v42 = vsel %vm12389_vm13, %v6024_v11, %v5743_v14  ;;  %vm12391_vm1 = vmmov %vm12383_vm10  ;;  %v6118_v59 = vadd.f32 %v6117_v60, %v6116_v25  ;;  %v5482_v17 = vadd.f32 %v5447_v63, %v5226_v27  ;;  %v3937_v15 = vmin.f32 %v3902_v30, 1.0  ;;  %v12392_v14 = vld [vmem:[#allocation136_spill] sm:$0xff]  ;;  %v12395_v27 = vld [vmem:[#allocation55_spill] sm:$0xff] }
 0x3d9   :  { %v6057_v45 = vsel %vm12391_vm1, %v6025_v52, %v5749_v49  ;;  %v6119_v3 = vsel %vm4605_vm0, %v6056_v42, 0.0  ;;  %v4822_v51 = vadd.f32 %v4821_v16, %v4820_v8  ;;  %v4440_v5 = vmul.f32 0.6931472, %v12392_v14  ;;  %vm12401_vm10 = vmmov %vm12386_vm4  ;;  %v12402_v63 = vld [vmem:[#allocation119_spill] sm:$0xff] }
 0x3da   :  { %v4812_v26 = vrot.slane %v12393_v62, 2  ;;  %v5196_v50 = vmul.f32 %v11048_v0, %v12394_v35  ;;  %v6120_v13 = vadd.f32 %v6119_v3, %v6118_v59  ;;  %v5546_v37 = vsub.f32 %v5482_v17, %v11052_v38  ;;  %vm12403_vm5 = vmmov %vm12388_vm2  ;;  %v12404_v35 = vld [vmem:[#allocation142_spill] sm:$0xff] }
 0x3db   :  { %v5228_v28 = vmax.f32 %v10986_v53, 0.0  ;;  %v6121_v41 = vsel %vm4605_vm0, %v6057_v45, 0.0  ;;  %v4892_v48 = vmul.f32 %v11010_v6, %v12395_v27  ;;  %v6778_v33 = vpop.eup %6777  ;;  %v5130_v54 = vmul.f32 %v12364_v58, %v4505_v46  ;;  %vm12409_vm11 = vmmov %vm12386_vm4 }
 0x3dc   :  { %v5018_v36 = vmul.f32 %v12362_v12, %v11025_v61  ;;  %v3936_v19 = vmin.f32 %v3833_v43, 1.0  ;;  %v6122_v8 = vadd.f32 %v6121_v41, %v6120_v13  ;;  %v5578_v0 = vmul.f32 %v5546_v37, %v12396_v29  ;;  %vm12410_vm4 = vmmov %vm12391_vm1 }
 0x3dd   :  { %v5451_v10 = vmul.f32 0.6931472, %v6778_v33  ;;  %v5516_v38 = vmul.f32 %v3937_v15, %v10986_v53  ;;  %v4860_v57 = vmul.f32 5.0, %v4822_v51  ;;  %v4444_v7 = vmul.f32 0.6931472, %v12397_v20  ;;  %v6807_v53 = vld [vmem:[%s11183_s0 + $0x1c8] sm:$0xff]  ;;  %vm12411_vm12 = vmmov %vm12401_vm10 }
 0x3de   :  { %v11109_v55 = vadd.f32 %v4440_v5, %v12398_v22  ;;  %v5932_v6 = vrot.slane %v5196_v50, 2  ;;  %6123 = vadd.xlane.f32.xlu1 %v6122_v8  ;;  %v12400_v49 = vrot.slane %v12399_v39, 4  ;;  %v5750_v47 = vrot.slane %v5578_v0, 4  ;;  %v12406_v8 = vld [vmem:[#allocation56_spill] sm:$0xff]  ;;  %vm12412_vm13 = vmmov %vm12391_vm1 }
 0x3df   :  { %v5484_v32 = vadd.f32 %v5451_v10, %v5228_v28  ;;  %v5227_v40 = vmax.f32 %v11002_v4, 0.0  ;;  %v5836_v34 = vrot.slane %v4892_v48, 3  ;;  %v6780_v1 = vpop.eup %6779  ;;  %v5515_v25 = vmul.f32 %v3936_v19, %v11002_v4  ;;  %v12405_v48 = vld [vmem:[#allocation112_spill] sm:$0xff]  ;;  %vm12413_vm1 = vmmov %vm12388_vm2 }
 0x3e0   :  { %v4825_v44 = vadd.f32 %v12400_v49, %v12399_v39  ;;  %v4506_v21 = vadd.f32 %v6807_v53, %v11109_v55  ;;  %v3938_v2 = vmin.f32 %v3904_v9, 1.0  ;;  %v4806_v30 = vadd.f32 %v4805_v23, %v12390_v31  ;;  %v6808_v23 = vld [vmem:[%s11183_s0 + $0x1d8] sm:$0xff] }
 0x3e1   :  { %v5751_v18 = vadd.f32 %v5750_v47, %v5578_v0  ;;  %v5548_v11 = vsub.f32 %v5484_v32, %v5516_v38  ;;  %v5449_v60 = vmul.f32 0.6931472, %v6780_v1  ;;  %v5996_v16 = vsel %vm12401_vm10, %v4860_v57, %v5836_v34  ;;  %v12407_v47 = vld [vmem:[#allocation73_spill] sm:$0xff]  ;;  %vm12414_vm10 = vmmov %vm12410_vm4 }
 0x3e2   :  { %v4476_v52 = vadd.f32 %v4444_v7, %v12402_v63  ;;  %v4813_v42 = vadd.f32 %v4812_v26, %v12393_v62  ;;  %v4826_v24 = vrot.slane %v4825_v44, 2  ;;  %v11125_v46 = vsel %vm12403_vm5, %v5996_v16, %v5932_v6  ;;  %vm12415_vm5 = vmmov %vm12409_vm11 }
 0x3e3   :  { %v5752_v45 = vrot.slane %v5751_v18, 2  ;;  %v5580_v59 = vmul.f32 %v5548_v11, %v12395_v27  ;;  %v5483_v4 = vadd.f32 %v5449_v60, %v5227_v40  ;;  %v5229_v17 = vmax.f32 %v11031_v56, 0.0  ;;  %v6782_v31 = vpop.eup %6781  ;;  %v12408_v40 = vld [vmem:[#allocation143_spill] sm:$0xff] }
 0x3e4   :  { %v4508_v15 = vadd.f32 %v6808_v23, %v4476_v52  ;;  %v5131_v43 = vmul.f32 %v12364_v58, %v4506_v21  ;;  %v5019_v3 = vmul.f32 %v12362_v12, %v11109_v55  ;;  %v5517_v51 = vmul.f32 %v3938_v2, %v11031_v56 }
 0x3e5   :  { %v5762_v14 = vrot.slane %v5580_v59, 4  ;;  %v5547_v5 = vsub.f32 %v5483_v4, %v5515_v25  ;;  %v5453_v62 = vmul.f32 0.6931472, %v6782_v31  ;;  %v4807_v26 = vrot.slane %v4806_v30, 1 }
 0x3e6   :  { %v4923_v50 = vmul.f32 100.0, %v12404_v35  ;;  %v5162_v13 = vadd.f32 %v5130_v54, %v5018_v36  ;;  %v4814_v37 = vrot.slane %v4813_v42, 1  ;;  %v4827_v28 = vadd.f32 %v4826_v24, %v4825_v44 }
 0x3e7   :  { %v5753_v41 = vadd.f32 %v5752_v45, %v5751_v18  ;;  %v5763_v27 = vadd.f32 %v5762_v14, %v5580_v59  ;;  %v5579_v33 = vmul.f32 %v5547_v5, %v12405_v48  ;;  %v5485_v19 = vadd.f32 %v5453_v62, %v5229_v17 }
 0x3e8   :  { %v4922_v0 = vmul.f32 100.0, %v12406_v8  ;;  %v5133_v10 = vmul.f32 %v12364_v58, %v4508_v15  ;;  %v5021_v56 = vmul.f32 %v12362_v12, %v4476_v52  ;;  %v5163_v38 = vadd.f32 %v5131_v43, %v5019_v3 }
 0x3e9   :  { %v5764_v9 = vrot.slane %v5763_v27, 2  ;;  %v5756_v57 = vrot.slane %v5579_v33, 4  ;;  %v5549_v20 = vsub.f32 %v5485_v19, %v5517_v51  ;;  %v4808_v7 = vadd.f32 %v4807_v26, %v4806_v30 }
 0x3ea   :  { %v5194_v22 = vmul.f32 %v5162_v13, %v4922_v0  ;;  %v4815_v54 = vadd.f32 %v4814_v37, %v4813_v42  ;;  %v4828_v36 = vrot.slane %v4827_v28, 1  ;;  %v4890_v6 = vmul.f32 %v11025_v61, %v12396_v29  ;;  %v6070_v0 = vpop.xlane.xlu1 %6069 }
 0x3eb   :  { %v5754_v39 = vrot.slane %v5753_v41, 1  ;;  %v5765_v49 = vadd.f32 %v5764_v9, %v5763_v27  ;;  %v5757_v44 = vadd.f32 %v5756_v57, %v5579_v33  ;;  %v5581_v32 = vmul.f32 %v5549_v20, %v12407_v47  ;;  %v12417_v57 = vld [vmem:[#allocation19_spill] sm:$0xff] }
 0x3ec   :  { %v4925_v58 = vmul.f32 100.0, %v12408_v40  ;;  %v5165_v34 = vadd.f32 %v5133_v10, %v5021_v56  ;;  %v5195_v12 = vmul.f32 %v5163_v38, %v4923_v50  ;;  %v4891_v1 = vmul.f32 %v11109_v55, %v12405_v48  ;;  %v6079_v10 = vpop.xlane.xlu0 %6078 }
 0x3ed   :  { %v5766_v53 = vrot.slane %v5765_v49, 1  ;;  %v5758_v21 = vrot.slane %v5757_v44, 2  ;;  %v5768_v25 = vrot.slane %v5581_v32, 4  ;;  %v4858_v2 = vmul.f32 5.0, %v4808_v7 }
 0x3ee   :  { %v5930_v30 = vrot.slane %v5194_v22, 2  ;;  %v4829_v18 = vadd.f32 %v4828_v36, %v4827_v28  ;;  %v4859_v11 = vmul.f32 5.0, %v4815_v54  ;;  %v5834_v61 = vrot.slane %v4890_v6, 3  ;;  %v6088_v56 = vpop.xlane.xlu1 %6087 }
 0x3ef   :  { %v5755_v29 = vadd.f32 %v5754_v39, %v5753_v41  ;;  %v5759_v60 = vadd.f32 %v5758_v21, %v5757_v44  ;;  %v5769_v16 = vadd.f32 %v5768_v25, %v5581_v32  ;;  %v5767_v63 = vadd.f32 %v5766_v53, %v5765_v49 }
 0x3f0   :  { %v5197_v42 = vmul.f32 %v5165_v34, %v4925_v58  ;;  %v5931_v24 = vrot.slane %v5195_v12, 2  ;;  %v4893_v45 = vmul.f32 %v4476_v52, %v12407_v47  ;;  %v5835_v59 = vrot.slane %v4891_v1, 3 }
 0x3f1   :  { %v5760_v4 = vrot.slane %v5759_v60, 1  ;;  %v5770_v17 = vrot.slane %v5769_v16, 2  ;;  %v5994_v55 = vsel %vm12409_vm11, %v4858_v2, %v5834_v61  ;;  %v6060_v31 = vsel %vm12410_vm4, %v11125_v46, %v5767_v63  ;;  %vm12416_vm11 = vmmov %vm12413_vm1 }
 0x3f2   :  { %v5995_v23 = vsel %vm12411_vm12, %v4859_v11, %v5835_v59  ;;  %v6026_v15 = vsel %vm12388_vm2, %v5994_v55, %v5930_v30  ;;  %v4861_v51 = vmul.f32 5.0, %v4829_v18  ;;  %v5933_v5 = vrot.slane %v5197_v42, 2 }
 0x3f3   :  { %v5761_v43 = vadd.f32 %v5760_v4, %v5759_v60  ;;  %v5771_v3 = vadd.f32 %v5770_v17, %v5769_v16  ;;  %v6058_v14 = vsel %vm12412_vm13, %v6026_v15, %v5755_v29  ;;  %v6027_v52 = vsel %vm12413_vm1, %v5995_v23, %v5931_v24 }
 0x3f4   :  { %v5837_v26 = vrot.slane %v4893_v45, 3  ;;  %v6125_v50 = vsel %vm4605_vm0, %v6058_v14, 0.0  ;;  %v6128_v27 = vsel %vm4605_vm0, %v6060_v31, 0.0  ;;  %v6149_v20 = vrot.slane %v6079_v10, %v12417_v57 }
 0x3f5   :  { %v5772_v62 = vrot.slane %v5771_v3, 1  ;;  %v6059_v35 = vsel %vm12414_vm10, %v6027_v52, %v5761_v43  ;;  %v6153_v7 = vrot.slane %v6088_v56, %v12417_v57  ;;  %v6145_v54 = vrot.slane %v6070_v0, %v12417_v57 }
 0x3f6   :  { %v6126_v46 = vsel %vm4605_vm0, %v6059_v35, 0.0  ;;  %v5997_v37 = vsel %vm12415_vm5, %v4861_v51, %v5837_v26 }
 0x3f7   :  { %v5773_v13 = vadd.f32 %v5772_v62, %v5771_v3  ;;  %v6127_v28 = vadd.f32 %v6126_v46, %v6125_v50  ;;  %v6029_v41 = vsel %vm12416_vm11, %v5997_v37, %v5933_v5  ;;  %v6174_v49 = vsel %vm2243_vm8, %v6149_v20, %v6145_v54 }
 0x3f8   :  { %v6175_v47 = vsel %vm2245_vm9, %v6153_v7, %v6174_v49 }
 0x3f9   :  { %v6061_v48 = vsel %vm12410_vm4, %v6029_v41, %v5773_v13  ;;  %v6129_v33 = vadd.f32 %v6128_v27, %v6127_v28 }
 0x3fa   :  { %v6130_v19 = vsel %vm4605_vm0, %v6061_v48, 0.0  ;;  %vm6182_vm0 = vcmask 31744  }
 0x3fb   :  { %v6131_v8 = vadd.f32 %v6130_v19, %v6129_v33 }
 0x3fd   :  { %6132 = vadd.xlane.f32.xlu0 %v6131_v8 }
 0x400   :  { %v6097_v38 = vpop.xlane.xlu0 %6096 }
 0x401   :  { %v6157_v36 = vrot.slane %v6097_v38, %v12417_v57 }
 0x403   :  { %v6176_v40 = vsel %vm2247_vm15, %v6157_v36, %v6175_v47 }
 0x41a   :  { %v6106_v9 = vpop.xlane.xlu1 %6105 }
 0x41b   :  { %v6161_v39 = vrot.slane %v6106_v9, %v12417_v57 }
 0x41d   :  { %v6177_v58 = vsel %vm2249_vm6, %v6161_v39, %v6176_v40 }
 0x447   :  { %v6115_v22 = vpop.xlane.xlu0 %6114 }
 0x448   :  { %v6165_v44 = vrot.slane %v6115_v22, %v12417_v57 }
 0x44a   :  { %v6178_v12 = vsel %vm2251_vm7, %v6165_v44, %v6177_v58 }
 0x467   :  { %v6124_v6 = vpop.xlane.xlu1 %6123 }
 0x468   :  { %v6169_v32 = vrot.slane %v6124_v6, %v12417_v57 }
 0x46a   :  { %v6179_v53 = vsel %vm2253_vm14, %v6169_v32, %v6178_v12 }
 0x486   :  { %v6133_v34 = vpop.xlane.xlu0 %6132 }
 0x487   :  { %v6173_v1 = vrot.slane %v6133_v34, %v12417_v57 }
 0x489   :  { %v6180_v21 = vsel %vm2255_vm3, %v6173_v1, %v6179_v53 }
 0x48a   :  { %v6183_v25 = vsel %vm6182_vm0, %v6180_v21, 0.0 }
 0x48b   :  { %6184 = vst [vmem:[%s11184_s3] sm:$0xff] %v6183_v25 }

</bundles_post_ra>
